<compile_context>
chip_gen: v7x
topology: tpu7x:2x2x1
jax: 0.10.0
libtpu: 0.0.40
codegen_flags: <defaults>
</compile_context>

<pallas_src>
import functools

import jax
import jax.numpy as jnp
from jax.experimental import pallas as pl
from jax.experimental.pallas import tpu as pltpu

LANE = 128


def _round_up(n, m):
    return ((n + m - 1) // m) * m


def _pad_to(a, axis, size):
    pad = size - a.shape[axis]
    if pad <= 0:
        return a
    widths = [(0, 0)] * a.ndim
    widths[axis] = (0, pad)
    return jnp.pad(a, widths)


# ----------------------------- Pallas kernels --------------------------------

def _conv_sigmoid_pool_kernel(p_ref, w_ref, b_ref, o_ref):
    """One image: conv (4 pool-phase matmuls) + 2x2 maxpool + sigmoid, fused.

    p_ref : (4, P, Kp) bf16   im2col patches, one set per 2x2-pool phase
    w_ref : (Kp, 128)  bf16   conv weights, (kh,kw,cin)-major, Cout zero-padded
    b_ref : (1, 128)   f32
    o_ref : (P, 128)   f32    pooled + activated output, channels in lanes
    """
    w = w_ref[...]
    z = jnp.dot(p_ref[0], w, preferred_element_type=jnp.float32)
    for ph in range(1, 4):
        z = jnp.maximum(z, jnp.dot(p_ref[ph], w,
                                   preferred_element_type=jnp.float32))
    z = z + b_ref[...]
    # maxpool(sigmoid(x)) == sigmoid(maxpool(x)) -> one sigmoid on pooled values.
    o_ref[...] = pl.reciprocal(1.0 + jnp.exp(-z), approx=True).astype(o_ref.dtype)


def _conv_kernel(p_ref, w_ref, b_ref, o_ref):
    """One image: plain conv matmul + bias (conv3, no activation)."""
    z = jnp.dot(p_ref[...], w_ref[...], preferred_element_type=jnp.float32)
    o_ref[...] = (z + b_ref[...]).astype(o_ref.dtype)


def _fc_head_kernel(x_ref, w4_ref, b4_ref, w5_ref, b5_ref, o_ref, *, num_classes):
    """Fused fc1 -> sigmoid -> fc2 -> softmax over the real `num_classes` cols."""
    h = jnp.dot(x_ref[...], w4_ref[...], preferred_element_type=jnp.float32)
    h = pl.reciprocal(1.0 + jnp.exp(-(h + b4_ref[...])), approx=True)
    logits = jnp.dot(h.astype(jnp.bfloat16), w5_ref[...],
                     preferred_element_type=jnp.float32) + b5_ref[...]
    col = jax.lax.broadcasted_iota(jnp.int32, logits.shape, 1)
    logits = jnp.where(col < num_classes, logits, jnp.float32(-1e30))
    m = jnp.max(logits, axis=-1, keepdims=True)
    e = jnp.exp(logits - m)
    o_ref[...] = (e / jnp.sum(e, axis=-1, keepdims=True)).astype(o_ref.dtype)


# ----------------------------- pallas_call wrappers ---------------------------

def conv_sigmoid_pool(patches, w, b):
    """patches:(N,4,P,Kp) bf16, w:(Kp,128) bf16, b:(1,128) f32 -> (N,P,128) f32."""
    N, _, P, Kp = patches.shape
    return pl.pallas_call(
        _conv_sigmoid_pool_kernel,
        out_shape=jax.ShapeDtypeStruct((N, P, LANE), jnp.float32),
        grid=(N,),
        in_specs=[
            pl.BlockSpec((None, 4, P, Kp), lambda n: (n, 0, 0, 0)),
            pl.BlockSpec((Kp, LANE), lambda n: (0, 0)),
            pl.BlockSpec((1, LANE), lambda n: (0, 0)),
        ],
        out_specs=pl.BlockSpec((None, P, LANE), lambda n: (n, 0, 0)),
        compiler_params=pltpu.CompilerParams(dimension_semantics=("parallel",)),
    )(patches, w, b)


def conv_bias(patches, w, b):
    """patches:(N,P,Kp) bf16, w:(Kp,128) bf16, b:(1,128) f32 -> (N,P,128) f32."""
    N, P, Kp = patches.shape
    return pl.pallas_call(
        _conv_kernel,
        out_shape=jax.ShapeDtypeStruct((N, P, LANE), jnp.float32),
        grid=(N,),
        in_specs=[
            pl.BlockSpec((None, P, Kp), lambda n: (n, 0, 0)),
            pl.BlockSpec((Kp, LANE), lambda n: (0, 0)),
            pl.BlockSpec((1, LANE), lambda n: (0, 0)),
        ],
        out_specs=pl.BlockSpec((None, P, LANE), lambda n: (n, 0, 0)),
        compiler_params=pltpu.CompilerParams(dimension_semantics=("parallel",)),
    )(patches, w, b)


def fc_head(x, w4, b4, w5, b5, num_classes):
    """x:(M,K) bf16 (M mult of 8, K mult of 128) -> (M,128) f32 softmax probs."""
    M, K = x.shape
    return pl.pallas_call(
        functools.partial(_fc_head_kernel, num_classes=num_classes),
        out_shape=jax.ShapeDtypeStruct((M, LANE), jnp.float32),
        grid=(1,),
        in_specs=[
            pl.BlockSpec((M, K), lambda i: (0, 0)),
            pl.BlockSpec((K, LANE), lambda i: (0, 0)),
            pl.BlockSpec((1, LANE), lambda i: (0, 0)),
            pl.BlockSpec((LANE, LANE), lambda i: (0, 0)),
            pl.BlockSpec((1, LANE), lambda i: (0, 0)),
        ],
        out_specs=pl.BlockSpec((M, LANE), lambda i: (0, 0)),
        compiler_params=pltpu.CompilerParams(dimension_semantics=("arbitrary",)),
    )(x, w4, b4, w5, b5)


# ------------------------- im2col layout glue (XLA) ---------------------------

def _im2col(x, KH, KW):
    """x:(N,H,W,C) -> (N, OH*OW, KH*KW*C) with k ordered (kh, kw, c)."""
    N, H, W, C = x.shape
    OH, OW = H - KH + 1, W - KW + 1
    cols = [x[:, kh:kh + OH, kw:kw + OW, :] for kh in range(KH) for kw in range(KW)]
    p = jnp.stack(cols, axis=3)                       # (N, OH, OW, KH*KW, C)
    return p.reshape(N, OH * OW, KH * KW * C)


def _im2col_pool_phases(x, KH, KW):
    """x:(N,H,W,C) -> (N, 4, PH*PW, KH*KW*C); one patch set per 2x2-pool phase."""
    N, H, W, C = x.shape
    OH, OW = H - KH + 1, W - KW + 1
    PH, PW = OH // 2, OW // 2
    phases = []
    for dy in range(2):
        for dx in range(2):
            cols = [x[:, dy + kh:dy + kh + 2 * PH - 1:2,
                        dx + kw:dx + kw + 2 * PW - 1:2, :]
                    for kh in range(KH) for kw in range(KW)]
            p = jnp.stack(cols, axis=3)               # (N, PH, PW, KH*KW, C)
            phases.append(p.reshape(N, PH * PW, KH * KW * C))
    return jnp.stack(phases, axis=1)                  # (N, 4, PH*PW, K)


# ----------------------------- parameter prep ---------------------------------

def prepare_params(p):
    """One-time layout prep: matmul layouts, K/N padded to 128, bf16 weights."""
    def conv_w(w):
        Cout, Cin, KH, KW = w.shape
        k = KH * KW * Cin
        wm = w.transpose(2, 3, 1, 0).reshape(k, Cout)        # rows (kh,kw,cin)
        wm = _pad_to(_pad_to(wm, 0, _round_up(k, LANE)), 1, LANE)
        return wm.astype(jnp.bfloat16)

    def bias(b):
        return _pad_to(b.astype(jnp.float32), 0, LANE).reshape(1, LANE)

    # fc1 weight: permute columns from NCHW-flatten (c,h,w) to NHWC-flatten (h,w,c)
    w4 = p["w4"].reshape(84, 120, 9, 9).transpose(0, 2, 3, 1).reshape(84, 9720).T
    w4 = _pad_to(_pad_to(w4, 0, _round_up(9720, LANE)), 1, LANE).astype(jnp.bfloat16)
    w5 = _pad_to(_pad_to(p["w5"].T, 0, LANE), 1, LANE).astype(jnp.bfloat16)
    return {
        "w1": conv_w(p["w1"]), "b1": bias(p["b1"]),
        "w2": conv_w(p["w2"]), "b2": bias(p["b2"]),
        "w3": conv_w(p["w3"]), "b3": bias(p["b3"]),
        "w4": w4, "b4": bias(p["b4"]),
        "w5": w5, "b5": bias(p["b5"]),
    }


# ----------------------------- LeNet5 forward ---------------------------------

def lenet5_forward(prep, x):
    """x: (N, 3, 64, 64) NCHW float32 (PyTorch layout) -> (N, 50) softmax probs."""
    N = x.shape[0]
    x = jnp.transpose(x, (0, 2, 3, 1))                         # NHWC end-to-end

    # conv1(3->6,5x5) + Sigmoid + MaxPool2x2   (fused in one kernel)
    pt = _im2col_pool_phases(x, 5, 5)                          # (N, 4, 900, 75)
    pt = _pad_to(pt, 3, _round_up(pt.shape[3], LANE)).astype(jnp.bfloat16)
    y = conv_sigmoid_pool(pt, prep["w1"], prep["b1"])          # (N, 900, 128)
    x = y[:, :, :6].reshape(N, 30, 30, 6)

    # conv2(6->16,5x5) + Sigmoid + MaxPool2x2  (fused in one kernel)
    pt = _im2col_pool_phases(x, 5, 5)                          # (N, 4, 169, 150)
    pt = _pad_to(pt, 3, _round_up(pt.shape[3], LANE)).astype(jnp.bfloat16)
    y = conv_sigmoid_pool(pt, prep["w2"], prep["b2"])          # (N, 169, 128)
    x = y[:, :, :16].reshape(N, 13, 13, 16)

    # conv3(16->120,5x5), no activation
    pt = _im2col(x, 5, 5)                                      # (N, 81, 400)
    pt = _pad_to(pt, 2, _round_up(pt.shape[2], LANE)).astype(jnp.bfloat16)
    y = conv_bias(pt, prep["w3"], prep["b3"])                  # (N, 81, 128)

    # flatten in NHWC order (fc1 weight columns were permuted to match),
    # then fused fc1 -> sigmoid -> fc2 -> masked softmax
    feat = y[:, :, :120].reshape(N, 120 * 9 * 9)
    feat = _pad_to(feat, 1, _round_up(feat.shape[1], LANE))
    feat = _pad_to(feat, 0, _round_up(N, 8)).astype(jnp.bfloat16)
    out = fc_head(feat, prep["w4"], prep["b4"], prep["w5"], prep["b5"],
                  num_classes=50)
    return out[:N, :50]


def init_params(key):
    """Deterministic init (PyTorch-like uniform(-1/sqrt(fan_in), +1/sqrt(fan_in)))."""
    def uni(k, shape, fan_in):
        bound = 1.0 / jnp.sqrt(float(fan_in))
        return jax.random.uniform(k, shape, jnp.float32, -bound, bound)

    ks = jax.random.split(key, 10)
    return {
        "w1": uni(ks[0], (6, 3, 5, 5), 3 * 25),     "b1": uni(ks[1], (6,), 3 * 25),
        "w2": uni(ks[2], (16, 6, 5, 5), 6 * 25),    "b2": uni(ks[3], (16,), 6 * 25),
        "w3": uni(ks[4], (120, 16, 5, 5), 16 * 25), "b3": uni(ks[5], (120,), 16 * 25),
        "w4": uni(ks[6], (84, 120 * 9 * 9), 120 * 9 * 9),
        "b4": uni(ks[7], (84,), 120 * 9 * 9),
        "w5": uni(ks[8], (50, 84), 84),             "b5": uni(ks[9], (50,), 84),
    }


if __name__ == "__main__":
    key = jax.random.PRNGKey(0)
    pkey, xkey = jax.random.split(key)
    params = init_params(pkey)
    prep = prepare_params(params)
    # Input must be 64x64 so the conv/pool stack yields the 120 x 9 x 9 features
    # expected by the fc head (view(-1, 120*9*9)).
    x = jax.random.normal(xkey, (2, 3, 64, 64), dtype=jnp.float32)

    out = jax.block_until_ready(jax.jit(lenet5_forward)(prep, x))

    assert out.shape == (2, 50), out.shape
    row_sums = jnp.sum(out, axis=1)
    assert bool(jnp.allclose(row_sums, 1.0, atol=1e-4)), row_sums
    print("KERNEL_OK")
</pallas_src>

<mosaic_0001>
module attributes {stable_mosaic.version = 11 : i64} {
  func.func @_conv_sigmoid_pool_kernel(%arg0: i32, %arg1: memref<1x4x900x128xbf16, #tpu.memory_space<vmem>>, %arg2: memref<128x128xbf16, #tpu.memory_space<vmem>>, %arg3: memref<1x128xf32, #tpu.memory_space<vmem>>, %arg4: memref<1x900x128xf32, #tpu.memory_space<vmem>>) attributes {dimension_semantics = [#tpu.dimension_semantics<parallel>], iteration_bounds = array<i64: 2>, scalar_prefetch = 0 : i64, scratch_operands = 0 : i64, tpu.core_type = #tpu.core_type<tc>, window_params = [{transform_indices = @transform_0, window_bounds = array<i64: 1, 4, 900, 128>}, {pipeline_mode = #tpu.pipeline_mode<synchronous>, transform_indices = @transform_1, window_bounds = array<i64: 128, 128>}, {pipeline_mode = #tpu.pipeline_mode<synchronous>, transform_indices = @transform_2, window_bounds = array<i64: 1, 128>}, {transform_indices = @transform_3, window_bounds = array<i64: 1, 900, 128>}]} {
    %c0 = arith.constant 0 : index
    %c0_0 = arith.constant 0 : index
    %0 = vector.load %arg2[%c0, %c0_0] : memref<128x128xbf16, #tpu.memory_space<vmem>>, vector<128x128xbf16>
    %c0_1 = arith.constant 0 : index
    %c0_2 = arith.constant 0 : index
    %c0_3 = arith.constant 0 : index
    %c0_4 = arith.constant 0 : index
    %1 = vector.load %arg1[%c0_1, %c0_2, %c0_3, %c0_4] : memref<1x4x900x128xbf16, #tpu.memory_space<vmem>>, vector<1x1x900x128xbf16>
    %2 = vector.shape_cast %1 : vector<1x1x900x128xbf16> to vector<900x128xbf16>
    %cst = arith.constant dense<0.000000e+00> : vector<900x128xf32>
    %3 = tpu.matmul %2, %0, %cst {dimension_numbers = #tpu.dot_dimension_numbers<[1], [0], [0], [1], [0, 0, 1, 1], [], []>} : vector<900x128xbf16>, vector<128x128xbf16>, vector<900x128xf32> -> vector<900x128xf32>
    %c0_5 = arith.constant 0 : index
    %c1 = arith.constant 1 : index
    %c0_6 = arith.constant 0 : index
    %c0_7 = arith.constant 0 : index
    %4 = vector.load %arg1[%c0_5, %c1, %c0_6, %c0_7] : memref<1x4x900x128xbf16, #tpu.memory_space<vmem>>, vector<1x1x900x128xbf16>
    %5 = vector.shape_cast %4 : vector<1x1x900x128xbf16> to vector<900x128xbf16>
    %cst_8 = arith.constant dense<0.000000e+00> : vector<900x128xf32>
    %6 = tpu.matmul %5, %0, %cst_8 {dimension_numbers = #tpu.dot_dimension_numbers<[1], [0], [0], [1], [0, 0, 1, 1], [], []>} : vector<900x128xbf16>, vector<128x128xbf16>, vector<900x128xf32> -> vector<900x128xf32>
    %7 = arith.maximumf %3, %6 : vector<900x128xf32>
    %c0_9 = arith.constant 0 : index
    %c2 = arith.constant 2 : index
    %c0_10 = arith.constant 0 : index
    %c0_11 = arith.constant 0 : index
    %8 = vector.load %arg1[%c0_9, %c2, %c0_10, %c0_11] : memref<1x4x900x128xbf16, #tpu.memory_space<vmem>>, vector<1x1x900x128xbf16>
    %9 = vector.shape_cast %8 : vector<1x1x900x128xbf16> to vector<900x128xbf16>
    %cst_12 = arith.constant dense<0.000000e+00> : vector<900x128xf32>
    %10 = tpu.matmul %9, %0, %cst_12 {dimension_numbers = #tpu.dot_dimension_numbers<[1], [0], [0], [1], [0, 0, 1, 1], [], []>} : vector<900x128xbf16>, vector<128x128xbf16>, vector<900x128xf32> -> vector<900x128xf32>
    %11 = arith.maximumf %7, %10 : vector<900x128xf32>
    %c0_13 = arith.constant 0 : index
    %c3 = arith.constant 3 : index
    %c0_14 = arith.constant 0 : index
    %c0_15 = arith.constant 0 : index
    %12 = vector.load %arg1[%c0_13, %c3, %c0_14, %c0_15] : memref<1x4x900x128xbf16, #tpu.memory_space<vmem>>, vector<1x1x900x128xbf16>
    %13 = vector.shape_cast %12 : vector<1x1x900x128xbf16> to vector<900x128xbf16>
    %cst_16 = arith.constant dense<0.000000e+00> : vector<900x128xf32>
    %14 = tpu.matmul %13, %0, %cst_16 {dimension_numbers = #tpu.dot_dimension_numbers<[1], [0], [0], [1], [0, 0, 1, 1], [], []>} : vector<900x128xbf16>, vector<128x128xbf16>, vector<900x128xf32> -> vector<900x128xf32>
    %15 = arith.maximumf %11, %14 : vector<900x128xf32>
    %c0_17 = arith.constant 0 : index
    %c0_18 = arith.constant 0 : index
    %16 = vector.load %arg3[%c0_17, %c0_18] : memref<1x128xf32, #tpu.memory_space<vmem>>, vector<1x128xf32>
    %17 = vector.broadcast %16 : vector<1x128xf32> to vector<900x128xf32>
    %18 = arith.addf %15, %17 : vector<900x128xf32>
    %cst_19 = arith.constant 0.000000e+00 : f32
    %19 = vector.broadcast %cst_19 : f32 to vector<900x128xf32>
    %20 = arith.subf %19, %18 : vector<900x128xf32>
    %21 = math.exp %20 : vector<900x128xf32>
    %cst_20 = arith.constant 1.000000e+00 : f32
    %22 = vector.broadcast %cst_20 : f32 to vector<900x128xf32>
    %23 = arith.addf %22, %21 : vector<900x128xf32>
    %24 = tpu.reciprocal %23 {approx = true} : vector<900x128xf32> -> vector<900x128xf32>
    %c0_21 = arith.constant 0 : index
    %c0_22 = arith.constant 0 : index
    %c0_23 = arith.constant 0 : index
    %25 = vector.load %arg4[%c0_21, %c0_22, %c0_23] : memref<1x900x128xf32, #tpu.memory_space<vmem>>, vector<1x900x128xf32>
    %26 = vector.shape_cast %25 : vector<1x900x128xf32> to vector<900x128xf32>
    %27 = vector.shape_cast %24 : vector<900x128xf32> to vector<1x900x128xf32>
    tpu.vector_store %arg4[%c0_21, %c0_22, %c0_23], %27 {strides = array<i32>} : memref<1x900x128xf32, #tpu.memory_space<vmem>>, vector<1x900x128xf32>,
    return
  }
  func.func @transform_0(%arg0: i32) -> (i32, i32, i32, i32) {
    %c0_i32 = arith.constant 0 : i32
    %c0_i32_0 = arith.constant 0 : i32
    %c0_i32_1 = arith.constant 0 : i32
    %c0_i32_2 = arith.constant 0 : i32
    return %arg0, %c0_i32, %c0_i32_0, %c0_i32_1 : i32, i32, i32, i32
  }
  func.func @transform_1(%arg0: i32) -> (i32, i32) {
    %c0_i32 = arith.constant 0 : i32
    %c0_i32_0 = arith.constant 0 : i32
    %c0_i32_1 = arith.constant 0 : i32
    return %c0_i32, %c0_i32_0 : i32, i32
  }
  func.func @transform_2(%arg0: i32) -> (i32, i32) {
    %c0_i32 = arith.constant 0 : i32
    %c0_i32_0 = arith.constant 0 : i32
    %c0_i32_1 = arith.constant 0 : i32
    return %c0_i32, %c0_i32_0 : i32, i32
  }
  func.func @transform_3(%arg0: i32) -> (i32, i32, i32) {
    %c0_i32 = arith.constant 0 : i32
    %c0_i32_0 = arith.constant 0 : i32
    %c0_i32_1 = arith.constant 0 : i32
    return %arg0, %c0_i32, %c0_i32_0 : i32, i32, i32
  }
}

module attributes {stable_mosaic.version = 11 : i64} {
  func.func @_conv_sigmoid_pool_kernel(%arg0: i32, %arg1: memref<1x4x169x256xbf16, #tpu.memory_space<vmem>>, %arg2: memref<256x128xbf16, #tpu.memory_space<vmem>>, %arg3: memref<1x128xf32, #tpu.memory_space<vmem>>, %arg4: memref<1x169x128xf32, #tpu.memory_space<vmem>>) attributes {dimension_semantics = [#tpu.dimension_semantics<parallel>], iteration_bounds = array<i64: 2>, scalar_prefetch = 0 : i64, scratch_operands = 0 : i64, tpu.core_type = #tpu.core_type<tc>, window_params = [{transform_indices = @transform_0, window_bounds = array<i64: 1, 4, 169, 256>}, {pipeline_mode = #tpu.pipeline_mode<synchronous>, transform_indices = @transform_1, window_bounds = array<i64: 256, 128>}, {pipeline_mode = #tpu.pipeline_mode<synchronous>, transform_indices = @transform_2, window_bounds = array<i64: 1, 128>}, {transform_indices = @transform_3, window_bounds = array<i64: 1, 169, 128>}]} {
    %c0 = arith.constant 0 : index
    %c0_0 = arith.constant 0 : index
    %0 = vector.load %arg2[%c0, %c0_0] : memref<256x128xbf16, #tpu.memory_space<vmem>>, vector<256x128xbf16>
    %c0_1 = arith.constant 0 : index
    %c0_2 = arith.constant 0 : index
    %c0_3 = arith.constant 0 : index
    %c0_4 = arith.constant 0 : index
    %1 = vector.load %arg1[%c0_1, %c0_2, %c0_3, %c0_4] : memref<1x4x169x256xbf16, #tpu.memory_space<vmem>>, vector<1x1x169x256xbf16>
    %2 = vector.shape_cast %1 : vector<1x1x169x256xbf16> to vector<169x256xbf16>
    %cst = arith.constant dense<0.000000e+00> : vector<169x128xf32>
    %3 = tpu.matmul %2, %0, %cst {dimension_numbers = #tpu.dot_dimension_numbers<[1], [0], [0], [1], [0, 0, 1, 1], [], []>} : vector<169x256xbf16>, vector<256x128xbf16>, vector<169x128xf32> -> vector<169x128xf32>
    %c0_5 = arith.constant 0 : index
    %c1 = arith.constant 1 : index
    %c0_6 = arith.constant 0 : index
    %c0_7 = arith.constant 0 : index
    %4 = vector.load %arg1[%c0_5, %c1, %c0_6, %c0_7] : memref<1x4x169x256xbf16, #tpu.memory_space<vmem>>, vector<1x1x169x256xbf16>
    %5 = vector.shape_cast %4 : vector<1x1x169x256xbf16> to vector<169x256xbf16>
    %cst_8 = arith.constant dense<0.000000e+00> : vector<169x128xf32>
    %6 = tpu.matmul %5, %0, %cst_8 {dimension_numbers = #tpu.dot_dimension_numbers<[1], [0], [0], [1], [0, 0, 1, 1], [], []>} : vector<169x256xbf16>, vector<256x128xbf16>, vector<169x128xf32> -> vector<169x128xf32>
    %7 = arith.maximumf %3, %6 : vector<169x128xf32>
    %c0_9 = arith.constant 0 : index
    %c2 = arith.constant 2 : index
    %c0_10 = arith.constant 0 : index
    %c0_11 = arith.constant 0 : index
    %8 = vector.load %arg1[%c0_9, %c2, %c0_10, %c0_11] : memref<1x4x169x256xbf16, #tpu.memory_space<vmem>>, vector<1x1x169x256xbf16>
    %9 = vector.shape_cast %8 : vector<1x1x169x256xbf16> to vector<169x256xbf16>
    %cst_12 = arith.constant dense<0.000000e+00> : vector<169x128xf32>
    %10 = tpu.matmul %9, %0, %cst_12 {dimension_numbers = #tpu.dot_dimension_numbers<[1], [0], [0], [1], [0, 0, 1, 1], [], []>} : vector<169x256xbf16>, vector<256x128xbf16>, vector<169x128xf32> -> vector<169x128xf32>
    %11 = arith.maximumf %7, %10 : vector<169x128xf32>
    %c0_13 = arith.constant 0 : index
    %c3 = arith.constant 3 : index
    %c0_14 = arith.constant 0 : index
    %c0_15 = arith.constant 0 : index
    %12 = vector.load %arg1[%c0_13, %c3, %c0_14, %c0_15] : memref<1x4x169x256xbf16, #tpu.memory_space<vmem>>, vector<1x1x169x256xbf16>
    %13 = vector.shape_cast %12 : vector<1x1x169x256xbf16> to vector<169x256xbf16>
    %cst_16 = arith.constant dense<0.000000e+00> : vector<169x128xf32>
    %14 = tpu.matmul %13, %0, %cst_16 {dimension_numbers = #tpu.dot_dimension_numbers<[1], [0], [0], [1], [0, 0, 1, 1], [], []>} : vector<169x256xbf16>, vector<256x128xbf16>, vector<169x128xf32> -> vector<169x128xf32>
    %15 = arith.maximumf %11, %14 : vector<169x128xf32>
    %c0_17 = arith.constant 0 : index
    %c0_18 = arith.constant 0 : index
    %16 = vector.load %arg3[%c0_17, %c0_18] : memref<1x128xf32, #tpu.memory_space<vmem>>, vector<1x128xf32>
    %17 = vector.broadcast %16 : vector<1x128xf32> to vector<169x128xf32>
    %18 = arith.addf %15, %17 : vector<169x128xf32>
    %cst_19 = arith.constant 0.000000e+00 : f32
    %19 = vector.broadcast %cst_19 : f32 to vector<169x128xf32>
    %20 = arith.subf %19, %18 : vector<169x128xf32>
    %21 = math.exp %20 : vector<169x128xf32>
    %cst_20 = arith.constant 1.000000e+00 : f32
    %22 = vector.broadcast %cst_20 : f32 to vector<169x128xf32>
    %23 = arith.addf %22, %21 : vector<169x128xf32>
    %24 = tpu.reciprocal %23 {approx = true} : vector<169x128xf32> -> vector<169x128xf32>
    %c0_21 = arith.constant 0 : index
    %c0_22 = arith.constant 0 : index
    %c0_23 = arith.constant 0 : index
    %25 = vector.load %arg4[%c0_21, %c0_22, %c0_23] : memref<1x169x128xf32, #tpu.memory_space<vmem>>, vector<1x169x128xf32>
    %26 = vector.shape_cast %25 : vector<1x169x128xf32> to vector<169x128xf32>
    %27 = vector.shape_cast %24 : vector<169x128xf32> to vector<1x169x128xf32>
    tpu.vector_store %arg4[%c0_21, %c0_22, %c0_23], %27 {strides = array<i32>} : memref<1x169x128xf32, #tpu.memory_space<vmem>>, vector<1x169x128xf32>,
    return
  }
  func.func @transform_0(%arg0: i32) -> (i32, i32, i32, i32) {
    %c0_i32 = arith.constant 0 : i32
    %c0_i32_0 = arith.constant 0 : i32
    %c0_i32_1 = arith.constant 0 : i32
    %c0_i32_2 = arith.constant 0 : i32
    return %arg0, %c0_i32, %c0_i32_0, %c0_i32_1 : i32, i32, i32, i32
  }
  func.func @transform_1(%arg0: i32) -> (i32, i32) {
    %c0_i32 = arith.constant 0 : i32
    %c0_i32_0 = arith.constant 0 : i32
    %c0_i32_1 = arith.constant 0 : i32
    return %c0_i32, %c0_i32_0 : i32, i32
  }
  func.func @transform_2(%arg0: i32) -> (i32, i32) {
    %c0_i32 = arith.constant 0 : i32
    %c0_i32_0 = arith.constant 0 : i32
    %c0_i32_1 = arith.constant 0 : i32
    return %c0_i32, %c0_i32_0 : i32, i32
  }
  func.func @transform_3(%arg0: i32) -> (i32, i32, i32) {
    %c0_i32 = arith.constant 0 : i32
    %c0_i32_0 = arith.constant 0 : i32
    %c0_i32_1 = arith.constant 0 : i32
    return %arg0, %c0_i32, %c0_i32_0 : i32, i32, i32
  }
}

module attributes {stable_mosaic.version = 11 : i64} {
  func.func @_conv_kernel(%arg0: i32, %arg1: memref<1x81x512xbf16, #tpu.memory_space<vmem>>, %arg2: memref<512x128xbf16, #tpu.memory_space<vmem>>, %arg3: memref<1x128xf32, #tpu.memory_space<vmem>>, %arg4: memref<1x81x128xf32, #tpu.memory_space<vmem>>) attributes {dimension_semantics = [#tpu.dimension_semantics<parallel>], iteration_bounds = array<i64: 2>, scalar_prefetch = 0 : i64, scratch_operands = 0 : i64, tpu.core_type = #tpu.core_type<tc>, window_params = [{transform_indices = @transform_0, window_bounds = array<i64: 1, 81, 512>}, {pipeline_mode = #tpu.pipeline_mode<synchronous>, transform_indices = @transform_1, window_bounds = array<i64: 512, 128>}, {pipeline_mode = #tpu.pipeline_mode<synchronous>, transform_indices = @transform_2, window_bounds = array<i64: 1, 128>}, {transform_indices = @transform_3, window_bounds = array<i64: 1, 81, 128>}]} {
    %c0 = arith.constant 0 : index
    %c0_0 = arith.constant 0 : index
    %c0_1 = arith.constant 0 : index
    %0 = vector.load %arg1[%c0, %c0_0, %c0_1] : memref<1x81x512xbf16, #tpu.memory_space<vmem>>, vector<1x81x512xbf16>
    %1 = vector.shape_cast %0 : vector<1x81x512xbf16> to vector<81x512xbf16>
    %c0_2 = arith.constant 0 : index
    %c0_3 = arith.constant 0 : index
    %2 = vector.load %arg2[%c0_2, %c0_3] : memref<512x128xbf16, #tpu.memory_space<vmem>>, vector<512x128xbf16>
    %cst = arith.constant dense<0.000000e+00> : vector<81x128xf32>
    %3 = tpu.matmul %1, %2, %cst {dimension_numbers = #tpu.dot_dimension_numbers<[1], [0], [0], [1], [0, 0, 1, 1], [], []>} : vector<81x512xbf16>, vector<512x128xbf16>, vector<81x128xf32> -> vector<81x128xf32>
    %c0_4 = arith.constant 0 : index
    %c0_5 = arith.constant 0 : index
    %4 = vector.load %arg3[%c0_4, %c0_5] : memref<1x128xf32, #tpu.memory_space<vmem>>, vector<1x128xf32>
    %5 = vector.broadcast %4 : vector<1x128xf32> to vector<81x128xf32>
    %6 = arith.addf %3, %5 : vector<81x128xf32>
    %c0_6 = arith.constant 0 : index
    %c0_7 = arith.constant 0 : index
    %c0_8 = arith.constant 0 : index
    %7 = vector.load %arg4[%c0_6, %c0_7, %c0_8] : memref<1x81x128xf32, #tpu.memory_space<vmem>>, vector<1x81x128xf32>
    %8 = vector.shape_cast %7 : vector<1x81x128xf32> to vector<81x128xf32>
    %9 = vector.shape_cast %6 : vector<81x128xf32> to vector<1x81x128xf32>
    tpu.vector_store %arg4[%c0_6, %c0_7, %c0_8], %9 {strides = array<i32>} : memref<1x81x128xf32, #tpu.memory_space<vmem>>, vector<1x81x128xf32>,
    return
  }
  func.func @transform_0(%arg0: i32) -> (i32, i32, i32) {
    %c0_i32 = arith.constant 0 : i32
    %c0_i32_0 = arith.constant 0 : i32
    %c0_i32_1 = arith.constant 0 : i32
    return %arg0, %c0_i32, %c0_i32_0 : i32, i32, i32
  }
  func.func @transform_1(%arg0: i32) -> (i32, i32) {
    %c0_i32 = arith.constant 0 : i32
    %c0_i32_0 = arith.constant 0 : i32
    %c0_i32_1 = arith.constant 0 : i32
    return %c0_i32, %c0_i32_0 : i32, i32
  }
  func.func @transform_2(%arg0: i32) -> (i32, i32) {
    %c0_i32 = arith.constant 0 : i32
    %c0_i32_0 = arith.constant 0 : i32
    %c0_i32_1 = arith.constant 0 : i32
    return %c0_i32, %c0_i32_0 : i32, i32
  }
  func.func @transform_3(%arg0: i32) -> (i32, i32, i32) {
    %c0_i32 = arith.constant 0 : i32
    %c0_i32_0 = arith.constant 0 : i32
    %c0_i32_1 = arith.constant 0 : i32
    return %arg0, %c0_i32, %c0_i32_0 : i32, i32, i32
  }
}

module attributes {stable_mosaic.version = 11 : i64} {
  func.func @_fc_head_kernel(%arg0: i32, %arg1: memref<8x9728xbf16, #tpu.memory_space<vmem>>, %arg2: memref<9728x128xbf16, #tpu.memory_space<vmem>>, %arg3: memref<1x128xf32, #tpu.memory_space<vmem>>, %arg4: memref<128x128xbf16, #tpu.memory_space<vmem>>, %arg5: memref<1x128xf32, #tpu.memory_space<vmem>>, %arg6: memref<8x128xf32, #tpu.memory_space<vmem>>) attributes {dimension_semantics = [#tpu.dimension_semantics<arbitrary>], iteration_bounds = array<i64: 1>, scalar_prefetch = 0 : i64, scratch_operands = 0 : i64, tpu.core_type = #tpu.core_type<tc>, window_params = [{pipeline_mode = #tpu.pipeline_mode<synchronous>, transform_indices = @transform_0, window_bounds = array<i64: 8, 9728>}, {pipeline_mode = #tpu.pipeline_mode<synchronous>, transform_indices = @transform_1, window_bounds = array<i64: 9728, 128>}, {pipeline_mode = #tpu.pipeline_mode<synchronous>, transform_indices = @transform_2, window_bounds = array<i64: 1, 128>}, {pipeline_mode = #tpu.pipeline_mode<synchronous>, transform_indices = @transform_3, window_bounds = array<i64: 128, 128>}, {pipeline_mode = #tpu.pipeline_mode<synchronous>, transform_indices = @transform_4, window_bounds = array<i64: 1, 128>}, {pipeline_mode = #tpu.pipeline_mode<synchronous>, transform_indices = @transform_5, window_bounds = array<i64: 8, 128>}]} {
    %c0 = arith.constant 0 : index
    %c0_0 = arith.constant 0 : index
    %0 = vector.load %arg1[%c0, %c0_0] : memref<8x9728xbf16, #tpu.memory_space<vmem>>, vector<8x9728xbf16>
    %c0_1 = arith.constant 0 : index
    %c0_2 = arith.constant 0 : index
    %1 = vector.load %arg2[%c0_1, %c0_2] : memref<9728x128xbf16, #tpu.memory_space<vmem>>, vector<9728x128xbf16>
    %cst = arith.constant dense<0.000000e+00> : vector<8x128xf32>
    %2 = tpu.matmul %0, %1, %cst {dimension_numbers = #tpu.dot_dimension_numbers<[1], [0], [0], [1], [0, 0, 1, 1], [], []>} : vector<8x9728xbf16>, vector<9728x128xbf16>, vector<8x128xf32> -> vector<8x128xf32>
    %c0_3 = arith.constant 0 : index
    %c0_4 = arith.constant 0 : index
    %3 = vector.load %arg3[%c0_3, %c0_4] : memref<1x128xf32, #tpu.memory_space<vmem>>, vector<1x128xf32>
    %4 = vector.broadcast %3 : vector<1x128xf32> to vector<8x128xf32>
    %5 = arith.addf %2, %4 : vector<8x128xf32>
    %cst_5 = arith.constant 0.000000e+00 : f32
    %6 = vector.broadcast %cst_5 : f32 to vector<8x128xf32>
    %7 = arith.subf %6, %5 : vector<8x128xf32>
    %8 = math.exp %7 : vector<8x128xf32>
    %cst_6 = arith.constant 1.000000e+00 : f32
    %9 = vector.broadcast %cst_6 : f32 to vector<8x128xf32>
    %10 = arith.addf %9, %8 : vector<8x128xf32>
    %11 = tpu.reciprocal %10 {approx = true} : vector<8x128xf32> -> vector<8x128xf32>
    %12 = arith.truncf %11 : vector<8x128xf32> to vector<8x128xbf16>
    %c0_7 = arith.constant 0 : index
    %c0_8 = arith.constant 0 : index
    %13 = vector.load %arg4[%c0_7, %c0_8] : memref<128x128xbf16, #tpu.memory_space<vmem>>, vector<128x128xbf16>
    %cst_9 = arith.constant dense<0.000000e+00> : vector<8x128xf32>
    %14 = tpu.matmul %12, %13, %cst_9 {dimension_numbers = #tpu.dot_dimension_numbers<[1], [0], [0], [1], [0, 0, 1, 1], [], []>} : vector<8x128xbf16>, vector<128x128xbf16>, vector<8x128xf32> -> vector<8x128xf32>
    %c0_10 = arith.constant 0 : index
    %c0_11 = arith.constant 0 : index
    %15 = vector.load %arg5[%c0_10, %c0_11] : memref<1x128xf32, #tpu.memory_space<vmem>>, vector<1x128xf32>
    %16 = vector.broadcast %15 : vector<1x128xf32> to vector<8x128xf32>
    %17 = arith.addf %14, %16 : vector<8x128xf32>
    %18 = tpu.iota {dimensions = array<i32: 1>} : vector<8x128xi32>
    %c50_i32 = arith.constant 50 : i32
    %19 = vector.broadcast %c50_i32 : i32 to vector<8x128xi32>
    %20 = arith.cmpi slt, %18, %19 : vector<8x128xi32>
    %cst_12 = arith.constant -1.000000e+30 : f32
    %21 = vector.broadcast %cst_12 : f32 to vector<8x128xf32>
    %22 = arith.select %20, %17, %21 : vector<8x128xi1>, vector<8x128xf32>
    %cst_13 = arith.constant dense<0xFF800000> : vector<8xf32>
    %23 = vector.multi_reduction <maximumf>, %22, %cst_13 [1] : vector<8x128xf32> to vector<8xf32>
    %24 = vector.shape_cast %23 : vector<8xf32> to vector<8x1xf32>
    %25 = vector.broadcast %24 : vector<8x1xf32> to vector<8x128xf32>
    %26 = arith.subf %22, %25 : vector<8x128xf32>
    %27 = math.exp %26 : vector<8x128xf32>
    %cst_14 = arith.constant dense<0.000000e+00> : vector<8xf32>
    %28 = vector.multi_reduction <add>, %27, %cst_14 [1] : vector<8x128xf32> to vector<8xf32>
    %29 = vector.shape_cast %28 : vector<8xf32> to vector<8x1xf32>
    %30 = vector.broadcast %29 : vector<8x1xf32> to vector<8x128xf32>
    %31 = arith.divf %27, %30 : vector<8x128xf32>
    %c0_15 = arith.constant 0 : index
    %c0_16 = arith.constant 0 : index
    %32 = vector.load %arg6[%c0_15, %c0_16] : memref<8x128xf32, #tpu.memory_space<vmem>>, vector<8x128xf32>
    tpu.vector_store %arg6[%c0_15, %c0_16], %31 {strides = array<i32>} : memref<8x128xf32, #tpu.memory_space<vmem>>, vector<8x128xf32>,
    return
  }
  func.func @transform_0(%arg0: i32) -> (i32, i32) {
    %c0_i32 = arith.constant 0 : i32
    %c0_i32_0 = arith.constant 0 : i32
    %c0_i32_1 = arith.constant 0 : i32
    return %c0_i32, %c0_i32_0 : i32, i32
  }
  func.func @transform_1(%arg0: i32) -> (i32, i32) {
    %c0_i32 = arith.constant 0 : i32
    %c0_i32_0 = arith.constant 0 : i32
    %c0_i32_1 = arith.constant 0 : i32
    return %c0_i32, %c0_i32_0 : i32, i32
  }
  func.func @transform_2(%arg0: i32) -> (i32, i32) {
    %c0_i32 = arith.constant 0 : i32
    %c0_i32_0 = arith.constant 0 : i32
    %c0_i32_1 = arith.constant 0 : i32
    return %c0_i32, %c0_i32_0 : i32, i32
  }
  func.func @transform_3(%arg0: i32) -> (i32, i32) {
    %c0_i32 = arith.constant 0 : i32
    %c0_i32_0 = arith.constant 0 : i32
    %c0_i32_1 = arith.constant 0 : i32
    return %c0_i32, %c0_i32_0 : i32, i32
  }
  func.func @transform_4(%arg0: i32) -> (i32, i32) {
    %c0_i32 = arith.constant 0 : i32
    %c0_i32_0 = arith.constant 0 : i32
    %c0_i32_1 = arith.constant 0 : i32
    return %c0_i32, %c0_i32_0 : i32, i32
  }
  func.func @transform_5(%arg0: i32) -> (i32, i32) {
    %c0_i32 = arith.constant 0 : i32
    %c0_i32_0 = arith.constant 0 : i32
    %c0_i32_1 = arith.constant 0 : i32
    return %c0_i32, %c0_i32_0 : i32, i32
  }
}

</mosaic_0001>

<bundles_post_ra>
// kernel: lenet5_forward.4
= control target key start
LH: loop header
LB: loop body
LE: loop exit
PB: predicated region body
PF: predicated region fallthrough
CT: control target
= control target key end

     0   :  { %s7749_s12 = smov 0   ;;  %s9777_s0 = inlined_call_operand.vmem [shape: bf16[2,4,900,128], index: 0, kind: input, shape index: {}]   ;;  %s9778_s1 = inlined_call_operand.vmem [shape: bf16[128,128], index: 1, kind: input, shape index: {}]   ;;  %s9779_s2 = inlined_call_operand.vmem [shape: f32[1,128], index: 2, kind: input, shape index: {}]   ;;  %s9780_s3 = inlined_call_operand.vmem [shape: f32[2,900,128], index: 3, kind: output, shape index: {}]  }
   0x1 LB: > { %s5195_s13 = sadd.s32 4294967295, %s7725_s12   ;;  %p5199_p0 = scmp.ge.s32.totalorder %s7725_s12, 1  ;;  %s7725_s12 = sphi %s7749_s12, %s13_s12  }
   0x2   : > { %p137_p1 = scmp.lt.s32.totalorder %s7725_s12, 3 }
   0x4   : > { %p138_p2 = pnand %p5199_p0, %p137_p1 }
   0x6   : > { %141 = sbr.rel (%p138_p2) target bundleno = 1197 (0x4ad), region = 32 }
   0xd   : > { %v7028_v0 = vld [vmem:[%s9778_s1] sm:$0xff]   ;;  %v9781_v1 = vmov 0.0   ;;  %v7029_v2 = vld [vmem:[%s9778_s1 + $0x8] sm:$0xff]   ;;  %p161_p3 = scmp.lt.s32.totalorder %s5195_s13, 1  ;;  %vm7728_vm0 = vmmov 0   ;;  %v7030_v3 = vld [vmem:[%s9778_s1 + $0x10] sm:$0xff]  }
   0xe   : > { %6040 = vmatprep.subr.bf16.mxu0 %v9781_v1  ;;  %6284 = vmatprep.subr.bf16.mxu1 %v9781_v1  ;;  %v7031_v4 = vld [vmem:[%s9778_s1 + $0x18] sm:$0xff]   ;;  %v7032_v5 = vld [vmem:[%s9778_s1 + $0x20] sm:$0xff]   ;;  %v7033_v6 = vld [vmem:[%s9778_s1 + $0x28] sm:$0xff]  }
   0xf   : > { %6041 = vmatpush3.bf16.msra.mxu0 %v7028_v0  ;;  %6285 = vmatpush3.bf16.msra.mxu1 %v7028_v0  ;;  %s10435_s13 = smov (!%p161_p3, %s5195_s13), 1  ;;  %v7034_v7 = vld [vmem:[%s9778_s1 + $0x30] sm:$0xff]   ;;  %v7035_v8 = vld [vmem:[%s9778_s1 + $0x38] sm:$0xff]  }
  0x10   : > { %6042 = vmatprep.subr.bf16.mxu0 %v9781_v1  ;;  %6286 = vmatprep.subr.bf16.mxu1 %v9781_v1  ;;  %s7016_s20 = smul.u32 1808, %s10435_s13 }
  0x11   : > { %6056 = vmatprep.mubr.msk.bf16.mxu0 %vm7728_vm0, %v9781_v1  ;;  %6300 = vmatprep.mubr.msk.bf16.mxu1 %vm7728_vm0, %v9781_v1  ;;  %s7017_s9 = smul.u32 904, %s10435_s13 }
  0x12   : > { %s7782_s23 = scalar_lea.vmem %s9777_s0, %s7016_s20 }
  0x13   : > { %6043 = vmatpush3.bf16.msra.mxu0 %v7029_v2  ;;  %6287 = vmatpush3.bf16.msra.mxu1 %v7029_v2  ;;  %v7036_v9 = vld [vmem:[%s7782_s23] sm:$0xff]   ;;  %v7038_v11 = vld [vmem:[%s7782_s23 + $0x8] sm:$0xff]   ;;  %v7040_v13 = vld [vmem:[%s7782_s23 + $0x10] sm:$0xff]   ;;  %s9072_s13 = scalar_lea.vmem %s9780_s3, %s7017_s9 }
  0x14   : > { %6044 = vmatprep.subr.bf16.mxu0 %v9781_v1  ;;  %6288 = vmatprep.subr.bf16.mxu1 %v9781_v1  ;;  %v7037_v10 = vld [vmem:[%s7782_s23 + $0x1c4] sm:$0xff]   ;;  %v7039_v12 = vld [vmem:[%s7782_s23 + $0x1cc] sm:$0xff]   ;;  %v7041_v14 = vld [vmem:[%s7782_s23 + $0x1d4] sm:$0xff]  }
  0x15   : > { %v7042_v15 = vld [vmem:[%s7782_s23 + $0x18] sm:$0xff]   ;;  %v7044_v17 = vld [vmem:[%s7782_s23 + $0x20] sm:$0xff]   ;;  %v7046_v19 = vld [vmem:[%s7782_s23 + $0x28] sm:$0xff]  }
  0x16   : > { %v7043_v16 = vld [vmem:[%s7782_s23 + $0x1dc] sm:$0xff]   ;;  %v7045_v18 = vld [vmem:[%s7782_s23 + $0x1e4] sm:$0xff]   ;;  %v7047_v20 = vld [vmem:[%s7782_s23 + $0x1ec] sm:$0xff]  }
  0x17   : > { %6045 = vmatpush3.bf16.msra.mxu0 %v7030_v3  ;;  %6289 = vmatpush3.bf16.msra.mxu1 %v7030_v3  ;;  %v7048_v21 = vld [vmem:[%s7782_s23 + $0x30] sm:$0xff]   ;;  %v7050_v23 = vld [vmem:[%s7782_s23 + $0x38] sm:$0xff]   ;;  %v7052_v25 = vld [vmem:[%s7782_s23 + $0x40] sm:$0xff]  }
  0x18   : > { %6046 = vmatprep.subr.bf16.mxu0 %v9781_v1  ;;  %6290 = vmatprep.subr.bf16.mxu1 %v9781_v1  ;;  %v7049_v22 = vld [vmem:[%s7782_s23 + $0x1f4] sm:$0xff]   ;;  %v7051_v24 = vld [vmem:[%s7782_s23 + $0x1fc] sm:$0xff]   ;;  %v7053_v26 = vld [vmem:[%s7782_s23 + $0x204] sm:$0xff]  }
  0x19   : > { %v7054_v27 = vld [vmem:[%s7782_s23 + $0x48] sm:$0xff]   ;;  %v7056_v29 = vld [vmem:[%s7782_s23 + $0x50] sm:$0xff]   ;;  %v7058_v31 = vld [vmem:[%s7782_s23 + $0x58] sm:$0xff]  }
  0x1a   : > { %v7055_v28 = vld [vmem:[%s7782_s23 + $0x20c] sm:$0xff]   ;;  %v7057_v30 = vld [vmem:[%s7782_s23 + $0x214] sm:$0xff]   ;;  %v7059_v32 = vld [vmem:[%s7782_s23 + $0x21c] sm:$0xff]  }
  0x1b   : > { %6047 = vmatpush3.bf16.msra.mxu0 %v7031_v4  ;;  %6291 = vmatpush3.bf16.msra.mxu1 %v7031_v4  ;;  %v7060_v33 = vld [vmem:[%s7782_s23 + $0x60] sm:$0xff]   ;;  %v7062_v35 = vld [vmem:[%s7782_s23 + $0x68] sm:$0xff]   ;;  %v7064_v37 = vld [vmem:[%s7782_s23 + $0x70] sm:$0xff]  }
  0x1c   : > { %6048 = vmatprep.subr.bf16.mxu0 %v9781_v1  ;;  %6292 = vmatprep.subr.bf16.mxu1 %v9781_v1  ;;  %v7061_v34 = vld [vmem:[%s7782_s23 + $0x224] sm:$0xff]   ;;  %v7063_v36 = vld [vmem:[%s7782_s23 + $0x22c] sm:$0xff]   ;;  %v7065_v38 = vld [vmem:[%s7782_s23 + $0x234] sm:$0xff]  }
  0x1d   : > { %v7066_v39 = vld [vmem:[%s7782_s23 + $0x78] sm:$0xff]   ;;  %v7068_v41 = vld [vmem:[%s7782_s23 + $0x80] sm:$0xff]   ;;  %v7070_v43 = vld [vmem:[%s7782_s23 + $0x88] sm:$0xff]  }
  0x1e   : > { %v7067_v40 = vld [vmem:[%s7782_s23 + $0x23c] sm:$0xff]   ;;  %v7069_v42 = vld [vmem:[%s7782_s23 + $0x244] sm:$0xff]   ;;  %v7071_v44 = vld [vmem:[%s7782_s23 + $0x24c] sm:$0xff]  }
  0x1f   : > { %6049 = vmatpush3.bf16.msra.mxu0 %v7032_v5  ;;  %6293 = vmatpush3.bf16.msra.mxu1 %v7032_v5  ;;  %v7072_v45 = vld [vmem:[%s7782_s23 + $0x90] sm:$0xff]   ;;  %v7074_v47 = vld [vmem:[%s7782_s23 + $0x98] sm:$0xff]   ;;  %v7076_v49 = vld [vmem:[%s7782_s23 + $0xa0] sm:$0xff]  }
  0x20   : > { %6050 = vmatprep.subr.bf16.mxu0 %v9781_v1  ;;  %6294 = vmatprep.subr.bf16.mxu1 %v9781_v1  ;;  %v7073_v46 = vld [vmem:[%s7782_s23 + $0x254] sm:$0xff]   ;;  %v7075_v48 = vld [vmem:[%s7782_s23 + $0x25c] sm:$0xff]   ;;  %v7077_v50 = vld [vmem:[%s7782_s23 + $0x264] sm:$0xff]  }
  0x21   : > { %v7078_v51 = vld [vmem:[%s7782_s23 + $0xa8] sm:$0xff]   ;;  %v7080_v53 = vld [vmem:[%s7782_s23 + $0xb0] sm:$0xff]   ;;  %v7082_v55 = vld [vmem:[%s7782_s23 + $0xb8] sm:$0xff]  }
  0x22   : > { %v7079_v52 = vld [vmem:[%s7782_s23 + $0x26c] sm:$0xff]   ;;  %v7081_v54 = vld [vmem:[%s7782_s23 + $0x274] sm:$0xff]   ;;  %v7083_v56 = vld [vmem:[%s7782_s23 + $0x27c] sm:$0xff]  }
  0x23   : > { %6051 = vmatpush3.bf16.msra.mxu0 %v7033_v6  ;;  %6295 = vmatpush3.bf16.msra.mxu1 %v7033_v6  ;;  %v7084_v57 = vld [vmem:[%s7782_s23 + $0xc0] sm:$0xff]   ;;  %v7086_v59 = vld [vmem:[%s7782_s23 + $0xc8] sm:$0xff]   ;;  %v7088_v61 = vld [vmem:[%s7782_s23 + $0xd0] sm:$0xff]  }
  0x24   : > { %6052 = vmatprep.subr.bf16.mxu0 %v9781_v1  ;;  %6296 = vmatprep.subr.bf16.mxu1 %v9781_v1  ;;  %v7085_v58 = vld [vmem:[%s7782_s23 + $0x284] sm:$0xff]   ;;  %v7087_v60 = vld [vmem:[%s7782_s23 + $0x28c] sm:$0xff]   ;;  %v7089_v62 = vld [vmem:[%s7782_s23 + $0x294] sm:$0xff]  }
  0x27   : > { %6053 = vmatpush3.bf16.msra.mxu0 %v7034_v7  ;;  %6297 = vmatpush3.bf16.msra.mxu1 %v7034_v7 }
  0x28   : > { %6054 = vmatprep.subr.bf16.mxu0 %v9781_v1  ;;  %6298 = vmatprep.subr.bf16.mxu1 %v9781_v1 }
  0x2b   : > { %6055 = vmatpush3.bf16.msra.mxu0 %v7035_v8  ;;  %6299 = vmatpush3.bf16.msra.mxu1 %v7035_v8 }
  0x2c   : > { %6528 = vmatprep.subr.bf16.mxu0 %v9781_v1  ;;  %6772 = vmatprep.subr.bf16.mxu1 %v9781_v1 }
  0x2e   : > { %6057 = vmatmul.mubr.bf16.vlgmr.msra.gmra.mrb[0].mxu0 %v7036_v9  ;;  %6301 = vmatmul.mubr.bf16.vlgmr.msra.gmra.mrb[0].mxu1 %v7037_v10 }
  0x2f   : > { %6529 = vmatpush3.bf16.msra.mxu0 %v7028_v0  ;;  %6773 = vmatpush3.bf16.msra.mxu1 %v7028_v0 }
  0x30   : > { %6060 = vmatprep.mubr.msk.bf16.mxu0 %vm7728_vm0, %v9781_v1  ;;  %6304 = vmatprep.mubr.msk.bf16.mxu1 %vm7728_vm0, %v9781_v1 }
  0x31   : > { %6530 = vmatprep.subr.bf16.mxu0 %v9781_v1  ;;  %6774 = vmatprep.subr.bf16.mxu1 %v9781_v1 }
  0x33   : > { %6531 = vmatpush3.bf16.msra.mxu0 %v7029_v2  ;;  %6775 = vmatpush3.bf16.msra.mxu1 %v7029_v2 }
  0x34   : > { %6532 = vmatprep.subr.bf16.mxu0 %v9781_v1  ;;  %6776 = vmatprep.subr.bf16.mxu1 %v9781_v1 }
  0x36   : > { %6061 = vmatmul.mubr.bf16.gmra.mrb[4].mxu0 %v7038_v11  ;;  %6305 = vmatmul.mubr.bf16.gmra.mrb[4].mxu1 %v7039_v12  ;;  %v7116_v11 = vld [vmem:[%s7782_s23 + $0x140] sm:$0xff]  }
  0x37   : > { %6064 = vmatprep.mubr.msk.bf16.mxu0 %vm7728_vm0, %v9781_v1  ;;  %6308 = vmatprep.mubr.msk.bf16.mxu1 %vm7728_vm0, %v9781_v1 }
  0x38   : > { %6533 = vmatpush3.bf16.msra.mxu0 %v7030_v3  ;;  %6777 = vmatpush3.bf16.msra.mxu1 %v7030_v3 }
  0x39   : > { %6534 = vmatprep.subr.bf16.mxu0 %v9781_v1  ;;  %6778 = vmatprep.subr.bf16.mxu1 %v9781_v1 }
  0x3c   : > { %6535 = vmatpush3.bf16.msra.mxu0 %v7031_v4  ;;  %6779 = vmatpush3.bf16.msra.mxu1 %v7031_v4  ;;  %v7090_v4 = vld [vmem:[%s7782_s23 + $0xd8] sm:$0xff]  }
  0x3d   : > { %6536 = vmatprep.subr.bf16.mxu0 %v9781_v1  ;;  %6780 = vmatprep.subr.bf16.mxu1 %v9781_v1 }
  0x3e   : > { %6065 = vmatmul.mubr.bf16.gmra.mrb[8].mxu0 %v7040_v13  ;;  %6309 = vmatmul.mubr.bf16.gmra.mrb[8].mxu1 %v7041_v14 }
  0x3f   : > { %6068 = vmatprep.mubr.msk.bf16.mxu0 %vm7728_vm0, %v9781_v1  ;;  %6312 = vmatprep.mubr.msk.bf16.mxu1 %vm7728_vm0, %v9781_v1 }
  0x40   : > { %6537 = vmatpush3.bf16.msra.mxu0 %v7032_v5  ;;  %6781 = vmatpush3.bf16.msra.mxu1 %v7032_v5  ;;  %v7091_v5 = vld [vmem:[%s7782_s23 + $0x29c] sm:$0xff]  }
  0x41   : > { %6538 = vmatprep.subr.bf16.mxu0 %v9781_v1  ;;  %6782 = vmatprep.subr.bf16.mxu1 %v9781_v1 }
  0x44   : > { %6539 = vmatpush3.bf16.msra.mxu0 %v7033_v6  ;;  %6783 = vmatpush3.bf16.msra.mxu1 %v7033_v6 }
  0x45   : > { %6540 = vmatprep.subr.bf16.mxu0 %v9781_v1  ;;  %6784 = vmatprep.subr.bf16.mxu1 %v9781_v1 }
  0x46   : > { %6069 = vmatmul.mubr.bf16.gmra.mrb[12].mxu0 %v7042_v15  ;;  %6313 = vmatmul.mubr.bf16.gmra.mrb[12].mxu1 %v7043_v16  ;;  %v7092_v16 = vld [vmem:[%s7782_s23 + $0xe0] sm:$0xff]  }
  0x47   : > { %6072 = vmatprep.mubr.msk.bf16.mxu0 %vm7728_vm0, %v9781_v1  ;;  %6316 = vmatprep.mubr.msk.bf16.mxu1 %vm7728_vm0, %v9781_v1 }
  0x48   : > { %6541 = vmatpush3.bf16.msra.mxu0 %v7034_v7  ;;  %6785 = vmatpush3.bf16.msra.mxu1 %v7034_v7 }
  0x49   : > { %6542 = vmatprep.subr.bf16.mxu0 %v9781_v1  ;;  %6786 = vmatprep.subr.bf16.mxu1 %v9781_v1 }
  0x4c   : > { %6543 = vmatpush3.bf16.msra.mxu0 %v7035_v8  ;;  %6787 = vmatpush3.bf16.msra.mxu1 %v7035_v8 }
  0x4e   : > { %6073 = vmatmul.mubr.bf16.gmra.mrb[16].mxu0 %v7044_v17  ;;  %6317 = vmatmul.mubr.bf16.gmra.mrb[16].mxu1 %v7045_v18  ;;  %v7093_v17 = vld [vmem:[%s7782_s23 + $0x2a4] sm:$0xff]  }
  0x4f   : > { %6076 = vmatprep.mubr.msk.bf16.mxu0 %vm7728_vm0, %v9781_v1  ;;  %6320 = vmatprep.mubr.msk.bf16.mxu1 %vm7728_vm0, %v9781_v1 }
  0x56   : > { %6077 = vmatmul.mubr.bf16.gmra.mrb[20].mxu0 %v7046_v19  ;;  %6321 = vmatmul.mubr.bf16.gmra.mrb[20].mxu1 %v7047_v20 }
  0x57   : > { %6080 = vmatprep.mubr.msk.bf16.mxu0 %vm7728_vm0, %v9781_v1  ;;  %6324 = vmatprep.mubr.msk.bf16.mxu1 %vm7728_vm0, %v9781_v1 }
  0x5e   : > { %6081 = vmatmul.mubr.bf16.gmra.mrb[24].mxu0 %v7048_v21  ;;  %6325 = vmatmul.mubr.bf16.gmra.mrb[24].mxu1 %v7049_v22 }
  0x5f   : > { %6084 = vmatprep.mubr.msk.bf16.mxu0 %vm7728_vm0, %v9781_v1  ;;  %6328 = vmatprep.mubr.msk.bf16.mxu1 %vm7728_vm0, %v9781_v1 }
  0x66   : > { %6085 = vmatmul.mubr.bf16.gmra.mrb[28].mxu0 %v7050_v23  ;;  %6329 = vmatmul.mubr.bf16.gmra.mrb[28].mxu1 %v7051_v24 }
  0x67   : > { %6088 = vmatprep.mubr.msk.bf16.mxu0 %vm7728_vm0, %v9781_v1  ;;  %6332 = vmatprep.mubr.msk.bf16.mxu1 %vm7728_vm0, %v9781_v1 }
  0x6e   : > { %6089 = vmatmul.mubr.bf16.gmra.mrb[32].mxu0 %v7052_v25  ;;  %6333 = vmatmul.mubr.bf16.gmra.mrb[32].mxu1 %v7053_v26 }
  0x6f   : > { %6092 = vmatprep.mubr.msk.bf16.mxu0 %vm7728_vm0, %v9781_v1  ;;  %6336 = vmatprep.mubr.msk.bf16.mxu1 %vm7728_vm0, %v9781_v1 }
  0x76   : > { %6093 = vmatmul.mubr.bf16.gmra.mrb[36].mxu0 %v7054_v27  ;;  %6337 = vmatmul.mubr.bf16.gmra.mrb[36].mxu1 %v7055_v28  ;;  %v7094_v28 = vld [vmem:[%s7782_s23 + $0xe8] sm:$0xff]  }
  0x77   : > { %6096 = vmatprep.mubr.msk.bf16.mxu0 %vm7728_vm0, %v9781_v1  ;;  %6340 = vmatprep.mubr.msk.bf16.mxu1 %vm7728_vm0, %v9781_v1 }
  0x7e   : > { %6097 = vmatmul.mubr.bf16.gmra.mrb[40].mxu0 %v7056_v29  ;;  %6341 = vmatmul.mubr.bf16.gmra.mrb[40].mxu1 %v7057_v30  ;;  %v7095_v29 = vld [vmem:[%s7782_s23 + $0x2ac] sm:$0xff]  }
  0x7f   : > { %6100 = vmatprep.mubr.msk.bf16.mxu0 %vm7728_vm0, %v9781_v1  ;;  %6344 = vmatprep.mubr.msk.bf16.mxu1 %vm7728_vm0, %v9781_v1 }
  0x86   : > { %6101 = vmatmul.mubr.bf16.gmra.mrb[44].mxu0 %v7058_v31  ;;  %6345 = vmatmul.mubr.bf16.gmra.mrb[44].mxu1 %v7059_v32 }
  0x87   : > { %6104 = vmatprep.mubr.msk.bf16.mxu0 %vm7728_vm0, %v9781_v1  ;;  %6348 = vmatprep.mubr.msk.bf16.mxu1 %vm7728_vm0, %v9781_v1 }
  0x8e   : > { %6105 = vmatmul.mubr.bf16.gmra.mrb[48].mxu0 %v7060_v33  ;;  %6349 = vmatmul.mubr.bf16.gmra.mrb[48].mxu1 %v7061_v34 }
  0x8f   : > { %6108 = vmatprep.mubr.msk.bf16.mxu0 %vm7728_vm0, %v9781_v1  ;;  %6352 = vmatprep.mubr.msk.bf16.mxu1 %vm7728_vm0, %v9781_v1 }
  0x96   : > { %6109 = vmatmul.mubr.bf16.gmra.mrb[52].mxu0 %v7062_v35  ;;  %6353 = vmatmul.mubr.bf16.gmra.mrb[52].mxu1 %v7063_v36  ;;  %v7114_v35 = vld [vmem:[%s7782_s23 + $0x138] sm:$0xff]  }
  0x97   : > { %6112 = vmatprep.mubr.msk.bf16.mxu0 %vm7728_vm0, %v9781_v1  ;;  %6356 = vmatprep.mubr.msk.bf16.mxu1 %vm7728_vm0, %v9781_v1 }
  0x9e   : > { %6113 = vmatmul.mubr.bf16.gmra.mrb[56].mxu0 %v7064_v37  ;;  %6357 = vmatmul.mubr.bf16.gmra.mrb[56].mxu1 %v7065_v38 }
  0x9f   : > { %6116 = vmatprep.mubr.msk.bf16.mxu0 %vm7728_vm0, %v9781_v1  ;;  %6360 = vmatprep.mubr.msk.bf16.mxu1 %vm7728_vm0, %v9781_v1 }
  0xa6   : > { %6117 = vmatmul.mubr.bf16.gmra.mrb[60].mxu0 %v7066_v39  ;;  %6361 = vmatmul.mubr.bf16.gmra.mrb[60].mxu1 %v7067_v40  ;;  %v7096_v40 = vld [vmem:[%s7782_s23 + $0xf0] sm:$0xff]  }
  0xa7   : > { %6120 = vmatprep.mubr.msk.bf16.mxu0 %vm7728_vm0, %v9781_v1  ;;  %6364 = vmatprep.mubr.msk.bf16.mxu1 %vm7728_vm0, %v9781_v1 }
  0xae   : > { %6121 = vmatmul.mubr.bf16.gmra.mrb[64].mxu0 %v7068_v41  ;;  %6365 = vmatmul.mubr.bf16.gmra.mrb[64].mxu1 %v7069_v42  ;;  %v7097_v41 = vld [vmem:[%s7782_s23 + $0x2b4] sm:$0xff]  }
  0xaf   : > { %6124 = vmatprep.mubr.msk.bf16.mxu0 %vm7728_vm0, %v9781_v1  ;;  %6368 = vmatprep.mubr.msk.bf16.mxu1 %vm7728_vm0, %v9781_v1 }
  0xb6   : > { %6125 = vmatmul.mubr.bf16.gmra.mrb[68].mxu0 %v7070_v43  ;;  %6369 = vmatmul.mubr.bf16.gmra.mrb[68].mxu1 %v7071_v44 }
  0xb7   : > { %6128 = vmatprep.mubr.msk.bf16.mxu0 %vm7728_vm0, %v9781_v1  ;;  %6372 = vmatprep.mubr.msk.bf16.mxu1 %vm7728_vm0, %v9781_v1 }
  0xbe   : > { %6129 = vmatmul.mubr.bf16.gmra.mrb[72].mxu0 %v7072_v45  ;;  %6373 = vmatmul.mubr.bf16.gmra.mrb[72].mxu1 %v7073_v46 }
  0xbf   : > { %6132 = vmatprep.mubr.msk.bf16.mxu0 %vm7728_vm0, %v9781_v1  ;;  %6376 = vmatprep.mubr.msk.bf16.mxu1 %vm7728_vm0, %v9781_v1 }
  0xc6   : > { %6133 = vmatmul.mubr.bf16.gmra.mrb[76].mxu0 %v7074_v47  ;;  %6377 = vmatmul.mubr.bf16.gmra.mrb[76].mxu1 %v7075_v48 }
  0xc7   : > { %6136 = vmatprep.mubr.msk.bf16.mxu0 %vm7728_vm0, %v9781_v1  ;;  %6380 = vmatprep.mubr.msk.bf16.mxu1 %vm7728_vm0, %v9781_v1 }
  0xce   : > { %6137 = vmatmul.mubr.bf16.gmra.mrb[80].mxu0 %v7076_v49  ;;  %6381 = vmatmul.mubr.bf16.gmra.mrb[80].mxu1 %v7077_v50 }
  0xcf   : > { %6140 = vmatprep.mubr.msk.bf16.mxu0 %vm7728_vm0, %v9781_v1  ;;  %6384 = vmatprep.mubr.msk.bf16.mxu1 %vm7728_vm0, %v9781_v1 }
  0xd6   : > { %6141 = vmatmul.mubr.bf16.gmra.mrb[84].mxu0 %v7078_v51  ;;  %6385 = vmatmul.mubr.bf16.gmra.mrb[84].mxu1 %v7079_v52  ;;  %v7098_v52 = vld [vmem:[%s7782_s23 + $0xf8] sm:$0xff]  }
  0xd7   : > { %6144 = vmatprep.mubr.msk.bf16.mxu0 %vm7728_vm0, %v9781_v1  ;;  %6388 = vmatprep.mubr.msk.bf16.mxu1 %vm7728_vm0, %v9781_v1 }
  0xde   : > { %6145 = vmatmul.mubr.bf16.gmra.mrb[88].mxu0 %v7080_v53  ;;  %6389 = vmatmul.mubr.bf16.gmra.mrb[88].mxu1 %v7081_v54  ;;  %v7099_v53 = vld [vmem:[%s7782_s23 + $0x2bc] sm:$0xff]  }
  0xdf   : > { %6148 = vmatprep.mubr.msk.bf16.mxu0 %vm7728_vm0, %v9781_v1  ;;  %6392 = vmatprep.mubr.msk.bf16.mxu1 %vm7728_vm0, %v9781_v1 }
  0xe6   : > { %6149 = vmatmul.mubr.bf16.gmra.mrb[92].mxu0 %v7082_v55  ;;  %6393 = vmatmul.mubr.bf16.gmra.mrb[92].mxu1 %v7083_v56 }
  0xe7   : > { %6152 = vmatprep.mubr.msk.bf16.mxu0 %vm7728_vm0, %v9781_v1  ;;  %6396 = vmatprep.mubr.msk.bf16.mxu1 %vm7728_vm0, %v9781_v1 }
  0xee   : > { %6153 = vmatmul.mubr.bf16.gmra.mrb[96].mxu0 %v7084_v57  ;;  %6397 = vmatmul.mubr.bf16.gmra.mrb[96].mxu1 %v7085_v58 }
  0xef   : > { %6156 = vmatprep.mubr.msk.bf16.mxu0 %vm7728_vm0, %v9781_v1  ;;  %6400 = vmatprep.mubr.msk.bf16.mxu1 %vm7728_vm0, %v9781_v1 }
  0xf6   : > { %6157 = vmatmul.mubr.bf16.gmra.mrb[100].mxu0 %v7086_v59  ;;  %6401 = vmatmul.mubr.bf16.gmra.mrb[100].mxu1 %v7087_v60  ;;  %v7112_v59 = vld [vmem:[%s7782_s23 + $0x130] sm:$0xff]  }
  0xf7   : > { %6160 = vmatprep.mubr.msk.bf16.mxu0 %vm7728_vm0, %v9781_v1  ;;  %6404 = vmatprep.mubr.msk.bf16.mxu1 %vm7728_vm0, %v9781_v1 }
  0xfe   : > { %6161 = vmatmul.mubr.bf16.gmra.mrb[104].mxu0 %v7088_v61  ;;  %6405 = vmatmul.mubr.bf16.gmra.mrb[104].mxu1 %v7089_v62 }
  0xff   : > { %6164 = vmatprep.mubr.msk.bf16.mxu0 %vm7728_vm0, %v9781_v1  ;;  %6408 = vmatprep.mubr.msk.bf16.mxu1 %vm7728_vm0, %v9781_v1 }
 0x101   : > { %v7987_v63 = vpop.f32.mrb[0].mxu0  ;;  %v7989_v0 = vpop.f32.mrb[0].mxu1 }
 0x102   : > { %v6058_v2 = vpop.f32.mrb[1].mxu0  ;;  %v6302_v3 = vpop.f32.mrb[1].mxu1 }
 0x103   : > { %v7995_v7 = vpop.f32.mrb[2].mxu0  ;;  %v7997_v8 = vpop.f32.mrb[2].mxu1  ;;  %v7100_v3 = vld [vmem:[%s7782_s23 + $0x100] sm:$0xff]  }
 0x104   : > { %v6059_v9 = vpop.f32.mrb[3].mxu0  ;;  %v6303_v10 = vpop.f32.mrb[3].mxu1 }
 0x106   : > { %6165 = vmatmul.mubr.bf16.gmra.mrb[108].mxu0 %v7090_v4  ;;  %6409 = vmatmul.mubr.bf16.gmra.mrb[108].mxu1 %v7091_v5  ;;  %v7101_v4 = vld [vmem:[%s7782_s23 + $0x2c4] sm:$0xff]  }
 0x107   : > { %6168 = vmatprep.mubr.msk.bf16.mxu0 %vm7728_vm0, %v9781_v1  ;;  %6412 = vmatprep.mubr.msk.bf16.mxu1 %vm7728_vm0, %v9781_v1 }
 0x109   : > { %v8005_v12 = vpop.f32.mrb[4].mxu0  ;;  %v8007_v13 = vpop.f32.mrb[4].mxu1 }
 0x10a   : > { %v6062_v14 = vpop.f32.mrb[5].mxu0  ;;  %v6306_v15 = vpop.f32.mrb[5].mxu1 }
 0x10b   : > { %v8013_v19 = vpop.f32.mrb[6].mxu0  ;;  %v8015_v20 = vpop.f32.mrb[6].mxu1 }
 0x10c   : > { %v6063_v21 = vpop.f32.mrb[7].mxu0  ;;  %v6307_v22 = vpop.f32.mrb[7].mxu1 }
 0x10e   : > { %6169 = vmatmul.mubr.bf16.gmra.mrb[112].mxu0 %v7092_v16  ;;  %6413 = vmatmul.mubr.bf16.gmra.mrb[112].mxu1 %v7093_v17 }
 0x10f   : > { %6172 = vmatprep.mubr.msk.bf16.mxu0 %vm7728_vm0, %v9781_v1  ;;  %6416 = vmatprep.mubr.msk.bf16.mxu1 %vm7728_vm0, %v9781_v1 }
 0x111   : > { %v8023_v24 = vpop.f32.mrb[8].mxu0  ;;  %v8025_v25 = vpop.f32.mrb[8].mxu1 }
 0x112   : > { %v6066_v26 = vpop.f32.mrb[9].mxu0  ;;  %v6310_v27 = vpop.f32.mrb[9].mxu1 }
 0x113   : > { %v8031_v31 = vpop.f32.mrb[10].mxu0  ;;  %v8033_v32 = vpop.f32.mrb[10].mxu1  ;;  %v7102_v27 = vld [vmem:[%s7782_s23 + $0x108] sm:$0xff]  }
 0x114   : > { %v6067_v33 = vpop.f32.mrb[11].mxu0  ;;  %v6311_v34 = vpop.f32.mrb[11].mxu1 }
 0x116   : > { %6173 = vmatmul.mubr.bf16.gmra.mrb[116].mxu0 %v7094_v28  ;;  %6417 = vmatmul.mubr.bf16.gmra.mrb[116].mxu1 %v7095_v29  ;;  %v7103_v28 = vld [vmem:[%s7782_s23 + $0x2cc] sm:$0xff]  }
 0x117   : > { %6176 = vmatprep.mubr.msk.bf16.mxu0 %vm7728_vm0, %v9781_v1  ;;  %6420 = vmatprep.mubr.msk.bf16.mxu1 %vm7728_vm0, %v9781_v1 }
 0x119   : > { %v8041_v36 = vpop.f32.mrb[12].mxu0  ;;  %v8043_v37 = vpop.f32.mrb[12].mxu1 }
 0x11a   : > { %v6070_v38 = vpop.f32.mrb[13].mxu0  ;;  %v6314_v39 = vpop.f32.mrb[13].mxu1 }
 0x11b   : > { %v8049_v43 = vpop.f32.mrb[14].mxu0  ;;  %v8051_v44 = vpop.f32.mrb[14].mxu1 }
 0x11c   : > { %v6071_v45 = vpop.f32.mrb[15].mxu0  ;;  %v6315_v46 = vpop.f32.mrb[15].mxu1 }
 0x11e   : > { %6177 = vmatmul.mubr.bf16.gmra.mrb[120].mxu0 %v7096_v40  ;;  %6421 = vmatmul.mubr.bf16.gmra.mrb[120].mxu1 %v7097_v41  ;;  %v7110_v40 = vld [vmem:[%s7782_s23 + $0x128] sm:$0xff]  }
 0x11f   : > { %6180 = vmatprep.mubr.msk.bf16.mxu0 %vm7728_vm0, %v9781_v1  ;;  %6424 = vmatprep.mubr.msk.bf16.mxu1 %vm7728_vm0, %v9781_v1 }
 0x121   : > { %v8059_v48 = vpop.f32.mrb[16].mxu0  ;;  %v8061_v49 = vpop.f32.mrb[16].mxu1 }
 0x122   : > { %v6074_v50 = vpop.f32.mrb[17].mxu0  ;;  %v6318_v51 = vpop.f32.mrb[17].mxu1 }
 0x123   : > { %v8067_v55 = vpop.f32.mrb[18].mxu0  ;;  %v8069_v56 = vpop.f32.mrb[18].mxu1  ;;  %v7104_v51 = vld [vmem:[%s7782_s23 + $0x110] sm:$0xff]  }
 0x124   : > { %v6075_v57 = vpop.f32.mrb[19].mxu0  ;;  %v6319_v58 = vpop.f32.mrb[19].mxu1 }
 0x126   : > { %6181 = vmatmul.mubr.bf16.gmra.mrb[124].mxu0 %v7098_v52  ;;  %6425 = vmatmul.mubr.bf16.gmra.mrb[124].mxu1 %v7099_v53  ;;  %v7105_v52 = vld [vmem:[%s7782_s23 + $0x2d4] sm:$0xff]  }
 0x127   : > { %6184 = vmatprep.mubr.msk.bf16.mxu0 %vm7728_vm0, %v9781_v1  ;;  %6428 = vmatprep.mubr.msk.bf16.mxu1 %vm7728_vm0, %v9781_v1 }
 0x129   : > { %v8077_v60 = vpop.f32.mrb[20].mxu0  ;;  %v8079_v61 = vpop.f32.mrb[20].mxu1 }
 0x12a   : > { %v6078_v62 = vpop.f32.mrb[21].mxu0  ;;  %v6322_v2 = vpop.f32.mrb[21].mxu1 }
 0x12b   : > { %v8085_v9 = vpop.f32.mrb[22].mxu0  ;;  %v8087_v10 = vpop.f32.mrb[22].mxu1 }
 0x12c   : > { %v6079_v14 = vpop.f32.mrb[23].mxu0  ;;  %v6323_v15 = vpop.f32.mrb[23].mxu1 }
 0x12e   : > { %6185 = vmatmul.mubr.bf16.gmra.mrb[128].mxu0 %v7100_v3  ;;  %6429 = vmatmul.mubr.bf16.gmra.mrb[128].mxu1 %v7101_v4 }
 0x12f   : > { %6188 = vmatprep.mubr.msk.bf16.mxu0 %vm7728_vm0, %v9781_v1  ;;  %6432 = vmatprep.mubr.msk.bf16.mxu1 %vm7728_vm0, %v9781_v1 }
 0x131   : > { %v8095_v17 = vpop.f32.mrb[24].mxu0  ;;  %v8097_v21 = vpop.f32.mrb[24].mxu1 }
 0x132   : > { %v6082_v22 = vpop.f32.mrb[25].mxu0  ;;  %v6326_v26 = vpop.f32.mrb[25].mxu1 }
 0x133   : > { %v8103_v33 = vpop.f32.mrb[26].mxu0  ;;  %v8105_v34 = vpop.f32.mrb[26].mxu1  ;;  %v7106_v26 = vld [vmem:[%s7782_s23 + $0x118] sm:$0xff]  }
 0x134   : > { %v6083_v38 = vpop.f32.mrb[27].mxu0  ;;  %v6327_v39 = vpop.f32.mrb[27].mxu1 }
 0x136   : > { %6189 = vmatmul.mubr.bf16.gmra.mrb[132].mxu0 %v7102_v27  ;;  %6433 = vmatmul.mubr.bf16.gmra.mrb[132].mxu1 %v7103_v28  ;;  %v7107_v27 = vld [vmem:[%s7782_s23 + $0x2dc] sm:$0xff]  }
 0x137   : > { %6192 = vmatprep.mubr.msk.bf16.mxu0 %vm7728_vm0, %v9781_v1  ;;  %6436 = vmatprep.mubr.msk.bf16.mxu1 %vm7728_vm0, %v9781_v1 }
 0x139   : > { %v8113_v41 = vpop.f32.mrb[28].mxu0  ;;  %v8115_v45 = vpop.f32.mrb[28].mxu1 }
 0x13a   : > { %v6086_v46 = vpop.f32.mrb[29].mxu0  ;;  %v6330_v50 = vpop.f32.mrb[29].mxu1 }
 0x13b   : > { %v8121_v57 = vpop.f32.mrb[30].mxu0  ;;  %v8123_v58 = vpop.f32.mrb[30].mxu1 }
 0x13c   : > { %v6087_v62 = vpop.f32.mrb[31].mxu0  ;;  %v6331_v2 = vpop.f32.mrb[31].mxu1 }
 0x13e   : > { %6193 = vmatmul.mubr.bf16.gmra.mrb[136].mxu0 %v7104_v51  ;;  %6437 = vmatmul.mubr.bf16.gmra.mrb[136].mxu1 %v7105_v52 }
 0x13f   : > { %6196 = vmatprep.mubr.msk.bf16.mxu0 %vm7728_vm0, %v9781_v1  ;;  %6440 = vmatprep.mubr.msk.bf16.mxu1 %vm7728_vm0, %v9781_v1 }
 0x141   : > { %v8131_v4 = vpop.f32.mrb[32].mxu0  ;;  %v8133_v14 = vpop.f32.mrb[32].mxu1 }
 0x142   : > { %v6090_v15 = vpop.f32.mrb[33].mxu0  ;;  %v6334_v22 = vpop.f32.mrb[33].mxu1 }
 0x143   : > { %v8139_v38 = vpop.f32.mrb[34].mxu0  ;;  %v8141_v39 = vpop.f32.mrb[34].mxu1  ;;  %v7108_v22 = vld [vmem:[%s7782_s23 + $0x120] sm:$0xff]  }
 0x144   : > { %v6091_v46 = vpop.f32.mrb[35].mxu0  ;;  %v6335_v50 = vpop.f32.mrb[35].mxu1 }
 0x145   : > { %v7109_v46 = vld [vmem:[%s7782_s23 + $0x2e4] sm:$0xff]  }
 0x146   : > { %6197 = vmatmul.mubr.bf16.gmra.mrb[140].mxu0 %v7106_v26  ;;  %6441 = vmatmul.mubr.bf16.gmra.mrb[140].mxu1 %v7107_v27 }
 0x147   : > { %6200 = vmatprep.mubr.msk.bf16.mxu0 %vm7728_vm0, %v9781_v1  ;;  %6444 = vmatprep.mubr.msk.bf16.mxu1 %vm7728_vm0, %v9781_v1 }
 0x149   : > { %v8149_v52 = vpop.f32.mrb[36].mxu0  ;;  %v8151_v62 = vpop.f32.mrb[36].mxu1 }
 0x14a   : > { %v6094_v2 = vpop.f32.mrb[37].mxu0  ;;  %v6338_v15 = vpop.f32.mrb[37].mxu1 }
 0x14b   : > { %v8157_v27 = vpop.f32.mrb[38].mxu0  ;;  %v8159_v50 = vpop.f32.mrb[38].mxu1 }
 0x14c   : > { %v6095_v51 = vpop.f32.mrb[39].mxu0  ;;  %v6339_v28 = vpop.f32.mrb[39].mxu1 }
 0x14d   : > { %v7111_v28 = vld [vmem:[%s7782_s23 + $0x2ec] sm:$0xff]  }
 0x14e   : > { %6201 = vmatmul.mubr.bf16.gmra.mrb[144].mxu0 %v7108_v22  ;;  %6445 = vmatmul.mubr.bf16.gmra.mrb[144].mxu1 %v7109_v46 }
 0x14f   : > { %6204 = vmatprep.mubr.msk.bf16.mxu0 %vm7728_vm0, %v9781_v1  ;;  %6448 = vmatprep.mubr.msk.bf16.mxu1 %vm7728_vm0, %v9781_v1 }
 0x151   : > { %v8167_v2 = vpop.f32.mrb[40].mxu0  ;;  %v8169_v15 = vpop.f32.mrb[40].mxu1 }
 0x152   : > { %v6098_v26 = vpop.f32.mrb[41].mxu0  ;;  %v6342_v53 = vpop.f32.mrb[41].mxu1 }
 0x153   : > { %v8175_v22 = vpop.f32.mrb[42].mxu0  ;;  %v8177_v46 = vpop.f32.mrb[42].mxu1 }
 0x154   : > { %v6099_v3 = vpop.f32.mrb[43].mxu0  ;;  %v6343_v29 = vpop.f32.mrb[43].mxu1 }
 0x155   : > { %v7113_v29 = vld [vmem:[%s7782_s23 + $0x2f4] sm:$0xff]  }
 0x156   : > { %6205 = vmatmul.mubr.bf16.gmra.mrb[148].mxu0 %v7110_v40  ;;  %6449 = vmatmul.mubr.bf16.gmra.mrb[148].mxu1 %v7111_v28 }
 0x157   : > { %6208 = vmatprep.mubr.msk.bf16.mxu0 %vm7728_vm0, %v9781_v1  ;;  %6452 = vmatprep.mubr.msk.bf16.mxu1 %vm7728_vm0, %v9781_v1 }
 0x159   : > { %v8185_v53 = vpop.f32.mrb[44].mxu0  ;;  %v8187_v26 = vpop.f32.mrb[44].mxu1 }
 0x15a   : > { %v6102_v51 = vpop.f32.mrb[45].mxu0  ;;  %v6346_v5 = vpop.f32.mrb[45].mxu1 }
 0x15b   : > { %v8193_v3 = vpop.f32.mrb[46].mxu0  ;;  %v8195_v28 = vpop.f32.mrb[46].mxu1 }
 0x15c   : > { %9962 = vst [vmem:[#allocation2_spill] sm:$0xff] %v8195_v28  ;;  %v6103_v16 = vpop.f32.mrb[47].mxu0  ;;  %v6347_v54 = vpop.f32.mrb[47].mxu1 }
 0x15d   : > { %v7115_v54 = vld [vmem:[%s7782_s23 + $0x2fc] sm:$0xff]  }
 0x15e   : > { %6209 = vmatmul.mubr.bf16.gmra.mrb[152].mxu0 %v7112_v59  ;;  %6453 = vmatmul.mubr.bf16.gmra.mrb[152].mxu1 %v7113_v29 }
 0x15f   : > { %6212 = vmatprep.mubr.msk.bf16.mxu0 %vm7728_vm0, %v9781_v1  ;;  %6456 = vmatprep.mubr.msk.bf16.mxu1 %vm7728_vm0, %v9781_v1 }
 0x161   : > { %v8203_v5 = vpop.f32.mrb[48].mxu0  ;;  %v8205_v51 = vpop.f32.mrb[48].mxu1 }
 0x162   : > { %9963 = vst [vmem:[#allocation3_spill] sm:$0xff] %v8203_v5  ;;  %9964 = vst [vmem:[#allocation4_spill] sm:$0xff] %v8205_v51  ;;  %v6106_v40 = vpop.f32.mrb[49].mxu0  ;;  %v6350_v42 = vpop.f32.mrb[49].mxu1 }
 0x163   : > { %v8211_v16 = vpop.f32.mrb[50].mxu0  ;;  %v8213_v29 = vpop.f32.mrb[50].mxu1 }
 0x164   : > { %9965 = vst [vmem:[#allocation5_spill] sm:$0xff] %v8211_v16  ;;  %9966 = vst [vmem:[#allocation6_spill] sm:$0xff] %v8213_v29  ;;  %v6107_v47 = vpop.f32.mrb[51].mxu0  ;;  %v6351_v30 = vpop.f32.mrb[51].mxu1  ;;  %v7118_v29 = vld [vmem:[%s7782_s23 + $0x148] sm:$0xff]   ;;  %v10143_v16 = vmax.f32 %v7995_v7, %v7997_v8 }
 0x165   : > { %v7117_v30 = vld [vmem:[%s7782_s23 + $0x304] sm:$0xff]  }
 0x166   : > { %6213 = vmatmul.mubr.bf16.gmra.mrb[156].mxu0 %v7114_v35  ;;  %6457 = vmatmul.mubr.bf16.gmra.mrb[156].mxu1 %v7115_v54  ;;  %v7206_v8 = vld [vmem:[%s7782_s23 + $0x468] sm:$0xff]  }
 0x167   : > { %6216 = vmatprep.mubr.msk.bf16.mxu0 %vm7728_vm0, %v9781_v1  ;;  %6460 = vmatprep.mubr.msk.bf16.mxu1 %vm7728_vm0, %v9781_v1 }
 0x169   : > { %v8221_v42 = vpop.f32.mrb[52].mxu0  ;;  %v8223_v40 = vpop.f32.mrb[52].mxu1 }
 0x16a   : > { %9967 = vst [vmem:[#allocation7_spill] sm:$0xff] %v8221_v42  ;;  %9968 = vst [vmem:[#allocation8_spill] sm:$0xff] %v8223_v40  ;;  %v6110_v59 = vpop.f32.mrb[53].mxu0  ;;  %v6354_v18 = vpop.f32.mrb[53].mxu1 }
 0x16b   : > { %v8229_v47 = vpop.f32.mrb[54].mxu0  ;;  %v8231_v54 = vpop.f32.mrb[54].mxu1  ;;  %v9971_v59 = vmov 0.0  }
 0x16c   : > { %9969 = vst [vmem:[#allocation9_spill] sm:$0xff] %v8229_v47  ;;  %9970 = vst [vmem:[#allocation10_spill] sm:$0xff] %v8231_v54  ;;  %v6111_v23 = vpop.f32.mrb[55].mxu0  ;;  %v6355_v6 = vpop.f32.mrb[55].mxu1 }
 0x16d   : > { %v7119_v6 = vld [vmem:[%s7782_s23 + $0x30c] sm:$0xff]  }
 0x16e   : > { %6217 = vmatmul.mubr.bf16.gmra.mrb[160].mxu0 %v7116_v11  ;;  %6461 = vmatmul.mubr.bf16.gmra.mrb[160].mxu1 %v7117_v30 }
 0x16f   : > { %6220 = vmatprep.mubr.msk.bf16.mxu0 %vm7728_vm0, %v9971_v59  ;;  %6464 = vmatprep.mubr.msk.bf16.mxu1 %vm7728_vm0, %v9971_v59 }
 0x171   : > { %v8239_v18 = vpop.f32.mrb[56].mxu0  ;;  %v8241_v35 = vpop.f32.mrb[56].mxu1 }
 0x172   : > { %9972 = vst [vmem:[#allocation11_spill] sm:$0xff] %v8239_v18  ;;  %9973 = vst [vmem:[#allocation12_spill] sm:$0xff] %v8241_v35  ;;  %v6114_v40 = vpop.f32.mrb[57].mxu0  ;;  %v6358_v42 = vpop.f32.mrb[57].mxu1  ;;  %v7120_v18 = vld [vmem:[%s7782_s23 + $0x150] sm:$0xff]  }
 0x173   : > { %v8247_v23 = vpop.f32.mrb[58].mxu0  ;;  %v8249_v30 = vpop.f32.mrb[58].mxu1 }
 0x174   : > { %9974 = vst [vmem:[#allocation13_spill] sm:$0xff] %v8247_v23  ;;  %9975 = vst [vmem:[#allocation14_spill] sm:$0xff] %v8249_v30  ;;  %v6115_v1 = vpop.f32.mrb[59].mxu0  ;;  %v6359_v54 = vpop.f32.mrb[59].mxu1 }
 0x175   : > { %v7121_v1 = vld [vmem:[%s7782_s23 + $0x314] sm:$0xff]  }
 0x176   : > { %6221 = vmatmul.mubr.bf16.gmra.mrb[164].mxu0 %v7118_v29  ;;  %6465 = vmatmul.mubr.bf16.gmra.mrb[164].mxu1 %v7119_v6 }
 0x177   : > { %6224 = vmatprep.mubr.msk.bf16.mxu0 %vm7728_vm0, %v9971_v59  ;;  %6468 = vmatprep.mubr.msk.bf16.mxu1 %vm7728_vm0, %v9971_v59 }
 0x179   : > { %v8257_v42 = vpop.f32.mrb[60].mxu0  ;;  %v8259_v40 = vpop.f32.mrb[60].mxu1 }
 0x17a   : > { %9976 = vst [vmem:[#allocation15_spill] sm:$0xff] %v8257_v42  ;;  %9977 = vst [vmem:[#allocation16_spill] sm:$0xff] %v8259_v40  ;;  %v6118_v11 = vpop.f32.mrb[61].mxu0  ;;  %v6362_v35 = vpop.f32.mrb[61].mxu1  ;;  %v7122_v42 = vld [vmem:[%s7782_s23 + $0x158] sm:$0xff]  }
 0x17b   : > { %v8265_v54 = vpop.f32.mrb[62].mxu0  ;;  %v8267_v6 = vpop.f32.mrb[62].mxu1 }
 0x17c   : > { %9978 = vst [vmem:[#allocation17_spill] sm:$0xff] %v8265_v54  ;;  %9979 = vst [vmem:[#allocation18_spill] sm:$0xff] %v8267_v6  ;;  %v6119_v47 = vpop.f32.mrb[63].mxu0  ;;  %v6363_v30 = vpop.f32.mrb[63].mxu1 }
 0x17d   : > { %v7123_v47 = vld [vmem:[%s7782_s23 + $0x31c] sm:$0xff]  }
 0x17e   : > { %6225 = vmatmul.mubr.bf16.gmra.mrb[168].mxu0 %v7120_v18  ;;  %6469 = vmatmul.mubr.bf16.gmra.mrb[168].mxu1 %v7121_v1 }
 0x17f   : > { %6228 = vmatprep.mubr.msk.bf16.mxu0 %vm7728_vm0, %v9971_v59  ;;  %6472 = vmatprep.mubr.msk.bf16.mxu1 %vm7728_vm0, %v9971_v59 }
 0x181   : > { %v8275_v35 = vpop.f32.mrb[64].mxu0  ;;  %v8277_v11 = vpop.f32.mrb[64].mxu1 }
 0x182   : > { %9980 = vst [vmem:[#allocation19_spill] sm:$0xff] %v8275_v35  ;;  %9981 = vst [vmem:[#allocation20_spill] sm:$0xff] %v8277_v11  ;;  %v6122_v29 = vpop.f32.mrb[65].mxu0  ;;  %v6366_v40 = vpop.f32.mrb[65].mxu1  ;;  %v7124_v35 = vld [vmem:[%s7782_s23 + $0x160] sm:$0xff]  }
 0x183   : > { %v8283_v30 = vpop.f32.mrb[66].mxu0  ;;  %v8285_v1 = vpop.f32.mrb[66].mxu1 }
 0x184   : > { %9982 = vst [vmem:[#allocation21_spill] sm:$0xff] %v8283_v30  ;;  %9983 = vst [vmem:[#allocation22_spill] sm:$0xff] %v8285_v1  ;;  %v6123_v23 = vpop.f32.mrb[67].mxu0  ;;  %v6367_v6 = vpop.f32.mrb[67].mxu1 }
 0x185   : > { %v7125_v23 = vld [vmem:[%s7782_s23 + $0x324] sm:$0xff]  }
 0x186   : > { %6229 = vmatmul.mubr.bf16.gmra.mrb[172].mxu0 %v7122_v42  ;;  %6473 = vmatmul.mubr.bf16.gmra.mrb[172].mxu1 %v7123_v47 }
 0x187   : > { %6232 = vmatprep.mubr.msk.bf16.mxu0 %vm7728_vm0, %v9971_v59  ;;  %6476 = vmatprep.mubr.msk.bf16.mxu1 %vm7728_vm0, %v9971_v59 }
 0x189   : > { %v8293_v40 = vpop.f32.mrb[68].mxu0  ;;  %v8295_v29 = vpop.f32.mrb[68].mxu1 }
 0x18a   : > { %9984 = vst [vmem:[#allocation23_spill] sm:$0xff] %v8293_v40  ;;  %9985 = vst [vmem:[#allocation24_spill] sm:$0xff] %v8295_v29  ;;  %v6126_v18 = vpop.f32.mrb[69].mxu0  ;;  %v6370_v11 = vpop.f32.mrb[69].mxu1  ;;  %v7126_v40 = vld [vmem:[%s7782_s23 + $0x168] sm:$0xff]  }
 0x18b   : > { %v8301_v6 = vpop.f32.mrb[70].mxu0  ;;  %v8303_v47 = vpop.f32.mrb[70].mxu1 }
 0x18c   : > { %9986 = vst [vmem:[#allocation25_spill] sm:$0xff] %v8301_v6  ;;  %9987 = vst [vmem:[#allocation26_spill] sm:$0xff] %v8303_v47  ;;  %v6127_v54 = vpop.f32.mrb[71].mxu0  ;;  %v6371_v1 = vpop.f32.mrb[71].mxu1 }
 0x18d   : > { %v7127_v54 = vld [vmem:[%s7782_s23 + $0x32c] sm:$0xff]  }
 0x18e   : > { %6233 = vmatmul.mubr.bf16.gmra.mrb[176].mxu0 %v7124_v35  ;;  %6477 = vmatmul.mubr.bf16.gmra.mrb[176].mxu1 %v7125_v23 }
 0x18f   : > { %6236 = vmatprep.mubr.msk.bf16.mxu0 %vm7728_vm0, %v9971_v59  ;;  %6480 = vmatprep.mubr.msk.bf16.mxu1 %vm7728_vm0, %v9971_v59 }
 0x191   : > { %v8311_v11 = vpop.f32.mrb[72].mxu0  ;;  %v8313_v18 = vpop.f32.mrb[72].mxu1 }
 0x192   : > { %9988 = vst [vmem:[#allocation27_spill] sm:$0xff] %v8311_v11  ;;  %9989 = vst [vmem:[#allocation28_spill] sm:$0xff] %v8313_v18  ;;  %v6130_v42 = vpop.f32.mrb[73].mxu0  ;;  %v6374_v29 = vpop.f32.mrb[73].mxu1  ;;  %v7128_v11 = vld [vmem:[%s7782_s23 + $0x170] sm:$0xff]  }
 0x193   : > { %v8319_v1 = vpop.f32.mrb[74].mxu0  ;;  %v8321_v23 = vpop.f32.mrb[74].mxu1 }
 0x194   : > { %9990 = vst [vmem:[#allocation29_spill] sm:$0xff] %v8319_v1  ;;  %9991 = vst [vmem:[#allocation30_spill] sm:$0xff] %v8321_v23  ;;  %v6131_v30 = vpop.f32.mrb[75].mxu0  ;;  %v6375_v47 = vpop.f32.mrb[75].mxu1 }
 0x195   : > { %v7129_v30 = vld [vmem:[%s7782_s23 + $0x334] sm:$0xff]  }
 0x196   : > { %6237 = vmatmul.mubr.bf16.gmra.mrb[180].mxu0 %v7126_v40  ;;  %6481 = vmatmul.mubr.bf16.gmra.mrb[180].mxu1 %v7127_v54 }
 0x197   : > { %6240 = vmatprep.mubr.msk.bf16.mxu0 %vm7728_vm0, %v9971_v59  ;;  %6484 = vmatprep.mubr.msk.bf16.mxu1 %vm7728_vm0, %v9971_v59 }
 0x199   : > { %v8329_v29 = vpop.f32.mrb[76].mxu0  ;;  %v8331_v42 = vpop.f32.mrb[76].mxu1 }
 0x19a   : > { %9992 = vst [vmem:[#allocation31_spill] sm:$0xff] %v8329_v29  ;;  %9993 = vst [vmem:[#allocation32_spill] sm:$0xff] %v8331_v42  ;;  %v6134_v35 = vpop.f32.mrb[77].mxu0  ;;  %v6378_v18 = vpop.f32.mrb[77].mxu1  ;;  %v7130_v29 = vld [vmem:[%s7782_s23 + $0x178] sm:$0xff]  }
 0x19b   : > { %v8337_v47 = vpop.f32.mrb[78].mxu0  ;;  %v8339_v54 = vpop.f32.mrb[78].mxu1 }
 0x19c   : > { %9994 = vst [vmem:[#allocation33_spill] sm:$0xff] %v8337_v47  ;;  %9995 = vst [vmem:[#allocation34_spill] sm:$0xff] %v8339_v54  ;;  %v6135_v6 = vpop.f32.mrb[79].mxu0  ;;  %v6379_v23 = vpop.f32.mrb[79].mxu1 }
 0x19d   : > { %v7131_v6 = vld [vmem:[%s7782_s23 + $0x33c] sm:$0xff]  }
 0x19e   : > { %6241 = vmatmul.mubr.bf16.gmra.mrb[184].mxu0 %v7128_v11  ;;  %6485 = vmatmul.mubr.bf16.gmra.mrb[184].mxu1 %v7129_v30 }
 0x19f   : > { %6244 = vmatprep.mubr.msk.bf16.mxu0 %vm7728_vm0, %v9971_v59  ;;  %6488 = vmatprep.mubr.msk.bf16.mxu1 %vm7728_vm0, %v9971_v59 }
 0x1a1   : > { %v8347_v18 = vpop.f32.mrb[80].mxu0  ;;  %v8349_v35 = vpop.f32.mrb[80].mxu1 }
 0x1a2   : > { %9996 = vst [vmem:[#allocation35_spill] sm:$0xff] %v8347_v18  ;;  %9997 = vst [vmem:[#allocation36_spill] sm:$0xff] %v8349_v35  ;;  %v6138_v40 = vpop.f32.mrb[81].mxu0  ;;  %v6382_v42 = vpop.f32.mrb[81].mxu1  ;;  %v7132_v18 = vld [vmem:[%s7782_s23 + $0x180] sm:$0xff]  }
 0x1a3   : > { %v8355_v23 = vpop.f32.mrb[82].mxu0  ;;  %v8357_v30 = vpop.f32.mrb[82].mxu1 }
 0x1a4   : > { %9998 = vst [vmem:[#allocation37_spill] sm:$0xff] %v8355_v23  ;;  %9999 = vst [vmem:[#allocation38_spill] sm:$0xff] %v8357_v30  ;;  %v6139_v1 = vpop.f32.mrb[83].mxu0  ;;  %v6383_v54 = vpop.f32.mrb[83].mxu1 }
 0x1a5   : > { %v7133_v1 = vld [vmem:[%s7782_s23 + $0x344] sm:$0xff]  }
 0x1a6   : > { %6245 = vmatmul.mubr.bf16.gmra.mrb[188].mxu0 %v7130_v29  ;;  %6489 = vmatmul.mubr.bf16.gmra.mrb[188].mxu1 %v7131_v6 }
 0x1a7   : > { %6248 = vmatprep.mubr.msk.bf16.mxu0 %vm7728_vm0, %v9971_v59  ;;  %6492 = vmatprep.mubr.msk.bf16.mxu1 %vm7728_vm0, %v9971_v59 }
 0x1a9   : > { %v8365_v42 = vpop.f32.mrb[84].mxu0  ;;  %v8367_v40 = vpop.f32.mrb[84].mxu1 }
 0x1aa   : > { %10000 = vst [vmem:[#allocation39_spill] sm:$0xff] %v8365_v42  ;;  %10001 = vst [vmem:[#allocation40_spill] sm:$0xff] %v8367_v40  ;;  %v6142_v11 = vpop.f32.mrb[85].mxu0  ;;  %v6386_v35 = vpop.f32.mrb[85].mxu1  ;;  %v7134_v42 = vld [vmem:[%s7782_s23 + $0x188] sm:$0xff]  }
 0x1ab   : > { %v8373_v54 = vpop.f32.mrb[86].mxu0  ;;  %v8375_v6 = vpop.f32.mrb[86].mxu1 }
 0x1ac   : > { %10002 = vst [vmem:[#allocation41_spill] sm:$0xff] %v8373_v54  ;;  %10003 = vst [vmem:[#allocation42_spill] sm:$0xff] %v8375_v6  ;;  %v6143_v47 = vpop.f32.mrb[87].mxu0  ;;  %v6387_v30 = vpop.f32.mrb[87].mxu1 }
 0x1ad   : > { %v7135_v47 = vld [vmem:[%s7782_s23 + $0x34c] sm:$0xff]  }
 0x1ae   : > { %6249 = vmatmul.mubr.bf16.gmra.mrb[192].mxu0 %v7132_v18  ;;  %6493 = vmatmul.mubr.bf16.gmra.mrb[192].mxu1 %v7133_v1 }
 0x1af   : > { %6252 = vmatprep.mubr.msk.bf16.mxu0 %vm7728_vm0, %v9971_v59  ;;  %6496 = vmatprep.mubr.msk.bf16.mxu1 %vm7728_vm0, %v9971_v59 }
 0x1b1   : > { %v8383_v35 = vpop.f32.mrb[88].mxu0  ;;  %v8385_v11 = vpop.f32.mrb[88].mxu1 }
 0x1b2   : > { %10004 = vst [vmem:[#allocation43_spill] sm:$0xff] %v8383_v35  ;;  %10005 = vst [vmem:[#allocation44_spill] sm:$0xff] %v8385_v11  ;;  %v6146_v29 = vpop.f32.mrb[89].mxu0  ;;  %v6390_v40 = vpop.f32.mrb[89].mxu1  ;;  %v7136_v35 = vld [vmem:[%s7782_s23 + $0x190] sm:$0xff]  }
 0x1b3   : > { %v8391_v30 = vpop.f32.mrb[90].mxu0  ;;  %v8393_v1 = vpop.f32.mrb[90].mxu1 }
 0x1b4   : > { %10006 = vst [vmem:[#allocation45_spill] sm:$0xff] %v8391_v30  ;;  %10007 = vst [vmem:[#allocation46_spill] sm:$0xff] %v8393_v1  ;;  %v6147_v23 = vpop.f32.mrb[91].mxu0  ;;  %v6391_v6 = vpop.f32.mrb[91].mxu1 }
 0x1b5   : > { %v7137_v23 = vld [vmem:[%s7782_s23 + $0x354] sm:$0xff]  }
 0x1b6   : > { %6253 = vmatmul.mubr.bf16.gmra.mrb[196].mxu0 %v7134_v42  ;;  %6497 = vmatmul.mubr.bf16.gmra.mrb[196].mxu1 %v7135_v47 }
 0x1b7   : > { %6256 = vmatprep.mubr.msk.bf16.mxu0 %vm7728_vm0, %v9971_v59  ;;  %6500 = vmatprep.mubr.msk.bf16.mxu1 %vm7728_vm0, %v9971_v59 }
 0x1b9   : > { %v8401_v40 = vpop.f32.mrb[92].mxu0  ;;  %v8403_v29 = vpop.f32.mrb[92].mxu1 }
 0x1ba   : > { %10008 = vst [vmem:[#allocation47_spill] sm:$0xff] %v8401_v40  ;;  %10009 = vst [vmem:[#allocation48_spill] sm:$0xff] %v8403_v29  ;;  %v6150_v18 = vpop.f32.mrb[93].mxu0  ;;  %v6394_v11 = vpop.f32.mrb[93].mxu1  ;;  %v7138_v40 = vld [vmem:[%s7782_s23 + $0x198] sm:$0xff]  }
 0x1bb   : > { %v8409_v6 = vpop.f32.mrb[94].mxu0  ;;  %v8411_v47 = vpop.f32.mrb[94].mxu1 }
 0x1bc   : > { %10010 = vst [vmem:[#allocation49_spill] sm:$0xff] %v8409_v6  ;;  %10011 = vst [vmem:[#allocation50_spill] sm:$0xff] %v8411_v47  ;;  %v6151_v54 = vpop.f32.mrb[95].mxu0  ;;  %v6395_v1 = vpop.f32.mrb[95].mxu1 }
 0x1bd   : > { %v7139_v54 = vld [vmem:[%s7782_s23 + $0x35c] sm:$0xff]  }
 0x1be   : > { %6257 = vmatmul.mubr.bf16.gmra.mrb[200].mxu0 %v7136_v35  ;;  %6501 = vmatmul.mubr.bf16.gmra.mrb[200].mxu1 %v7137_v23 }
 0x1bf   : > { %6260 = vmatprep.mubr.msk.bf16.mxu0 %vm7728_vm0, %v9971_v59  ;;  %6504 = vmatprep.mubr.msk.bf16.mxu1 %vm7728_vm0, %v9971_v59 }
 0x1c1   : > { %v8419_v11 = vpop.f32.mrb[96].mxu0  ;;  %v8421_v18 = vpop.f32.mrb[96].mxu1 }
 0x1c2   : > { %10012 = vst [vmem:[#allocation51_spill] sm:$0xff] %v8419_v11  ;;  %10013 = vst [vmem:[#allocation52_spill] sm:$0xff] %v8421_v18  ;;  %v6154_v42 = vpop.f32.mrb[97].mxu0  ;;  %v6398_v29 = vpop.f32.mrb[97].mxu1  ;;  %v7140_v11 = vld [vmem:[%s7782_s23 + $0x1a0] sm:$0xff]  }
 0x1c3   : > { %v8427_v1 = vpop.f32.mrb[98].mxu0  ;;  %v8429_v23 = vpop.f32.mrb[98].mxu1 }
 0x1c4   : > { %10014 = vst [vmem:[#allocation53_spill] sm:$0xff] %v8427_v1  ;;  %10015 = vst [vmem:[#allocation54_spill] sm:$0xff] %v8429_v23  ;;  %v6155_v30 = vpop.f32.mrb[99].mxu0  ;;  %v6399_v47 = vpop.f32.mrb[99].mxu1 }
 0x1c5   : > { %v7141_v30 = vld [vmem:[%s7782_s23 + $0x364] sm:$0xff]  }
 0x1c6   : > { %6261 = vmatmul.mubr.bf16.gmra.mrb[204].mxu0 %v7138_v40  ;;  %6505 = vmatmul.mubr.bf16.gmra.mrb[204].mxu1 %v7139_v54 }
 0x1c7   : > { %6264 = vmatprep.mubr.msk.bf16.mxu0 %vm7728_vm0, %v9971_v59  ;;  %6508 = vmatprep.mubr.msk.bf16.mxu1 %vm7728_vm0, %v9971_v59 }
 0x1c9   : > { %v8437_v29 = vpop.f32.mrb[100].mxu0  ;;  %v8439_v42 = vpop.f32.mrb[100].mxu1 }
 0x1ca   : > { %10016 = vst [vmem:[#allocation55_spill] sm:$0xff] %v8437_v29  ;;  %10017 = vst [vmem:[#allocation56_spill] sm:$0xff] %v8439_v42  ;;  %v6158_v35 = vpop.f32.mrb[101].mxu0  ;;  %v6402_v18 = vpop.f32.mrb[101].mxu1  ;;  %v7142_v29 = vld [vmem:[%s7782_s23 + $0x1a8] sm:$0xff]  }
 0x1cb   : > { %v8445_v47 = vpop.f32.mrb[102].mxu0  ;;  %v8447_v54 = vpop.f32.mrb[102].mxu1 }
 0x1cc   : > { %10018 = vst [vmem:[#allocation57_spill] sm:$0xff] %v8445_v47  ;;  %10019 = vst [vmem:[#allocation58_spill] sm:$0xff] %v8447_v54  ;;  %v6159_v6 = vpop.f32.mrb[103].mxu0  ;;  %v6403_v23 = vpop.f32.mrb[103].mxu1 }
 0x1cd   : > { %v7143_v6 = vld [vmem:[%s7782_s23 + $0x36c] sm:$0xff]  }
 0x1ce   : > { %6265 = vmatmul.mubr.bf16.gmra.mrb[208].mxu0 %v7140_v11  ;;  %6509 = vmatmul.mubr.bf16.gmra.mrb[208].mxu1 %v7141_v30 }
 0x1cf   : > { %6268 = vmatprep.mubr.msk.bf16.mxu0 %vm7728_vm0, %v9971_v59  ;;  %6512 = vmatprep.mubr.msk.bf16.mxu1 %vm7728_vm0, %v9971_v59 }
 0x1d1   : > { %v8455_v18 = vpop.f32.mrb[104].mxu0  ;;  %v8457_v35 = vpop.f32.mrb[104].mxu1 }
 0x1d2   : > { %10020 = vst [vmem:[#allocation59_spill] sm:$0xff] %v8455_v18  ;;  %10021 = vst [vmem:[#allocation60_spill] sm:$0xff] %v8457_v35  ;;  %v6162_v40 = vpop.f32.mrb[105].mxu0  ;;  %v6406_v42 = vpop.f32.mrb[105].mxu1  ;;  %v7144_v18 = vld [vmem:[%s7782_s23 + $0x1b0] sm:$0xff]  }
 0x1d3   : > { %v8463_v23 = vpop.f32.mrb[106].mxu0  ;;  %v8465_v30 = vpop.f32.mrb[106].mxu1 }
 0x1d4   : > { %10022 = vst [vmem:[#allocation61_spill] sm:$0xff] %v8463_v23  ;;  %10023 = vst [vmem:[#allocation62_spill] sm:$0xff] %v8465_v30  ;;  %v6163_v1 = vpop.f32.mrb[107].mxu0  ;;  %v6407_v54 = vpop.f32.mrb[107].mxu1 }
 0x1d5   : > { %v7145_v1 = vld [vmem:[%s7782_s23 + $0x374] sm:$0xff]  }
 0x1d6   : > { %6269 = vmatmul.mubr.bf16.gmra.mrb[212].mxu0 %v7142_v29  ;;  %6513 = vmatmul.mubr.bf16.gmra.mrb[212].mxu1 %v7143_v6 }
 0x1d7   : > { %6272 = vmatprep.mubr.msk.bf16.mxu0 %vm7728_vm0, %v9971_v59  ;;  %6516 = vmatprep.mubr.msk.bf16.mxu1 %vm7728_vm0, %v9971_v59 }
 0x1d9   : > { %v8473_v42 = vpop.f32.mrb[108].mxu0  ;;  %v8475_v40 = vpop.f32.mrb[108].mxu1 }
 0x1da   : > { %10024 = vst [vmem:[#allocation63_spill] sm:$0xff] %v8473_v42  ;;  %10025 = vst [vmem:[#allocation64_spill] sm:$0xff] %v8475_v40  ;;  %v6166_v11 = vpop.f32.mrb[109].mxu0  ;;  %v6410_v35 = vpop.f32.mrb[109].mxu1 }
 0x1db   : > { %v8481_v54 = vpop.f32.mrb[110].mxu0  ;;  %v8483_v6 = vpop.f32.mrb[110].mxu1 }
 0x1dc   : > { %10026 = vst [vmem:[#allocation65_spill] sm:$0xff] %v8481_v54  ;;  %10027 = vst [vmem:[#allocation66_spill] sm:$0xff] %v8483_v6  ;;  %v6167_v47 = vpop.f32.mrb[111].mxu0  ;;  %v6411_v30 = vpop.f32.mrb[111].mxu1 }
 0x1dd   : > { %v7146_v47 = vld [vmem:[%s7782_s23 + $0x1b8] sm:$0xff]  }
 0x1de   : > { %6273 = vmatmul.mubr.bf16.gmra.mrb[216].mxu0 %v7144_v18  ;;  %6517 = vmatmul.mubr.bf16.gmra.mrb[216].mxu1 %v7145_v1  ;;  %v7147_v30 = vld [vmem:[%s7782_s23 + $0x37c] sm:$0xff]  }
 0x1df   : > { %6276 = vmatprep.mubr.msk.bf16.mxu0 %vm7728_vm0, %v9971_v59  ;;  %6520 = vmatprep.mubr.msk.bf16.mxu1 %vm7728_vm0, %v9971_v59  ;;  %v7148_v18 = vld [vmem:[%s7782_s23 + $0x1c0] ss:$0 sps:$4 sm:$0x33]  }
 0x1e1   : > { %v8491_v35 = vpop.f32.mrb[112].mxu0  ;;  %v8493_v11 = vpop.f32.mrb[112].mxu1 }
 0x1e2   : > { %10028 = vst [vmem:[#allocation67_spill] sm:$0xff] %v8491_v35  ;;  %10029 = vst [vmem:[#allocation68_spill] sm:$0xff] %v8493_v11  ;;  %v6170_v29 = vpop.f32.mrb[113].mxu0  ;;  %v6414_v40 = vpop.f32.mrb[113].mxu1 }
 0x1e3   : > { %v8499_v1 = vpop.f32.mrb[114].mxu0  ;;  %v8501_v23 = vpop.f32.mrb[114].mxu1 }
 0x1e4   : > { %10030 = vst [vmem:[#allocation69_spill] sm:$0xff] %v8499_v1  ;;  %10031 = vst [vmem:[#allocation70_spill] sm:$0xff] %v8501_v23  ;;  %v6171_v6 = vpop.f32.mrb[115].mxu0  ;;  %v6415_v54 = vpop.f32.mrb[115].mxu1 }
 0x1e5   : > { %v7149_v54 = vld [vmem:[%s7782_s23 + $0x384] ss:$0 sps:$4 sm:$0x33]  }
 0x1e6   : > { %6277 = vmatmul.mubr.bf16.gmra.mrb[220].mxu0 %v7146_v47  ;;  %6521 = vmatmul.mubr.bf16.gmra.mrb[220].mxu1 %v7147_v30 }
 0x1e7   : > { %6280 = vmatprep.mubr.msk.bf16.mxu0 %vm7728_vm0, %v9971_v59  ;;  %6524 = vmatprep.mubr.msk.bf16.mxu1 %vm7728_vm0, %v9971_v59 }
 0x1e9   : > { %v8509_v40 = vpop.f32.mrb[116].mxu0  ;;  %v8511_v29 = vpop.f32.mrb[116].mxu1 }
 0x1ea   : > { %10032 = vst [vmem:[#allocation71_spill] sm:$0xff] %v8509_v40  ;;  %10033 = vst [vmem:[#allocation72_spill] sm:$0xff] %v8511_v29  ;;  %v6174_v11 = vpop.f32.mrb[117].mxu0  ;;  %v6418_v35 = vpop.f32.mrb[117].mxu1  ;;  %v7150_v40 = vld [vmem:[%s7782_s23 + $0x388] sm:$0xff]  }
 0x1eb   : > { %v8517_v47 = vpop.f32.mrb[118].mxu0  ;;  %v8519_v30 = vpop.f32.mrb[118].mxu1 }
 0x1ec   : > { %10034 = vst [vmem:[#allocation73_spill] sm:$0xff] %v8517_v47  ;;  %10035 = vst [vmem:[#allocation74_spill] sm:$0xff] %v8519_v30  ;;  %v6175_v42 = vpop.f32.mrb[119].mxu0  ;;  %v6419_v23 = vpop.f32.mrb[119].mxu1 }
 0x1ed   : > { %v7151_v23 = vld [vmem:[%s7782_s23 + $0x54c] sm:$0xff]  }
 0x1ee   : > { %6281 = vmatmul.mubr.bf16.gmra.mrb[224].mxu0 %v7148_v18  ;;  %6525 = vmatmul.mubr.bf16.gmra.mrb[224].mxu1 %v7149_v54 }
 0x1ef   : > { %6544 = vmatprep.mubr.msk.bf16.mxu0 %vm7728_vm0, %v9971_v59  ;;  %6788 = vmatprep.mubr.msk.bf16.mxu1 %vm7728_vm0, %v9971_v59 }
 0x1f1   : > { %v8527_v35 = vpop.f32.mrb[120].mxu0  ;;  %v8529_v11 = vpop.f32.mrb[120].mxu1 }
 0x1f2   : > { %10036 = vst [vmem:[#allocation75_spill] sm:$0xff] %v8527_v35  ;;  %10037 = vst [vmem:[#allocation76_spill] sm:$0xff] %v8529_v11  ;;  %v6178_v6 = vpop.f32.mrb[121].mxu0  ;;  %v6422_v29 = vpop.f32.mrb[121].mxu1  ;;  %v7152_v35 = vld [vmem:[%s7782_s23 + $0x390] sm:$0xff]  }
 0x1f3   : > { %v8535_v18 = vpop.f32.mrb[122].mxu0  ;;  %v8537_v54 = vpop.f32.mrb[122].mxu1 }
 0x1f4   : > { %10038 = vst [vmem:[#allocation77_spill] sm:$0xff] %v8535_v18  ;;  %10039 = vst [vmem:[#allocation78_spill] sm:$0xff] %v8537_v54  ;;  %v6179_v1 = vpop.f32.mrb[123].mxu0  ;;  %v6423_v30 = vpop.f32.mrb[123].mxu1 }
 0x1f5   : > { %v7153_v1 = vld [vmem:[%s7782_s23 + $0x554] sm:$0xff]  }
 0x1f6   : > { %6545 = vmatmul.mubr.bf16.vlgmr.msra.gmra.mrb[228].mxu0 %v7150_v40  ;;  %6789 = vmatmul.mubr.bf16.vlgmr.msra.gmra.mrb[228].mxu1 %v7151_v23 }
 0x1f7   : > { %6548 = vmatprep.mubr.msk.bf16.mxu0 %vm7728_vm0, %v9971_v59  ;;  %6792 = vmatprep.mubr.msk.bf16.mxu1 %vm7728_vm0, %v9971_v59 }
 0x1f9   : > { %v8545_v29 = vpop.f32.mrb[124].mxu0  ;;  %v8547_v6 = vpop.f32.mrb[124].mxu1 }
 0x1fa   : > { %10040 = vst [vmem:[#allocation79_spill] sm:$0xff] %v8545_v29  ;;  %10041 = vst [vmem:[#allocation80_spill] sm:$0xff] %v8547_v6  ;;  %v6182_v42 = vpop.f32.mrb[125].mxu0  ;;  %v6426_v11 = vpop.f32.mrb[125].mxu1  ;;  %v7154_v29 = vld [vmem:[%s7782_s23 + $0x398] sm:$0xff]  }
 0x1fb   : > { %v8553_v30 = vpop.f32.mrb[126].mxu0  ;;  %v8555_v23 = vpop.f32.mrb[126].mxu1 }
 0x1fc   : > { %10042 = vst [vmem:[#allocation81_spill] sm:$0xff] %v8553_v30  ;;  %10043 = vst [vmem:[#allocation82_spill] sm:$0xff] %v8555_v23  ;;  %v6183_v47 = vpop.f32.mrb[127].mxu0  ;;  %v6427_v54 = vpop.f32.mrb[127].mxu1 }
 0x1fd   : > { %v7155_v47 = vld [vmem:[%s7782_s23 + $0x55c] sm:$0xff]  }
 0x1fe   : > { %6549 = vmatmul.mubr.bf16.gmra.mrb[232].mxu0 %v7152_v35  ;;  %6793 = vmatmul.mubr.bf16.gmra.mrb[232].mxu1 %v7153_v1 }
 0x1ff   : > { %6552 = vmatprep.mubr.msk.bf16.mxu0 %vm7728_vm0, %v9971_v59  ;;  %6796 = vmatprep.mubr.msk.bf16.mxu1 %vm7728_vm0, %v9971_v59 }
 0x201   : > { %v8563_v11 = vpop.f32.mrb[128].mxu0  ;;  %v8565_v42 = vpop.f32.mrb[128].mxu1 }
 0x202   : > { %10044 = vst [vmem:[#allocation83_spill] sm:$0xff] %v8563_v11  ;;  %10045 = vst [vmem:[#allocation84_spill] sm:$0xff] %v8565_v42  ;;  %v6186_v40 = vpop.f32.mrb[129].mxu0  ;;  %v6430_v6 = vpop.f32.mrb[129].mxu1  ;;  %v7156_v11 = vld [vmem:[%s7782_s23 + $0x3a0] sm:$0xff]  }
 0x203   : > { %v8571_v54 = vpop.f32.mrb[130].mxu0  ;;  %v8573_v1 = vpop.f32.mrb[130].mxu1 }
 0x204   : > { %10046 = vst [vmem:[#allocation85_spill] sm:$0xff] %v8571_v54  ;;  %10047 = vst [vmem:[#allocation86_spill] sm:$0xff] %v8573_v1  ;;  %v6187_v18 = vpop.f32.mrb[131].mxu0  ;;  %v6431_v23 = vpop.f32.mrb[131].mxu1 }
 0x205   : > { %v7157_v18 = vld [vmem:[%s7782_s23 + $0x564] sm:$0xff]  }
 0x206   : > { %6553 = vmatmul.mubr.bf16.gmra.mrb[236].mxu0 %v7154_v29  ;;  %6797 = vmatmul.mubr.bf16.gmra.mrb[236].mxu1 %v7155_v47 }
 0x207   : > { %6556 = vmatprep.mubr.msk.bf16.mxu0 %vm7728_vm0, %v9971_v59  ;;  %6800 = vmatprep.mubr.msk.bf16.mxu1 %vm7728_vm0, %v9971_v59 }
 0x209   : > { %v8581_v6 = vpop.f32.mrb[132].mxu0  ;;  %v8583_v40 = vpop.f32.mrb[132].mxu1 }
 0x20a   : > { %10048 = vst [vmem:[#allocation87_spill] sm:$0xff] %v8581_v6  ;;  %10049 = vst [vmem:[#allocation88_spill] sm:$0xff] %v8583_v40  ;;  %v6190_v35 = vpop.f32.mrb[133].mxu0  ;;  %v6434_v42 = vpop.f32.mrb[133].mxu1  ;;  %v7158_v6 = vld [vmem:[%s7782_s23 + $0x3a8] sm:$0xff]  }
 0x20b   : > { %v8589_v23 = vpop.f32.mrb[134].mxu0  ;;  %v8591_v47 = vpop.f32.mrb[134].mxu1 }
 0x20c   : > { %10050 = vst [vmem:[#allocation89_spill] sm:$0xff] %v8589_v23  ;;  %10051 = vst [vmem:[#allocation90_spill] sm:$0xff] %v8591_v47  ;;  %v6191_v30 = vpop.f32.mrb[135].mxu0  ;;  %v6435_v1 = vpop.f32.mrb[135].mxu1 }
 0x20d   : > { %v7159_v30 = vld [vmem:[%s7782_s23 + $0x56c] sm:$0xff]  }
 0x20e   : > { %6557 = vmatmul.mubr.bf16.gmra.mrb[240].mxu0 %v7156_v11  ;;  %6801 = vmatmul.mubr.bf16.gmra.mrb[240].mxu1 %v7157_v18 }
 0x20f   : > { %6560 = vmatprep.mubr.msk.bf16.mxu0 %vm7728_vm0, %v9971_v59  ;;  %6804 = vmatprep.mubr.msk.bf16.mxu1 %vm7728_vm0, %v9971_v59 }
 0x211   : > { %v8599_v42 = vpop.f32.mrb[136].mxu0  ;;  %v8601_v35 = vpop.f32.mrb[136].mxu1 }
 0x212   : > { %10052 = vst [vmem:[#allocation91_spill] sm:$0xff] %v8599_v42  ;;  %10053 = vst [vmem:[#allocation92_spill] sm:$0xff] %v8601_v35  ;;  %v6194_v29 = vpop.f32.mrb[137].mxu0  ;;  %v6438_v40 = vpop.f32.mrb[137].mxu1  ;;  %v7160_v42 = vld [vmem:[%s7782_s23 + $0x3b0] sm:$0xff]  }
 0x213   : > { %v8607_v1 = vpop.f32.mrb[138].mxu0  ;;  %v8609_v18 = vpop.f32.mrb[138].mxu1 }
 0x214   : > { %10054 = vst [vmem:[#allocation93_spill] sm:$0xff] %v8607_v1  ;;  %10055 = vst [vmem:[#allocation94_spill] sm:$0xff] %v8609_v18  ;;  %v6195_v54 = vpop.f32.mrb[139].mxu0  ;;  %v6439_v47 = vpop.f32.mrb[139].mxu1 }
 0x215   : > { %v7161_v54 = vld [vmem:[%s7782_s23 + $0x574] sm:$0xff]  }
 0x216   : > { %6561 = vmatmul.mubr.bf16.gmra.mrb[244].mxu0 %v7158_v6  ;;  %6805 = vmatmul.mubr.bf16.gmra.mrb[244].mxu1 %v7159_v30 }
 0x217   : > { %6564 = vmatprep.mubr.msk.bf16.mxu0 %vm7728_vm0, %v9971_v59  ;;  %6808 = vmatprep.mubr.msk.bf16.mxu1 %vm7728_vm0, %v9971_v59 }
 0x219   : > { %v8617_v40 = vpop.f32.mrb[140].mxu0  ;;  %v8619_v29 = vpop.f32.mrb[140].mxu1 }
 0x21a   : > { %10056 = vst [vmem:[#allocation95_spill] sm:$0xff] %v8617_v40  ;;  %10057 = vst [vmem:[#allocation96_spill] sm:$0xff] %v8619_v29  ;;  %v6198_v11 = vpop.f32.mrb[141].mxu0  ;;  %v6442_v35 = vpop.f32.mrb[141].mxu1  ;;  %v7162_v40 = vld [vmem:[%s7782_s23 + $0x3b8] sm:$0xff]  }
 0x21b   : > { %v8625_v47 = vpop.f32.mrb[142].mxu0  ;;  %v8627_v30 = vpop.f32.mrb[142].mxu1 }
 0x21c   : > { %10058 = vst [vmem:[#allocation97_spill] sm:$0xff] %v8625_v47  ;;  %10059 = vst [vmem:[#allocation98_spill] sm:$0xff] %v8627_v30  ;;  %v6199_v23 = vpop.f32.mrb[143].mxu0  ;;  %v6443_v18 = vpop.f32.mrb[143].mxu1 }
 0x21d   : > { %v7163_v23 = vld [vmem:[%s7782_s23 + $0x57c] sm:$0xff]  }
 0x21e   : > { %6565 = vmatmul.mubr.bf16.gmra.mrb[248].mxu0 %v7160_v42  ;;  %6809 = vmatmul.mubr.bf16.gmra.mrb[248].mxu1 %v7161_v54 }
 0x21f   : > { %6568 = vmatprep.mubr.msk.bf16.mxu0 %vm7728_vm0, %v9971_v59  ;;  %6812 = vmatprep.mubr.msk.bf16.mxu1 %vm7728_vm0, %v9971_v59 }
 0x221   : > { %v8635_v35 = vpop.f32.mrb[144].mxu0  ;;  %v8637_v11 = vpop.f32.mrb[144].mxu1 }
 0x222   : > { %10060 = vst [vmem:[#allocation99_spill] sm:$0xff] %v8635_v35  ;;  %10061 = vst [vmem:[#allocation100_spill] sm:$0xff] %v8637_v11  ;;  %v6202_v6 = vpop.f32.mrb[145].mxu0  ;;  %v6446_v29 = vpop.f32.mrb[145].mxu1  ;;  %v7164_v35 = vld [vmem:[%s7782_s23 + $0x3c0] sm:$0xff]  }
 0x223   : > { %v8643_v18 = vpop.f32.mrb[146].mxu0  ;;  %v8645_v54 = vpop.f32.mrb[146].mxu1 }
 0x224   : > { %10062 = vst [vmem:[#allocation101_spill] sm:$0xff] %v8643_v18  ;;  %10063 = vst [vmem:[#allocation102_spill] sm:$0xff] %v8645_v54  ;;  %v6203_v1 = vpop.f32.mrb[147].mxu0  ;;  %v6447_v30 = vpop.f32.mrb[147].mxu1 }
 0x225   : > { %v7165_v1 = vld [vmem:[%s7782_s23 + $0x584] sm:$0xff]  }
 0x226   : > { %6569 = vmatmul.mubr.bf16.gmra.mrb[252].mxu0 %v7162_v40  ;;  %6813 = vmatmul.mubr.bf16.gmra.mrb[252].mxu1 %v7163_v23 }
 0x227   : > { %6572 = vmatprep.mubr.msk.bf16.mxu0 %vm7728_vm0, %v9971_v59  ;;  %6816 = vmatprep.mubr.msk.bf16.mxu1 %vm7728_vm0, %v9971_v59 }
 0x229   : > { %v8653_v29 = vpop.f32.mrb[148].mxu0  ;;  %v8655_v6 = vpop.f32.mrb[148].mxu1 }
 0x22a   : > { %10064 = vst [vmem:[#allocation103_spill] sm:$0xff] %v8653_v29  ;;  %10065 = vst [vmem:[#allocation104_spill] sm:$0xff] %v8655_v6  ;;  %v6206_v42 = vpop.f32.mrb[149].mxu0  ;;  %v6450_v11 = vpop.f32.mrb[149].mxu1  ;;  %v7166_v29 = vld [vmem:[%s7782_s23 + $0x3c8] sm:$0xff]  }
 0x22b   : > { %v8661_v30 = vpop.f32.mrb[150].mxu0  ;;  %v8663_v23 = vpop.f32.mrb[150].mxu1 }
 0x22c   : > { %10066 = vst [vmem:[#allocation105_spill] sm:$0xff] %v8661_v30  ;;  %10067 = vst [vmem:[#allocation106_spill] sm:$0xff] %v8663_v23  ;;  %v6207_v47 = vpop.f32.mrb[151].mxu0  ;;  %v6451_v54 = vpop.f32.mrb[151].mxu1 }
 0x22d   : > { %v7167_v47 = vld [vmem:[%s7782_s23 + $0x58c] sm:$0xff]  }
 0x22e   : > { %6573 = vmatmul.mubr.bf16.gmra.mrb[0].mxu0 %v7164_v35  ;;  %6817 = vmatmul.mubr.bf16.gmra.mrb[0].mxu1 %v7165_v1 }
 0x22f   : > { %6576 = vmatprep.mubr.msk.bf16.mxu0 %vm7728_vm0, %v9971_v59  ;;  %6820 = vmatprep.mubr.msk.bf16.mxu1 %vm7728_vm0, %v9971_v59 }
 0x231   : > { %v8671_v11 = vpop.f32.mrb[152].mxu0  ;;  %v8673_v42 = vpop.f32.mrb[152].mxu1 }
 0x232   : > { %10068 = vst [vmem:[#allocation107_spill] sm:$0xff] %v8671_v11  ;;  %10069 = vst [vmem:[#allocation108_spill] sm:$0xff] %v8673_v42  ;;  %v6210_v40 = vpop.f32.mrb[153].mxu0  ;;  %v6454_v6 = vpop.f32.mrb[153].mxu1  ;;  %v7168_v11 = vld [vmem:[%s7782_s23 + $0x3d0] sm:$0xff]  }
 0x233   : > { %v8679_v54 = vpop.f32.mrb[154].mxu0  ;;  %v8681_v1 = vpop.f32.mrb[154].mxu1 }
 0x234   : > { %10070 = vst [vmem:[#allocation109_spill] sm:$0xff] %v8679_v54  ;;  %10071 = vst [vmem:[#allocation110_spill] sm:$0xff] %v8681_v1  ;;  %v6211_v18 = vpop.f32.mrb[155].mxu0  ;;  %v6455_v23 = vpop.f32.mrb[155].mxu1 }
 0x235   : > { %v7169_v18 = vld [vmem:[%s7782_s23 + $0x594] sm:$0xff]  }
 0x236   : > { %6577 = vmatmul.mubr.bf16.gmra.mrb[4].mxu0 %v7166_v29  ;;  %6821 = vmatmul.mubr.bf16.gmra.mrb[4].mxu1 %v7167_v47 }
 0x237   : > { %6580 = vmatprep.mubr.msk.bf16.mxu0 %vm7728_vm0, %v9971_v59  ;;  %6824 = vmatprep.mubr.msk.bf16.mxu1 %vm7728_vm0, %v9971_v59 }
 0x239   : > { %v8689_v6 = vpop.f32.mrb[156].mxu0  ;;  %v8691_v40 = vpop.f32.mrb[156].mxu1 }
 0x23a   : > { %10072 = vst [vmem:[#allocation111_spill] sm:$0xff] %v8689_v6  ;;  %10073 = vst [vmem:[#allocation112_spill] sm:$0xff] %v8691_v40  ;;  %v6214_v35 = vpop.f32.mrb[157].mxu0  ;;  %v6458_v42 = vpop.f32.mrb[157].mxu1  ;;  %v7170_v6 = vld [vmem:[%s7782_s23 + $0x3d8] sm:$0xff]  }
 0x23b   : > { %v8697_v23 = vpop.f32.mrb[158].mxu0  ;;  %v8699_v47 = vpop.f32.mrb[158].mxu1 }
 0x23c   : > { %10074 = vst [vmem:[#allocation113_spill] sm:$0xff] %v8697_v23  ;;  %10075 = vst [vmem:[#allocation114_spill] sm:$0xff] %v8699_v47  ;;  %v6215_v30 = vpop.f32.mrb[159].mxu0  ;;  %v6459_v1 = vpop.f32.mrb[159].mxu1 }
 0x23d   : > { %v7171_v30 = vld [vmem:[%s7782_s23 + $0x59c] sm:$0xff]  }
 0x23e   : > { %6581 = vmatmul.mubr.bf16.gmra.mrb[8].mxu0 %v7168_v11  ;;  %6825 = vmatmul.mubr.bf16.gmra.mrb[8].mxu1 %v7169_v18 }
 0x23f   : > { %6584 = vmatprep.mubr.msk.bf16.mxu0 %vm7728_vm0, %v9971_v59  ;;  %6828 = vmatprep.mubr.msk.bf16.mxu1 %vm7728_vm0, %v9971_v59 }
 0x241   : > { %v8707_v42 = vpop.f32.mrb[160].mxu0  ;;  %v8709_v35 = vpop.f32.mrb[160].mxu1 }
 0x242   : > { %10076 = vst [vmem:[#allocation115_spill] sm:$0xff] %v8707_v42  ;;  %10077 = vst [vmem:[#allocation116_spill] sm:$0xff] %v8709_v35  ;;  %v6218_v29 = vpop.f32.mrb[161].mxu0  ;;  %v6462_v40 = vpop.f32.mrb[161].mxu1  ;;  %v7172_v42 = vld [vmem:[%s7782_s23 + $0x3e0] sm:$0xff]  }
 0x243   : > { %v8715_v1 = vpop.f32.mrb[162].mxu0  ;;  %v8717_v18 = vpop.f32.mrb[162].mxu1 }
 0x244   : > { %10078 = vst [vmem:[#allocation117_spill] sm:$0xff] %v8715_v1  ;;  %10079 = vst [vmem:[#allocation118_spill] sm:$0xff] %v8717_v18  ;;  %v6219_v54 = vpop.f32.mrb[163].mxu0  ;;  %v6463_v47 = vpop.f32.mrb[163].mxu1 }
 0x245   : > { %v7173_v54 = vld [vmem:[%s7782_s23 + $0x5a4] sm:$0xff]  }
 0x246   : > { %6585 = vmatmul.mubr.bf16.gmra.mrb[12].mxu0 %v7170_v6  ;;  %6829 = vmatmul.mubr.bf16.gmra.mrb[12].mxu1 %v7171_v30 }
 0x247   : > { %6588 = vmatprep.mubr.msk.bf16.mxu0 %vm7728_vm0, %v9971_v59  ;;  %6832 = vmatprep.mubr.msk.bf16.mxu1 %vm7728_vm0, %v9971_v59 }
 0x249   : > { %v8725_v40 = vpop.f32.mrb[164].mxu0  ;;  %v8727_v29 = vpop.f32.mrb[164].mxu1 }
 0x24a   : > { %10080 = vst [vmem:[#allocation119_spill] sm:$0xff] %v8725_v40  ;;  %10081 = vst [vmem:[#allocation120_spill] sm:$0xff] %v8727_v29  ;;  %v6222_v11 = vpop.f32.mrb[165].mxu0  ;;  %v6466_v35 = vpop.f32.mrb[165].mxu1  ;;  %v7174_v40 = vld [vmem:[%s7782_s23 + $0x3e8] sm:$0xff]  }
 0x24b   : > { %v8733_v47 = vpop.f32.mrb[166].mxu0  ;;  %v8735_v30 = vpop.f32.mrb[166].mxu1 }
 0x24c   : > { %10082 = vst [vmem:[#allocation121_spill] sm:$0xff] %v8733_v47  ;;  %10083 = vst [vmem:[#allocation122_spill] sm:$0xff] %v8735_v30  ;;  %v6223_v23 = vpop.f32.mrb[167].mxu0  ;;  %v6467_v18 = vpop.f32.mrb[167].mxu1 }
 0x24d   : > { %v7175_v23 = vld [vmem:[%s7782_s23 + $0x5ac] sm:$0xff]  }
 0x24e   : > { %6589 = vmatmul.mubr.bf16.gmra.mrb[16].mxu0 %v7172_v42  ;;  %6833 = vmatmul.mubr.bf16.gmra.mrb[16].mxu1 %v7173_v54 }
 0x24f   : > { %6592 = vmatprep.mubr.msk.bf16.mxu0 %vm7728_vm0, %v9971_v59  ;;  %6836 = vmatprep.mubr.msk.bf16.mxu1 %vm7728_vm0, %v9971_v59 }
 0x251   : > { %v8743_v35 = vpop.f32.mrb[168].mxu0  ;;  %v8745_v11 = vpop.f32.mrb[168].mxu1 }
 0x252   : > { %10084 = vst [vmem:[#allocation123_spill] sm:$0xff] %v8743_v35  ;;  %10085 = vst [vmem:[#allocation124_spill] sm:$0xff] %v8745_v11  ;;  %v6226_v6 = vpop.f32.mrb[169].mxu0  ;;  %v6470_v29 = vpop.f32.mrb[169].mxu1  ;;  %v7176_v35 = vld [vmem:[%s7782_s23 + $0x3f0] sm:$0xff]  }
 0x253   : > { %v8751_v18 = vpop.f32.mrb[170].mxu0  ;;  %v8753_v54 = vpop.f32.mrb[170].mxu1 }
 0x254   : > { %10086 = vst [vmem:[#allocation125_spill] sm:$0xff] %v8751_v18  ;;  %10087 = vst [vmem:[#allocation126_spill] sm:$0xff] %v8753_v54  ;;  %v6227_v1 = vpop.f32.mrb[171].mxu0  ;;  %v6471_v30 = vpop.f32.mrb[171].mxu1 }
 0x255   : > { %v7177_v1 = vld [vmem:[%s7782_s23 + $0x5b4] sm:$0xff]  }
 0x256   : > { %6593 = vmatmul.mubr.bf16.gmra.mrb[20].mxu0 %v7174_v40  ;;  %6837 = vmatmul.mubr.bf16.gmra.mrb[20].mxu1 %v7175_v23 }
 0x257   : > { %6596 = vmatprep.mubr.msk.bf16.mxu0 %vm7728_vm0, %v9971_v59  ;;  %6840 = vmatprep.mubr.msk.bf16.mxu1 %vm7728_vm0, %v9971_v59 }
 0x259   : > { %v8761_v29 = vpop.f32.mrb[172].mxu0  ;;  %v8763_v6 = vpop.f32.mrb[172].mxu1 }
 0x25a   : > { %10088 = vst [vmem:[#allocation127_spill] sm:$0xff] %v8761_v29  ;;  %10089 = vst [vmem:[#allocation128_spill] sm:$0xff] %v8763_v6  ;;  %v6230_v42 = vpop.f32.mrb[173].mxu0  ;;  %v6474_v11 = vpop.f32.mrb[173].mxu1  ;;  %v7178_v29 = vld [vmem:[%s7782_s23 + $0x3f8] sm:$0xff]  }
 0x25b   : > { %v8769_v30 = vpop.f32.mrb[174].mxu0  ;;  %v8771_v23 = vpop.f32.mrb[174].mxu1 }
 0x25c   : > { %10090 = vst [vmem:[#allocation129_spill] sm:$0xff] %v8769_v30  ;;  %10091 = vst [vmem:[#allocation130_spill] sm:$0xff] %v8771_v23  ;;  %v6231_v47 = vpop.f32.mrb[175].mxu0  ;;  %v6475_v54 = vpop.f32.mrb[175].mxu1 }
 0x25d   : > { %v7179_v47 = vld [vmem:[%s7782_s23 + $0x5bc] sm:$0xff]  }
 0x25e   : > { %6597 = vmatmul.mubr.bf16.gmra.mrb[24].mxu0 %v7176_v35  ;;  %6841 = vmatmul.mubr.bf16.gmra.mrb[24].mxu1 %v7177_v1 }
 0x25f   : > { %6600 = vmatprep.mubr.msk.bf16.mxu0 %vm7728_vm0, %v9971_v59  ;;  %6844 = vmatprep.mubr.msk.bf16.mxu1 %vm7728_vm0, %v9971_v59 }
 0x261   : > { %v8779_v11 = vpop.f32.mrb[176].mxu0  ;;  %v8781_v42 = vpop.f32.mrb[176].mxu1 }
 0x262   : > { %10092 = vst [vmem:[#allocation131_spill] sm:$0xff] %v8779_v11  ;;  %10093 = vst [vmem:[#allocation132_spill] sm:$0xff] %v8781_v42  ;;  %v6234_v40 = vpop.f32.mrb[177].mxu0  ;;  %v6478_v6 = vpop.f32.mrb[177].mxu1  ;;  %v7180_v11 = vld [vmem:[%s7782_s23 + $0x400] sm:$0xff]  }
 0x263   : > { %v8787_v54 = vpop.f32.mrb[178].mxu0  ;;  %v8789_v1 = vpop.f32.mrb[178].mxu1 }
 0x264   : > { %10094 = vst [vmem:[#allocation133_spill] sm:$0xff] %v8787_v54  ;;  %10095 = vst [vmem:[#allocation134_spill] sm:$0xff] %v8789_v1  ;;  %v6235_v18 = vpop.f32.mrb[179].mxu0  ;;  %v6479_v23 = vpop.f32.mrb[179].mxu1 }
 0x265   : > { %v7181_v18 = vld [vmem:[%s7782_s23 + $0x5c4] sm:$0xff]  }
 0x266   : > { %6601 = vmatmul.mubr.bf16.gmra.mrb[28].mxu0 %v7178_v29  ;;  %6845 = vmatmul.mubr.bf16.gmra.mrb[28].mxu1 %v7179_v47 }
 0x267   : > { %6604 = vmatprep.mubr.msk.bf16.mxu0 %vm7728_vm0, %v9971_v59  ;;  %6848 = vmatprep.mubr.msk.bf16.mxu1 %vm7728_vm0, %v9971_v59 }
 0x269   : > { %v8797_v6 = vpop.f32.mrb[180].mxu0  ;;  %v8799_v40 = vpop.f32.mrb[180].mxu1 }
 0x26a   : > { %10096 = vst [vmem:[#allocation135_spill] sm:$0xff] %v8797_v6  ;;  %10097 = vst [vmem:[#allocation136_spill] sm:$0xff] %v8799_v40  ;;  %v6238_v35 = vpop.f32.mrb[181].mxu0  ;;  %v6482_v42 = vpop.f32.mrb[181].mxu1  ;;  %v7182_v6 = vld [vmem:[%s7782_s23 + $0x408] sm:$0xff]  }
 0x26b   : > { %v8805_v23 = vpop.f32.mrb[182].mxu0  ;;  %v8807_v47 = vpop.f32.mrb[182].mxu1 }
 0x26c   : > { %10098 = vst [vmem:[#allocation137_spill] sm:$0xff] %v8805_v23  ;;  %10099 = vst [vmem:[#allocation138_spill] sm:$0xff] %v8807_v47  ;;  %v6239_v30 = vpop.f32.mrb[183].mxu0  ;;  %v6483_v1 = vpop.f32.mrb[183].mxu1 }
 0x26d   : > { %v7183_v30 = vld [vmem:[%s7782_s23 + $0x5cc] sm:$0xff]  }
 0x26e   : > { %6605 = vmatmul.mubr.bf16.gmra.mrb[32].mxu0 %v7180_v11  ;;  %6849 = vmatmul.mubr.bf16.gmra.mrb[32].mxu1 %v7181_v18 }
 0x26f   : > { %6608 = vmatprep.mubr.msk.bf16.mxu0 %vm7728_vm0, %v9971_v59  ;;  %6852 = vmatprep.mubr.msk.bf16.mxu1 %vm7728_vm0, %v9971_v59 }
 0x271   : > { %v8815_v42 = vpop.f32.mrb[184].mxu0  ;;  %v8817_v35 = vpop.f32.mrb[184].mxu1 }
 0x272   : > { %10100 = vst [vmem:[#allocation139_spill] sm:$0xff] %v8815_v42  ;;  %10101 = vst [vmem:[#allocation140_spill] sm:$0xff] %v8817_v35  ;;  %v6242_v29 = vpop.f32.mrb[185].mxu0  ;;  %v6486_v40 = vpop.f32.mrb[185].mxu1  ;;  %v7184_v42 = vld [vmem:[%s7782_s23 + $0x410] sm:$0xff]  }
 0x273   : > { %v8823_v1 = vpop.f32.mrb[186].mxu0  ;;  %v8825_v18 = vpop.f32.mrb[186].mxu1 }
 0x274   : > { %10102 = vst [vmem:[#allocation141_spill] sm:$0xff] %v8823_v1  ;;  %10103 = vst [vmem:[#allocation142_spill] sm:$0xff] %v8825_v18  ;;  %v6243_v54 = vpop.f32.mrb[187].mxu0  ;;  %v6487_v47 = vpop.f32.mrb[187].mxu1 }
 0x275   : > { %v7185_v54 = vld [vmem:[%s7782_s23 + $0x5d4] sm:$0xff]  }
 0x276   : > { %6609 = vmatmul.mubr.bf16.gmra.mrb[36].mxu0 %v7182_v6  ;;  %6853 = vmatmul.mubr.bf16.gmra.mrb[36].mxu1 %v7183_v30 }
 0x277   : > { %6612 = vmatprep.mubr.msk.bf16.mxu0 %vm7728_vm0, %v9971_v59  ;;  %6856 = vmatprep.mubr.msk.bf16.mxu1 %vm7728_vm0, %v9971_v59 }
 0x279   : > { %v8833_v40 = vpop.f32.mrb[188].mxu0  ;;  %v8835_v29 = vpop.f32.mrb[188].mxu1 }
 0x27a   : > { %10104 = vst [vmem:[#allocation143_spill] sm:$0xff] %v8833_v40  ;;  %10105 = vst [vmem:[#allocation144_spill] sm:$0xff] %v8835_v29  ;;  %v6246_v11 = vpop.f32.mrb[189].mxu0  ;;  %v6490_v35 = vpop.f32.mrb[189].mxu1  ;;  %v7186_v40 = vld [vmem:[%s7782_s23 + $0x418] sm:$0xff]  }
 0x27b   : > { %v8841_v47 = vpop.f32.mrb[190].mxu0  ;;  %v8843_v30 = vpop.f32.mrb[190].mxu1 }
 0x27c   : > { %10106 = vst [vmem:[#allocation145_spill] sm:$0xff] %v8841_v47  ;;  %10107 = vst [vmem:[#allocation146_spill] sm:$0xff] %v8843_v30  ;;  %v6247_v23 = vpop.f32.mrb[191].mxu0  ;;  %v6491_v18 = vpop.f32.mrb[191].mxu1 }
 0x27d   : > { %v7187_v23 = vld [vmem:[%s7782_s23 + $0x5dc] sm:$0xff]  }
 0x27e   : > { %6613 = vmatmul.mubr.bf16.gmra.mrb[40].mxu0 %v7184_v42  ;;  %6857 = vmatmul.mubr.bf16.gmra.mrb[40].mxu1 %v7185_v54 }
 0x27f   : > { %6616 = vmatprep.mubr.msk.bf16.mxu0 %vm7728_vm0, %v9971_v59  ;;  %6860 = vmatprep.mubr.msk.bf16.mxu1 %vm7728_vm0, %v9971_v59 }
 0x281   : > { %v8851_v35 = vpop.f32.mrb[192].mxu0  ;;  %v8853_v11 = vpop.f32.mrb[192].mxu1 }
 0x282   : > { %10108 = vst [vmem:[#allocation147_spill] sm:$0xff] %v8851_v35  ;;  %10109 = vst [vmem:[#allocation148_spill] sm:$0xff] %v8853_v11  ;;  %v6250_v6 = vpop.f32.mrb[193].mxu0  ;;  %v6494_v29 = vpop.f32.mrb[193].mxu1  ;;  %v7188_v35 = vld [vmem:[%s7782_s23 + $0x420] sm:$0xff]  }
 0x283   : > { %v8859_v18 = vpop.f32.mrb[194].mxu0  ;;  %v8861_v54 = vpop.f32.mrb[194].mxu1 }
 0x284   : > { %10110 = vst [vmem:[#allocation149_spill] sm:$0xff] %v8859_v18  ;;  %10111 = vst [vmem:[#allocation150_spill] sm:$0xff] %v8861_v54  ;;  %v6251_v1 = vpop.f32.mrb[195].mxu0  ;;  %v6495_v30 = vpop.f32.mrb[195].mxu1  ;;  %v7191_v18 = vld [vmem:[%s7782_s23 + $0x5ec] sm:$0xff]  }
 0x285   : > { %v7189_v1 = vld [vmem:[%s7782_s23 + $0x5e4] sm:$0xff]  }
 0x286   : > { %6617 = vmatmul.mubr.bf16.gmra.mrb[44].mxu0 %v7186_v40  ;;  %6861 = vmatmul.mubr.bf16.gmra.mrb[44].mxu1 %v7187_v23 }
 0x287   : > { %6620 = vmatprep.mubr.msk.bf16.mxu0 %vm7728_vm0, %v9971_v59  ;;  %6864 = vmatprep.mubr.msk.bf16.mxu1 %vm7728_vm0, %v9971_v59 }
 0x289   : > { %v8869_v29 = vpop.f32.mrb[196].mxu0  ;;  %v8871_v6 = vpop.f32.mrb[196].mxu1 }
 0x28a   : > { %10112 = vst [vmem:[#allocation151_spill] sm:$0xff] %v8869_v29  ;;  %10113 = vst [vmem:[#allocation152_spill] sm:$0xff] %v8871_v6  ;;  %v6254_v42 = vpop.f32.mrb[197].mxu0  ;;  %v6498_v11 = vpop.f32.mrb[197].mxu1  ;;  %v7190_v6 = vld [vmem:[%s7782_s23 + $0x428] sm:$0xff]  }
 0x28b   : > { %v8877_v40 = vpop.f32.mrb[198].mxu0  ;;  %v8879_v23 = vpop.f32.mrb[198].mxu1 }
 0x28c   : > { %10114 = vst [vmem:[#allocation153_spill] sm:$0xff] %v8877_v40  ;;  %10115 = vst [vmem:[#allocation154_spill] sm:$0xff] %v8879_v23  ;;  %v6255_v47 = vpop.f32.mrb[199].mxu0  ;;  %v6499_v54 = vpop.f32.mrb[199].mxu1  ;;  %v7192_v23 = vld [vmem:[%s7782_s23 + $0x430] sm:$0xff]  }
 0x28e   : > { %6621 = vmatmul.mubr.bf16.gmra.mrb[48].mxu0 %v7188_v35  ;;  %6865 = vmatmul.mubr.bf16.gmra.mrb[48].mxu1 %v7189_v1 }
 0x28f   : > { %6624 = vmatprep.mubr.msk.bf16.mxu0 %vm7728_vm0, %v9971_v59  ;;  %6868 = vmatprep.mubr.msk.bf16.mxu1 %vm7728_vm0, %v9971_v59 }
 0x291   : > { %v8887_v11 = vpop.f32.mrb[200].mxu0  ;;  %v8889_v42 = vpop.f32.mrb[200].mxu1 }
 0x292   : > { %10116 = vst [vmem:[#allocation155_spill] sm:$0xff] %v8887_v11  ;;  %10117 = vst [vmem:[#allocation156_spill] sm:$0xff] %v8889_v42  ;;  %v6258_v47 = vpop.f32.mrb[201].mxu0  ;;  %v6502_v54 = vpop.f32.mrb[201].mxu1 }
 0x293   : > { %v8895_v35 = vpop.f32.mrb[202].mxu0  ;;  %v8897_v1 = vpop.f32.mrb[202].mxu1 }
 0x294   : > { %10118 = vst [vmem:[#allocation157_spill] sm:$0xff] %v8895_v35  ;;  %10119 = vst [vmem:[#allocation158_spill] sm:$0xff] %v8897_v1  ;;  %v6259_v40 = vpop.f32.mrb[203].mxu0  ;;  %v6503_v29 = vpop.f32.mrb[203].mxu1 }
 0x295   : > { %v7193_v29 = vld [vmem:[%s7782_s23 + $0x5f4] sm:$0xff]  }
 0x296   : > { %6625 = vmatmul.mubr.bf16.gmra.mrb[52].mxu0 %v7190_v6  ;;  %6869 = vmatmul.mubr.bf16.gmra.mrb[52].mxu1 %v7191_v18  ;;  %v7194_v40 = vld [vmem:[%s7782_s23 + $0x438] sm:$0xff]  }
 0x297   : > { %6628 = vmatprep.mubr.msk.bf16.mxu0 %vm7728_vm0, %v9971_v59  ;;  %6872 = vmatprep.mubr.msk.bf16.mxu1 %vm7728_vm0, %v9971_v59 }
 0x299   : > { %v8905_v47 = vpop.f32.mrb[204].mxu0  ;;  %v8907_v54 = vpop.f32.mrb[204].mxu1 }
 0x29a   : > { %10120 = vst [vmem:[#allocation159_spill] sm:$0xff] %v8905_v47  ;;  %10121 = vst [vmem:[#allocation160_spill] sm:$0xff] %v8907_v54  ;;  %v6262_v42 = vpop.f32.mrb[205].mxu0  ;;  %v6506_v11 = vpop.f32.mrb[205].mxu1 }
 0x29b   : > { %v8913_v18 = vpop.f32.mrb[206].mxu0  ;;  %v8915_v6 = vpop.f32.mrb[206].mxu1 }
 0x29c   : > { %10122 = vst [vmem:[#allocation161_spill] sm:$0xff] %v8913_v18  ;;  %10123 = vst [vmem:[#allocation162_spill] sm:$0xff] %v8915_v6  ;;  %v6263_v1 = vpop.f32.mrb[207].mxu0  ;;  %v6507_v35 = vpop.f32.mrb[207].mxu1 }
 0x29d   : > { %v7195_v35 = vld [vmem:[%s7782_s23 + $0x5fc] sm:$0xff]  }
 0x29e   : > { %6629 = vmatmul.mubr.bf16.gmra.mrb[56].mxu0 %v7192_v23  ;;  %6873 = vmatmul.mubr.bf16.gmra.mrb[56].mxu1 %v7193_v29  ;;  %v7196_v29 = vld [vmem:[%s7782_s23 + $0x440] sm:$0xff]  }
 0x29f   : > { %6632 = vmatprep.mubr.msk.bf16.mxu0 %vm7728_vm0, %v9971_v59  ;;  %6876 = vmatprep.mubr.msk.bf16.mxu1 %vm7728_vm0, %v9971_v59 }
 0x2a1   : > { %v8923_v11 = vpop.f32.mrb[208].mxu0  ;;  %v8925_v42 = vpop.f32.mrb[208].mxu1 }
 0x2a2   : > { %10124 = vst [vmem:[#allocation163_spill] sm:$0xff] %v8923_v11  ;;  %10125 = vst [vmem:[#allocation164_spill] sm:$0xff] %v8925_v42  ;;  %v6266_v54 = vpop.f32.mrb[209].mxu0  ;;  %v6510_v47 = vpop.f32.mrb[209].mxu1 }
 0x2a3   : > { %v8931_v23 = vpop.f32.mrb[210].mxu0  ;;  %v8933_v1 = vpop.f32.mrb[210].mxu1 }
 0x2a4   : > { %10126 = vst [vmem:[#allocation165_spill] sm:$0xff] %v8931_v23  ;;  %10127 = vst [vmem:[#allocation166_spill] sm:$0xff] %v8933_v1  ;;  %v6267_v6 = vpop.f32.mrb[211].mxu0  ;;  %v6511_v18 = vpop.f32.mrb[211].mxu1 }
 0x2a5   : > { %v7197_v18 = vld [vmem:[%s7782_s23 + $0x604] sm:$0xff]  }
 0x2a6   : > { %6633 = vmatmul.mubr.bf16.gmra.mrb[60].mxu0 %v7194_v40  ;;  %6877 = vmatmul.mubr.bf16.gmra.mrb[60].mxu1 %v7195_v35  ;;  %v7198_v35 = vld [vmem:[%s7782_s23 + $0x448] sm:$0xff]  }
 0x2a7   : > { %6636 = vmatprep.mubr.msk.bf16.mxu0 %vm7728_vm0, %v9971_v59  ;;  %6880 = vmatprep.mubr.msk.bf16.mxu1 %vm7728_vm0, %v9971_v59 }
 0x2a9   : > { %v8941_v47 = vpop.f32.mrb[212].mxu0  ;;  %v8943_v54 = vpop.f32.mrb[212].mxu1 }
 0x2aa   : > { %10128 = vst [vmem:[#allocation167_spill] sm:$0xff] %v8941_v47  ;;  %10129 = vst [vmem:[#allocation168_spill] sm:$0xff] %v8943_v54  ;;  %v6270_v42 = vpop.f32.mrb[213].mxu0  ;;  %v6514_v11 = vpop.f32.mrb[213].mxu1 }
 0x2ab   : > { %v8949_v6 = vpop.f32.mrb[214].mxu0  ;;  %v8951_v40 = vpop.f32.mrb[214].mxu1 }
 0x2ac   : > { %10130 = vst [vmem:[#allocation169_spill] sm:$0xff] %v8949_v6  ;;  %10131 = vst [vmem:[#allocation170_spill] sm:$0xff] %v8951_v40  ;;  %v6271_v1 = vpop.f32.mrb[215].mxu0  ;;  %v6515_v23 = vpop.f32.mrb[215].mxu1 }
 0x2ad   : > { %v7199_v23 = vld [vmem:[%s7782_s23 + $0x60c] sm:$0xff]  }
 0x2ae   : > { %6637 = vmatmul.mubr.bf16.gmra.mrb[64].mxu0 %v7196_v29  ;;  %6881 = vmatmul.mubr.bf16.gmra.mrb[64].mxu1 %v7197_v18  ;;  %v7200_v18 = vld [vmem:[%s7782_s23 + $0x450] sm:$0xff]  }
 0x2af   : > { %6640 = vmatprep.mubr.msk.bf16.mxu0 %vm7728_vm0, %v9971_v59  ;;  %6884 = vmatprep.mubr.msk.bf16.mxu1 %vm7728_vm0, %v9971_v59 }
 0x2b1   : > { %v8959_v11 = vpop.f32.mrb[216].mxu0  ;;  %v8961_v42 = vpop.f32.mrb[216].mxu1 }
 0x2b2   : > { %10132 = vst [vmem:[#allocation171_spill] sm:$0xff] %v8959_v11  ;;  %10133 = vst [vmem:[#allocation172_spill] sm:$0xff] %v8961_v42  ;;  %v6274_v54 = vpop.f32.mrb[217].mxu0  ;;  %v6518_v47 = vpop.f32.mrb[217].mxu1 }
 0x2b3   : > { %v8967_v1 = vpop.f32.mrb[218].mxu0  ;;  %v8969_v29 = vpop.f32.mrb[218].mxu1 }
 0x2b4   : > { %10134 = vst [vmem:[#allocation173_spill] sm:$0xff] %v8967_v1  ;;  %10135 = vst [vmem:[#allocation174_spill] sm:$0xff] %v8969_v29  ;;  %v6275_v40 = vpop.f32.mrb[219].mxu0  ;;  %v6519_v6 = vpop.f32.mrb[219].mxu1 }
 0x2b5   : > { %v7201_v6 = vld [vmem:[%s7782_s23 + $0x614] sm:$0xff]  }
 0x2b6   : > { %6641 = vmatmul.mubr.bf16.gmra.mrb[68].mxu0 %v7198_v35  ;;  %6885 = vmatmul.mubr.bf16.gmra.mrb[68].mxu1 %v7199_v23 }
 0x2b7   : > { %6644 = vmatprep.mubr.msk.bf16.mxu0 %vm7728_vm0, %v9971_v59  ;;  %6888 = vmatprep.mubr.msk.bf16.mxu1 %vm7728_vm0, %v9971_v59 }
 0x2b9   : > { %v8977_v47 = vpop.f32.mrb[220].mxu0  ;;  %v8979_v54 = vpop.f32.mrb[220].mxu1 }
 0x2ba   : > { %10136 = vst [vmem:[#allocation175_spill] sm:$0xff] %v8977_v47  ;;  %10137 = vst [vmem:[#allocation176_spill] sm:$0xff] %v8979_v54  ;;  %v6278_v42 = vpop.f32.mrb[221].mxu0  ;;  %v6522_v11 = vpop.f32.mrb[221].mxu1 }
 0x2bb   : > { %v8985_v40 = vpop.f32.mrb[222].mxu0  ;;  %v8987_v35 = vpop.f32.mrb[222].mxu1 }
 0x2bc   : > { %10138 = vst [vmem:[#allocation177_spill] sm:$0xff] %v8985_v40  ;;  %10139 = vst [vmem:[#allocation178_spill] sm:$0xff] %v8987_v35  ;;  %v6279_v29 = vpop.f32.mrb[223].mxu0  ;;  %v6523_v1 = vpop.f32.mrb[223].mxu1 }
 0x2bd   : > { %v7202_v29 = vld [vmem:[%s7782_s23 + $0x458] sm:$0xff]  }
 0x2be   : > { %6645 = vmatmul.mubr.bf16.gmra.mrb[72].mxu0 %v7200_v18  ;;  %6889 = vmatmul.mubr.bf16.gmra.mrb[72].mxu1 %v7201_v6  ;;  %v7203_v1 = vld [vmem:[%s7782_s23 + $0x61c] sm:$0xff]  }
 0x2bf   : > { %6648 = vmatprep.mubr.msk.bf16.mxu0 %vm7728_vm0, %v9971_v59  ;;  %6892 = vmatprep.mubr.msk.bf16.mxu1 %vm7728_vm0, %v9971_v59 }
 0x2c1   : > { %v8995_v11 = vpop.f32.mrb[224].mxu0  ;;  %v8997_v42 = vpop.f32.mrb[224].mxu1 }
 0x2c2   : > { %10140 = vst [vmem:[#allocation179_spill] sm:$0xff] %v8995_v11  ;;  %10141 = vst [vmem:[#allocation180_spill] sm:$0xff] %v8997_v42  ;;  %v6282_v54 = vpop.f32.mrb[225].mxu0  ;;  %v6526_v47 = vpop.f32.mrb[225].mxu1 }
 0x2c3   : > { %v1174_v18 = vpop.f32.mrb[226].mxu0  ;;  %v2116_v6 = vpop.f32.mrb[226].mxu1  ;;  %v10142_v47 = vmax.f32 %v7987_v63, %v7989_v0 }
 0x2c4   : > { %v6283_v23 = vpop.f32.mrb[227].mxu0  ;;  %v6527_v35 = vpop.f32.mrb[227].mxu1  ;;  %v7204_v18 = vld [vmem:[%s7782_s23 + $0x460] sm:$0xff]  }
 0x2c5   : > { %v7205_v6 = vld [vmem:[%s7782_s23 + $0x624] sm:$0xff]   ;;  %v9015_v35 = vld [vmem:[%s9779_s2] ss:$0 sm:$0xff] }
 0x2c6   : > { %6649 = vmatmul.mubr.bf16.gmra.mrb[76].mxu0 %v7202_v29  ;;  %6893 = vmatmul.mubr.bf16.gmra.mrb[76].mxu1 %v7203_v1 }
 0x2c7   : > { %6652 = vmatprep.mubr.msk.bf16.mxu0 %vm7728_vm0, %v9971_v59  ;;  %6896 = vmatprep.mubr.msk.bf16.mxu1 %vm7728_vm0, %v9971_v59 }
 0x2c9   : > { %v2720_v40 = vpop.f32.mrb[228].mxu0  ;;  %v3775_v30 = vpop.f32.mrb[228].mxu1 }
 0x2ca   : > { %v3174_v54 = vmax.f32 %v10142_v47, %v2720_v40  ;;  %v6546_v42 = vpop.f32.mrb[229].mxu0  ;;  %v6790_v11 = vpop.f32.mrb[229].mxu1  ;;  %v10144_v47 = vmax.f32 %v8005_v12, %v8007_v13 }
 0x2cb   : > { %v2723_v23 = vpop.f32.mrb[230].mxu0  ;;  %v3778_v29 = vpop.f32.mrb[230].mxu1 }
 0x2cc   : > { %v4229_v1 = vmax.f32 %v3174_v54, %v3775_v30  ;;  %v3175_v51 = vmax.f32 %v10143_v16, %v2723_v23  ;;  %v6547_v5 = vpop.f32.mrb[231].mxu0  ;;  %v6791_v63 = vpop.f32.mrb[231].mxu1 }
 0x2ce   : > { %v4349_v0 = vadd.f32 %v9015_v35, %v4229_v1  ;;  %v4230_v40 = vmax.f32 %v3175_v51, %v3778_v29  ;;  %6653 = vmatmul.mubr.bf16.gmra.mrb[80].mxu0 %v7204_v18  ;;  %6897 = vmatmul.mubr.bf16.gmra.mrb[80].mxu1 %v7205_v6  ;;  %v7207_v6 = vld [vmem:[%s7782_s23 + $0x62c] sm:$0xff]  }
 0x2cf   : > { %6656 = vmatprep.mubr.msk.bf16.mxu0 %vm7728_vm0, %v9971_v59  ;;  %6900 = vmatprep.mubr.msk.bf16.mxu1 %vm7728_vm0, %v9971_v59 }
 0x2d0   : > { %v4462_v11 = vsub.f32 0.0, %v4349_v0  ;;  %v4350_v30 = vadd.f32 %v9015_v35, %v4230_v40  ;;  %v10145_v0 = vmax.f32 %v8013_v19, %v8015_v20 }
 0x2d1   : > { %v2728_v42 = vpop.f32.mrb[232].mxu0  ;;  %v3783_v7 = vpop.f32.mrb[232].mxu1 }
 0x2d2   : > { %v4575_v5 = vmul.f32 1.442695, %v4462_v11  ;;  %v4463_v16 = vsub.f32 0.0, %v4350_v30  ;;  %v3176_v51 = vmax.f32 %v10144_v47, %v2728_v42  ;;  %v6550_v54 = vpop.f32.mrb[233].mxu0  ;;  %v6794_v18 = vpop.f32.mrb[233].mxu1 }
 0x2d3   : > { %v2731_v23 = vpop.f32.mrb[234].mxu0  ;;  %v3786_v29 = vpop.f32.mrb[234].mxu1  ;;  %v7209_v54 = vld [vmem:[%s7782_s23 + $0x634] sm:$0xff]  }
 0x2d4   : > { %7264 = vpow2.f32 %v4575_v5  ;;  %v4577_v1 = vmul.f32 1.442695, %v4463_v16  ;;  %v4231_v63 = vmax.f32 %v3176_v51, %v3783_v7  ;;  %v3177_v40 = vmax.f32 %v10145_v0, %v2731_v23  ;;  %v6551_v28 = vpop.f32.mrb[235].mxu0  ;;  %v6795_v11 = vpop.f32.mrb[235].mxu1 }
 0x2d5   : > { %v7208_v28 = vld [vmem:[%s7782_s23 + $0x470] sm:$0xff]   ;;  %v10146_v16 = vmax.f32 %v8023_v24, %v8025_v25 }
 0x2d6   : > { %7266 = vpow2.f32 %v4577_v1  ;;  %v4351_v30 = vadd.f32 %v9015_v35, %v4231_v63  ;;  %v4232_v12 = vmax.f32 %v3177_v40, %v3786_v29  ;;  %6657 = vmatmul.mubr.bf16.gmra.mrb[84].mxu0 %v7206_v8  ;;  %6901 = vmatmul.mubr.bf16.gmra.mrb[84].mxu1 %v7207_v6  ;;  %v10147_v1 = vmax.f32 %v8031_v31, %v8033_v32 }
 0x2d7   : > { %6660 = vmatprep.mubr.msk.bf16.mxu0 %vm7728_vm0, %v9971_v59  ;;  %6904 = vmatprep.mubr.msk.bf16.mxu1 %vm7728_vm0, %v9971_v59 }
 0x2d8   : > { %v4464_v13 = vsub.f32 0.0, %v4351_v30  ;;  %v4352_v42 = vadd.f32 %v9015_v35, %v4232_v12 }
 0x2d9   : > { %v2736_v19 = vpop.f32.mrb[236].mxu0  ;;  %v3791_v20 = vpop.f32.mrb[236].mxu1 }
 0x2da   : > { %v4579_v7 = vmul.f32 1.442695, %v4464_v13  ;;  %v4465_v5 = vsub.f32 0.0, %v4352_v42  ;;  %v3178_v47 = vmax.f32 %v10146_v16, %v2736_v19  ;;  %v6554_v8 = vpop.f32.mrb[237].mxu0  ;;  %v6798_v51 = vpop.f32.mrb[237].mxu1 }
 0x2db   : > { %v2739_v18 = vpop.f32.mrb[238].mxu0  ;;  %v3794_v6 = vpop.f32.mrb[238].mxu1  ;;  %v7211_v51 = vld [vmem:[%s7782_s23 + $0x63c] sm:$0xff]  }
 0x2dc   : > { %7268 = vpow2.f32 %v4579_v7  ;;  %v4581_v23 = vmul.f32 1.442695, %v4465_v5  ;;  %v4233_v29 = vmax.f32 %v3178_v47, %v3791_v20  ;;  %v3179_v63 = vmax.f32 %v10147_v1, %v2739_v18  ;;  %v6555_v0 = vpop.f32.mrb[239].mxu0  ;;  %v6799_v40 = vpop.f32.mrb[239].mxu1  ;;  %v7210_v20 = vld [vmem:[%s7782_s23 + $0x478] sm:$0xff]  }
 0x2dd   : > { %v10148_v5 = vmax.f32 %v8041_v36, %v8043_v37 }
 0x2de   : > { %v7265_v11 = vpop.eup %7264  ;;  %7270 = vpow2.f32 %v4581_v23  ;;  %v4353_v24 = vadd.f32 %v9015_v35, %v4233_v29  ;;  %v4234_v25 = vmax.f32 %v3179_v63, %v3794_v6  ;;  %6661 = vmatmul.mubr.bf16.gmra.mrb[88].mxu0 %v7208_v28  ;;  %6905 = vmatmul.mubr.bf16.gmra.mrb[88].mxu1 %v7209_v54  ;;  %v10149_v29 = vmax.f32 %v8049_v43, %v8051_v44 }
 0x2df   : > { %v4801_v30 = vadd.f32 1.0, %v7265_v11  ;;  %6664 = vmatprep.mubr.msk.bf16.mxu0 %vm7728_vm0, %v9971_v59  ;;  %6908 = vmatprep.mubr.msk.bf16.mxu1 %vm7728_vm0, %v9971_v59 }
 0x2e0   : > { %v7267_v31 = vpop.eup %7266  ;;  %v4466_v32 = vsub.f32 0.0, %v4353_v24  ;;  %v4354_v12 = vadd.f32 %v9015_v35, %v4234_v25 }
 0x2e1   : > { %7272 = vrcp.f32 %v4801_v30  ;;  %v4802_v13 = vadd.f32 1.0, %v7267_v31  ;;  %v2744_v42 = vpop.f32.mrb[240].mxu0  ;;  %v3799_v19 = vpop.f32.mrb[240].mxu1 }
 0x2e2   : > { %v4583_v28 = vmul.f32 1.442695, %v4466_v32  ;;  %v4467_v7 = vsub.f32 0.0, %v4354_v12  ;;  %v3180_v16 = vmax.f32 %v10148_v5, %v2744_v42  ;;  %v6558_v47 = vpop.f32.mrb[241].mxu0  ;;  %v6802_v8 = vpop.f32.mrb[241].mxu1  ;;  %v7212_v32 = vld [vmem:[%s7782_s23 + $0x480] sm:$0xff]   ;;  %v10150_v42 = vmax.f32 %v8059_v48, %v8061_v49 }
 0x2e3   : > { %7274 = vrcp.f32 %v4802_v13  ;;  %v2747_v54 = vpop.f32.mrb[242].mxu0  ;;  %v3802_v18 = vpop.f32.mrb[242].mxu1 }
 0x2e4   : > { %7276 = vpow2.f32 %v4583_v28  ;;  %v4585_v6 = vmul.f32 1.442695, %v4467_v7  ;;  %v4235_v23 = vmax.f32 %v3180_v16, %v3799_v19  ;;  %v3181_v1 = vmax.f32 %v10149_v29, %v2747_v54  ;;  %v6559_v63 = vpop.f32.mrb[243].mxu0  ;;  %v6803_v0 = vpop.f32.mrb[243].mxu1  ;;  %v7213_v7 = vld [vmem:[%s7782_s23 + $0x644] sm:$0xff]  }
 0x2e5   : > { %v10151_v54 = vmax.f32 %v8067_v55, %v8069_v56 }
 0x2e6   : > { %v7269_v40 = vpop.eup %7268  ;;  %7278 = vpow2.f32 %v4585_v6  ;;  %v4355_v36 = vadd.f32 %v9015_v35, %v4235_v23  ;;  %v4236_v37 = vmax.f32 %v3181_v1, %v3802_v18  ;;  %6665 = vmatmul.mubr.bf16.gmra.mrb[92].mxu0 %v7210_v20  ;;  %6909 = vmatmul.mubr.bf16.gmra.mrb[92].mxu1 %v7211_v51 }
 0x2e7   : > { %v4803_v11 = vadd.f32 1.0, %v7269_v40  ;;  %6668 = vmatprep.mubr.msk.bf16.mxu0 %vm7728_vm0, %v9971_v59  ;;  %6912 = vmatprep.mubr.msk.bf16.mxu1 %vm7728_vm0, %v9971_v59 }
 0x2e8   : > { %v7271_v43 = vpop.eup %7270  ;;  %v4468_v44 = vsub.f32 0.0, %v4355_v36  ;;  %v4356_v24 = vadd.f32 %v9015_v35, %v4236_v37 }
 0x2e9   : > { %7280 = vrcp.f32 %v4803_v11  ;;  %v4804_v25 = vadd.f32 1.0, %v7271_v43  ;;  %v2752_v30 = vpop.f32.mrb[244].mxu0  ;;  %v3807_v31 = vpop.f32.mrb[244].mxu1  ;;  %v7214_v11 = vld [vmem:[%s7782_s23 + $0x488] sm:$0xff]  }
 0x2ea   : > { %v4587_v12 = vmul.f32 1.442695, %v4468_v44  ;;  %v4469_v13 = vsub.f32 0.0, %v4356_v24  ;;  %v3182_v19 = vmax.f32 %v10150_v42, %v2752_v30  ;;  %v6562_v20 = vpop.f32.mrb[245].mxu0  ;;  %v6806_v28 = vpop.f32.mrb[245].mxu1  ;;  %v10152_v24 = vmax.f32 %v8077_v60, %v8079_v61 }
 0x2eb   : > { %v7273_v5 = vpop.eup %7272  ;;  %7282 = vrcp.f32 %v4804_v25  ;;  %v2755_v16 = vpop.f32.mrb[246].mxu0  ;;  %v10153_v28 = vmax.f32 %v8085_v9, %v8087_v10 }
 0x2ec   : > { %v3810_v47 = vpop.f32.mrb[246].mxu1  ;;  %5027 = vst [vmem:[%s9072_s13] sm:$0xff] %v7273_v5  ;;  %7284 = vpow2.f32 %v4587_v12  ;;  %v4589_v8 = vmul.f32 1.442695, %v4469_v13  ;;  %v4237_v51 = vmax.f32 %v3182_v19, %v3807_v31  ;;  %v3183_v18 = vmax.f32 %v10151_v54, %v2755_v16  ;;  %v6563_v6 = vpop.f32.mrb[247].mxu0 }
 0x2ed   : > { %v6807_v23 = vpop.f32.mrb[247].mxu1  ;;  %v7275_v48 = vpop.eup %7274 }
 0x2ee   : > { %v7277_v49 = vpop.eup %7276  ;;  %5028 = vst [vmem:[%s9072_s13 + $0x8] sm:$0xff] %v7275_v48  ;;  %7286 = vpow2.f32 %v4589_v8  ;;  %v4357_v29 = vadd.f32 %v9015_v35, %v4237_v51  ;;  %v4238_v1 = vmax.f32 %v3183_v18, %v3810_v47  ;;  %6669 = vmatmul.mubr.bf16.gmra.mrb[96].mxu0 %v7212_v32  ;;  %6913 = vmatmul.mubr.bf16.gmra.mrb[96].mxu1 %v7213_v7  ;;  %v7215_v32 = vld [vmem:[%s7782_s23 + $0x64c] sm:$0xff]  }
 0x2ef   : > { %v4805_v63 = vadd.f32 1.0, %v7277_v49  ;;  %6672 = vmatprep.mubr.msk.bf16.mxu0 %vm7728_vm0, %v9971_v59  ;;  %6916 = vmatprep.mubr.msk.bf16.mxu1 %vm7728_vm0, %v9971_v59  ;;  %v7216_v48 = vld [vmem:[%s7782_s23 + $0x490] sm:$0xff]  }
 0x2f0   : > { %v7279_v55 = vpop.eup %7278  ;;  %v4470_v56 = vsub.f32 0.0, %v4357_v29  ;;  %v4358_v0 = vadd.f32 %v9015_v35, %v4238_v1  ;;  %v10154_v1 = vmax.f32 %v8095_v17, %v8097_v21 }
 0x2f1   : > { %7288 = vrcp.f32 %v4805_v63  ;;  %v4806_v40 = vadd.f32 1.0, %v7279_v55  ;;  %v2760_v36 = vpop.f32.mrb[248].mxu0  ;;  %v3815_v37 = vpop.f32.mrb[248].mxu1 }
 0x2f2   : > { %v4591_v43 = vmul.f32 1.442695, %v4470_v56  ;;  %v4471_v44 = vsub.f32 0.0, %v4358_v0  ;;  %v3184_v25 = vmax.f32 %v10152_v24, %v2760_v36  ;;  %v6566_v30 = vpop.f32.mrb[249].mxu0  ;;  %v6810_v31 = vpop.f32.mrb[249].mxu1  ;;  %v7217_v0 = vld [vmem:[%s7782_s23 + $0x654] sm:$0xff]  }
 0x2f3   : > { %v7281_v12 = vpop.eup %7280  ;;  %7290 = vrcp.f32 %v4806_v40  ;;  %v2763_v13 = vpop.f32.mrb[250].mxu0 }
 0x2f4   : > { %v3818_v42 = vpop.f32.mrb[250].mxu1  ;;  %5029 = vst [vmem:[%s9072_s13 + $0x10] sm:$0xff] %v7281_v12  ;;  %7292 = vpow2.f32 %v4591_v43  ;;  %v4593_v19 = vmul.f32 1.442695, %v4471_v44  ;;  %v4239_v20 = vmax.f32 %v3184_v25, %v3815_v37  ;;  %v3185_v7 = vmax.f32 %v10153_v28, %v2763_v13  ;;  %v6567_v5 = vpop.f32.mrb[251].mxu0  ;;  %v7218_v28 = vld [vmem:[%s7782_s23 + $0x498] sm:$0xff]  }
 0x2f5   : > { %v6811_v16 = vpop.f32.mrb[251].mxu1  ;;  %v7283_v60 = vpop.eup %7282  ;;  %v10155_v44 = vmax.f32 %v8103_v33, %v8105_v34 }
 0x2f6   : > { %v7285_v61 = vpop.eup %7284  ;;  %5030 = vst [vmem:[%s9072_s13 + $0x18] sm:$0xff] %v7283_v60  ;;  %7294 = vpow2.f32 %v4593_v19  ;;  %v4359_v47 = vadd.f32 %v9015_v35, %v4239_v20  ;;  %v4240_v8 = vmax.f32 %v3185_v7, %v3818_v42  ;;  %6673 = vmatmul.mubr.bf16.gmra.mrb[100].mxu0 %v7214_v11  ;;  %6917 = vmatmul.mubr.bf16.gmra.mrb[100].mxu1 %v7215_v32 }
 0x2f7   : > { %v4807_v51 = vadd.f32 1.0, %v7285_v61  ;;  %6676 = vmatprep.mubr.msk.bf16.mxu0 %vm7728_vm0, %v9971_v59  ;;  %6920 = vmatprep.mubr.msk.bf16.mxu1 %vm7728_vm0, %v9971_v59  ;;  %v10156_v16 = vmax.f32 %v8113_v41, %v8115_v45 }
 0x2f8   : > { %v7287_v9 = vpop.eup %7286  ;;  %v4472_v10 = vsub.f32 0.0, %v4359_v47  ;;  %v4360_v54 = vadd.f32 %v9015_v35, %v4240_v8  ;;  %v7219_v8 = vld [vmem:[%s7782_s23 + $0x65c] sm:$0xff]  }
 0x2f9   : > { %7296 = vrcp.f32 %v4807_v51  ;;  %v4808_v18 = vadd.f32 1.0, %v7287_v9  ;;  %v2768_v6 = vpop.f32.mrb[252].mxu0  ;;  %v3823_v23 = vpop.f32.mrb[252].mxu1 }
 0x2fa   : > { %v4595_v49 = vmul.f32 1.442695, %v4472_v10  ;;  %v4473_v29 = vsub.f32 0.0, %v4360_v54  ;;  %v3186_v63 = vmax.f32 %v10154_v1, %v2768_v6  ;;  %v6570_v55 = vpop.f32.mrb[253].mxu0  ;;  %v6814_v56 = vpop.f32.mrb[253].mxu1  ;;  %v10157_v6 = vmax.f32 %v8121_v57, %v8123_v58 }
 0x2fb   : > { %v7289_v40 = vpop.eup %7288  ;;  %7298 = vrcp.f32 %v4808_v18  ;;  %v2771_v36 = vpop.f32.mrb[254].mxu0 }
 0x2fc   : > { %v3826_v37 = vpop.f32.mrb[254].mxu1  ;;  %5031 = vst [vmem:[%s9072_s13 + $0x20] sm:$0xff] %v7289_v40  ;;  %7300 = vpow2.f32 %v4595_v49  ;;  %v4597_v11 = vmul.f32 1.442695, %v4473_v29  ;;  %v4241_v43 = vmax.f32 %v3186_v63, %v3823_v23  ;;  %v3187_v24 = vmax.f32 %v10155_v44, %v2771_v36  ;;  %v6571_v25 = vpop.f32.mrb[255].mxu0  ;;  %v7220_v36 = vld [vmem:[%s7782_s23 + $0x4a0] sm:$0xff]  }
 0x2fd   : > { %v6815_v30 = vpop.f32.mrb[255].mxu1  ;;  %v7291_v17 = vpop.eup %7290 }
 0x2fe   : > { %v7293_v21 = vpop.eup %7292  ;;  %5032 = vst [vmem:[%s9072_s13 + $0x28] sm:$0xff] %v7291_v17  ;;  %7302 = vpow2.f32 %v4597_v11  ;;  %v4361_v31 = vadd.f32 %v9015_v35, %v4241_v43  ;;  %v4242_v32 = vmax.f32 %v3187_v24, %v3826_v37  ;;  %6677 = vmatmul.mubr.bf16.gmra.mrb[104].mxu0 %v7216_v48  ;;  %6921 = vmatmul.mubr.bf16.gmra.mrb[104].mxu1 %v7217_v0  ;;  %v7221_v30 = vld [vmem:[%s7782_s23 + $0x664] sm:$0xff]  }
 0x2ff   : > { %v4809_v12 = vadd.f32 1.0, %v7293_v21  ;;  %6680 = vmatprep.mubr.msk.bf16.mxu0 %vm7728_vm0, %v9971_v59  ;;  %6924 = vmatprep.mubr.msk.bf16.mxu1 %vm7728_vm0, %v9971_v59  ;;  %v10158_v43 = vmax.f32 %v8131_v4, %v8133_v14 }
 0x300   : > { %v7295_v33 = vpop.eup %7294  ;;  %v4474_v34 = vsub.f32 0.0, %v4361_v31  ;;  %v4362_v13 = vadd.f32 %v9015_v35, %v4242_v32 }
 0x301   : > { %7304 = vrcp.f32 %v4809_v12  ;;  %v4810_v42 = vadd.f32 1.0, %v7295_v33  ;;  %v2776_v19 = vpop.f32.mrb[0].mxu0  ;;  %v3831_v20 = vpop.f32.mrb[0].mxu1  ;;  %v10159_v33 = vmax.f32 %v8139_v38, %v8141_v39 }
 0x302   : > { %v4599_v7 = vmul.f32 1.442695, %v4474_v34  ;;  %v4475_v5 = vsub.f32 0.0, %v4362_v13  ;;  %v3188_v60 = vmax.f32 %v10156_v16, %v2776_v19  ;;  %v6574_v61 = vpop.f32.mrb[1].mxu0  ;;  %v6818_v47 = vpop.f32.mrb[1].mxu1 }
 0x303   : > { %v7297_v51 = vpop.eup %7296  ;;  %7306 = vrcp.f32 %v4810_v42  ;;  %v2779_v9 = vpop.f32.mrb[2].mxu0  ;;  %v7222_v61 = vld [vmem:[%s7782_s23 + $0x4a8] sm:$0xff]  }
 0x304   : > { %v3834_v10 = vpop.f32.mrb[2].mxu1  ;;  %5033 = vst [vmem:[%s9072_s13 + $0x30] sm:$0xff] %v7297_v51  ;;  %7308 = vpow2.f32 %v4599_v7  ;;  %v4601_v54 = vmul.f32 1.442695, %v4475_v5  ;;  %v4243_v18 = vmax.f32 %v3188_v60, %v3831_v20  ;;  %v3189_v23 = vmax.f32 %v10157_v6, %v2779_v9  ;;  %v6575_v48 = vpop.f32.mrb[3].mxu0 }
 0x305   : > { %v6819_v49 = vpop.f32.mrb[3].mxu1  ;;  %v7299_v41 = vpop.eup %7298  ;;  %v10160_v51 = vmax.f32 %v8149_v52, %v8151_v62 }
 0x306   : > { %v7301_v45 = vpop.eup %7300  ;;  %5034 = vst [vmem:[%s9072_s13 + $0x38] sm:$0xff] %v7299_v41  ;;  %7310 = vpow2.f32 %v4601_v54  ;;  %v4363_v29 = vadd.f32 %v9015_v35, %v4243_v18  ;;  %v4244_v1 = vmax.f32 %v3189_v23, %v3834_v10  ;;  %6681 = vmatmul.mubr.bf16.gmra.mrb[108].mxu0 %v7218_v28  ;;  %6925 = vmatmul.mubr.bf16.gmra.mrb[108].mxu1 %v7219_v8  ;;  %v7223_v18 = vld [vmem:[%s7782_s23 + $0x66c] sm:$0xff]  }
 0x307   : > { %v4811_v63 = vadd.f32 1.0, %v7301_v45  ;;  %6684 = vmatprep.mubr.msk.bf16.mxu0 %vm7728_vm0, %v9971_v59  ;;  %6928 = vmatprep.mubr.msk.bf16.mxu1 %vm7728_vm0, %v9971_v59  ;;  %v10161_v45 = vmax.f32 %v8157_v27, %v8159_v50 }
 0x308   : > { %v7303_v57 = vpop.eup %7302  ;;  %v4476_v58 = vsub.f32 0.0, %v4363_v29  ;;  %v4364_v55 = vadd.f32 %v9015_v35, %v4244_v1 }
 0x309   : > { %7312 = vrcp.f32 %v4811_v63  ;;  %v4812_v56 = vadd.f32 1.0, %v7303_v57  ;;  %v2784_v0 = vpop.f32.mrb[4].mxu0  ;;  %v3839_v40 = vpop.f32.mrb[4].mxu1 }
 0x30a   : > { %v4603_v37 = vmul.f32 1.442695, %v4476_v58  ;;  %v4477_v11 = vsub.f32 0.0, %v4364_v55  ;;  %v3190_v44 = vmax.f32 %v10158_v43, %v2784_v0  ;;  %v6578_v24 = vpop.f32.mrb[5].mxu0  ;;  %v6822_v25 = vpop.f32.mrb[5].mxu1 }
 0x30b   : > { %v7305_v17 = vpop.eup %7304  ;;  %7314 = vrcp.f32 %v4812_v56  ;;  %v2787_v21 = vpop.f32.mrb[6].mxu0 }
 0x30c   : > { %v3842_v31 = vpop.f32.mrb[6].mxu1  ;;  %5035 = vst [vmem:[%s9072_s13 + $0x40] sm:$0xff] %v7305_v17  ;;  %7316 = vpow2.f32 %v4603_v37  ;;  %v4605_v32 = vmul.f32 1.442695, %v4477_v11  ;;  %v4245_v12 = vmax.f32 %v3190_v44, %v3839_v40  ;;  %v3191_v34 = vmax.f32 %v10159_v33, %v2787_v21  ;;  %v6579_v13 = vpop.f32.mrb[7].mxu0  ;;  %v7224_v37 = vld [vmem:[%s7782_s23 + $0x4b0] sm:$0xff]  }
 0x30d   : > { %v6823_v42 = vpop.f32.mrb[7].mxu1  ;;  %v7307_v4 = vpop.eup %7306  ;;  %v10162_v44 = vmax.f32 %v8167_v2, %v8169_v15  ;;  %v7225_v17 = vld [vmem:[%s7782_s23 + $0x674] sm:$0xff]  }
 0x30e   : > { %v7309_v14 = vpop.eup %7308  ;;  %5036 = vst [vmem:[%s9072_s13 + $0x48] sm:$0xff] %v7307_v4  ;;  %7318 = vpow2.f32 %v4605_v32  ;;  %v4365_v19 = vadd.f32 %v9015_v35, %v4245_v12  ;;  %v4246_v20 = vmax.f32 %v3191_v34, %v3842_v31  ;;  %6685 = vmatmul.mubr.bf16.gmra.mrb[112].mxu0 %v7220_v36  ;;  %6929 = vmatmul.mubr.bf16.gmra.mrb[112].mxu1 %v7221_v30 }
 0x30f   : > { %v4813_v28 = vadd.f32 1.0, %v7309_v14  ;;  %6688 = vmatprep.mubr.msk.bf16.mxu0 %vm7728_vm0, %v9971_v59  ;;  %6932 = vmatprep.mubr.msk.bf16.mxu1 %vm7728_vm0, %v9971_v59  ;;  %v10163_v34 = vmax.f32 %v8175_v22, %v8177_v46 }
 0x310   : > { %v7311_v38 = vpop.eup %7310  ;;  %v4478_v39 = vsub.f32 0.0, %v4365_v19  ;;  %v4366_v7 = vadd.f32 %v9015_v35, %v4246_v20 }
 0x311   : > { %7320 = vrcp.f32 %v4813_v28  ;;  %v4814_v5 = vadd.f32 1.0, %v7311_v38  ;;  %v2792_v16 = vpop.f32.mrb[8].mxu0  ;;  %v3847_v60 = vpop.f32.mrb[8].mxu1 }
 0x312   : > { %v4607_v47 = vmul.f32 1.442695, %v4478_v39  ;;  %v4479_v8 = vsub.f32 0.0, %v4366_v7  ;;  %v3192_v9 = vmax.f32 %v10160_v51, %v2792_v16  ;;  %v6582_v10 = vpop.f32.mrb[9].mxu0  ;;  %v6826_v54 = vpop.f32.mrb[9].mxu1 }
 0x313   : > { %v7313_v6 = vpop.eup %7312  ;;  %7322 = vrcp.f32 %v4814_v5  ;;  %v2795_v23 = vpop.f32.mrb[10].mxu0  ;;  %v7226_v5 = vld [vmem:[%s7782_s23 + $0x4b8] sm:$0xff]  }
 0x314   : > { %v3850_v48 = vpop.f32.mrb[10].mxu1  ;;  %5037 = vst [vmem:[%s9072_s13 + $0x50] sm:$0xff] %v7313_v6  ;;  %7324 = vpow2.f32 %v4607_v47  ;;  %v4609_v49 = vmul.f32 1.442695, %v4479_v8  ;;  %v4247_v41 = vmax.f32 %v3192_v9, %v3847_v60  ;;  %v3193_v29 = vmax.f32 %v10161_v45, %v2795_v23  ;;  %v6583_v1 = vpop.f32.mrb[11].mxu0  ;;  %v7227_v9 = vld [vmem:[%s7782_s23 + $0x67c] sm:$0xff]  }
 0x315   : > { %v6827_v63 = vpop.f32.mrb[11].mxu1  ;;  %v7315_v52 = vpop.eup %7314 }
 0x316   : > { %v7317_v62 = vpop.eup %7316  ;;  %5038 = vst [vmem:[%s9072_s13 + $0x58] sm:$0xff] %v7315_v52  ;;  %7326 = vpow2.f32 %v4609_v49  ;;  %v4367_v57 = vadd.f32 %v9015_v35, %v4247_v41  ;;  %v4248_v58 = vmax.f32 %v3193_v29, %v3850_v48  ;;  %6689 = vmatmul.mubr.bf16.gmra.mrb[116].mxu0 %v7222_v61  ;;  %6933 = vmatmul.mubr.bf16.gmra.mrb[116].mxu1 %v7223_v18  ;;  %v10165_v48 = vld [vmem:[#allocation2_spill] sm:$0xff] }
 0x317   : > { %v4815_v55 = vadd.f32 1.0, %v7317_v62  ;;  %6692 = vmatprep.mubr.msk.bf16.mxu0 %vm7728_vm0, %v9971_v59  ;;  %6936 = vmatprep.mubr.msk.bf16.mxu1 %vm7728_vm0, %v9971_v59  ;;  %v10164_v61 = vmax.f32 %v8185_v53, %v8187_v26  ;;  %v10166_v49 = vmax.f32 %v8193_v3, %v10165_v48 }
 0x318   : > { %v7319_v27 = vpop.eup %7318  ;;  %v4480_v50 = vsub.f32 0.0, %v4367_v57  ;;  %v4368_v56 = vadd.f32 %v9015_v35, %v4248_v58 }
 0x319   : > { %7328 = vrcp.f32 %v4815_v55  ;;  %v4816_v0 = vadd.f32 1.0, %v7319_v27  ;;  %v2800_v40 = vpop.f32.mrb[12].mxu0  ;;  %v3855_v36 = vpop.f32.mrb[12].mxu1 }
 0x31a   : > { %v4611_v11 = vmul.f32 1.442695, %v4480_v50  ;;  %v4481_v43 = vsub.f32 0.0, %v4368_v56  ;;  %v3194_v24 = vmax.f32 %v10162_v44, %v2800_v40  ;;  %v6586_v25 = vpop.f32.mrb[13].mxu0  ;;  %v6830_v30 = vpop.f32.mrb[13].mxu1  ;;  %v7228_v50 = vld [vmem:[%s7782_s23 + $0x4c0] sm:$0xff]  }
 0x31b   : > { %v7321_v21 = vpop.eup %7320  ;;  %7330 = vrcp.f32 %v4816_v0  ;;  %v2803_v31 = vpop.f32.mrb[14].mxu0  ;;  %v10167_v40 = vld [vmem:[#allocation3_spill] sm:$0xff] }
 0x31c   : > { %v3858_v32 = vpop.f32.mrb[14].mxu1  ;;  %5039 = vst [vmem:[%s9072_s13 + $0x60] sm:$0xff] %v7321_v21  ;;  %7332 = vpow2.f32 %v4611_v11  ;;  %v4613_v12 = vmul.f32 1.442695, %v4481_v43  ;;  %v4249_v33 = vmax.f32 %v3194_v24, %v3855_v36  ;;  %v3195_v13 = vmax.f32 %v10163_v34, %v2803_v31  ;;  %v6587_v42 = vpop.f32.mrb[15].mxu0  ;;  %v10168_v36 = vld [vmem:[#allocation4_spill] sm:$0xff] }
 0x31d   : > { %v6831_v4 = vpop.f32.mrb[15].mxu1  ;;  %v7323_v2 = vpop.eup %7322  ;;  %v7229_v24 = vld [vmem:[%s7782_s23 + $0x684] sm:$0xff]  }
 0x31e   : > { %v7325_v15 = vpop.eup %7324  ;;  %5040 = vst [vmem:[%s9072_s13 + $0x68] sm:$0xff] %v7323_v2  ;;  %7334 = vpow2.f32 %v4613_v12  ;;  %v4369_v14 = vadd.f32 %v9015_v35, %v4249_v33  ;;  %v4250_v19 = vmax.f32 %v3195_v13, %v3858_v32  ;;  %6693 = vmatmul.mubr.bf16.gmra.mrb[120].mxu0 %v7224_v37  ;;  %6937 = vmatmul.mubr.bf16.gmra.mrb[120].mxu1 %v7225_v17  ;;  %v10170_v32 = vld [vmem:[#allocation5_spill] sm:$0xff]  ;;  %v10171_v12 = vld [vmem:[#allocation6_spill] sm:$0xff] }
 0x31f   : > { %v4817_v20 = vadd.f32 1.0, %v7325_v15  ;;  %6696 = vmatprep.mubr.msk.bf16.mxu0 %vm7728_vm0, %v9971_v59  ;;  %6940 = vmatprep.mubr.msk.bf16.mxu1 %vm7728_vm0, %v9971_v59  ;;  %v10169_v37 = vmax.f32 %v10167_v40, %v10168_v36  ;;  %v10172_v33 = vmax.f32 %v10170_v32, %v10171_v12 }
 0x320   : > { %v7327_v22 = vpop.eup %7326  ;;  %v4482_v46 = vsub.f32 0.0, %v4369_v14  ;;  %v4370_v28 = vadd.f32 %v9015_v35, %v4250_v19 }
 0x321   : > { %7336 = vrcp.f32 %v4817_v20  ;;  %v4818_v38 = vadd.f32 1.0, %v7327_v22  ;;  %v2808_v39 = vpop.f32.mrb[16].mxu0  ;;  %v3863_v7 = vpop.f32.mrb[16].mxu1 }
 0x322   : > { %v4615_v16 = vmul.f32 1.442695, %v4482_v46  ;;  %v4483_v60 = vsub.f32 0.0, %v4370_v28  ;;  %v3196_v47 = vmax.f32 %v10164_v61, %v2808_v39  ;;  %v6590_v8 = vpop.f32.mrb[17].mxu0  ;;  %v6834_v51 = vpop.f32.mrb[17].mxu1  ;;  %v10174_v61 = vld [vmem:[#allocation8_spill] sm:$0xff] }
 0x323   : > { %v7329_v10 = vpop.eup %7328  ;;  %7338 = vrcp.f32 %v4818_v38  ;;  %v2811_v54 = vpop.f32.mrb[18].mxu0 }
 0x324   : > { %v3866_v18 = vpop.f32.mrb[18].mxu1  ;;  %5041 = vst [vmem:[%s9072_s13 + $0x70] sm:$0xff] %v7329_v10  ;;  %7340 = vpow2.f32 %v4615_v16  ;;  %v4617_v6 = vmul.f32 1.442695, %v4483_v60  ;;  %v4251_v23 = vmax.f32 %v3196_v47, %v3863_v7  ;;  %v3197_v41 = vmax.f32 %v10166_v49, %v2811_v54  ;;  %v6591_v45 = vpop.f32.mrb[19].mxu0  ;;  %v7230_v7 = vld [vmem:[%s7782_s23 + $0x4c8] sm:$0xff]  }
 0x325   : > { %v6835_v29 = vpop.f32.mrb[19].mxu1  ;;  %v7331_v53 = vpop.eup %7330  ;;  %v10173_v60 = vld [vmem:[#allocation7_spill] sm:$0xff]  ;;  %v10176_v49 = vld [vmem:[#allocation9_spill] sm:$0xff] }
 0x326   : > { %v7333_v26 = vpop.eup %7332  ;;  %5042 = vst [vmem:[%s9072_s13 + $0x78] sm:$0xff] %v7331_v53  ;;  %7342 = vpow2.f32 %v4617_v6  ;;  %v4371_v1 = vadd.f32 %v9015_v35, %v4251_v23  ;;  %v4252_v63 = vmax.f32 %v3197_v41, %v3866_v18  ;;  %6697 = vmatmul.mubr.bf16.gmra.mrb[124].mxu0 %v7226_v5  ;;  %6941 = vmatmul.mubr.bf16.gmra.mrb[124].mxu1 %v7227_v9  ;;  %v7231_v10 = vld [vmem:[%s7782_s23 + $0x68c] sm:$0xff]   ;;  %v10177_v41 = vld [vmem:[#allocation10_spill] sm:$0xff] }
 0x327   : > { %v4819_v52 = vadd.f32 1.0, %v7333_v26  ;;  %6700 = vmatprep.mubr.msk.bf16.mxu0 %vm7728_vm0, %v9971_v59  ;;  %6944 = vmatprep.mubr.msk.bf16.mxu1 %vm7728_vm0, %v9971_v59  ;;  %v10175_v47 = vmax.f32 %v10173_v60, %v10174_v61  ;;  %v10178_v45 = vmax.f32 %v10176_v49, %v10177_v41  ;;  %v10188_v41 = vld [vmem:[#allocation17_spill] sm:$0xff] }
 0x328   : > { %v7335_v3 = vpop.eup %7334  ;;  %v4484_v62 = vsub.f32 0.0, %v4371_v1  ;;  %v4372_v57 = vadd.f32 %v9015_v35, %v4252_v63 }
 0x329   : > { %7344 = vrcp.f32 %v4819_v52  ;;  %v4820_v58 = vadd.f32 1.0, %v7335_v3  ;;  %v2816_v55 = vpop.f32.mrb[20].mxu0  ;;  %v3871_v27 = vpop.f32.mrb[20].mxu1 }
 0x32a   : > { %v4619_v56 = vmul.f32 1.442695, %v4484_v62  ;;  %v4485_v0 = vsub.f32 0.0, %v4372_v57  ;;  %v3198_v11 = vmax.f32 %v10169_v37, %v2816_v55  ;;  %v6594_v43 = vpop.f32.mrb[21].mxu0  ;;  %v6838_v44 = vpop.f32.mrb[21].mxu1  ;;  %v10179_v37 = vld [vmem:[#allocation11_spill] sm:$0xff] }
 0x32b   : > { %v7337_v25 = vpop.eup %7336  ;;  %7346 = vrcp.f32 %v4820_v58  ;;  %v2819_v30 = vpop.f32.mrb[22].mxu0 }
 0x32c   : > { %v3874_v17 = vpop.f32.mrb[22].mxu1  ;;  %5043 = vst [vmem:[%s9072_s13 + $0x80] sm:$0xff] %v7337_v25  ;;  %7348 = vpow2.f32 %v4619_v56  ;;  %v4621_v21 = vmul.f32 1.442695, %v4485_v0  ;;  %v4253_v31 = vmax.f32 %v3198_v11, %v3871_v27  ;;  %v3199_v34 = vmax.f32 %v10172_v33, %v2819_v30  ;;  %v6595_v13 = vpop.f32.mrb[23].mxu0  ;;  %v7232_v0 = vld [vmem:[%s7782_s23 + $0x4d0] sm:$0xff]  }
 0x32d   : > { %v6839_v42 = vpop.f32.mrb[23].mxu1  ;;  %v7339_v4 = vpop.eup %7338  ;;  %v10180_v11 = vld [vmem:[#allocation12_spill] sm:$0xff]  ;;  %v10182_v33 = vld [vmem:[#allocation13_spill] sm:$0xff] }
 0x32e   : > { %v7341_v2 = vpop.eup %7340  ;;  %5044 = vst [vmem:[%s9072_s13 + $0x88] sm:$0xff] %v7339_v4  ;;  %7350 = vpow2.f32 %v4621_v21  ;;  %v4373_v15 = vadd.f32 %v9015_v35, %v4253_v31  ;;  %v4254_v14 = vmax.f32 %v3199_v34, %v3874_v17  ;;  %6701 = vmatmul.mubr.bf16.gmra.mrb[128].mxu0 %v7228_v50  ;;  %6945 = vmatmul.mubr.bf16.gmra.mrb[128].mxu1 %v7229_v24  ;;  %v7233_v30 = vld [vmem:[%s7782_s23 + $0x694] sm:$0xff]   ;;  %v10183_v34 = vld [vmem:[#allocation14_spill] sm:$0xff] }
 0x32f   : > { %v4821_v19 = vadd.f32 1.0, %v7341_v2  ;;  %6704 = vmatprep.mubr.msk.bf16.mxu0 %vm7728_vm0, %v9971_v59  ;;  %6948 = vmatprep.mubr.msk.bf16.mxu1 %vm7728_vm0, %v9971_v59  ;;  %v10181_v43 = vmax.f32 %v10179_v37, %v10180_v11  ;;  %v10184_v13 = vmax.f32 %v10182_v33, %v10183_v34 }
 0x330   : > { %v7343_v20 = vpop.eup %7342  ;;  %v4486_v22 = vsub.f32 0.0, %v4373_v15  ;;  %v4374_v46 = vadd.f32 %v9015_v35, %v4254_v14 }
 0x331   : > { %7352 = vrcp.f32 %v4821_v19  ;;  %v4822_v28 = vadd.f32 1.0, %v7343_v20  ;;  %v2824_v38 = vpop.f32.mrb[24].mxu0  ;;  %v3879_v39 = vpop.f32.mrb[24].mxu1 }
 0x332   : > { %v4623_v5 = vmul.f32 1.442695, %v4486_v22  ;;  %v4487_v16 = vsub.f32 0.0, %v4374_v46  ;;  %v3200_v8 = vmax.f32 %v10175_v47, %v2824_v38  ;;  %v6598_v51 = vpop.f32.mrb[25].mxu0  ;;  %v6842_v9 = vpop.f32.mrb[25].mxu1  ;;  %v10185_v47 = vld [vmem:[#allocation15_spill] sm:$0xff] }
 0x333   : > { %v7345_v54 = vpop.eup %7344  ;;  %7354 = vrcp.f32 %v4822_v28  ;;  %v2827_v18 = vpop.f32.mrb[26].mxu0 }
 0x334   : > { %v3882_v6 = vpop.f32.mrb[26].mxu1  ;;  %5045 = vst [vmem:[%s9072_s13 + $0x90] sm:$0xff] %v7345_v54  ;;  %7356 = vpow2.f32 %v4623_v5  ;;  %v4625_v23 = vmul.f32 1.442695, %v4487_v16  ;;  %v4255_v48 = vmax.f32 %v3200_v8, %v3879_v39  ;;  %v3201_v29 = vmax.f32 %v10178_v45, %v2827_v18  ;;  %v6599_v53 = vpop.f32.mrb[27].mxu0  ;;  %v7234_v16 = vld [vmem:[%s7782_s23 + $0x4d8] sm:$0xff]  }
 0x335   : > { %v6843_v26 = vpop.f32.mrb[27].mxu1  ;;  %v7347_v1 = vpop.eup %7346  ;;  %v10186_v8 = vld [vmem:[#allocation16_spill] sm:$0xff]  ;;  %v7235_v18 = vld [vmem:[%s7782_s23 + $0x69c] sm:$0xff]  }
 0x336   : > { %v7349_v63 = vpop.eup %7348  ;;  %5046 = vst [vmem:[%s9072_s13 + $0x98] sm:$0xff] %v7347_v1  ;;  %7358 = vpow2.f32 %v4625_v23  ;;  %v4375_v52 = vadd.f32 %v9015_v35, %v4255_v48  ;;  %v4256_v3 = vmax.f32 %v3201_v29, %v3882_v6  ;;  %6705 = vmatmul.mubr.bf16.gmra.mrb[132].mxu0 %v7230_v7  ;;  %6949 = vmatmul.mubr.bf16.gmra.mrb[132].mxu1 %v7231_v10  ;;  %v10189_v45 = vld [vmem:[#allocation18_spill] sm:$0xff] }
 0x337   : > { %v4823_v62 = vadd.f32 1.0, %v7349_v63  ;;  %6708 = vmatprep.mubr.msk.bf16.mxu0 %vm7728_vm0, %v9971_v59  ;;  %6952 = vmatprep.mubr.msk.bf16.mxu1 %vm7728_vm0, %v9971_v59  ;;  %v10187_v51 = vmax.f32 %v10185_v47, %v10186_v8  ;;  %v10190_v29 = vmax.f32 %v10188_v41, %v10189_v45 }
 0x338   : > { %v7351_v57 = vpop.eup %7350  ;;  %v4488_v58 = vsub.f32 0.0, %v4375_v52  ;;  %v4376_v55 = vadd.f32 %v9015_v35, %v4256_v3  ;;  %v9263_v3 = vld [vmem:[%s9779_s2] ss:$0 sm:$0xff] }
 0x339   : > { %7360 = vrcp.f32 %v4823_v62  ;;  %v4824_v27 = vadd.f32 1.0, %v7351_v57  ;;  %v2832_v50 = vpop.f32.mrb[28].mxu0  ;;  %v3887_v56 = vpop.f32.mrb[28].mxu1 }
 0x33a   : > { %v4627_v40 = vmul.f32 1.442695, %v4488_v58  ;;  %v4489_v36 = vsub.f32 0.0, %v4376_v55  ;;  %v3202_v44 = vmax.f32 %v10181_v43, %v2832_v50  ;;  %v6602_v24 = vpop.f32.mrb[29].mxu0  ;;  %v6846_v25 = vpop.f32.mrb[29].mxu1  ;;  %v10191_v43 = vld [vmem:[#allocation19_spill] sm:$0xff] }
 0x33b   : > { %v7353_v17 = vpop.eup %7352  ;;  %7362 = vrcp.f32 %v4824_v27  ;;  %v2835_v21 = vpop.f32.mrb[30].mxu0 }
 0x33c   : > { %v3890_v31 = vpop.f32.mrb[30].mxu1  ;;  %5047 = vst [vmem:[%s9072_s13 + $0xa0] sm:$0xff] %v7353_v17  ;;  %7364 = vpow2.f32 %v4627_v40  ;;  %v4629_v32 = vmul.f32 1.442695, %v4489_v36  ;;  %v4257_v12 = vmax.f32 %v3202_v44, %v3887_v56  ;;  %v3203_v42 = vmax.f32 %v10184_v13, %v2835_v21  ;;  %v6603_v4 = vpop.f32.mrb[31].mxu0  ;;  %v7236_v36 = vld [vmem:[%s7782_s23 + $0x4e0] sm:$0xff]  }
 0x33d   : > { %v6847_v2 = vpop.f32.mrb[31].mxu1  ;;  %v7355_v15 = vpop.eup %7354  ;;  %v10192_v44 = vld [vmem:[#allocation20_spill] sm:$0xff]  ;;  %v7237_v21 = vld [vmem:[%s7782_s23 + $0x6a4] sm:$0xff]   ;;  %v10194_v13 = vld [vmem:[#allocation21_spill] sm:$0xff] }
 0x33e   : > { %v7357_v14 = vpop.eup %7356  ;;  %5048 = vst [vmem:[%s9072_s13 + $0xa8] sm:$0xff] %v7355_v15  ;;  %7366 = vpow2.f32 %v4629_v32  ;;  %v4377_v19 = vadd.f32 %v9015_v35, %v4257_v12  ;;  %v4258_v20 = vmax.f32 %v3203_v42, %v3890_v31  ;;  %6709 = vmatmul.mubr.bf16.gmra.mrb[136].mxu0 %v7232_v0  ;;  %6953 = vmatmul.mubr.bf16.gmra.mrb[136].mxu1 %v7233_v30  ;;  %v10195_v42 = vld [vmem:[#allocation22_spill] sm:$0xff] }
 0x33f   : > { %v4825_v22 = vadd.f32 1.0, %v7357_v14  ;;  %6712 = vmatprep.mubr.msk.bf16.mxu0 %vm7728_vm0, %v9971_v59  ;;  %6956 = vmatprep.mubr.msk.bf16.mxu1 %vm7728_vm0, %v9971_v59  ;;  %v10193_v24 = vmax.f32 %v10191_v43, %v10192_v44  ;;  %v10196_v4 = vmax.f32 %v10194_v13, %v10195_v42 }
 0x340   : > { %v7359_v46 = vpop.eup %7358  ;;  %v4490_v28 = vsub.f32 0.0, %v4377_v19  ;;  %v4378_v38 = vadd.f32 %v9015_v35, %v4258_v20 }
 0x341   : > { %7368 = vrcp.f32 %v4825_v22  ;;  %v4826_v39 = vadd.f32 1.0, %v7359_v46  ;;  %v2840_v7 = vpop.f32.mrb[32].mxu0  ;;  %v3895_v5 = vpop.f32.mrb[32].mxu1 }
 0x342   : > { %v4631_v60 = vmul.f32 1.442695, %v4490_v28  ;;  %v4491_v61 = vsub.f32 0.0, %v4378_v38  ;;  %v3204_v9 = vmax.f32 %v10187_v51, %v2840_v7  ;;  %v6606_v10 = vpop.f32.mrb[33].mxu0  ;;  %v6850_v54 = vpop.f32.mrb[33].mxu1  ;;  %v10197_v51 = vld [vmem:[#allocation23_spill] sm:$0xff] }
 0x343   : > { %v7361_v6 = vpop.eup %7360  ;;  %7370 = vrcp.f32 %v4826_v39  ;;  %v2843_v23 = vpop.f32.mrb[34].mxu0 }
 0x344   : > { %v3898_v35 = vpop.f32.mrb[34].mxu1  ;;  %5049 = vst [vmem:[%s9072_s13 + $0xb0] sm:$0xff] %v7361_v6  ;;  %7372 = vpow2.f32 %v4631_v60  ;;  %v4633_v48 = vmul.f32 1.442695, %v4491_v61  ;;  %v4259_v49 = vmax.f32 %v3204_v9, %v3895_v5  ;;  %v3205_v53 = vmax.f32 %v10190_v29, %v2843_v23  ;;  %v6607_v26 = vpop.f32.mrb[35].mxu0  ;;  %v7238_v61 = vld [vmem:[%s7782_s23 + $0x4e8] sm:$0xff]  }
 0x345   : > { %v6851_v1 = vpop.f32.mrb[35].mxu1  ;;  %v7363_v63 = vpop.eup %7362  ;;  %v10198_v9 = vld [vmem:[#allocation24_spill] sm:$0xff]  ;;  %v10200_v29 = vld [vmem:[#allocation25_spill] sm:$0xff] }
 0x346   : > { %v7365_v52 = vpop.eup %7364  ;;  %5050 = vst [vmem:[%s9072_s13 + $0xb8] sm:$0xff] %v7363_v63  ;;  %7374 = vpow2.f32 %v4633_v48  ;;  %v4379_v62 = vadd.f32 %v9263_v3, %v4259_v49  ;;  %v4260_v57 = vmax.f32 %v3205_v53, %v3898_v35  ;;  %6713 = vmatmul.mubr.bf16.gmra.mrb[140].mxu0 %v7234_v16  ;;  %6957 = vmatmul.mubr.bf16.gmra.mrb[140].mxu1 %v7235_v18  ;;  %v7239_v23 = vld [vmem:[%s7782_s23 + $0x6ac] sm:$0xff]   ;;  %v10201_v53 = vld [vmem:[#allocation26_spill] sm:$0xff] }
 0x347   : > { %v4827_v58 = vadd.f32 1.0, %v7365_v52  ;;  %6716 = vmatprep.mubr.msk.bf16.mxu0 %vm7728_vm0, %v9971_v59  ;;  %6960 = vmatprep.mubr.msk.bf16.mxu1 %vm7728_vm0, %v9971_v59  ;;  %v10199_v10 = vmax.f32 %v10197_v51, %v10198_v9  ;;  %v10202_v26 = vmax.f32 %v10200_v29, %v10201_v53 }
 0x348   : > { %v7367_v55 = vpop.eup %7366  ;;  %v4492_v27 = vsub.f32 0.0, %v4379_v62  ;;  %v4380_v50 = vadd.f32 %v9263_v3, %v4260_v57 }
 0x349   : > { %7376 = vrcp.f32 %v4827_v58  ;;  %v4828_v56 = vadd.f32 1.0, %v7367_v55  ;;  %v2848_v0 = vpop.f32.mrb[36].mxu0  ;;  %v3903_v40 = vpop.f32.mrb[36].mxu1 }
 0x34a   : > { %v4635_v37 = vmul.f32 1.442695, %v4492_v27  ;;  %v4493_v11 = vsub.f32 0.0, %v4380_v50  ;;  %v3206_v25 = vmax.f32 %v10193_v24, %v2848_v0  ;;  %v6610_v30 = vpop.f32.mrb[37].mxu0  ;;  %v6854_v17 = vpop.f32.mrb[37].mxu1  ;;  %v10203_v24 = vld [vmem:[#allocation27_spill] sm:$0xff] }
 0x34b   : > { %v7369_v31 = vpop.eup %7368  ;;  %7378 = vrcp.f32 %v4828_v56  ;;  %v2851_v32 = vpop.f32.mrb[38].mxu0 }
 0x34c   : > { %v3906_v12 = vpop.f32.mrb[38].mxu1  ;;  %5051 = vst [vmem:[%s9072_s13 + $0xc0] sm:$0xff] %v7369_v31  ;;  %7380 = vpow2.f32 %v4635_v37  ;;  %v4637_v33 = vmul.f32 1.442695, %v4493_v11  ;;  %v4261_v34 = vmax.f32 %v3206_v25, %v3903_v40  ;;  %v3207_v2 = vmax.f32 %v10196_v4, %v2851_v32  ;;  %v6611_v15 = vpop.f32.mrb[39].mxu0  ;;  %v7240_v11 = vld [vmem:[%s7782_s23 + $0x4f0] sm:$0xff]  }
 0x34d   : > { %v6855_v14 = vpop.f32.mrb[39].mxu1  ;;  %v7371_v19 = vpop.eup %7370  ;;  %v10204_v25 = vld [vmem:[#allocation28_spill] sm:$0xff]  ;;  %v10206_v4 = vld [vmem:[#allocation29_spill] sm:$0xff] }
 0x34e   : > { %v7373_v20 = vpop.eup %7372  ;;  %5052 = vst [vmem:[%s9072_s13 + $0xc8] sm:$0xff] %v7371_v19  ;;  %7382 = vpow2.f32 %v4637_v33  ;;  %v4381_v22 = vadd.f32 %v9263_v3, %v4261_v34  ;;  %v4262_v46 = vmax.f32 %v3207_v2, %v3906_v12  ;;  %6717 = vmatmul.mubr.bf16.gmra.mrb[144].mxu0 %v7236_v36  ;;  %6961 = vmatmul.mubr.bf16.gmra.mrb[144].mxu1 %v7237_v21  ;;  %v7241_v32 = vld [vmem:[%s7782_s23 + $0x6b4] sm:$0xff]   ;;  %v10207_v2 = vld [vmem:[#allocation30_spill] sm:$0xff] }
 0x34f   : > { %v4829_v28 = vadd.f32 1.0, %v7373_v20  ;;  %6720 = vmatprep.mubr.msk.bf16.mxu0 %vm7728_vm0, %v9971_v59  ;;  %6964 = vmatprep.mubr.msk.bf16.mxu1 %vm7728_vm0, %v9971_v59  ;;  %v10205_v30 = vmax.f32 %v10203_v24, %v10204_v25  ;;  %v10208_v15 = vmax.f32 %v10206_v4, %v10207_v2 }
 0x350   : > { %v7375_v38 = vpop.eup %7374  ;;  %v4494_v39 = vsub.f32 0.0, %v4381_v22  ;;  %v4382_v7 = vadd.f32 %v9263_v3, %v4262_v46 }
 0x351   : > { %7384 = vrcp.f32 %v4829_v28  ;;  %v4830_v5 = vadd.f32 1.0, %v7375_v38  ;;  %v2856_v16 = vpop.f32.mrb[40].mxu0  ;;  %v3911_v60 = vpop.f32.mrb[40].mxu1 }
 0x352   : > { %v4639_v47 = vmul.f32 1.442695, %v4494_v39  ;;  %v4495_v8 = vsub.f32 0.0, %v4382_v7  ;;  %v3208_v54 = vmax.f32 %v10199_v10, %v2856_v16  ;;  %v6614_v18 = vpop.f32.mrb[41].mxu0  ;;  %v6858_v6 = vpop.f32.mrb[41].mxu1  ;;  %v10209_v10 = vld [vmem:[#allocation31_spill] sm:$0xff] }
 0x353   : > { %v7377_v35 = vpop.eup %7376  ;;  %7386 = vrcp.f32 %v4830_v5  ;;  %v2859_v48 = vpop.f32.mrb[42].mxu0 }
 0x354   : > { %v3914_v49 = vpop.f32.mrb[42].mxu1  ;;  %5053 = vst [vmem:[%s9072_s13 + $0xd0] sm:$0xff] %v7377_v35  ;;  %7388 = vpow2.f32 %v4639_v47  ;;  %v4641_v41 = vmul.f32 1.442695, %v4495_v8  ;;  %v4263_v45 = vmax.f32 %v3208_v54, %v3911_v60  ;;  %v3209_v1 = vmax.f32 %v10202_v26, %v2859_v48  ;;  %v6615_v63 = vpop.f32.mrb[43].mxu0  ;;  %v7242_v8 = vld [vmem:[%s7782_s23 + $0x4f8] sm:$0xff]  }
 0x355   : > { %v6859_v52 = vpop.f32.mrb[43].mxu1  ;;  %v7379_v62 = vpop.eup %7378  ;;  %v10210_v54 = vld [vmem:[#allocation32_spill] sm:$0xff]  ;;  %v7243_v48 = vld [vmem:[%s7782_s23 + $0x6bc] sm:$0xff]  }
 0x356   : > { %v7381_v57 = vpop.eup %7380  ;;  %5054 = vst [vmem:[%s9072_s13 + $0xd8] sm:$0xff] %v7379_v62  ;;  %7390 = vpow2.f32 %v4641_v41  ;;  %v4383_v58 = vadd.f32 %v9263_v3, %v4263_v45  ;;  %v4264_v55 = vmax.f32 %v3209_v1, %v3914_v49  ;;  %6721 = vmatmul.mubr.bf16.gmra.mrb[148].mxu0 %v7238_v61  ;;  %6965 = vmatmul.mubr.bf16.gmra.mrb[148].mxu1 %v7239_v23  ;;  %v10212_v26 = vld [vmem:[#allocation33_spill] sm:$0xff]  ;;  %v10213_v1 = vld [vmem:[#allocation34_spill] sm:$0xff] }
 0x357   : > { %v4831_v27 = vadd.f32 1.0, %v7381_v57  ;;  %6724 = vmatprep.mubr.msk.bf16.mxu0 %vm7728_vm0, %v9971_v59  ;;  %6968 = vmatprep.mubr.msk.bf16.mxu1 %vm7728_vm0, %v9971_v59  ;;  %v10211_v18 = vmax.f32 %v10209_v10, %v10210_v54  ;;  %v10214_v63 = vmax.f32 %v10212_v26, %v10213_v1 }
 0x358   : > { %v7383_v50 = vpop.eup %7382  ;;  %v4496_v56 = vsub.f32 0.0, %v4383_v58  ;;  %v4384_v0 = vadd.f32 %v9263_v3, %v4264_v55 }
 0x359   : > { %7392 = vrcp.f32 %v4831_v27  ;;  %v4832_v40 = vadd.f32 1.0, %v7383_v50  ;;  %v2864_v36 = vpop.f32.mrb[44].mxu0  ;;  %v3919_v37 = vpop.f32.mrb[44].mxu1 }
 0x35a   : > { %v4643_v43 = vmul.f32 1.442695, %v4496_v56  ;;  %v4497_v44 = vsub.f32 0.0, %v4384_v0  ;;  %v3210_v17 = vmax.f32 %v10205_v30, %v2864_v36  ;;  %v6618_v21 = vpop.f32.mrb[45].mxu0  ;;  %v6862_v31 = vpop.f32.mrb[45].mxu1  ;;  %v10215_v30 = vld [vmem:[#allocation35_spill] sm:$0xff] }
 0x35b   : > { %v7385_v12 = vpop.eup %7384  ;;  %7394 = vrcp.f32 %v4832_v40  ;;  %v2867_v33 = vpop.f32.mrb[46].mxu0 }
 0x35c   : > { %v3922_v34 = vpop.f32.mrb[46].mxu1  ;;  %5055 = vst [vmem:[%s9072_s13 + $0xe0] sm:$0xff] %v7385_v12  ;;  %7396 = vpow2.f32 %v4643_v43  ;;  %v4645_v13 = vmul.f32 1.442695, %v4497_v44  ;;  %v4265_v42 = vmax.f32 %v3210_v17, %v3919_v37  ;;  %v3211_v14 = vmax.f32 %v10208_v15, %v2867_v33  ;;  %v6619_v19 = vpop.f32.mrb[47].mxu0  ;;  %v7244_v44 = vld [vmem:[%s7782_s23 + $0x500] sm:$0xff]  }
 0x35d   : > { %v6863_v20 = vpop.f32.mrb[47].mxu1  ;;  %v7387_v22 = vpop.eup %7386  ;;  %v10216_v17 = vld [vmem:[#allocation36_spill] sm:$0xff]  ;;  %v7245_v33 = vld [vmem:[%s7782_s23 + $0x6c4] sm:$0xff]   ;;  %v10218_v15 = vld [vmem:[#allocation37_spill] sm:$0xff] }
 0x35e   : > { %v7389_v46 = vpop.eup %7388  ;;  %5056 = vst [vmem:[%s9072_s13 + $0xe8] sm:$0xff] %v7387_v22  ;;  %7398 = vpow2.f32 %v4645_v13  ;;  %v4385_v28 = vadd.f32 %v9263_v3, %v4265_v42  ;;  %v4266_v38 = vmax.f32 %v3211_v14, %v3922_v34  ;;  %6725 = vmatmul.mubr.bf16.gmra.mrb[152].mxu0 %v7240_v11  ;;  %6969 = vmatmul.mubr.bf16.gmra.mrb[152].mxu1 %v7241_v32  ;;  %v10219_v14 = vld [vmem:[#allocation38_spill] sm:$0xff] }
 0x35f   : > { %v4833_v39 = vadd.f32 1.0, %v7389_v46  ;;  %6728 = vmatprep.mubr.msk.bf16.mxu0 %vm7728_vm0, %v9971_v59  ;;  %6972 = vmatprep.mubr.msk.bf16.mxu1 %vm7728_vm0, %v9971_v59  ;;  %v10217_v21 = vmax.f32 %v10215_v30, %v10216_v17  ;;  %v10220_v19 = vmax.f32 %v10218_v15, %v10219_v14 }
 0x360   : > { %v7391_v7 = vpop.eup %7390  ;;  %v4498_v5 = vsub.f32 0.0, %v4385_v28  ;;  %v4386_v16 = vadd.f32 %v9263_v3, %v4266_v38 }
 0x361   : > { %7400 = vrcp.f32 %v4833_v39  ;;  %v4834_v60 = vadd.f32 1.0, %v7391_v7  ;;  %v2872_v61 = vpop.f32.mrb[48].mxu0  ;;  %v3927_v47 = vpop.f32.mrb[48].mxu1 }
 0x362   : > { %v4647_v51 = vmul.f32 1.442695, %v4498_v5  ;;  %v4499_v9 = vsub.f32 0.0, %v4386_v16  ;;  %v3212_v6 = vmax.f32 %v10211_v18, %v2872_v61  ;;  %v6622_v23 = vpop.f32.mrb[49].mxu0  ;;  %v6866_v35 = vpop.f32.mrb[49].mxu1  ;;  %v10221_v18 = vld [vmem:[#allocation39_spill] sm:$0xff] }
 0x363   : > { %v7393_v49 = vpop.eup %7392  ;;  %7402 = vrcp.f32 %v4834_v60  ;;  %v2875_v41 = vpop.f32.mrb[50].mxu0 }
 0x364   : > { %v3930_v45 = vpop.f32.mrb[50].mxu1  ;;  %5057 = vst [vmem:[%s9072_s13 + $0xf0] sm:$0xff] %v7393_v49  ;;  %7404 = vpow2.f32 %v4647_v51  ;;  %v4649_v29 = vmul.f32 1.442695, %v4499_v9  ;;  %v4267_v53 = vmax.f32 %v3212_v6, %v3927_v47  ;;  %v3213_v52 = vmax.f32 %v10214_v63, %v2875_v41  ;;  %v6623_v62 = vpop.f32.mrb[51].mxu0  ;;  %v7246_v9 = vld [vmem:[%s7782_s23 + $0x508] sm:$0xff]  }
 0x365   : > { %v6867_v57 = vpop.f32.mrb[51].mxu1  ;;  %v7395_v58 = vpop.eup %7394  ;;  %v10222_v6 = vld [vmem:[#allocation40_spill] sm:$0xff]  ;;  %v10224_v63 = vld [vmem:[#allocation41_spill] sm:$0xff] }
 0x366   : > { %v7397_v55 = vpop.eup %7396  ;;  %5058 = vst [vmem:[%s9072_s13 + $0xf8] sm:$0xff] %v7395_v58  ;;  %7406 = vpow2.f32 %v4649_v29  ;;  %v4387_v27 = vadd.f32 %v9263_v3, %v4267_v53  ;;  %v4268_v50 = vmax.f32 %v3213_v52, %v3930_v45  ;;  %6729 = vmatmul.mubr.bf16.gmra.mrb[156].mxu0 %v7242_v8  ;;  %6973 = vmatmul.mubr.bf16.gmra.mrb[156].mxu1 %v7243_v48  ;;  %v7247_v41 = vld [vmem:[%s7782_s23 + $0x6cc] sm:$0xff]   ;;  %v10225_v52 = vld [vmem:[#allocation42_spill] sm:$0xff] }
 0x367   : > { %v4835_v56 = vadd.f32 1.0, %v7397_v55  ;;  %6732 = vmatprep.mubr.msk.bf16.mxu0 %vm7728_vm0, %v9971_v59  ;;  %6976 = vmatprep.mubr.msk.bf16.mxu1 %vm7728_vm0, %v9971_v59  ;;  %v10223_v23 = vmax.f32 %v10221_v18, %v10222_v6  ;;  %v10226_v62 = vmax.f32 %v10224_v63, %v10225_v52 }
 0x368   : > { %v7399_v0 = vpop.eup %7398  ;;  %v4500_v40 = vsub.f32 0.0, %v4387_v27  ;;  %v4388_v36 = vadd.f32 %v9263_v3, %v4268_v50 }
 0x369   : > { %7408 = vrcp.f32 %v4835_v56  ;;  %v4836_v37 = vadd.f32 1.0, %v7399_v0  ;;  %v2880_v11 = vpop.f32.mrb[52].mxu0  ;;  %v3935_v43 = vpop.f32.mrb[52].mxu1 }
 0x36a   : > { %v4651_v24 = vmul.f32 1.442695, %v4500_v40  ;;  %v4501_v25 = vsub.f32 0.0, %v4388_v36  ;;  %v3214_v31 = vmax.f32 %v10217_v21, %v2880_v11  ;;  %v6626_v32 = vpop.f32.mrb[53].mxu0  ;;  %v6870_v12 = vpop.f32.mrb[53].mxu1  ;;  %v10227_v21 = vld [vmem:[#allocation43_spill] sm:$0xff] }
 0x36b   : > { %v7401_v34 = vpop.eup %7400  ;;  %7410 = vrcp.f32 %v4836_v37  ;;  %v2883_v13 = vpop.f32.mrb[54].mxu0 }
 0x36c   : > { %v3938_v42 = vpop.f32.mrb[54].mxu1  ;;  %5059 = vst [vmem:[%s9072_s13 + $0x100] sm:$0xff] %v7401_v34  ;;  %7412 = vpow2.f32 %v4651_v24  ;;  %v4653_v4 = vmul.f32 1.442695, %v4501_v25  ;;  %v4269_v2 = vmax.f32 %v3214_v31, %v3935_v43  ;;  %v3215_v20 = vmax.f32 %v10220_v19, %v2883_v13  ;;  %v6627_v22 = vpop.f32.mrb[55].mxu0  ;;  %v7248_v25 = vld [vmem:[%s7782_s23 + $0x510] sm:$0xff]  }
 0x36d   : > { %v6871_v46 = vpop.f32.mrb[55].mxu1  ;;  %v7403_v28 = vpop.eup %7402  ;;  %v10228_v31 = vld [vmem:[#allocation44_spill] sm:$0xff]  ;;  %v10230_v19 = vld [vmem:[#allocation45_spill] sm:$0xff] }
 0x36e   : > { %v7405_v38 = vpop.eup %7404  ;;  %5060 = vst [vmem:[%s9072_s13 + $0x108] sm:$0xff] %v7403_v28  ;;  %7414 = vpow2.f32 %v4653_v4  ;;  %v4389_v39 = vadd.f32 %v9263_v3, %v4269_v2  ;;  %v4270_v7 = vmax.f32 %v3215_v20, %v3938_v42  ;;  %6733 = vmatmul.mubr.bf16.gmra.mrb[160].mxu0 %v7244_v44  ;;  %6977 = vmatmul.mubr.bf16.gmra.mrb[160].mxu1 %v7245_v33  ;;  %v7249_v13 = vld [vmem:[%s7782_s23 + $0x6d4] sm:$0xff]   ;;  %v10231_v20 = vld [vmem:[#allocation46_spill] sm:$0xff] }
 0x36f   : > { %v4837_v5 = vadd.f32 1.0, %v7405_v38  ;;  %6736 = vmatprep.mubr.msk.bf16.mxu0 %vm7728_vm0, %v9971_v59  ;;  %6980 = vmatprep.mubr.msk.bf16.mxu1 %vm7728_vm0, %v9971_v59  ;;  %v10229_v32 = vmax.f32 %v10227_v21, %v10228_v31  ;;  %v10232_v22 = vmax.f32 %v10230_v19, %v10231_v20 }
 0x370   : > { %v7407_v16 = vpop.eup %7406  ;;  %v4502_v60 = vsub.f32 0.0, %v4389_v39  ;;  %v4390_v61 = vadd.f32 %v9263_v3, %v4270_v7 }
 0x371   : > { %7416 = vrcp.f32 %v4837_v5  ;;  %v4838_v47 = vadd.f32 1.0, %v7407_v16  ;;  %v2888_v8 = vpop.f32.mrb[56].mxu0  ;;  %v3943_v51 = vpop.f32.mrb[56].mxu1 }
 0x372   : > { %v4655_v10 = vmul.f32 1.442695, %v4502_v60  ;;  %v4503_v54 = vsub.f32 0.0, %v4390_v61  ;;  %v3216_v35 = vmax.f32 %v10223_v23, %v2888_v8  ;;  %v6630_v48 = vpop.f32.mrb[57].mxu0  ;;  %v6874_v49 = vpop.f32.mrb[57].mxu1  ;;  %v10233_v23 = vld [vmem:[#allocation47_spill] sm:$0xff] }
 0x373   : > { %v7409_v45 = vpop.eup %7408  ;;  %7418 = vrcp.f32 %v4838_v47  ;;  %v2891_v29 = vpop.f32.mrb[58].mxu0 }
 0x374   : > { %v3946_v53 = vpop.f32.mrb[58].mxu1  ;;  %5061 = vst [vmem:[%s9072_s13 + $0x110] sm:$0xff] %v7409_v45  ;;  %7420 = vpow2.f32 %v4655_v10  ;;  %v4657_v26 = vmul.f32 1.442695, %v4503_v54  ;;  %v4271_v1 = vmax.f32 %v3216_v35, %v3943_v51  ;;  %v3217_v57 = vmax.f32 %v10226_v62, %v2891_v29  ;;  %v6631_v58 = vpop.f32.mrb[59].mxu0  ;;  %v7250_v54 = vld [vmem:[%s7782_s23 + $0x518] sm:$0xff]  }
 0x375   : > { %v6875_v55 = vpop.f32.mrb[59].mxu1  ;;  %v7411_v27 = vpop.eup %7410  ;;  %v10234_v35 = vld [vmem:[#allocation48_spill] sm:$0xff]  ;;  %v7251_v29 = vld [vmem:[%s7782_s23 + $0x6dc] sm:$0xff]  }
 0x376   : > { %v7413_v50 = vpop.eup %7412  ;;  %5062 = vst [vmem:[%s9072_s13 + $0x118] sm:$0xff] %v7411_v27  ;;  %7422 = vpow2.f32 %v4657_v26  ;;  %v4391_v56 = vadd.f32 %v9263_v3, %v4271_v1  ;;  %v4272_v0 = vmax.f32 %v3217_v57, %v3946_v53  ;;  %6737 = vmatmul.mubr.bf16.gmra.mrb[164].mxu0 %v7246_v9  ;;  %6981 = vmatmul.mubr.bf16.gmra.mrb[164].mxu1 %v7247_v41  ;;  %v10236_v62 = vld [vmem:[#allocation49_spill] sm:$0xff]  ;;  %v10237_v57 = vld [vmem:[#allocation50_spill] sm:$0xff] }
 0x377   : > { %v4839_v40 = vadd.f32 1.0, %v7413_v50  ;;  %6740 = vmatprep.mubr.msk.bf16.mxu0 %vm7728_vm0, %v9971_v59  ;;  %6984 = vmatprep.mubr.msk.bf16.mxu1 %vm7728_vm0, %v9971_v59  ;;  %v10235_v48 = vmax.f32 %v10233_v23, %v10234_v35  ;;  %v10238_v58 = vmax.f32 %v10236_v62, %v10237_v57 }
 0x378   : > { %v7415_v36 = vpop.eup %7414  ;;  %v4504_v37 = vsub.f32 0.0, %v4391_v56  ;;  %v4392_v11 = vadd.f32 %v9263_v3, %v4272_v0 }
 0x379   : > { %7424 = vrcp.f32 %v4839_v40  ;;  %v4840_v43 = vadd.f32 1.0, %v7415_v36  ;;  %v2896_v44 = vpop.f32.mrb[60].mxu0  ;;  %v3951_v24 = vpop.f32.mrb[60].mxu1 }
 0x37a   : > { %v4659_v30 = vmul.f32 1.442695, %v4504_v37  ;;  %v4505_v17 = vsub.f32 0.0, %v4392_v11  ;;  %v3218_v12 = vmax.f32 %v10229_v32, %v2896_v44  ;;  %v6634_v33 = vpop.f32.mrb[61].mxu0  ;;  %v6878_v34 = vpop.f32.mrb[61].mxu1  ;;  %v10239_v32 = vld [vmem:[#allocation51_spill] sm:$0xff] }
 0x37b   : > { %v7417_v42 = vpop.eup %7416  ;;  %7426 = vrcp.f32 %v4840_v43  ;;  %v2899_v4 = vpop.f32.mrb[62].mxu0 }
 0x37c   : > { %v3954_v2 = vpop.f32.mrb[62].mxu1  ;;  %5063 = vst [vmem:[%s9072_s13 + $0x120] sm:$0xff] %v7417_v42  ;;  %7428 = vpow2.f32 %v4659_v30  ;;  %v4661_v15 = vmul.f32 1.442695, %v4505_v17  ;;  %v4273_v14 = vmax.f32 %v3218_v12, %v3951_v24  ;;  %v3219_v46 = vmax.f32 %v10232_v22, %v2899_v4  ;;  %v6635_v28 = vpop.f32.mrb[63].mxu0  ;;  %v7252_v17 = vld [vmem:[%s7782_s23 + $0x520] sm:$0xff]  }
 0x37d   : > { %v6879_v38 = vpop.f32.mrb[63].mxu1  ;;  %v7419_v39 = vpop.eup %7418  ;;  %v10240_v12 = vld [vmem:[#allocation52_spill] sm:$0xff]  ;;  %v7253_v4 = vld [vmem:[%s7782_s23 + $0x6e4] sm:$0xff]   ;;  %v10242_v22 = vld [vmem:[#allocation53_spill] sm:$0xff] }
 0x37e   : > { %v7421_v7 = vpop.eup %7420  ;;  %5064 = vst [vmem:[%s9072_s13 + $0x128] sm:$0xff] %v7419_v39  ;;  %7430 = vpow2.f32 %v4661_v15  ;;  %v4393_v5 = vadd.f32 %v9263_v3, %v4273_v14  ;;  %v4274_v16 = vmax.f32 %v3219_v46, %v3954_v2  ;;  %6741 = vmatmul.mubr.bf16.gmra.mrb[168].mxu0 %v7248_v25  ;;  %6985 = vmatmul.mubr.bf16.gmra.mrb[168].mxu1 %v7249_v13  ;;  %v10243_v46 = vld [vmem:[#allocation54_spill] sm:$0xff] }
 0x37f   : > { %v4841_v60 = vadd.f32 1.0, %v7421_v7  ;;  %6744 = vmatprep.mubr.msk.bf16.mxu0 %vm7728_vm0, %v9971_v59  ;;  %6988 = vmatprep.mubr.msk.bf16.mxu1 %vm7728_vm0, %v9971_v59  ;;  %v10241_v33 = vmax.f32 %v10239_v32, %v10240_v12  ;;  %v10244_v28 = vmax.f32 %v10242_v22, %v10243_v46 }
 0x380   : > { %v7423_v61 = vpop.eup %7422  ;;  %v4506_v47 = vsub.f32 0.0, %v4393_v5  ;;  %v4394_v8 = vadd.f32 %v9263_v3, %v4274_v16 }
 0x381   : > { %7432 = vrcp.f32 %v4841_v60  ;;  %v4842_v51 = vadd.f32 1.0, %v7423_v61  ;;  %v2904_v9 = vpop.f32.mrb[64].mxu0  ;;  %v3959_v10 = vpop.f32.mrb[64].mxu1 }
 0x382   : > { %v4663_v18 = vmul.f32 1.442695, %v4506_v47  ;;  %v4507_v6 = vsub.f32 0.0, %v4394_v8  ;;  %v3220_v49 = vmax.f32 %v10235_v48, %v2904_v9  ;;  %v6638_v41 = vpop.f32.mrb[65].mxu0  ;;  %v6882_v45 = vpop.f32.mrb[65].mxu1  ;;  %v10245_v48 = vld [vmem:[#allocation55_spill] sm:$0xff] }
 0x383   : > { %v7425_v53 = vpop.eup %7424  ;;  %7434 = vrcp.f32 %v4842_v51  ;;  %v2907_v26 = vpop.f32.mrb[66].mxu0 }
 0x384   : > { %v3962_v1 = vpop.f32.mrb[66].mxu1  ;;  %5065 = vst [vmem:[%s9072_s13 + $0x130] sm:$0xff] %v7425_v53  ;;  %7436 = vpow2.f32 %v4663_v18  ;;  %v4665_v63 = vmul.f32 1.442695, %v4507_v6  ;;  %v4275_v52 = vmax.f32 %v3220_v49, %v3959_v10  ;;  %v3221_v55 = vmax.f32 %v10238_v58, %v2907_v26  ;;  %v6639_v27 = vpop.f32.mrb[67].mxu0  ;;  %v7254_v6 = vld [vmem:[%s7782_s23 + $0x528] sm:$0xff]  }
 0x385   : > { %v6883_v50 = vpop.f32.mrb[67].mxu1  ;;  %v7427_v56 = vpop.eup %7426  ;;  %v10246_v49 = vld [vmem:[#allocation56_spill] sm:$0xff]  ;;  %v10248_v58 = vld [vmem:[#allocation57_spill] sm:$0xff] }
 0x386   : > { %v7429_v0 = vpop.eup %7428  ;;  %5066 = vst [vmem:[%s9072_s13 + $0x138] sm:$0xff] %v7427_v56  ;;  %7438 = vpow2.f32 %v4665_v63  ;;  %v4395_v40 = vadd.f32 %v9263_v3, %v4275_v52  ;;  %v4276_v36 = vmax.f32 %v3221_v55, %v3962_v1  ;;  %6745 = vmatmul.mubr.bf16.gmra.mrb[172].mxu0 %v7250_v54  ;;  %6989 = vmatmul.mubr.bf16.gmra.mrb[172].mxu1 %v7251_v29  ;;  %v7255_v26 = vld [vmem:[%s7782_s23 + $0x6ec] sm:$0xff]   ;;  %v10249_v55 = vld [vmem:[#allocation58_spill] sm:$0xff] }
 0x387   : > { %v4843_v37 = vadd.f32 1.0, %v7429_v0  ;;  %6748 = vmatprep.mubr.msk.bf16.mxu0 %vm7728_vm0, %v9971_v59  ;;  %6992 = vmatprep.mubr.msk.bf16.mxu1 %vm7728_vm0, %v9971_v59  ;;  %v10247_v41 = vmax.f32 %v10245_v48, %v10246_v49  ;;  %v10250_v27 = vmax.f32 %v10248_v58, %v10249_v55 }
 0x388   : > { %v7431_v11 = vpop.eup %7430  ;;  %v4508_v43 = vsub.f32 0.0, %v4395_v40  ;;  %v4396_v44 = vadd.f32 %v9263_v3, %v4276_v36 }
 0x389   : > { %7440 = vrcp.f32 %v4843_v37  ;;  %v4844_v24 = vadd.f32 1.0, %v7431_v11  ;;  %v2912_v25 = vpop.f32.mrb[68].mxu0  ;;  %v3967_v30 = vpop.f32.mrb[68].mxu1 }
 0x38a   : > { %v4667_v21 = vmul.f32 1.442695, %v4508_v43  ;;  %v4509_v31 = vsub.f32 0.0, %v4396_v44  ;;  %v3222_v34 = vmax.f32 %v10241_v33, %v2912_v25  ;;  %v6642_v13 = vpop.f32.mrb[69].mxu0  ;;  %v6886_v42 = vpop.f32.mrb[69].mxu1  ;;  %v10251_v33 = vld [vmem:[#allocation59_spill] sm:$0xff] }
 0x38b   : > { %v7433_v2 = vpop.eup %7432  ;;  %7442 = vrcp.f32 %v4844_v24  ;;  %v2915_v15 = vpop.f32.mrb[70].mxu0 }
 0x38c   : > { %v3970_v14 = vpop.f32.mrb[70].mxu1  ;;  %5067 = vst [vmem:[%s9072_s13 + $0x140] sm:$0xff] %v7433_v2  ;;  %7444 = vpow2.f32 %v4667_v21  ;;  %v4669_v19 = vmul.f32 1.442695, %v4509_v31  ;;  %v4277_v20 = vmax.f32 %v3222_v34, %v3967_v30  ;;  %v3223_v38 = vmax.f32 %v10244_v28, %v2915_v15  ;;  %v6643_v39 = vpop.f32.mrb[71].mxu0  ;;  %v7256_v31 = vld [vmem:[%s7782_s23 + $0x530] sm:$0xff]  }
 0x38d   : > { %v6887_v7 = vpop.f32.mrb[71].mxu1  ;;  %v7435_v5 = vpop.eup %7434  ;;  %v10252_v34 = vld [vmem:[#allocation60_spill] sm:$0xff]  ;;  %v10254_v28 = vld [vmem:[#allocation61_spill] sm:$0xff] }
 0x38e   : > { %v7437_v16 = vpop.eup %7436  ;;  %5068 = vst [vmem:[%s9072_s13 + $0x148] sm:$0xff] %v7435_v5  ;;  %7446 = vpow2.f32 %v4669_v19  ;;  %v4397_v60 = vadd.f32 %v9263_v3, %v4277_v20  ;;  %v4278_v61 = vmax.f32 %v3223_v38, %v3970_v14  ;;  %6749 = vmatmul.mubr.bf16.gmra.mrb[176].mxu0 %v7252_v17  ;;  %6993 = vmatmul.mubr.bf16.gmra.mrb[176].mxu1 %v7253_v4  ;;  %v7257_v15 = vld [vmem:[%s7782_s23 + $0x6f4] sm:$0xff]   ;;  %v10255_v38 = vld [vmem:[#allocation62_spill] sm:$0xff] }
 0x38f   : > { %v4845_v47 = vadd.f32 1.0, %v7437_v16  ;;  %6752 = vmatprep.mubr.msk.bf16.mxu0 %vm7728_vm0, %v9971_v59  ;;  %6996 = vmatprep.mubr.msk.bf16.mxu1 %vm7728_vm0, %v9971_v59  ;;  %v10253_v13 = vmax.f32 %v10251_v33, %v10252_v34  ;;  %v10256_v39 = vmax.f32 %v10254_v28, %v10255_v38 }
 0x390   : > { %v7439_v8 = vpop.eup %7438  ;;  %v4510_v51 = vsub.f32 0.0, %v4397_v60  ;;  %v4398_v9 = vadd.f32 %v9263_v3, %v4278_v61 }
 0x391   : > { %7448 = vrcp.f32 %v4845_v47  ;;  %v4846_v10 = vadd.f32 1.0, %v7439_v8  ;;  %v2920_v54 = vpop.f32.mrb[72].mxu0  ;;  %v3975_v18 = vpop.f32.mrb[72].mxu1 }
 0x392   : > { %v4671_v23 = vmul.f32 1.442695, %v4510_v51  ;;  %v4511_v35 = vsub.f32 0.0, %v4398_v9  ;;  %v3224_v45 = vmax.f32 %v10247_v41, %v2920_v54  ;;  %v6646_v29 = vpop.f32.mrb[73].mxu0  ;;  %v6890_v53 = vpop.f32.mrb[73].mxu1  ;;  %v10257_v41 = vld [vmem:[#allocation63_spill] sm:$0xff] }
 0x393   : > { %v7441_v1 = vpop.eup %7440  ;;  %7450 = vrcp.f32 %v4846_v10  ;;  %v2923_v63 = vpop.f32.mrb[74].mxu0 }
 0x394   : > { %v3978_v52 = vpop.f32.mrb[74].mxu1  ;;  %5069 = vst [vmem:[%s9072_s13 + $0x150] sm:$0xff] %v7441_v1  ;;  %7452 = vpow2.f32 %v4671_v23  ;;  %v4673_v62 = vmul.f32 1.442695, %v4511_v35  ;;  %v4279_v57 = vmax.f32 %v3224_v45, %v3975_v18  ;;  %v3225_v50 = vmax.f32 %v10250_v27, %v2923_v63  ;;  %v6647_v56 = vpop.f32.mrb[75].mxu0  ;;  %v7258_v35 = vld [vmem:[%s7782_s23 + $0x538] sm:$0xff]  }
 0x395   : > { %v6891_v0 = vpop.f32.mrb[75].mxu1  ;;  %v7443_v40 = vpop.eup %7442  ;;  %v10258_v45 = vld [vmem:[#allocation64_spill] sm:$0xff]  ;;  %v7259_v63 = vld [vmem:[%s7782_s23 + $0x6fc] sm:$0xff]  }
 0x396   : > { %v7445_v36 = vpop.eup %7444  ;;  %5070 = vst [vmem:[%s9072_s13 + $0x158] sm:$0xff] %v7443_v40  ;;  %7454 = vpow2.f32 %v4673_v62  ;;  %v4399_v37 = vadd.f32 %v9263_v3, %v4279_v57  ;;  %v4280_v11 = vmax.f32 %v3225_v50, %v3978_v52  ;;  %6753 = vmatmul.mubr.bf16.gmra.mrb[180].mxu0 %v7254_v6  ;;  %6997 = vmatmul.mubr.bf16.gmra.mrb[180].mxu1 %v7255_v26  ;;  %v10260_v27 = vld [vmem:[#allocation65_spill] sm:$0xff]  ;;  %v10261_v50 = vld [vmem:[#allocation66_spill] sm:$0xff] }
 0x397   : > { %v4847_v43 = vadd.f32 1.0, %v7445_v36  ;;  %6756 = vmatprep.mubr.msk.bf16.mxu0 %vm7728_vm0, %v9971_v59  ;;  %7000 = vmatprep.mubr.msk.bf16.mxu1 %vm7728_vm0, %v9971_v59  ;;  %v10259_v29 = vmax.f32 %v10257_v41, %v10258_v45  ;;  %v10262_v56 = vmax.f32 %v10260_v27, %v10261_v50  ;;  %v7263_v41 = vld [vmem:[%s7782_s23 + $0x70c] ss:$0 sps:$4 sm:$0x33]   ;;  %v10272_v50 = vld [vmem:[#allocation73_spill] sm:$0xff] }
 0x398   : > { %v7447_v44 = vpop.eup %7446  ;;  %v4512_v24 = vsub.f32 0.0, %v4399_v37  ;;  %v4400_v25 = vadd.f32 %v9263_v3, %v4280_v11 }
 0x399   : > { %7456 = vrcp.f32 %v4847_v43  ;;  %v4848_v30 = vadd.f32 1.0, %v7447_v44  ;;  %v2928_v17 = vpop.f32.mrb[76].mxu0  ;;  %v3983_v21 = vpop.f32.mrb[76].mxu1 }
 0x39a   : > { %v4675_v32 = vmul.f32 1.442695, %v4512_v24  ;;  %v4513_v12 = vsub.f32 0.0, %v4400_v25  ;;  %v3226_v42 = vmax.f32 %v10253_v13, %v2928_v17  ;;  %v6650_v4 = vpop.f32.mrb[77].mxu0  ;;  %v6894_v2 = vpop.f32.mrb[77].mxu1  ;;  %v10263_v13 = vld [vmem:[#allocation67_spill] sm:$0xff] }
 0x39b   : > { %v7449_v14 = vpop.eup %7448  ;;  %7458 = vrcp.f32 %v4848_v30  ;;  %v2931_v19 = vpop.f32.mrb[78].mxu0 }
 0x39c   : > { %v3986_v20 = vpop.f32.mrb[78].mxu1  ;;  %5071 = vst [vmem:[%s9072_s13 + $0x160] sm:$0xff] %v7449_v14  ;;  %7460 = vpow2.f32 %v4675_v32  ;;  %v4677_v22 = vmul.f32 1.442695, %v4513_v12  ;;  %v4281_v46 = vmax.f32 %v3226_v42, %v3983_v21  ;;  %v3227_v7 = vmax.f32 %v10256_v39, %v2931_v19  ;;  %v6651_v5 = vpop.f32.mrb[79].mxu0  ;;  %v7260_v12 = vld [vmem:[%s7782_s23 + $0x540] sm:$0xff]  }
 0x39d   : > { %v6895_v16 = vpop.f32.mrb[79].mxu1  ;;  %v7451_v60 = vpop.eup %7450  ;;  %v10264_v42 = vld [vmem:[#allocation68_spill] sm:$0xff]  ;;  %v7261_v19 = vld [vmem:[%s7782_s23 + $0x704] sm:$0xff]   ;;  %v10266_v39 = vld [vmem:[#allocation69_spill] sm:$0xff] }
 0x39e   : > { %v7453_v61 = vpop.eup %7452  ;;  %5072 = vst [vmem:[%s9072_s13 + $0x168] sm:$0xff] %v7451_v60  ;;  %7462 = vpow2.f32 %v4677_v22  ;;  %v4401_v47 = vadd.f32 %v9263_v3, %v4281_v46  ;;  %v4282_v8 = vmax.f32 %v3227_v7, %v3986_v20  ;;  %6757 = vmatmul.mubr.bf16.gmra.mrb[184].mxu0 %v7256_v31  ;;  %7001 = vmatmul.mubr.bf16.gmra.mrb[184].mxu1 %v7257_v15  ;;  %v10267_v7 = vld [vmem:[#allocation70_spill] sm:$0xff] }
 0x39f   : > { %v4849_v51 = vadd.f32 1.0, %v7453_v61  ;;  %6760 = vmatprep.mubr.msk.bf16.mxu0 %vm7728_vm0, %v9971_v59  ;;  %7004 = vmatprep.mubr.msk.bf16.mxu1 %vm7728_vm0, %v9971_v59  ;;  %v10265_v4 = vmax.f32 %v10263_v13, %v10264_v42  ;;  %v10268_v5 = vmax.f32 %v10266_v39, %v10267_v7  ;;  %v10275_v13 = vld [vmem:[#allocation75_spill] sm:$0xff]  ;;  %v10276_v42 = vld [vmem:[#allocation76_spill] sm:$0xff] }
 0x3a0   : > { %v7455_v9 = vpop.eup %7454  ;;  %v4514_v10 = vsub.f32 0.0, %v4401_v47  ;;  %v4402_v54 = vadd.f32 %v9263_v3, %v4282_v8 }
 0x3a1   : > { %7464 = vrcp.f32 %v4849_v51  ;;  %v4850_v18 = vadd.f32 1.0, %v7455_v9  ;;  %v2936_v6 = vpop.f32.mrb[80].mxu0  ;;  %v3991_v23 = vpop.f32.mrb[80].mxu1 }
 0x3a2   : > { %v4679_v48 = vmul.f32 1.442695, %v4514_v10  ;;  %v4515_v49 = vsub.f32 0.0, %v4402_v54  ;;  %v3228_v53 = vmax.f32 %v10259_v29, %v2936_v6  ;;  %v6654_v26 = vpop.f32.mrb[81].mxu0  ;;  %v6898_v1 = vpop.f32.mrb[81].mxu1 }
 0x3a3   : > { %v7457_v52 = vpop.eup %7456  ;;  %7466 = vrcp.f32 %v4850_v18  ;;  %v2939_v62 = vpop.f32.mrb[82].mxu0  ;;  %v10270_v26 = vld [vmem:[#allocation72_spill] sm:$0xff] }
 0x3a4   : > { %v3994_v57 = vpop.f32.mrb[82].mxu1  ;;  %5073 = vst [vmem:[%s9072_s13 + $0x170] sm:$0xff] %v7457_v52  ;;  %7468 = vpow2.f32 %v4679_v48  ;;  %v4681_v58 = vmul.f32 1.442695, %v4515_v49  ;;  %v4283_v55 = vmax.f32 %v3228_v53, %v3991_v23  ;;  %v3229_v0 = vmax.f32 %v10262_v56, %v2939_v62  ;;  %v6655_v40 = vpop.f32.mrb[83].mxu0  ;;  %v10269_v53 = vld [vmem:[#allocation71_spill] sm:$0xff] }
 0x3a5   : > { %v6899_v36 = vpop.f32.mrb[83].mxu1  ;;  %v7459_v37 = vpop.eup %7458  ;;  %v7262_v23 = vld [vmem:[%s7782_s23 + $0x548] ss:$0 sps:$4 sm:$0x33]   ;;  %v10271_v1 = vmax.f32 %v10269_v53, %v10270_v26  ;;  %v10273_v56 = vld [vmem:[#allocation74_spill] sm:$0xff] }
 0x3a6   : > { %v7461_v11 = vpop.eup %7460  ;;  %5074 = vst [vmem:[%s9072_s13 + $0x178] sm:$0xff] %v7459_v37  ;;  %7470 = vpow2.f32 %v4681_v58  ;;  %v4403_v43 = vadd.f32 %v9263_v3, %v4283_v55  ;;  %v4284_v44 = vmax.f32 %v3229_v0, %v3994_v57  ;;  %6761 = vmatmul.mubr.bf16.gmra.mrb[188].mxu0 %v7258_v35  ;;  %7005 = vmatmul.mubr.bf16.gmra.mrb[188].mxu1 %v7259_v63 }
 0x3a7   : > { %v4851_v24 = vadd.f32 1.0, %v7461_v11  ;;  %6764 = vmatprep.mubr.msk.bf16.mxu0 %vm7728_vm0, %v9971_v59  ;;  %7008 = vmatprep.mubr.msk.bf16.mxu1 %vm7728_vm0, %v9971_v59  ;;  %v10274_v0 = vmax.f32 %v10272_v50, %v10273_v56 }
 0x3a8   : > { %v7463_v25 = vpop.eup %7462  ;;  %v4516_v30 = vsub.f32 0.0, %v4403_v43  ;;  %v4404_v17 = vadd.f32 %v9263_v3, %v4284_v44 }
 0x3a9   : > { %7472 = vrcp.f32 %v4851_v24  ;;  %v4852_v21 = vadd.f32 1.0, %v7463_v25  ;;  %v2944_v31 = vpop.f32.mrb[84].mxu0  ;;  %v3999_v32 = vpop.f32.mrb[84].mxu1 }
 0x3aa   : > { %v4683_v33 = vmul.f32 1.442695, %v4516_v30  ;;  %v4517_v34 = vsub.f32 0.0, %v4404_v17  ;;  %v3230_v2 = vmax.f32 %v10265_v4, %v2944_v31  ;;  %v6658_v15 = vpop.f32.mrb[85].mxu0  ;;  %v6902_v14 = vpop.f32.mrb[85].mxu1  ;;  %v10277_v4 = vmax.f32 %v10275_v13, %v10276_v42 }
 0x3ab   : > { %v7465_v20 = vpop.eup %7464  ;;  %7474 = vrcp.f32 %v4852_v21  ;;  %v2947_v22 = vpop.f32.mrb[86].mxu0 }
 0x3ac   : > { %v4002_v46 = vpop.f32.mrb[86].mxu1  ;;  %5075 = vst [vmem:[%s9072_s13 + $0x180] sm:$0xff] %v7465_v20  ;;  %7476 = vpow2.f32 %v4683_v33  ;;  %v4685_v28 = vmul.f32 1.442695, %v4517_v34  ;;  %v4285_v38 = vmax.f32 %v3230_v2, %v3999_v32  ;;  %v3231_v16 = vmax.f32 %v10268_v5, %v2947_v22  ;;  %v6659_v60 = vpop.f32.mrb[87].mxu0 }
 0x3ad   : > { %v6903_v61 = vpop.f32.mrb[87].mxu1  ;;  %v7467_v47 = vpop.eup %7466 }
 0x3ae   : > { %v7469_v8 = vpop.eup %7468  ;;  %5076 = vst [vmem:[%s9072_s13 + $0x188] sm:$0xff] %v7467_v47  ;;  %7478 = vpow2.f32 %v4685_v28  ;;  %v4405_v51 = vadd.f32 %v9263_v3, %v4285_v38  ;;  %v4286_v9 = vmax.f32 %v3231_v16, %v4002_v46  ;;  %6765 = vmatmul.mubr.bf16.gmra.mrb[192].mxu0 %v7260_v12  ;;  %7009 = vmatmul.mubr.bf16.gmra.mrb[192].mxu1 %v7261_v19  ;;  %v10278_v28 = vld [vmem:[#allocation77_spill] sm:$0xff]  ;;  %v10279_v38 = vld [vmem:[#allocation78_spill] sm:$0xff] }
 0x3af   : > { %v4853_v10 = vadd.f32 1.0, %v7469_v8  ;;  %6768 = vmatprep.mubr.msk.bf16.mxu0 %vm7728_vm0, %v9971_v59  ;;  %7012 = vmatprep.mubr.msk.bf16.mxu1 %vm7728_vm0, %v9971_v59  ;;  %v10280_v39 = vmax.f32 %v10278_v28, %v10279_v38  ;;  %v9502_v47 = vld [vmem:[%s9779_s2] ss:$0 sm:$0xff] }
 0x3b0   : > { %v7471_v54 = vpop.eup %7470  ;;  %v4518_v18 = vsub.f32 0.0, %v4405_v51  ;;  %v4406_v6 = vadd.f32 %v9263_v3, %v4286_v9 }
 0x3b1   : > { %7480 = vrcp.f32 %v4853_v10  ;;  %v4854_v35 = vadd.f32 1.0, %v7471_v54  ;;  %v2952_v48 = vpop.f32.mrb[88].mxu0  ;;  %v4007_v49 = vpop.f32.mrb[88].mxu1 }
 0x3b2   : > { %v4687_v45 = vmul.f32 1.442695, %v4518_v18  ;;  %v4519_v29 = vsub.f32 0.0, %v4406_v6  ;;  %v3232_v63 = vmax.f32 %v10271_v1, %v2952_v48  ;;  %v6662_v52 = vpop.f32.mrb[89].mxu0  ;;  %v6906_v59 = vpop.f32.mrb[89].mxu1 }
 0x3b3   : > { %v7473_v62 = vpop.eup %7472  ;;  %7482 = vrcp.f32 %v4854_v35  ;;  %v2955_v57 = vpop.f32.mrb[90].mxu0 }
 0x3b4   : > { %v4010_v58 = vpop.f32.mrb[90].mxu1  ;;  %5077 = vst [vmem:[%s9072_s13 + $0x190] sm:$0xff] %v7473_v62  ;;  %7484 = vpow2.f32 %v4687_v45  ;;  %v4689_v55 = vmul.f32 1.442695, %v4519_v29  ;;  %v4287_v27 = vmax.f32 %v3232_v63, %v4007_v49  ;;  %v3233_v40 = vmax.f32 %v10274_v0, %v2955_v57  ;;  %v6663_v36 = vpop.f32.mrb[91].mxu0  ;;  %v10282_v45 = vld [vmem:[#allocation80_spill] sm:$0xff] }
 0x3b5   : > { %v6907_v37 = vpop.f32.mrb[91].mxu1  ;;  %v7475_v11 = vpop.eup %7474 }
 0x3b6   : > { %v7477_v43 = vpop.eup %7476  ;;  %5078 = vst [vmem:[%s9072_s13 + $0x198] sm:$0xff] %v7475_v11  ;;  %7486 = vpow2.f32 %v4689_v55  ;;  %v4407_v44 = vadd.f32 %v9263_v3, %v4287_v27  ;;  %v4288_v24 = vmax.f32 %v3233_v40, %v4010_v58  ;;  %6769 = vmatmul.mubr.bf16.gmra.mrb[196].mxu0 %v7262_v23  ;;  %7013 = vmatmul.mubr.bf16.gmra.mrb[196].mxu1 %v7263_v41  ;;  %v10281_v41 = vld [vmem:[#allocation79_spill] sm:$0xff]  ;;  %v10284_v58 = vld [vmem:[#allocation81_spill] sm:$0xff]  ;;  %v10285_v55 = vld [vmem:[#allocation82_spill] sm:$0xff] }
 0x3b7   : > { %v4855_v25 = vadd.f32 1.0, %v7477_v43  ;;  %v10283_v29 = vmax.f32 %v10281_v41, %v10282_v45  ;;  %v10286_v27 = vmax.f32 %v10284_v58, %v10285_v55 }
 0x3b8   : > { %v7479_v30 = vpop.eup %7478  ;;  %v4520_v17 = vsub.f32 0.0, %v4407_v44  ;;  %v4408_v21 = vadd.f32 %v9263_v3, %v4288_v24 }
 0x3b9   : > { %7488 = vrcp.f32 %v4855_v25  ;;  %v4856_v31 = vadd.f32 1.0, %v7479_v30  ;;  %v2960_v32 = vpop.f32.mrb[92].mxu0  ;;  %v4015_v12 = vpop.f32.mrb[92].mxu1 }
 0x3ba   : > { %v4691_v33 = vmul.f32 1.442695, %v4520_v17  ;;  %v4521_v34 = vsub.f32 0.0, %v4408_v21  ;;  %v3234_v2 = vmax.f32 %v10277_v4, %v2960_v32  ;;  %v6666_v15 = vpop.f32.mrb[93].mxu0  ;;  %v6910_v14 = vpop.f32.mrb[93].mxu1 }
 0x3bb   : > { %v7481_v19 = vpop.eup %7480  ;;  %7490 = vrcp.f32 %v4856_v31  ;;  %v2963_v20 = vpop.f32.mrb[94].mxu0 }
 0x3bc   : > { %v4018_v22 = vpop.f32.mrb[94].mxu1  ;;  %5079 = vst [vmem:[%s9072_s13 + $0x1a0] sm:$0xff] %v7481_v19  ;;  %7492 = vpow2.f32 %v4691_v33  ;;  %v4693_v3 = vmul.f32 1.442695, %v4521_v34  ;;  %v4289_v46 = vmax.f32 %v3234_v2, %v4015_v12  ;;  %v3235_v7 = vmax.f32 %v10280_v39, %v2963_v20  ;;  %v6667_v5 = vpop.f32.mrb[95].mxu0  ;;  %v10287_v12 = vld [vmem:[#allocation83_spill] sm:$0xff] }
 0x3bd   : > { %v6911_v16 = vpop.f32.mrb[95].mxu1  ;;  %v7483_v60 = vpop.eup %7482  ;;  %v10288_v33 = vld [vmem:[#allocation84_spill] sm:$0xff] }
 0x3be   : > { %v7485_v61 = vpop.eup %7484  ;;  %5080 = vst [vmem:[%s9072_s13 + $0x1a8] sm:$0xff] %v7483_v60  ;;  %7494 = vpow2.f32 %v4693_v3  ;;  %v4409_v8 = vadd.f32 %v9502_v47, %v4289_v46  ;;  %v4290_v51 = vmax.f32 %v3235_v7, %v4018_v22  ;;  %v10289_v34 = vmax.f32 %v10287_v12, %v10288_v33  ;;  %v10290_v22 = vld [vmem:[#allocation85_spill] sm:$0xff]  ;;  %v10291_v3 = vld [vmem:[#allocation86_spill] sm:$0xff] }
 0x3bf   : > { %v4857_v9 = vadd.f32 1.0, %v7485_v61  ;;  %v10292_v46 = vmax.f32 %v10290_v22, %v10291_v3 }
 0x3c0   : > { %v7487_v10 = vpop.eup %7486  ;;  %v4522_v54 = vsub.f32 0.0, %v4409_v8  ;;  %v4410_v18 = vadd.f32 %v9502_v47, %v4290_v51 }
 0x3c1   : > { %7496 = vrcp.f32 %v4857_v9  ;;  %v4858_v6 = vadd.f32 1.0, %v7487_v10  ;;  %v2968_v23 = vpop.f32.mrb[96].mxu0  ;;  %v4023_v35 = vpop.f32.mrb[96].mxu1 }
 0x3c2   : > { %v4695_v48 = vmul.f32 1.442695, %v4522_v54  ;;  %v4523_v49 = vsub.f32 0.0, %v4410_v18  ;;  %v3236_v53 = vmax.f32 %v10283_v29, %v2968_v23  ;;  %v6670_v26 = vpop.f32.mrb[97].mxu0  ;;  %v6914_v1 = vpop.f32.mrb[97].mxu1 }
 0x3c3   : > { %v7489_v63 = vpop.eup %7488  ;;  %7498 = vrcp.f32 %v4858_v6  ;;  %v2971_v52 = vpop.f32.mrb[98].mxu0 }
 0x3c4   : > { %v4026_v59 = vpop.f32.mrb[98].mxu1  ;;  %5081 = vst [vmem:[%s9072_s13 + $0x1b0] sm:$0xff] %v7489_v63  ;;  %7500 = vpow2.f32 %v4695_v48  ;;  %v4697_v62 = vmul.f32 1.442695, %v4523_v49  ;;  %v4291_v57 = vmax.f32 %v3236_v53, %v4023_v35  ;;  %v3237_v50 = vmax.f32 %v10286_v27, %v2971_v52  ;;  %v6671_v56 = vpop.f32.mrb[99].mxu0  ;;  %v10293_v35 = vld [vmem:[#allocation87_spill] sm:$0xff] }
 0x3c5   : > { %v6915_v0 = vpop.f32.mrb[99].mxu1  ;;  %v7491_v40 = vpop.eup %7490  ;;  %v10294_v48 = vld [vmem:[#allocation88_spill] sm:$0xff] }
 0x3c6   : > { %v7493_v36 = vpop.eup %7492  ;;  %5082 = vst [vmem:[%s9072_s13 + $0x1b8] sm:$0xff] %v7491_v40  ;;  %7502 = vpow2.f32 %v4697_v62  ;;  %v4411_v37 = vadd.f32 %v9502_v47, %v4291_v57  ;;  %v4292_v11 = vmax.f32 %v3237_v50, %v4026_v59  ;;  %v10295_v49 = vmax.f32 %v10293_v35, %v10294_v48  ;;  %v10296_v59 = vld [vmem:[#allocation89_spill] sm:$0xff]  ;;  %v10297_v62 = vld [vmem:[#allocation90_spill] sm:$0xff] }
 0x3c7   : > { %v4859_v43 = vadd.f32 1.0, %v7493_v36  ;;  %v10298_v57 = vmax.f32 %v10296_v59, %v10297_v62 }
 0x3c8   : > { %v7495_v44 = vpop.eup %7494  ;;  %v4524_v24 = vsub.f32 0.0, %v4411_v37  ;;  %v4412_v25 = vadd.f32 %v9502_v47, %v4292_v11 }
 0x3c9   : > { %7504 = vrcp.f32 %v4859_v43  ;;  %v4860_v30 = vadd.f32 1.0, %v7495_v44  ;;  %v2976_v17 = vpop.f32.mrb[100].mxu0  ;;  %v4031_v21 = vpop.f32.mrb[100].mxu1 }
 0x3ca   : > { %v4699_v31 = vmul.f32 1.442695, %v4524_v24  ;;  %v4525_v32 = vsub.f32 0.0, %v4412_v25  ;;  %v3238_v13 = vmax.f32 %v10289_v34, %v2976_v17  ;;  %v6674_v42 = vpop.f32.mrb[101].mxu0  ;;  %v6918_v4 = vpop.f32.mrb[101].mxu1 }
 0x3cb   : > { %v7497_v2 = vpop.eup %7496  ;;  %7506 = vrcp.f32 %v4860_v30  ;;  %v2979_v15 = vpop.f32.mrb[102].mxu0 }
 0x3cc   : > { %v4034_v14 = vpop.f32.mrb[102].mxu1  ;;  %5083 = vst [vmem:[%s9072_s13 + $0x1c0] sm:$0xff] %v7497_v2  ;;  %7508 = vpow2.f32 %v4699_v31  ;;  %v4701_v19 = vmul.f32 1.442695, %v4525_v32  ;;  %v4293_v20 = vmax.f32 %v3238_v13, %v4031_v21  ;;  %v3239_v28 = vmax.f32 %v10292_v46, %v2979_v15  ;;  %v6675_v38 = vpop.f32.mrb[103].mxu0  ;;  %v10299_v21 = vld [vmem:[#allocation91_spill] sm:$0xff] }
 0x3cd   : > { %v6919_v39 = vpop.f32.mrb[103].mxu1  ;;  %v7499_v7 = vpop.eup %7498  ;;  %v10300_v31 = vld [vmem:[#allocation92_spill] sm:$0xff] }
 0x3ce   : > { %v7501_v5 = vpop.eup %7500  ;;  %5084 = vst [vmem:[%s9072_s13 + $0x1c8] sm:$0xff] %v7499_v7  ;;  %7510 = vpow2.f32 %v4701_v19  ;;  %v4413_v16 = vadd.f32 %v9502_v47, %v4293_v20  ;;  %v4294_v60 = vmax.f32 %v3239_v28, %v4034_v14  ;;  %v10301_v32 = vmax.f32 %v10299_v21, %v10300_v31  ;;  %v10302_v14 = vld [vmem:[#allocation93_spill] sm:$0xff]  ;;  %v10303_v19 = vld [vmem:[#allocation94_spill] sm:$0xff] }
 0x3cf   : > { %v4861_v61 = vadd.f32 1.0, %v7501_v5  ;;  %v10304_v20 = vmax.f32 %v10302_v14, %v10303_v19 }
 0x3d0   : > { %v7503_v8 = vpop.eup %7502  ;;  %v4526_v51 = vsub.f32 0.0, %v4413_v16  ;;  %v4414_v9 = vadd.f32 %v9502_v47, %v4294_v60 }
 0x3d1   : > { %7512 = vrcp.f32 %v4861_v61  ;;  %v4862_v10 = vadd.f32 1.0, %v7503_v8  ;;  %v2984_v54 = vpop.f32.mrb[104].mxu0  ;;  %v4039_v18 = vpop.f32.mrb[104].mxu1 }
 0x3d2   : > { %v4703_v6 = vmul.f32 1.442695, %v4526_v51  ;;  %v4527_v23 = vsub.f32 0.0, %v4414_v9  ;;  %v3240_v41 = vmax.f32 %v10295_v49, %v2984_v54  ;;  %v6678_v45 = vpop.f32.mrb[105].mxu0  ;;  %v6922_v29 = vpop.f32.mrb[105].mxu1 }
 0x3d3   : > { %v7505_v53 = vpop.eup %7504  ;;  %7514 = vrcp.f32 %v4862_v10  ;;  %v2987_v26 = vpop.f32.mrb[106].mxu0 }
 0x3d4   : > { %v4042_v1 = vpop.f32.mrb[106].mxu1  ;;  %5085 = vst [vmem:[%s9072_s13 + $0x1d0] sm:$0xff] %v7505_v53  ;;  %7516 = vpow2.f32 %v4703_v6  ;;  %v4705_v63 = vmul.f32 1.442695, %v4527_v23  ;;  %v4295_v52 = vmax.f32 %v3240_v41, %v4039_v18  ;;  %v3241_v58 = vmax.f32 %v10298_v57, %v2987_v26  ;;  %v6679_v55 = vpop.f32.mrb[107].mxu0  ;;  %v10305_v18 = vld [vmem:[#allocation95_spill] sm:$0xff] }
 0x3d5   : > { %v6923_v27 = vpop.f32.mrb[107].mxu1  ;;  %v7507_v50 = vpop.eup %7506  ;;  %v10306_v6 = vld [vmem:[#allocation96_spill] sm:$0xff] }
 0x3d6   : > { %v7509_v56 = vpop.eup %7508  ;;  %5086 = vst [vmem:[%s9072_s13 + $0x1d8] sm:$0xff] %v7507_v50  ;;  %7518 = vpow2.f32 %v4705_v63  ;;  %v4415_v0 = vadd.f32 %v9502_v47, %v4295_v52  ;;  %v4296_v40 = vmax.f32 %v3241_v58, %v4042_v1  ;;  %v10307_v23 = vmax.f32 %v10305_v18, %v10306_v6  ;;  %v10308_v1 = vld [vmem:[#allocation97_spill] sm:$0xff]  ;;  %v10309_v63 = vld [vmem:[#allocation98_spill] sm:$0xff] }
 0x3d7   : > { %v4863_v36 = vadd.f32 1.0, %v7509_v56  ;;  %v10310_v52 = vmax.f32 %v10308_v1, %v10309_v63 }
 0x3d8   : > { %v7511_v37 = vpop.eup %7510  ;;  %v4528_v11 = vsub.f32 0.0, %v4415_v0  ;;  %v4416_v43 = vadd.f32 %v9502_v47, %v4296_v40 }
 0x3d9   : > { %7520 = vrcp.f32 %v4863_v36  ;;  %v4864_v44 = vadd.f32 1.0, %v7511_v37  ;;  %v2992_v24 = vpop.f32.mrb[108].mxu0  ;;  %v4047_v25 = vpop.f32.mrb[108].mxu1 }
 0x3da   : > { %v4707_v30 = vmul.f32 1.442695, %v4528_v11  ;;  %v4529_v17 = vsub.f32 0.0, %v4416_v43  ;;  %v3242_v12 = vmax.f32 %v10301_v32, %v2992_v24  ;;  %v6682_v33 = vpop.f32.mrb[109].mxu0  ;;  %v6926_v34 = vpop.f32.mrb[109].mxu1 }
 0x3db   : > { %v7513_v13 = vpop.eup %7512  ;;  %7522 = vrcp.f32 %v4864_v44  ;;  %v2995_v42 = vpop.f32.mrb[110].mxu0 }
 0x3dc   : > { %v4050_v4 = vpop.f32.mrb[110].mxu1  ;;  %5087 = vst [vmem:[%s9072_s13 + $0x1e0] sm:$0xff] %v7513_v13  ;;  %7524 = vpow2.f32 %v4707_v30  ;;  %v4709_v2 = vmul.f32 1.442695, %v4529_v17  ;;  %v4297_v15 = vmax.f32 %v3242_v12, %v4047_v25  ;;  %v3243_v22 = vmax.f32 %v10304_v20, %v2995_v42  ;;  %v6683_v3 = vpop.f32.mrb[111].mxu0  ;;  %v10311_v25 = vld [vmem:[#allocation99_spill] sm:$0xff] }
 0x3dd   : > { %v6927_v46 = vpop.f32.mrb[111].mxu1  ;;  %v7515_v28 = vpop.eup %7514  ;;  %v10312_v30 = vld [vmem:[#allocation100_spill] sm:$0xff] }
 0x3de   : > { %v7517_v38 = vpop.eup %7516  ;;  %5088 = vst [vmem:[%s9072_s13 + $0x1e8] sm:$0xff] %v7515_v28  ;;  %7526 = vpow2.f32 %v4709_v2  ;;  %v4417_v39 = vadd.f32 %v9502_v47, %v4297_v15  ;;  %v4298_v7 = vmax.f32 %v3243_v22, %v4050_v4  ;;  %v10313_v17 = vmax.f32 %v10311_v25, %v10312_v30  ;;  %v10314_v4 = vld [vmem:[#allocation101_spill] sm:$0xff]  ;;  %v10315_v2 = vld [vmem:[#allocation102_spill] sm:$0xff] }
 0x3df   : > { %v4865_v5 = vadd.f32 1.0, %v7517_v38  ;;  %v10316_v15 = vmax.f32 %v10314_v4, %v10315_v2 }
 0x3e0   : > { %v7519_v16 = vpop.eup %7518  ;;  %v4530_v60 = vsub.f32 0.0, %v4417_v39  ;;  %v4418_v61 = vadd.f32 %v9502_v47, %v4298_v7 }
 0x3e1   : > { %7528 = vrcp.f32 %v4865_v5  ;;  %v4866_v8 = vadd.f32 1.0, %v7519_v16  ;;  %v3000_v51 = vpop.f32.mrb[112].mxu0  ;;  %v4055_v9 = vpop.f32.mrb[112].mxu1 }
 0x3e2   : > { %v4711_v10 = vmul.f32 1.442695, %v4530_v60  ;;  %v4531_v54 = vsub.f32 0.0, %v4418_v61  ;;  %v3244_v35 = vmax.f32 %v10307_v23, %v3000_v51  ;;  %v6686_v48 = vpop.f32.mrb[113].mxu0  ;;  %v6930_v49 = vpop.f32.mrb[113].mxu1 }
 0x3e3   : > { %v7521_v41 = vpop.eup %7520  ;;  %7530 = vrcp.f32 %v4866_v8  ;;  %v3003_v45 = vpop.f32.mrb[114].mxu0 }
 0x3e4   : > { %v4058_v29 = vpop.f32.mrb[114].mxu1  ;;  %5089 = vst [vmem:[%s9072_s13 + $0x1f0] sm:$0xff] %v7521_v41  ;;  %7532 = vpow2.f32 %v4711_v10  ;;  %v4713_v53 = vmul.f32 1.442695, %v4531_v54  ;;  %v4299_v26 = vmax.f32 %v3244_v35, %v4055_v9  ;;  %v3245_v59 = vmax.f32 %v10310_v52, %v3003_v45  ;;  %v6687_v62 = vpop.f32.mrb[115].mxu0  ;;  %v10317_v9 = vld [vmem:[#allocation103_spill] sm:$0xff] }
 0x3e5   : > { %v6931_v57 = vpop.f32.mrb[115].mxu1  ;;  %v7523_v58 = vpop.eup %7522  ;;  %v10318_v10 = vld [vmem:[#allocation104_spill] sm:$0xff] }
 0x3e6   : > { %v7525_v55 = vpop.eup %7524  ;;  %5090 = vst [vmem:[%s9072_s13 + $0x1f8] sm:$0xff] %v7523_v58  ;;  %7534 = vpow2.f32 %v4713_v53  ;;  %v4419_v27 = vadd.f32 %v9502_v47, %v4299_v26  ;;  %v4300_v50 = vmax.f32 %v3245_v59, %v4058_v29  ;;  %v10319_v54 = vmax.f32 %v10317_v9, %v10318_v10  ;;  %v10320_v29 = vld [vmem:[#allocation105_spill] sm:$0xff]  ;;  %v10321_v53 = vld [vmem:[#allocation106_spill] sm:$0xff] }
 0x3e7   : > { %v4867_v56 = vadd.f32 1.0, %v7525_v55  ;;  %v10322_v26 = vmax.f32 %v10320_v29, %v10321_v53 }
 0x3e8   : > { %v7527_v0 = vpop.eup %7526  ;;  %v4532_v40 = vsub.f32 0.0, %v4419_v27  ;;  %v4420_v36 = vadd.f32 %v9502_v47, %v4300_v50 }
 0x3e9   : > { %7536 = vrcp.f32 %v4867_v56  ;;  %v4868_v37 = vadd.f32 1.0, %v7527_v0  ;;  %v3008_v11 = vpop.f32.mrb[116].mxu0  ;;  %v4063_v43 = vpop.f32.mrb[116].mxu1 }
 0x3ea   : > { %v4715_v44 = vmul.f32 1.442695, %v4532_v40  ;;  %v4533_v24 = vsub.f32 0.0, %v4420_v36  ;;  %v3246_v21 = vmax.f32 %v10313_v17, %v3008_v11  ;;  %v6690_v31 = vpop.f32.mrb[117].mxu0  ;;  %v6934_v32 = vpop.f32.mrb[117].mxu1 }
 0x3eb   : > { %v7529_v12 = vpop.eup %7528  ;;  %7538 = vrcp.f32 %v4868_v37  ;;  %v3011_v33 = vpop.f32.mrb[118].mxu0 }
 0x3ec   : > { %v4066_v34 = vpop.f32.mrb[118].mxu1  ;;  %5091 = vst [vmem:[%s9072_s13 + $0x200] sm:$0xff] %v7529_v12  ;;  %7540 = vpow2.f32 %v4715_v44  ;;  %v4717_v13 = vmul.f32 1.442695, %v4533_v24  ;;  %v4301_v42 = vmax.f32 %v3246_v21, %v4063_v43  ;;  %v3247_v14 = vmax.f32 %v10316_v15, %v3011_v33  ;;  %v6691_v19 = vpop.f32.mrb[119].mxu0  ;;  %v10323_v43 = vld [vmem:[#allocation107_spill] sm:$0xff] }
 0x3ed   : > { %v6935_v20 = vpop.f32.mrb[119].mxu1  ;;  %v7531_v22 = vpop.eup %7530  ;;  %v10324_v44 = vld [vmem:[#allocation108_spill] sm:$0xff] }
 0x3ee   : > { %v7533_v3 = vpop.eup %7532  ;;  %5092 = vst [vmem:[%s9072_s13 + $0x208] sm:$0xff] %v7531_v22  ;;  %7542 = vpow2.f32 %v4717_v13  ;;  %v4421_v46 = vadd.f32 %v9502_v47, %v4301_v42  ;;  %v4302_v28 = vmax.f32 %v3247_v14, %v4066_v34  ;;  %v10325_v24 = vmax.f32 %v10323_v43, %v10324_v44  ;;  %v10326_v34 = vld [vmem:[#allocation109_spill] sm:$0xff]  ;;  %v10327_v13 = vld [vmem:[#allocation110_spill] sm:$0xff] }
 0x3ef   : > { %v4869_v38 = vadd.f32 1.0, %v7533_v3  ;;  %v10328_v42 = vmax.f32 %v10326_v34, %v10327_v13 }
 0x3f0   : > { %v7535_v39 = vpop.eup %7534  ;;  %v4534_v7 = vsub.f32 0.0, %v4421_v46  ;;  %v4422_v5 = vadd.f32 %v9502_v47, %v4302_v28 }
 0x3f1   : > { %7544 = vrcp.f32 %v4869_v38  ;;  %v4870_v16 = vadd.f32 1.0, %v7535_v39  ;;  %v3016_v60 = vpop.f32.mrb[120].mxu0  ;;  %v4071_v61 = vpop.f32.mrb[120].mxu1 }
 0x3f2   : > { %v4719_v8 = vmul.f32 1.442695, %v4534_v7  ;;  %v4535_v51 = vsub.f32 0.0, %v4422_v5  ;;  %v3248_v18 = vmax.f32 %v10319_v54, %v3016_v60  ;;  %v6694_v6 = vpop.f32.mrb[121].mxu0  ;;  %v6938_v23 = vpop.f32.mrb[121].mxu1 }
 0x3f3   : > { %v7537_v35 = vpop.eup %7536  ;;  %7546 = vrcp.f32 %v4870_v16  ;;  %v3019_v48 = vpop.f32.mrb[122].mxu0 }
 0x3f4   : > { %v4074_v49 = vpop.f32.mrb[122].mxu1  ;;  %5093 = vst [vmem:[%s9072_s13 + $0x210] sm:$0xff] %v7537_v35  ;;  %7548 = vpow2.f32 %v4719_v8  ;;  %v4721_v41 = vmul.f32 1.442695, %v4535_v51  ;;  %v4303_v45 = vmax.f32 %v3248_v18, %v4071_v61  ;;  %v3249_v1 = vmax.f32 %v10322_v26, %v3019_v48  ;;  %v6695_v63 = vpop.f32.mrb[123].mxu0  ;;  %v10329_v61 = vld [vmem:[#allocation111_spill] sm:$0xff] }
 0x3f5   : > { %v6939_v52 = vpop.f32.mrb[123].mxu1  ;;  %v7539_v59 = vpop.eup %7538  ;;  %v10330_v8 = vld [vmem:[#allocation112_spill] sm:$0xff] }
 0x3f6   : > { %v7541_v62 = vpop.eup %7540  ;;  %5094 = vst [vmem:[%s9072_s13 + $0x218] sm:$0xff] %v7539_v59  ;;  %7550 = vpow2.f32 %v4721_v41  ;;  %v4423_v57 = vadd.f32 %v9502_v47, %v4303_v45  ;;  %v4304_v58 = vmax.f32 %v3249_v1, %v4074_v49  ;;  %v10331_v51 = vmax.f32 %v10329_v61, %v10330_v8  ;;  %v10332_v49 = vld [vmem:[#allocation113_spill] sm:$0xff]  ;;  %v10333_v41 = vld [vmem:[#allocation114_spill] sm:$0xff] }
 0x3f7   : > { %v4871_v55 = vadd.f32 1.0, %v7541_v62  ;;  %v10334_v45 = vmax.f32 %v10332_v49, %v10333_v41 }
 0x3f8   : > { %v7543_v27 = vpop.eup %7542  ;;  %v4536_v50 = vsub.f32 0.0, %v4423_v57  ;;  %v4424_v56 = vadd.f32 %v9502_v47, %v4304_v58 }
 0x3f9   : > { %7552 = vrcp.f32 %v4871_v55  ;;  %v4872_v0 = vadd.f32 1.0, %v7543_v27  ;;  %v3024_v40 = vpop.f32.mrb[124].mxu0  ;;  %v4079_v36 = vpop.f32.mrb[124].mxu1 }
 0x3fa   : > { %v4723_v37 = vmul.f32 1.442695, %v4536_v50  ;;  %v4537_v11 = vsub.f32 0.0, %v4424_v56  ;;  %v3250_v25 = vmax.f32 %v10325_v24, %v3024_v40  ;;  %v6698_v30 = vpop.f32.mrb[125].mxu0  ;;  %v6942_v17 = vpop.f32.mrb[125].mxu1 }
 0x3fb   : > { %v7545_v21 = vpop.eup %7544  ;;  %7554 = vrcp.f32 %v4872_v0  ;;  %v3027_v31 = vpop.f32.mrb[126].mxu0 }
 0x3fc   : > { %v4082_v32 = vpop.f32.mrb[126].mxu1  ;;  %5095 = vst [vmem:[%s9072_s13 + $0x220] sm:$0xff] %v7545_v21  ;;  %7556 = vpow2.f32 %v4723_v37  ;;  %v4725_v12 = vmul.f32 1.442695, %v4537_v11  ;;  %v4305_v33 = vmax.f32 %v3250_v25, %v4079_v36  ;;  %v3251_v4 = vmax.f32 %v10328_v42, %v3027_v31  ;;  %v6699_v2 = vpop.f32.mrb[127].mxu0  ;;  %v10335_v36 = vld [vmem:[#allocation115_spill] sm:$0xff] }
 0x3fd   : > { %v6943_v15 = vpop.f32.mrb[127].mxu1  ;;  %v7547_v14 = vpop.eup %7546  ;;  %v10336_v37 = vld [vmem:[#allocation116_spill] sm:$0xff] }
 0x3fe   : > { %v7549_v19 = vpop.eup %7548  ;;  %5096 = vst [vmem:[%s9072_s13 + $0x228] sm:$0xff] %v7547_v14  ;;  %7558 = vpow2.f32 %v4725_v12  ;;  %v4425_v20 = vadd.f32 %v9502_v47, %v4305_v33  ;;  %v4306_v22 = vmax.f32 %v3251_v4, %v4082_v32  ;;  %v10337_v11 = vmax.f32 %v10335_v36, %v10336_v37  ;;  %v10338_v32 = vld [vmem:[#allocation117_spill] sm:$0xff]  ;;  %v10339_v12 = vld [vmem:[#allocation118_spill] sm:$0xff] }
 0x3ff   : > { %v4873_v3 = vadd.f32 1.0, %v7549_v19  ;;  %v10340_v33 = vmax.f32 %v10338_v32, %v10339_v12 }
 0x400   : > { %v7551_v46 = vpop.eup %7550  ;;  %v4538_v28 = vsub.f32 0.0, %v4425_v20  ;;  %v4426_v38 = vadd.f32 %v9502_v47, %v4306_v22 }
 0x401   : > { %7560 = vrcp.f32 %v4873_v3  ;;  %v4874_v39 = vadd.f32 1.0, %v7551_v46  ;;  %v3032_v7 = vpop.f32.mrb[128].mxu0  ;;  %v4087_v5 = vpop.f32.mrb[128].mxu1 }
 0x402   : > { %v4727_v16 = vmul.f32 1.442695, %v4538_v28  ;;  %v4539_v60 = vsub.f32 0.0, %v4426_v38  ;;  %v3252_v9 = vmax.f32 %v10331_v51, %v3032_v7  ;;  %v6702_v10 = vpop.f32.mrb[129].mxu0  ;;  %v6946_v54 = vpop.f32.mrb[129].mxu1 }
 0x403   : > { %v7553_v18 = vpop.eup %7552  ;;  %7562 = vrcp.f32 %v4874_v39  ;;  %v3035_v6 = vpop.f32.mrb[130].mxu0 }
 0x404   : > { %v4090_v23 = vpop.f32.mrb[130].mxu1  ;;  %5097 = vst [vmem:[%s9072_s13 + $0x230] sm:$0xff] %v7553_v18  ;;  %7564 = vpow2.f32 %v4727_v16  ;;  %v4729_v35 = vmul.f32 1.442695, %v4539_v60  ;;  %v4307_v48 = vmax.f32 %v3252_v9, %v4087_v5  ;;  %v3253_v29 = vmax.f32 %v10334_v45, %v3035_v6  ;;  %v6703_v53 = vpop.f32.mrb[131].mxu0  ;;  %v10341_v5 = vld [vmem:[#allocation119_spill] sm:$0xff] }
 0x405   : > { %v6947_v26 = vpop.f32.mrb[131].mxu1  ;;  %v7555_v1 = vpop.eup %7554  ;;  %v10342_v16 = vld [vmem:[#allocation120_spill] sm:$0xff] }
 0x406   : > { %v7557_v63 = vpop.eup %7556  ;;  %5098 = vst [vmem:[%s9072_s13 + $0x238] sm:$0xff] %v7555_v1  ;;  %7566 = vpow2.f32 %v4729_v35  ;;  %v4427_v52 = vadd.f32 %v9502_v47, %v4307_v48  ;;  %v4308_v59 = vmax.f32 %v3253_v29, %v4090_v23  ;;  %v10343_v60 = vmax.f32 %v10341_v5, %v10342_v16  ;;  %v10344_v23 = vld [vmem:[#allocation121_spill] sm:$0xff]  ;;  %v10345_v35 = vld [vmem:[#allocation122_spill] sm:$0xff] }
 0x407   : > { %v4875_v62 = vadd.f32 1.0, %v7557_v63  ;;  %v10346_v48 = vmax.f32 %v10344_v23, %v10345_v35 }
 0x408   : > { %v7559_v57 = vpop.eup %7558  ;;  %v4540_v58 = vsub.f32 0.0, %v4427_v52  ;;  %v4428_v55 = vadd.f32 %v9502_v47, %v4308_v59 }
 0x409   : > { %7568 = vrcp.f32 %v4875_v62  ;;  %v4876_v27 = vadd.f32 1.0, %v7559_v57  ;;  %v3040_v50 = vpop.f32.mrb[132].mxu0  ;;  %v4095_v56 = vpop.f32.mrb[132].mxu1 }
 0x40a   : > { %v4731_v0 = vmul.f32 1.442695, %v4540_v58  ;;  %v4541_v40 = vsub.f32 0.0, %v4428_v55  ;;  %v3254_v43 = vmax.f32 %v10337_v11, %v3040_v50  ;;  %v6706_v44 = vpop.f32.mrb[133].mxu0  ;;  %v6950_v24 = vpop.f32.mrb[133].mxu1 }
 0x40b   : > { %v7561_v25 = vpop.eup %7560  ;;  %7570 = vrcp.f32 %v4876_v27  ;;  %v3043_v30 = vpop.f32.mrb[134].mxu0 }
 0x40c   : > { %v4098_v17 = vpop.f32.mrb[134].mxu1  ;;  %5099 = vst [vmem:[%s9072_s13 + $0x240] sm:$0xff] %v7561_v25  ;;  %7572 = vpow2.f32 %v4731_v0  ;;  %v4733_v21 = vmul.f32 1.442695, %v4541_v40  ;;  %v4309_v31 = vmax.f32 %v3254_v43, %v4095_v56  ;;  %v3255_v34 = vmax.f32 %v10340_v33, %v3043_v30  ;;  %v6707_v13 = vpop.f32.mrb[135].mxu0  ;;  %v10347_v56 = vld [vmem:[#allocation123_spill] sm:$0xff] }
 0x40d   : > { %v6951_v42 = vpop.f32.mrb[135].mxu1  ;;  %v7563_v4 = vpop.eup %7562  ;;  %v10348_v0 = vld [vmem:[#allocation124_spill] sm:$0xff] }
 0x40e   : > { %v7565_v2 = vpop.eup %7564  ;;  %5100 = vst [vmem:[%s9072_s13 + $0x248] sm:$0xff] %v7563_v4  ;;  %7574 = vpow2.f32 %v4733_v21  ;;  %v4429_v15 = vadd.f32 %v9502_v47, %v4309_v31  ;;  %v4310_v14 = vmax.f32 %v3255_v34, %v4098_v17  ;;  %v10349_v40 = vmax.f32 %v10347_v56, %v10348_v0  ;;  %v10350_v17 = vld [vmem:[#allocation125_spill] sm:$0xff]  ;;  %v10351_v21 = vld [vmem:[#allocation126_spill] sm:$0xff] }
 0x40f   : > { %v4877_v19 = vadd.f32 1.0, %v7565_v2  ;;  %v10352_v31 = vmax.f32 %v10350_v17, %v10351_v21 }
 0x410   : > { %v7567_v20 = vpop.eup %7566  ;;  %v4542_v22 = vsub.f32 0.0, %v4429_v15  ;;  %v4430_v3 = vadd.f32 %v9502_v47, %v4310_v14 }
 0x411   : > { %7576 = vrcp.f32 %v4877_v19  ;;  %v4878_v46 = vadd.f32 1.0, %v7567_v20  ;;  %v3048_v28 = vpop.f32.mrb[136].mxu0  ;;  %v4103_v38 = vpop.f32.mrb[136].mxu1 }
 0x412   : > { %v4735_v39 = vmul.f32 1.442695, %v4542_v22  ;;  %v4543_v7 = vsub.f32 0.0, %v4430_v3  ;;  %v3256_v61 = vmax.f32 %v10343_v60, %v3048_v28  ;;  %v6710_v8 = vpop.f32.mrb[137].mxu0  ;;  %v6954_v51 = vpop.f32.mrb[137].mxu1 }
 0x413   : > { %v7569_v9 = vpop.eup %7568  ;;  %7578 = vrcp.f32 %v4878_v46  ;;  %v3051_v10 = vpop.f32.mrb[138].mxu0 }
 0x414   : > { %v4106_v54 = vpop.f32.mrb[138].mxu1  ;;  %5101 = vst [vmem:[%s9072_s13 + $0x250] sm:$0xff] %v7569_v9  ;;  %7580 = vpow2.f32 %v4735_v39  ;;  %v4737_v18 = vmul.f32 1.442695, %v4543_v7  ;;  %v4311_v6 = vmax.f32 %v3256_v61, %v4103_v38  ;;  %v3257_v49 = vmax.f32 %v10346_v48, %v3051_v10  ;;  %v6711_v41 = vpop.f32.mrb[139].mxu0  ;;  %v10353_v38 = vld [vmem:[#allocation127_spill] sm:$0xff] }
 0x415   : > { %v6955_v45 = vpop.f32.mrb[139].mxu1  ;;  %v7571_v29 = vpop.eup %7570  ;;  %v10354_v39 = vld [vmem:[#allocation128_spill] sm:$0xff] }
 0x416   : > { %v7573_v53 = vpop.eup %7572  ;;  %5102 = vst [vmem:[%s9072_s13 + $0x258] sm:$0xff] %v7571_v29  ;;  %7582 = vpow2.f32 %v4737_v18  ;;  %v4431_v26 = vadd.f32 %v9502_v47, %v4311_v6  ;;  %v4312_v1 = vmax.f32 %v3257_v49, %v4106_v54  ;;  %v10355_v7 = vmax.f32 %v10353_v38, %v10354_v39  ;;  %v10356_v54 = vld [vmem:[#allocation129_spill] sm:$0xff]  ;;  %v10357_v18 = vld [vmem:[#allocation130_spill] sm:$0xff] }
 0x417   : > { %v4879_v63 = vadd.f32 1.0, %v7573_v53  ;;  %v10358_v6 = vmax.f32 %v10356_v54, %v10357_v18 }
 0x418   : > { %v7575_v52 = vpop.eup %7574  ;;  %v4544_v59 = vsub.f32 0.0, %v4431_v26  ;;  %v4432_v62 = vadd.f32 %v9502_v47, %v4312_v1 }
 0x419   : > { %7584 = vrcp.f32 %v4879_v63  ;;  %v4880_v57 = vadd.f32 1.0, %v7575_v52  ;;  %v3056_v58 = vpop.f32.mrb[140].mxu0  ;;  %v4111_v55 = vpop.f32.mrb[140].mxu1 }
 0x41a   : > { %v4739_v27 = vmul.f32 1.442695, %v4544_v59  ;;  %v4545_v50 = vsub.f32 0.0, %v4432_v62  ;;  %v3258_v36 = vmax.f32 %v10349_v40, %v3056_v58  ;;  %v6714_v37 = vpop.f32.mrb[141].mxu0  ;;  %v6958_v11 = vpop.f32.mrb[141].mxu1 }
 0x41b   : > { %v7577_v43 = vpop.eup %7576  ;;  %7586 = vrcp.f32 %v4880_v57  ;;  %v3059_v44 = vpop.f32.mrb[142].mxu0 }
 0x41c   : > { %v4114_v24 = vpop.f32.mrb[142].mxu1  ;;  %5103 = vst [vmem:[%s9072_s13 + $0x260] sm:$0xff] %v7577_v43  ;;  %7588 = vpow2.f32 %v4739_v27  ;;  %v4741_v25 = vmul.f32 1.442695, %v4545_v50  ;;  %v4313_v30 = vmax.f32 %v3258_v36, %v4111_v55  ;;  %v3259_v32 = vmax.f32 %v10352_v31, %v3059_v44  ;;  %v6715_v12 = vpop.f32.mrb[143].mxu0  ;;  %v10359_v55 = vld [vmem:[#allocation131_spill] sm:$0xff] }
 0x41d   : > { %v6959_v33 = vpop.f32.mrb[143].mxu1  ;;  %v7579_v34 = vpop.eup %7578  ;;  %v10360_v27 = vld [vmem:[#allocation132_spill] sm:$0xff] }
 0x41e   : > { %v7581_v13 = vpop.eup %7580  ;;  %5104 = vst [vmem:[%s9072_s13 + $0x268] sm:$0xff] %v7579_v34  ;;  %7590 = vpow2.f32 %v4741_v25  ;;  %v4433_v42 = vadd.f32 %v9502_v47, %v4313_v30  ;;  %v4314_v4 = vmax.f32 %v3259_v32, %v4114_v24  ;;  %v10361_v50 = vmax.f32 %v10359_v55, %v10360_v27  ;;  %v10362_v24 = vld [vmem:[#allocation133_spill] sm:$0xff]  ;;  %v10363_v25 = vld [vmem:[#allocation134_spill] sm:$0xff] }
 0x41f   : > { %v4881_v2 = vadd.f32 1.0, %v7581_v13  ;;  %v10364_v30 = vmax.f32 %v10362_v24, %v10363_v25 }
 0x420   : > { %v7583_v15 = vpop.eup %7582  ;;  %v4546_v14 = vsub.f32 0.0, %v4433_v42  ;;  %v4434_v19 = vadd.f32 %v9502_v47, %v4314_v4 }
 0x421   : > { %7592 = vrcp.f32 %v4881_v2  ;;  %v4882_v20 = vadd.f32 1.0, %v7583_v15  ;;  %v3064_v22 = vpop.f32.mrb[144].mxu0  ;;  %v4119_v3 = vpop.f32.mrb[144].mxu1 }
 0x422   : > { %v4743_v46 = vmul.f32 1.442695, %v4546_v14  ;;  %v4547_v28 = vsub.f32 0.0, %v4434_v19  ;;  %v3260_v5 = vmax.f32 %v10355_v7, %v3064_v22  ;;  %v6718_v16 = vpop.f32.mrb[145].mxu0  ;;  %v6962_v60 = vpop.f32.mrb[145].mxu1 }
 0x423   : > { %v7585_v61 = vpop.eup %7584  ;;  %7594 = vrcp.f32 %v4882_v20  ;;  %v3067_v8 = vpop.f32.mrb[146].mxu0 }
 0x424   : > { %v4122_v51 = vpop.f32.mrb[146].mxu1  ;;  %5105 = vst [vmem:[%s9072_s13 + $0x270] sm:$0xff] %v7585_v61  ;;  %7596 = vpow2.f32 %v4743_v46  ;;  %v4745_v9 = vmul.f32 1.442695, %v4547_v28  ;;  %v4315_v10 = vmax.f32 %v3260_v5, %v4119_v3  ;;  %v3261_v23 = vmax.f32 %v10358_v6, %v3067_v8  ;;  %v6719_v35 = vpop.f32.mrb[147].mxu0  ;;  %v10365_v3 = vld [vmem:[#allocation135_spill] sm:$0xff] }
 0x425   : > { %v6963_v48 = vpop.f32.mrb[147].mxu1  ;;  %v7587_v49 = vpop.eup %7586  ;;  %v10366_v46 = vld [vmem:[#allocation136_spill] sm:$0xff] }
 0x426   : > { %v7589_v41 = vpop.eup %7588  ;;  %5106 = vst [vmem:[%s9072_s13 + $0x278] sm:$0xff] %v7587_v49  ;;  %7598 = vpow2.f32 %v4745_v9  ;;  %v4435_v45 = vadd.f32 %v9502_v47, %v4315_v10  ;;  %v4316_v29 = vmax.f32 %v3261_v23, %v4122_v51  ;;  %v10367_v28 = vmax.f32 %v10365_v3, %v10366_v46  ;;  %v10368_v51 = vld [vmem:[#allocation137_spill] sm:$0xff]  ;;  %v10369_v9 = vld [vmem:[#allocation138_spill] sm:$0xff] }
 0x427   : > { %v4883_v53 = vadd.f32 1.0, %v7589_v41  ;;  %v10370_v10 = vmax.f32 %v10368_v51, %v10369_v9 }
 0x428   : > { %v7591_v26 = vpop.eup %7590  ;;  %v4548_v1 = vsub.f32 0.0, %v4435_v45  ;;  %v4436_v63 = vadd.f32 %v9502_v47, %v4316_v29 }
 0x429   : > { %7600 = vrcp.f32 %v4883_v53  ;;  %v4884_v52 = vadd.f32 1.0, %v7591_v26  ;;  %v3072_v59 = vpop.f32.mrb[148].mxu0  ;;  %v4127_v62 = vpop.f32.mrb[148].mxu1 }
 0x42a   : > { %v4747_v57 = vmul.f32 1.442695, %v4548_v1  ;;  %v4549_v58 = vsub.f32 0.0, %v4436_v63  ;;  %v3262_v56 = vmax.f32 %v10361_v50, %v3072_v59  ;;  %v6722_v0 = vpop.f32.mrb[149].mxu0  ;;  %v6966_v40 = vpop.f32.mrb[149].mxu1 }
 0x42b   : > { %v7593_v36 = vpop.eup %7592  ;;  %7602 = vrcp.f32 %v4884_v52  ;;  %v3075_v37 = vpop.f32.mrb[150].mxu0 }
 0x42c   : > { %v4130_v11 = vpop.f32.mrb[150].mxu1  ;;  %5107 = vst [vmem:[%s9072_s13 + $0x280] sm:$0xff] %v7593_v36  ;;  %7604 = vpow2.f32 %v4747_v57  ;;  %v4749_v43 = vmul.f32 1.442695, %v4549_v58  ;;  %v4317_v44 = vmax.f32 %v3262_v56, %v4127_v62  ;;  %v3263_v17 = vmax.f32 %v10364_v30, %v3075_v37  ;;  %v6723_v21 = vpop.f32.mrb[151].mxu0  ;;  %v10371_v62 = vld [vmem:[#allocation139_spill] sm:$0xff] }
 0x42d   : > { %v6967_v31 = vpop.f32.mrb[151].mxu1  ;;  %v7595_v32 = vpop.eup %7594  ;;  %v10372_v57 = vld [vmem:[#allocation140_spill] sm:$0xff] }
 0x42e   : > { %v7597_v12 = vpop.eup %7596  ;;  %5108 = vst [vmem:[%s9072_s13 + $0x288] sm:$0xff] %v7595_v32  ;;  %7606 = vpow2.f32 %v4749_v43  ;;  %v4437_v33 = vadd.f32 %v9502_v47, %v4317_v44  ;;  %v4318_v34 = vmax.f32 %v3263_v17, %v4130_v11  ;;  %v10373_v58 = vmax.f32 %v10371_v62, %v10372_v57  ;;  %v10374_v11 = vld [vmem:[#allocation141_spill] sm:$0xff]  ;;  %v10375_v43 = vld [vmem:[#allocation142_spill] sm:$0xff] }
 0x42f   : > { %v4885_v13 = vadd.f32 1.0, %v7597_v12  ;;  %v10376_v44 = vmax.f32 %v10374_v11, %v10375_v43 }
 0x430   : > { %v7599_v42 = vpop.eup %7598  ;;  %v4550_v4 = vsub.f32 0.0, %v4437_v33  ;;  %v4438_v2 = vadd.f32 %v9502_v47, %v4318_v34 }
 0x431   : > { %7608 = vrcp.f32 %v4885_v13  ;;  %v4886_v15 = vadd.f32 1.0, %v7599_v42  ;;  %v3080_v14 = vpop.f32.mrb[152].mxu0  ;;  %v4135_v19 = vpop.f32.mrb[152].mxu1 }
 0x432   : > { %v4751_v20 = vmul.f32 1.442695, %v4550_v4  ;;  %v4551_v22 = vsub.f32 0.0, %v4438_v2  ;;  %v3264_v38 = vmax.f32 %v10367_v28, %v3080_v14  ;;  %v6726_v39 = vpop.f32.mrb[153].mxu0  ;;  %v6970_v7 = vpop.f32.mrb[153].mxu1 }
 0x433   : > { %v7601_v5 = vpop.eup %7600  ;;  %7610 = vrcp.f32 %v4886_v15  ;;  %v3083_v16 = vpop.f32.mrb[154].mxu0 }
 0x434   : > { %v4138_v60 = vpop.f32.mrb[154].mxu1  ;;  %5109 = vst [vmem:[%s9072_s13 + $0x290] sm:$0xff] %v7601_v5  ;;  %7612 = vpow2.f32 %v4751_v20  ;;  %v4753_v61 = vmul.f32 1.442695, %v4551_v22  ;;  %v4319_v8 = vmax.f32 %v3264_v38, %v4135_v19  ;;  %v3265_v54 = vmax.f32 %v10370_v10, %v3083_v16  ;;  %v6727_v18 = vpop.f32.mrb[155].mxu0  ;;  %v10377_v19 = vld [vmem:[#allocation143_spill] sm:$0xff] }
 0x435   : > { %v6971_v6 = vpop.f32.mrb[155].mxu1  ;;  %v7603_v23 = vpop.eup %7602  ;;  %v10378_v20 = vld [vmem:[#allocation144_spill] sm:$0xff] }
 0x436   : > { %v7605_v35 = vpop.eup %7604  ;;  %5110 = vst [vmem:[%s9072_s13 + $0x298] sm:$0xff] %v7603_v23  ;;  %7614 = vpow2.f32 %v4753_v61  ;;  %v4439_v48 = vadd.f32 %v9502_v47, %v4319_v8  ;;  %v4320_v49 = vmax.f32 %v3265_v54, %v4138_v60  ;;  %v10379_v22 = vmax.f32 %v10377_v19, %v10378_v20  ;;  %v10380_v60 = vld [vmem:[#allocation145_spill] sm:$0xff]  ;;  %v10381_v61 = vld [vmem:[#allocation146_spill] sm:$0xff] }
 0x437   : > { %v4887_v41 = vadd.f32 1.0, %v7605_v35  ;;  %v10382_v8 = vmax.f32 %v10380_v60, %v10381_v61 }
 0x438   : > { %v7607_v45 = vpop.eup %7606  ;;  %v4552_v29 = vsub.f32 0.0, %v4439_v48  ;;  %v4440_v53 = vadd.f32 %v9502_v47, %v4320_v49 }
 0x439   : > { %7616 = vrcp.f32 %v4887_v41  ;;  %v4888_v26 = vadd.f32 1.0, %v7607_v45  ;;  %v3088_v1 = vpop.f32.mrb[156].mxu0  ;;  %v4143_v63 = vpop.f32.mrb[156].mxu1  ;;  %v9678_v41 = vld [vmem:[%s9779_s2] ss:$0 sm:$0xff] }
 0x43a   : > { %v4755_v52 = vmul.f32 1.442695, %v4552_v29  ;;  %v4553_v59 = vsub.f32 0.0, %v4440_v53  ;;  %v3266_v55 = vmax.f32 %v10373_v58, %v3088_v1  ;;  %v6730_v27 = vpop.f32.mrb[157].mxu0  ;;  %v6974_v50 = vpop.f32.mrb[157].mxu1 }
 0x43b   : > { %v7609_v56 = vpop.eup %7608  ;;  %7618 = vrcp.f32 %v4888_v26  ;;  %v3091_v0 = vpop.f32.mrb[158].mxu0 }
 0x43c   : > { %v4146_v40 = vpop.f32.mrb[158].mxu1  ;;  %5111 = vst [vmem:[%s9072_s13 + $0x2a0] sm:$0xff] %v7609_v56  ;;  %7620 = vpow2.f32 %v4755_v52  ;;  %v4757_v36 = vmul.f32 1.442695, %v4553_v59  ;;  %v4321_v37 = vmax.f32 %v3266_v55, %v4143_v63  ;;  %v3267_v24 = vmax.f32 %v10376_v44, %v3091_v0  ;;  %v6731_v25 = vpop.f32.mrb[159].mxu0  ;;  %v10383_v52 = vld [vmem:[#allocation147_spill] sm:$0xff] }
 0x43d   : > { %v6975_v30 = vpop.f32.mrb[159].mxu1  ;;  %v7611_v17 = vpop.eup %7610 }
 0x43e   : > { %v7613_v21 = vpop.eup %7612  ;;  %5112 = vst [vmem:[%s9072_s13 + $0x2a8] sm:$0xff] %v7611_v17  ;;  %7622 = vpow2.f32 %v4757_v36  ;;  %v4441_v31 = vadd.f32 %v9502_v47, %v4321_v37  ;;  %v4322_v32 = vmax.f32 %v3267_v24, %v4146_v40  ;;  %v10386_v40 = vld [vmem:[#allocation149_spill] sm:$0xff]  ;;  %v10387_v36 = vld [vmem:[#allocation150_spill] sm:$0xff] }
 0x43f   : > { %v4889_v12 = vadd.f32 1.0, %v7613_v21  ;;  %v10388_v37 = vmax.f32 %v10386_v40, %v10387_v36 }
 0x440   : > { %v7615_v33 = vpop.eup %7614  ;;  %v4554_v34 = vsub.f32 0.0, %v4441_v31  ;;  %v4442_v13 = vadd.f32 %v9502_v47, %v4322_v32 }
 0x441   : > { %7624 = vrcp.f32 %v4889_v12  ;;  %v4890_v42 = vadd.f32 1.0, %v7615_v33  ;;  %v3096_v4 = vpop.f32.mrb[160].mxu0  ;;  %v4151_v2 = vpop.f32.mrb[160].mxu1 }
 0x442   : > { %v4759_v15 = vmul.f32 1.442695, %v4554_v34  ;;  %v4555_v14 = vsub.f32 0.0, %v4442_v13  ;;  %v3268_v3 = vmax.f32 %v10379_v22, %v3096_v4  ;;  %v6734_v46 = vpop.f32.mrb[161].mxu0  ;;  %v6978_v28 = vpop.f32.mrb[161].mxu1 }
 0x443   : > { %v7617_v38 = vpop.eup %7616  ;;  %7626 = vrcp.f32 %v4890_v42  ;;  %v3099_v39 = vpop.f32.mrb[162].mxu0 }
 0x444   : > { %v4154_v7 = vpop.f32.mrb[162].mxu1  ;;  %5113 = vst [vmem:[%s9072_s13 + $0x2b0] sm:$0xff] %v7617_v38  ;;  %7628 = vpow2.f32 %v4759_v15  ;;  %v4761_v5 = vmul.f32 1.442695, %v4555_v14  ;;  %v4323_v16 = vmax.f32 %v3268_v3, %v4151_v2  ;;  %v3269_v51 = vmax.f32 %v10382_v8, %v3099_v39  ;;  %v6735_v9 = vpop.f32.mrb[163].mxu0  ;;  %v10389_v2 = vld [vmem:[#allocation151_spill] sm:$0xff] }
 0x445   : > { %v6979_v10 = vpop.f32.mrb[163].mxu1  ;;  %v7619_v54 = vpop.eup %7618  ;;  %v10390_v15 = vld [vmem:[#allocation152_spill] sm:$0xff] }
 0x446   : > { %v7621_v18 = vpop.eup %7620  ;;  %5114 = vst [vmem:[%s9072_s13 + $0x2b8] sm:$0xff] %v7619_v54  ;;  %7630 = vpow2.f32 %v4761_v5  ;;  %v4443_v6 = vadd.f32 %v9502_v47, %v4323_v16  ;;  %v4324_v23 = vmax.f32 %v3269_v51, %v4154_v7  ;;  %v10384_v47 = vld [vmem:[#allocation148_spill] sm:$0xff]  ;;  %v10391_v14 = vmax.f32 %v10389_v2, %v10390_v15  ;;  %v10392_v7 = vld [vmem:[#allocation153_spill] sm:$0xff]  ;;  %v10393_v5 = vld [vmem:[#allocation154_spill] sm:$0xff] }
 0x447   : > { %v4891_v35 = vadd.f32 1.0, %v7621_v18  ;;  %v10385_v59 = vmax.f32 %v10383_v52, %v10384_v47  ;;  %v10394_v16 = vmax.f32 %v10392_v7, %v10393_v5 }
 0x448   : > { %v7623_v48 = vpop.eup %7622  ;;  %v4556_v49 = vsub.f32 0.0, %v4443_v6  ;;  %v4444_v45 = vadd.f32 %v9678_v41, %v4324_v23 }
 0x449   : > { %7632 = vrcp.f32 %v4891_v35  ;;  %v4892_v29 = vadd.f32 1.0, %v7623_v48  ;;  %v3104_v53 = vpop.f32.mrb[164].mxu0  ;;  %v4159_v26 = vpop.f32.mrb[164].mxu1 }
 0x44a   : > { %v4763_v1 = vmul.f32 1.442695, %v4556_v49  ;;  %v4557_v63 = vsub.f32 0.0, %v4444_v45  ;;  %v3270_v62 = vmax.f32 %v10385_v59, %v3104_v53  ;;  %v6738_v57 = vpop.f32.mrb[165].mxu0  ;;  %v6982_v58 = vpop.f32.mrb[165].mxu1 }
 0x44b   : > { %v7625_v55 = vpop.eup %7624  ;;  %7634 = vrcp.f32 %v4892_v29  ;;  %v3107_v27 = vpop.f32.mrb[166].mxu0 }
 0x44c   : > { %v4162_v50 = vpop.f32.mrb[166].mxu1  ;;  %5115 = vst [vmem:[%s9072_s13 + $0x2c0] sm:$0xff] %v7625_v55  ;;  %7636 = vpow2.f32 %v4763_v1  ;;  %v4765_v56 = vmul.f32 1.442695, %v4557_v63  ;;  %v4325_v0 = vmax.f32 %v3270_v62, %v4159_v26  ;;  %v3271_v11 = vmax.f32 %v10388_v37, %v3107_v27  ;;  %v6739_v43 = vpop.f32.mrb[167].mxu0  ;;  %v10395_v26 = vld [vmem:[#allocation155_spill] sm:$0xff] }
 0x44d   : > { %v6983_v44 = vpop.f32.mrb[167].mxu1  ;;  %v7627_v24 = vpop.eup %7626  ;;  %v10396_v1 = vld [vmem:[#allocation156_spill] sm:$0xff] }
 0x44e   : > { %v7629_v25 = vpop.eup %7628  ;;  %5116 = vst [vmem:[%s9072_s13 + $0x2c8] sm:$0xff] %v7627_v24  ;;  %7638 = vpow2.f32 %v4765_v56  ;;  %v4445_v30 = vadd.f32 %v9678_v41, %v4325_v0  ;;  %v4326_v17 = vmax.f32 %v3271_v11, %v4162_v50  ;;  %v10397_v63 = vmax.f32 %v10395_v26, %v10396_v1  ;;  %v10398_v50 = vld [vmem:[#allocation157_spill] sm:$0xff]  ;;  %v10399_v56 = vld [vmem:[#allocation158_spill] sm:$0xff] }
 0x44f   : > { %v4893_v21 = vadd.f32 1.0, %v7629_v25  ;;  %v10400_v0 = vmax.f32 %v10398_v50, %v10399_v56 }
 0x450   : > { %v7631_v31 = vpop.eup %7630  ;;  %v4558_v32 = vsub.f32 0.0, %v4445_v30  ;;  %v4446_v12 = vadd.f32 %v9678_v41, %v4326_v17 }
 0x451   : > { %7640 = vrcp.f32 %v4893_v21  ;;  %v4894_v33 = vadd.f32 1.0, %v7631_v31  ;;  %v3112_v34 = vpop.f32.mrb[168].mxu0  ;;  %v4167_v13 = vpop.f32.mrb[168].mxu1 }
 0x452   : > { %v4767_v42 = vmul.f32 1.442695, %v4558_v32  ;;  %v4559_v4 = vsub.f32 0.0, %v4446_v12  ;;  %v3272_v19 = vmax.f32 %v10391_v14, %v3112_v34  ;;  %v6742_v20 = vpop.f32.mrb[169].mxu0  ;;  %v6986_v22 = vpop.f32.mrb[169].mxu1 }
 0x453   : > { %v7633_v3 = vpop.eup %7632  ;;  %7642 = vrcp.f32 %v4894_v33  ;;  %v3115_v46 = vpop.f32.mrb[170].mxu0 }
 0x454   : > { %v4170_v28 = vpop.f32.mrb[170].mxu1  ;;  %5117 = vst [vmem:[%s9072_s13 + $0x2d0] sm:$0xff] %v7633_v3  ;;  %7644 = vpow2.f32 %v4767_v42  ;;  %v4769_v38 = vmul.f32 1.442695, %v4559_v4  ;;  %v4327_v39 = vmax.f32 %v3272_v19, %v4167_v13  ;;  %v3273_v60 = vmax.f32 %v10394_v16, %v3115_v46  ;;  %v6743_v61 = vpop.f32.mrb[171].mxu0  ;;  %v10401_v13 = vld [vmem:[#allocation159_spill] sm:$0xff] }
 0x455   : > { %v6987_v8 = vpop.f32.mrb[171].mxu1  ;;  %v7635_v51 = vpop.eup %7634  ;;  %v10402_v42 = vld [vmem:[#allocation160_spill] sm:$0xff] }
 0x456   : > { %v7637_v9 = vpop.eup %7636  ;;  %5118 = vst [vmem:[%s9072_s13 + $0x2d8] sm:$0xff] %v7635_v51  ;;  %7646 = vpow2.f32 %v4769_v38  ;;  %v4447_v10 = vadd.f32 %v9678_v41, %v4327_v39  ;;  %v4328_v54 = vmax.f32 %v3273_v60, %v4170_v28  ;;  %v10403_v4 = vmax.f32 %v10401_v13, %v10402_v42  ;;  %v10404_v28 = vld [vmem:[#allocation161_spill] sm:$0xff]  ;;  %v10405_v38 = vld [vmem:[#allocation162_spill] sm:$0xff] }
 0x457   : > { %v4895_v18 = vadd.f32 1.0, %v7637_v9  ;;  %v10406_v39 = vmax.f32 %v10404_v28, %v10405_v38 }
 0x458   : > { %v7639_v6 = vpop.eup %7638  ;;  %v4560_v23 = vsub.f32 0.0, %v4447_v10  ;;  %v4448_v35 = vadd.f32 %v9678_v41, %v4328_v54 }
 0x459   : > { %7648 = vrcp.f32 %v4895_v18  ;;  %v4896_v48 = vadd.f32 1.0, %v7639_v6  ;;  %v3120_v49 = vpop.f32.mrb[172].mxu0  ;;  %v4175_v45 = vpop.f32.mrb[172].mxu1 }
 0x45a   : > { %v4771_v29 = vmul.f32 1.442695, %v4560_v23  ;;  %v4561_v53 = vsub.f32 0.0, %v4448_v35  ;;  %v3274_v52 = vmax.f32 %v10397_v63, %v3120_v49  ;;  %v6746_v47 = vpop.f32.mrb[173].mxu0  ;;  %v6990_v59 = vpop.f32.mrb[173].mxu1 }
 0x45b   : > { %v7641_v62 = vpop.eup %7640  ;;  %7650 = vrcp.f32 %v4896_v48  ;;  %v3123_v57 = vpop.f32.mrb[174].mxu0 }
 0x45c   : > { %v4178_v58 = vpop.f32.mrb[174].mxu1  ;;  %5119 = vst [vmem:[%s9072_s13 + $0x2e0] sm:$0xff] %v7641_v62  ;;  %7652 = vpow2.f32 %v4771_v29  ;;  %v4773_v55 = vmul.f32 1.442695, %v4561_v53  ;;  %v4329_v27 = vmax.f32 %v3274_v52, %v4175_v45  ;;  %v3275_v40 = vmax.f32 %v10400_v0, %v3123_v57  ;;  %v6747_v36 = vpop.f32.mrb[175].mxu0  ;;  %v10407_v45 = vld [vmem:[#allocation163_spill] sm:$0xff] }
 0x45d   : > { %v6991_v37 = vpop.f32.mrb[175].mxu1  ;;  %v7643_v11 = vpop.eup %7642  ;;  %v10408_v29 = vld [vmem:[#allocation164_spill] sm:$0xff] }
 0x45e   : > { %v7645_v43 = vpop.eup %7644  ;;  %5120 = vst [vmem:[%s9072_s13 + $0x2e8] sm:$0xff] %v7643_v11  ;;  %7654 = vpow2.f32 %v4773_v55  ;;  %v4449_v44 = vadd.f32 %v9678_v41, %v4329_v27  ;;  %v4330_v24 = vmax.f32 %v3275_v40, %v4178_v58  ;;  %v10409_v53 = vmax.f32 %v10407_v45, %v10408_v29  ;;  %v10410_v58 = vld [vmem:[#allocation165_spill] sm:$0xff]  ;;  %v10411_v55 = vld [vmem:[#allocation166_spill] sm:$0xff] }
 0x45f   : > { %v4897_v25 = vadd.f32 1.0, %v7645_v43  ;;  %v10412_v27 = vmax.f32 %v10410_v58, %v10411_v55 }
 0x460   : > { %v7647_v30 = vpop.eup %7646  ;;  %v4562_v17 = vsub.f32 0.0, %v4449_v44  ;;  %v4450_v21 = vadd.f32 %v9678_v41, %v4330_v24 }
 0x461   : > { %7656 = vrcp.f32 %v4897_v25  ;;  %v4898_v31 = vadd.f32 1.0, %v7647_v30  ;;  %v3128_v32 = vpop.f32.mrb[176].mxu0  ;;  %v4183_v12 = vpop.f32.mrb[176].mxu1 }
 0x462   : > { %v4775_v33 = vmul.f32 1.442695, %v4562_v17  ;;  %v4563_v34 = vsub.f32 0.0, %v4450_v21  ;;  %v3276_v2 = vmax.f32 %v10403_v4, %v3128_v32  ;;  %v6750_v15 = vpop.f32.mrb[177].mxu0  ;;  %v6994_v14 = vpop.f32.mrb[177].mxu1 }
 0x463   : > { %v7649_v19 = vpop.eup %7648  ;;  %7658 = vrcp.f32 %v4898_v31  ;;  %v3131_v20 = vpop.f32.mrb[178].mxu0 }
 0x464   : > { %v4186_v22 = vpop.f32.mrb[178].mxu1  ;;  %5121 = vst [vmem:[%s9072_s13 + $0x2f0] sm:$0xff] %v7649_v19  ;;  %7660 = vpow2.f32 %v4775_v33  ;;  %v4777_v3 = vmul.f32 1.442695, %v4563_v34  ;;  %v4331_v46 = vmax.f32 %v3276_v2, %v4183_v12  ;;  %v3277_v7 = vmax.f32 %v10406_v39, %v3131_v20  ;;  %v6751_v5 = vpop.f32.mrb[179].mxu0  ;;  %v10413_v12 = vld [vmem:[#allocation167_spill] sm:$0xff] }
 0x465   : > { %v6995_v16 = vpop.f32.mrb[179].mxu1  ;;  %v7651_v60 = vpop.eup %7650  ;;  %v10414_v33 = vld [vmem:[#allocation168_spill] sm:$0xff] }
 0x466   : > { %v7653_v61 = vpop.eup %7652  ;;  %5122 = vst [vmem:[%s9072_s13 + $0x2f8] sm:$0xff] %v7651_v60  ;;  %7662 = vpow2.f32 %v4777_v3  ;;  %v4451_v8 = vadd.f32 %v9678_v41, %v4331_v46  ;;  %v4332_v51 = vmax.f32 %v3277_v7, %v4186_v22  ;;  %v10415_v34 = vmax.f32 %v10413_v12, %v10414_v33  ;;  %v10416_v22 = vld [vmem:[#allocation169_spill] sm:$0xff]  ;;  %v10417_v3 = vld [vmem:[#allocation170_spill] sm:$0xff] }
 0x467   : > { %v4899_v9 = vadd.f32 1.0, %v7653_v61  ;;  %v10418_v46 = vmax.f32 %v10416_v22, %v10417_v3 }
 0x468   : > { %v7655_v10 = vpop.eup %7654  ;;  %v4564_v54 = vsub.f32 0.0, %v4451_v8  ;;  %v4452_v18 = vadd.f32 %v9678_v41, %v4332_v51 }
 0x469   : > { %7664 = vrcp.f32 %v4899_v9  ;;  %v4900_v6 = vadd.f32 1.0, %v7655_v10  ;;  %v3136_v23 = vpop.f32.mrb[180].mxu0  ;;  %v4191_v35 = vpop.f32.mrb[180].mxu1 }
 0x46a   : > { %v4779_v48 = vmul.f32 1.442695, %v4564_v54  ;;  %v4565_v49 = vsub.f32 0.0, %v4452_v18  ;;  %v3278_v26 = vmax.f32 %v10409_v53, %v3136_v23  ;;  %v6754_v1 = vpop.f32.mrb[181].mxu0  ;;  %v6998_v63 = vpop.f32.mrb[181].mxu1 }
 0x46b   : > { %v7657_v52 = vpop.eup %7656  ;;  %7666 = vrcp.f32 %v4900_v6  ;;  %v3139_v47 = vpop.f32.mrb[182].mxu0 }
 0x46c   : > { %v4194_v59 = vpop.f32.mrb[182].mxu1  ;;  %5123 = vst [vmem:[%s9072_s13 + $0x300] sm:$0xff] %v7657_v52  ;;  %7668 = vpow2.f32 %v4779_v48  ;;  %v4781_v62 = vmul.f32 1.442695, %v4565_v49  ;;  %v4333_v57 = vmax.f32 %v3278_v26, %v4191_v35  ;;  %v3279_v50 = vmax.f32 %v10412_v27, %v3139_v47  ;;  %v6755_v56 = vpop.f32.mrb[183].mxu0  ;;  %v10419_v35 = vld [vmem:[#allocation171_spill] sm:$0xff] }
 0x46d   : > { %v6999_v0 = vpop.f32.mrb[183].mxu1  ;;  %v7659_v40 = vpop.eup %7658  ;;  %v10420_v48 = vld [vmem:[#allocation172_spill] sm:$0xff] }
 0x46e   : > { %v7661_v36 = vpop.eup %7660  ;;  %5124 = vst [vmem:[%s9072_s13 + $0x308] sm:$0xff] %v7659_v40  ;;  %7670 = vpow2.f32 %v4781_v62  ;;  %v4453_v37 = vadd.f32 %v9678_v41, %v4333_v57  ;;  %v4334_v11 = vmax.f32 %v3279_v50, %v4194_v59  ;;  %v10421_v49 = vmax.f32 %v10419_v35, %v10420_v48  ;;  %v10422_v59 = vld [vmem:[#allocation173_spill] sm:$0xff]  ;;  %v10423_v62 = vld [vmem:[#allocation174_spill] sm:$0xff] }
 0x46f   : > { %v4901_v43 = vadd.f32 1.0, %v7661_v36  ;;  %v10424_v57 = vmax.f32 %v10422_v59, %v10423_v62 }
 0x470   : > { %v7663_v44 = vpop.eup %7662  ;;  %v4566_v24 = vsub.f32 0.0, %v4453_v37  ;;  %v4454_v25 = vadd.f32 %v9678_v41, %v4334_v11 }
 0x471   : > { %7672 = vrcp.f32 %v4901_v43  ;;  %v4902_v30 = vadd.f32 1.0, %v7663_v44  ;;  %v3144_v17 = vpop.f32.mrb[184].mxu0  ;;  %v4199_v21 = vpop.f32.mrb[184].mxu1 }
 0x472   : > { %v4783_v31 = vmul.f32 1.442695, %v4566_v24  ;;  %v4567_v32 = vsub.f32 0.0, %v4454_v25  ;;  %v3280_v13 = vmax.f32 %v10415_v34, %v3144_v17  ;;  %v6758_v42 = vpop.f32.mrb[185].mxu0  ;;  %v7002_v4 = vpop.f32.mrb[185].mxu1 }
 0x473   : > { %v7665_v2 = vpop.eup %7664  ;;  %7674 = vrcp.f32 %v4902_v30  ;;  %v3147_v15 = vpop.f32.mrb[186].mxu0 }
 0x474   : > { %v4202_v14 = vpop.f32.mrb[186].mxu1  ;;  %5125 = vst [vmem:[%s9072_s13 + $0x310] sm:$0xff] %v7665_v2  ;;  %7676 = vpow2.f32 %v4783_v31  ;;  %v4785_v19 = vmul.f32 1.442695, %v4567_v32  ;;  %v4335_v20 = vmax.f32 %v3280_v13, %v4199_v21  ;;  %v3281_v28 = vmax.f32 %v10418_v46, %v3147_v15  ;;  %v6759_v38 = vpop.f32.mrb[187].mxu0  ;;  %v10425_v21 = vld [vmem:[#allocation175_spill] sm:$0xff] }
 0x475   : > { %v7003_v39 = vpop.f32.mrb[187].mxu1  ;;  %v7667_v7 = vpop.eup %7666  ;;  %v10426_v31 = vld [vmem:[#allocation176_spill] sm:$0xff] }
 0x476   : > { %v7669_v5 = vpop.eup %7668  ;;  %5126 = vst [vmem:[%s9072_s13 + $0x318] sm:$0xff] %v7667_v7  ;;  %7678 = vpow2.f32 %v4785_v19  ;;  %v4455_v16 = vadd.f32 %v9678_v41, %v4335_v20  ;;  %v4336_v60 = vmax.f32 %v3281_v28, %v4202_v14  ;;  %v10427_v32 = vmax.f32 %v10425_v21, %v10426_v31  ;;  %v10428_v14 = vld [vmem:[#allocation177_spill] sm:$0xff]  ;;  %v10429_v19 = vld [vmem:[#allocation178_spill] sm:$0xff] }
 0x477   : > { %v4903_v61 = vadd.f32 1.0, %v7669_v5  ;;  %v10430_v20 = vmax.f32 %v10428_v14, %v10429_v19 }
 0x478   : > { %v7671_v8 = vpop.eup %7670  ;;  %v4568_v51 = vsub.f32 0.0, %v4455_v16  ;;  %v4456_v9 = vadd.f32 %v9678_v41, %v4336_v60 }
 0x479   : > { %7680 = vrcp.f32 %v4903_v61  ;;  %v4904_v10 = vadd.f32 1.0, %v7671_v8  ;;  %v3152_v54 = vpop.f32.mrb[188].mxu0  ;;  %v4207_v18 = vpop.f32.mrb[188].mxu1 }
 0x47a   : > { %v4787_v6 = vmul.f32 1.442695, %v4568_v51  ;;  %v4569_v23 = vsub.f32 0.0, %v4456_v9  ;;  %v3282_v45 = vmax.f32 %v10421_v49, %v3152_v54  ;;  %v6762_v29 = vpop.f32.mrb[189].mxu0  ;;  %v7006_v53 = vpop.f32.mrb[189].mxu1 }
 0x47b   : > { %v7673_v26 = vpop.eup %7672  ;;  %7682 = vrcp.f32 %v4904_v10  ;;  %v3155_v1 = vpop.f32.mrb[190].mxu0 }
 0x47c   : > { %v4210_v63 = vpop.f32.mrb[190].mxu1  ;;  %5127 = vst [vmem:[%s9072_s13 + $0x320] sm:$0xff] %v7673_v26  ;;  %7684 = vpow2.f32 %v4787_v6  ;;  %v4789_v52 = vmul.f32 1.442695, %v4569_v23  ;;  %v4337_v47 = vmax.f32 %v3282_v45, %v4207_v18  ;;  %v3283_v58 = vmax.f32 %v10424_v57, %v3155_v1  ;;  %v6763_v55 = vpop.f32.mrb[191].mxu0  ;;  %v10431_v18 = vld [vmem:[#allocation179_spill] sm:$0xff] }
 0x47d   : > { %v7007_v27 = vpop.f32.mrb[191].mxu1  ;;  %v7675_v50 = vpop.eup %7674  ;;  %v10432_v6 = vld [vmem:[#allocation180_spill] sm:$0xff] }
 0x47e   : > { %v7677_v56 = vpop.eup %7676  ;;  %5128 = vst [vmem:[%s9072_s13 + $0x328] sm:$0xff] %v7675_v50  ;;  %7686 = vpow2.f32 %v4789_v52  ;;  %v4457_v0 = vadd.f32 %v9678_v41, %v4337_v47  ;;  %v4338_v40 = vmax.f32 %v3283_v58, %v4210_v63  ;;  %v10433_v23 = vmax.f32 %v10431_v18, %v10432_v6 }
 0x47f   : > { %v4905_v36 = vadd.f32 1.0, %v7677_v56 }
 0x480   : > { %v7679_v37 = vpop.eup %7678  ;;  %v4570_v11 = vsub.f32 0.0, %v4457_v0  ;;  %v4458_v43 = vadd.f32 %v9678_v41, %v4338_v40 }
 0x481   : > { %7688 = vrcp.f32 %v4905_v36  ;;  %v4906_v44 = vadd.f32 1.0, %v7679_v37  ;;  %v3160_v24 = vpop.f32.mrb[192].mxu0  ;;  %v4215_v25 = vpop.f32.mrb[192].mxu1 }
 0x482   : > { %v4791_v30 = vmul.f32 1.442695, %v4570_v11  ;;  %v4571_v17 = vsub.f32 0.0, %v4458_v43  ;;  %v3284_v12 = vmax.f32 %v10427_v32, %v3160_v24  ;;  %v6766_v33 = vpop.f32.mrb[193].mxu0  ;;  %v7010_v34 = vpop.f32.mrb[193].mxu1 }
 0x483   : > { %v7681_v13 = vpop.eup %7680  ;;  %7690 = vrcp.f32 %v4906_v44  ;;  %v3163_v42 = vpop.f32.mrb[194].mxu0 }
 0x484   : > { %v4218_v4 = vpop.f32.mrb[194].mxu1  ;;  %5129 = vst [vmem:[%s9072_s13 + $0x330] sm:$0xff] %v7681_v13  ;;  %7692 = vpow2.f32 %v4791_v30  ;;  %v4793_v2 = vmul.f32 1.442695, %v4571_v17  ;;  %v4339_v15 = vmax.f32 %v3284_v12, %v4215_v25  ;;  %v3285_v22 = vmax.f32 %v10430_v20, %v3163_v42  ;;  %v6767_v3 = vpop.f32.mrb[195].mxu0 }
 0x485   : > { %v7011_v46 = vpop.f32.mrb[195].mxu1  ;;  %v7683_v28 = vpop.eup %7682 }
 0x486   : > { %v7685_v38 = vpop.eup %7684  ;;  %5130 = vst [vmem:[%s9072_s13 + $0x338] sm:$0xff] %v7683_v28  ;;  %7694 = vpow2.f32 %v4793_v2  ;;  %v4459_v39 = vadd.f32 %v9678_v41, %v4339_v15  ;;  %v4340_v7 = vmax.f32 %v3285_v22, %v4218_v4 }
 0x487   : > { %v4907_v5 = vadd.f32 1.0, %v7685_v38 }
 0x488   : > { %v7687_v16 = vpop.eup %7686  ;;  %v4572_v60 = vsub.f32 0.0, %v4459_v39  ;;  %v4460_v61 = vadd.f32 %v9678_v41, %v4340_v7 }
 0x489   : > { %7696 = vrcp.f32 %v4907_v5  ;;  %v4908_v8 = vadd.f32 1.0, %v7687_v16  ;;  %v3168_v51 = vpop.f32.mrb[196].mxu0  ;;  %v4223_v9 = vpop.f32.mrb[196].mxu1 }
 0x48a   : > { %v4795_v10 = vmul.f32 1.442695, %v4572_v60  ;;  %v4573_v54 = vsub.f32 0.0, %v4460_v61  ;;  %v3286_v35 = vmax.f32 %v10433_v23, %v3168_v51  ;;  %v6770_v48 = vpop.f32.mrb[197].mxu0  ;;  %v7014_v49 = vpop.f32.mrb[197].mxu1 }
 0x48b   : > { %v7689_v45 = vpop.eup %7688  ;;  %7698 = vrcp.f32 %v4908_v8  ;;  %v3171_v29 = vpop.f32.mrb[198].mxu0 }
 0x48c   : > { %v4226_v53 = vpop.f32.mrb[198].mxu1  ;;  %5131 = vst [vmem:[%s9072_s13 + $0x340] sm:$0xff] %v7689_v45  ;;  %7700 = vpow2.f32 %v4795_v10  ;;  %v4797_v26 = vmul.f32 1.442695, %v4573_v54  ;;  %v4341_v1 = vmax.f32 %v3286_v35, %v4223_v9  ;;  %v6771_v63 = vpop.f32.mrb[199].mxu0 }
 0x48d   : > { %v7015_v52 = vpop.f32.mrb[199].mxu1  ;;  %v7691_v47 = vpop.eup %7690 }
 0x48e   : > { %v7693_v59 = vpop.eup %7692  ;;  %5132 = vst [vmem:[%s9072_s13 + $0x348] sm:$0xff] %v7691_v47  ;;  %7702 = vpow2.f32 %v4797_v26  ;;  %v4461_v62 = vadd.f32 %v9678_v41, %v4341_v1 }
 0x48f   : > { %v4909_v57 = vadd.f32 1.0, %v7693_v59 }
 0x490   : > { %v7695_v58 = vpop.eup %7694  ;;  %v4574_v55 = vsub.f32 0.0, %v4461_v62 }
 0x491   : > { %7704 = vrcp.f32 %v4909_v57  ;;  %v4910_v27 = vadd.f32 1.0, %v7695_v58 }
 0x492   : > { %v4799_v50 = vmul.f32 1.442695, %v4574_v55 }
 0x493   : > { %v7697_v56 = vpop.eup %7696  ;;  %7706 = vrcp.f32 %v4910_v27 }
 0x494   : > { %5133 = vst [vmem:[%s9072_s13 + $0x350] sm:$0xff] %v7697_v56  ;;  %7708 = vpow2.f32 %v4799_v50 }
 0x495   : > { %v7699_v0 = vpop.eup %7698 }
 0x496   : > { %v7701_v40 = vpop.eup %7700  ;;  %5134 = vst [vmem:[%s9072_s13 + $0x358] sm:$0xff] %v7699_v0 }
 0x497   : > { %v4911_v36 = vadd.f32 1.0, %v7701_v40 }
 0x498   : > { %v7703_v37 = vpop.eup %7702 }
 0x499   : > { %7710 = vrcp.f32 %v4911_v36  ;;  %v4912_v41 = vadd.f32 1.0, %v7703_v37 }
 0x49b   : > { %v7705_v11 = vpop.eup %7704  ;;  %7712 = vrcp.f32 %v4912_v41 }
 0x49c   : > { %5135 = vst [vmem:[%s9072_s13 + $0x360] sm:$0xff] %v7705_v11 }
 0x49d   : > { %v7707_v43 = vpop.eup %7706 }
 0x49e   : > { %v7709_v44 = vpop.eup %7708  ;;  %5136 = vst [vmem:[%s9072_s13 + $0x368] sm:$0xff] %v7707_v43 }
 0x49f   : > { %v4913_v24 = vadd.f32 1.0, %v7709_v44 }
 0x4a1   : > { %7714 = vrcp.f32 %v4913_v24 }
 0x4a3   : > { %v7711_v25 = vpop.eup %7710 }
 0x4a4   : > { %5137 = vst [vmem:[%s9072_s13 + $0x370] sm:$0xff] %v7711_v25 }
 0x4a5   : > { %v7713_v30 = vpop.eup %7712 }
 0x4a6   : > { %5138 = vst [vmem:[%s9072_s13 + $0x378] sm:$0xff] %v7713_v30 }
 0x4ab   : > { %v7715_v17 = vpop.eup %7714 }
 0x4ac   : > { %5139 = vst [vmem:[%s9072_s13 + $0x380] sm:$0xf] %v7715_v17 }
 0x4ad PF: > { %s13_s12 = sadd.s32 1, %s7725_s12  }
 0x4ae   : > { %p10_p4 = scmp.ge.s32.totalorder %s13_s12, 4  }
 0x4b0   :  { %12 = sbr.rel (!%p10_p4) target bundleno = 1 (0x1), region = 65 }

// kernel: lenet5_forward.5
= control target key start
LH: loop header
LB: loop body
LE: loop exit
PB: predicated region body
PF: predicated region fallthrough
CT: control target
= control target key end

     0   :  { %s2379_s12 = smov 0   ;;  %s2877_s0 = inlined_call_operand.vmem [shape: bf16[2,4,169,256], index: 0, kind: input, shape index: {}]   ;;  %s2878_s1 = inlined_call_operand.vmem [shape: bf16[256,128], index: 1, kind: input, shape index: {}]   ;;  %s2879_s2 = inlined_call_operand.vmem [shape: f32[1,128], index: 2, kind: input, shape index: {}]   ;;  %s2880_s3 = inlined_call_operand.vmem [shape: f32[2,169,128], index: 3, kind: output, shape index: {}]  }
   0x1 LB: > { %s1597_s13 = sadd.s32 4294967295, %s2357_s12   ;;  %p1601_p0 = scmp.ge.s32.totalorder %s2357_s12, 1  ;;  %s2357_s12 = sphi %s2379_s12, %s13_s12  }
   0x2   : > { %p137_p1 = scmp.lt.s32.totalorder %s2357_s12, 3 }
   0x4   : > { %p138_p2 = pnand %p1601_p0, %p137_p1 }
   0x5   : > { %v2115_v0 = vld [vmem:[%s2878_s1 + $0x40] sm:$0xff] (!%p138_p2)   ;;  %v2398_v2 = vld [vmem:[%s2878_s1 + $0x48] sm:$0xff] (!%p138_p2)   ;;  %p161_p3 = scmp.lt.s32.totalorder (!%p138_p2), %s1597_s13, 1  ;;  %v2412_v4 = vld [vmem:[%s2878_s1 + $0x50] sm:$0xff] (!%p138_p2)  }
   0x6   : > { %141 = sbr.rel (%p138_p2) target bundleno = 459 (0x1cb), region = 32  ;;  %v2393_v1 = vld [vmem:[%s2878_s1] sm:$0xff] (!%p138_p2)   ;;  %1777 = vmatprep.subr.bf16.mxu0 (!%p138_p2), %v2115_v0  ;;  %1859 = vmatprep.subr.bf16.mxu1 (!%p138_p2), %v2115_v0  ;;  %v2405_v3 = vld [vmem:[%s2878_s1 + $0x8] sm:$0xff] (!%p138_p2)   ;;  %v2421_v5 = vld [vmem:[%s2878_s1 + $0x10] sm:$0xff] (!%p138_p2)  }
   0x7   : > { %1778 = vmatpush3.bf16.msra.mxu0 (!%p138_p2), %v2393_v1  ;;  %1860 = vmatpush3.bf16.msra.mxu1 (!%p138_p2), %v2393_v1  ;;  %v2428_v6 = vld [vmem:[%s2878_s1 + $0x58] sm:$0xff] (!%p138_p2)   ;;  %v2443_v8 = vld [vmem:[%s2878_s1 + $0x60] sm:$0xff] (!%p138_p2)   ;;  %v2462_v10 = vld [vmem:[%s2878_s1 + $0x68] sm:$0xff] (!%p138_p2)  }
   0x8   : > { %1779 = vmatprep.subr.bf16.mxu0 (!%p138_p2), %v2398_v2  ;;  %1861 = vmatprep.subr.bf16.mxu1 (!%p138_p2), %v2398_v2  ;;  %v2436_v7 = vld [vmem:[%s2878_s1 + $0x18] sm:$0xff] (!%p138_p2)   ;;  %v2455_v9 = vld [vmem:[%s2878_s1 + $0x20] sm:$0xff] (!%p138_p2)   ;;  %v2471_v13 = vld [vmem:[%s2878_s1 + $0x28] sm:$0xff] (!%p138_p2)  }
   0x9   : > { %v2478_v14 = vld [vmem:[%s2878_s1 + $0x70] sm:$0xff] (!%p138_p2)   ;;  %v2492_v16 = vld [vmem:[%s2878_s1 + $0x78] sm:$0xff] (!%p138_p2)  }
   0xa   : > { %v2485_v15 = vld [vmem:[%s2878_s1 + $0x30] sm:$0xff] (!%p138_p2)   ;;  %v2499_v17 = vld [vmem:[%s2878_s1 + $0x38] sm:$0xff] (!%p138_p2)  }
   0xb   : > { %1780 = vmatpush3.bf16.msra.mxu0 (!%p138_p2), %v2405_v3  ;;  %1862 = vmatpush3.bf16.msra.mxu1 (!%p138_p2), %v2405_v3 }
   0xc   : > { %1781 = vmatprep.subr.bf16.mxu0 (!%p138_p2), %v2412_v4  ;;  %1863 = vmatprep.subr.bf16.mxu1 (!%p138_p2), %v2412_v4 }
   0xd   : > { %s2902_s13 = smov (!%p161_p3, %s1597_s13), 1 }
   0xe   : > { %s2105_s28 = smul.u32 704, %s2902_s13 }
   0xf   : > { %1782 = vmatpush3.bf16.msra.mxu0 %v2421_v5  ;;  %1864 = vmatpush3.bf16.msra.mxu1 %v2421_v5  ;;  %s2106_s27 = smul.u32 176, %s2902_s13 }
  0x10   : > { %1783 = vmatprep.subr.bf16.mxu0 %v2428_v6  ;;  %1865 = vmatprep.subr.bf16.mxu1 %v2428_v6  ;;  %s2448_s8 = scalar_lea.vmem %s2877_s0, %s2105_s28 }
  0x11   : > { %v2133_v11 = vld [vmem:[%s2448_s8 + $0x4] ss:$8 sps:$4 sm:$0xff]   ;;  %v2136_v12 = vld [vmem:[%s2448_s8 + $0xb4] ss:$8 sps:$4 sm:$0xff]   ;;  %v2131_v18 = vld [vmem:[%s2448_s8] ss:$8 sps:$4 sm:$0xff]   ;;  %s2794_s29 = scalar_lea.vmem %s2880_s3, %s2106_s27 }
  0x12   : > { %464 = vmatprep.mubr.bf16.mxu0 %v2133_v11  ;;  %718 = vmatprep.mubr.bf16.mxu1 %v2136_v12  ;;  %v2134_v19 = vld [vmem:[%s2448_s8 + $0xb0] ss:$8 sps:$4 sm:$0xff]   ;;  %v2137_v20 = vld [vmem:[%s2448_s8 + $0x14] ss:$8 sps:$4 sm:$0xff]   ;;  %v2139_v21 = vld [vmem:[%s2448_s8 + $0xc4] ss:$8 sps:$4 sm:$0xff]  }
  0x13   : > { %1784 = vmatpush3.bf16.msra.mxu0 %v2436_v7  ;;  %1866 = vmatpush3.bf16.msra.mxu1 %v2436_v7  ;;  %v2141_v22 = vld [vmem:[%s2448_s8 + $0x10] ss:$8 sps:$4 sm:$0xff]   ;;  %v2142_v23 = vld [vmem:[%s2448_s8 + $0xc0] ss:$8 sps:$4 sm:$0xff]   ;;  %v2143_v24 = vld [vmem:[%s2448_s8 + $0x24] ss:$8 sps:$4 sm:$0xff]  }
  0x14   : > { %1785 = vmatprep.subr.bf16.mxu0 %v2443_v8  ;;  %1867 = vmatprep.subr.bf16.mxu1 %v2443_v8  ;;  %v2145_v25 = vld [vmem:[%s2448_s8 + $0xd4] ss:$8 sps:$4 sm:$0xff]   ;;  %v2147_v26 = vld [vmem:[%s2448_s8 + $0x20] ss:$8 sps:$4 sm:$0xff]   ;;  %v2148_v27 = vld [vmem:[%s2448_s8 + $0xd0] ss:$8 sps:$4 sm:$0xff]  }
  0x15   : > { %v2149_v28 = vld [vmem:[%s2448_s8 + $0x34] ss:$8 sps:$4 sm:$0xff]   ;;  %v2151_v29 = vld [vmem:[%s2448_s8 + $0xe4] ss:$8 sps:$4 sm:$0xff]   ;;  %v2153_v30 = vld [vmem:[%s2448_s8 + $0x30] ss:$8 sps:$4 sm:$0xff]  }
  0x16   : > { %v2154_v31 = vld [vmem:[%s2448_s8 + $0xe0] ss:$8 sps:$4 sm:$0xff]   ;;  %v2155_v32 = vld [vmem:[%s2448_s8 + $0x44] ss:$8 sps:$4 sm:$0xff]   ;;  %v2157_v33 = vld [vmem:[%s2448_s8 + $0xf4] ss:$8 sps:$4 sm:$0xff]  }
  0x17   : > { %1786 = vmatpush3.bf16.msra.mxu0 %v2455_v9  ;;  %1868 = vmatpush3.bf16.msra.mxu1 %v2455_v9  ;;  %v2159_v34 = vld [vmem:[%s2448_s8 + $0x40] ss:$8 sps:$4 sm:$0xff]   ;;  %v2160_v35 = vld [vmem:[%s2448_s8 + $0xf0] ss:$8 sps:$4 sm:$0xff]   ;;  %v2161_v36 = vld [vmem:[%s2448_s8 + $0x54] ss:$8 sps:$4 sm:$0xff]  }
  0x18   : > { %1787 = vmatprep.subr.bf16.mxu0 %v2462_v10  ;;  %1869 = vmatprep.subr.bf16.mxu1 %v2462_v10  ;;  %v2163_v37 = vld [vmem:[%s2448_s8 + $0x104] ss:$8 sps:$4 sm:$0xff]   ;;  %v2165_v38 = vld [vmem:[%s2448_s8 + $0x50] ss:$8 sps:$4 sm:$0xff]   ;;  %v2166_v39 = vld [vmem:[%s2448_s8 + $0x100] ss:$8 sps:$4 sm:$0xff]  }
  0x19   : > { %v2167_v40 = vld [vmem:[%s2448_s8 + $0x64] ss:$8 sps:$4 sm:$0xff]   ;;  %v2169_v41 = vld [vmem:[%s2448_s8 + $0x114] ss:$8 sps:$4 sm:$0xff]   ;;  %v2171_v42 = vld [vmem:[%s2448_s8 + $0x60] ss:$8 sps:$4 sm:$0xff]  }
  0x1a   : > { %v2172_v43 = vld [vmem:[%s2448_s8 + $0x110] ss:$8 sps:$4 sm:$0xff]   ;;  %v2173_v44 = vld [vmem:[%s2448_s8 + $0x74] ss:$8 sps:$4 sm:$0xff]   ;;  %v2175_v45 = vld [vmem:[%s2448_s8 + $0x124] ss:$8 sps:$4 sm:$0xff]  }
  0x1b   : > { %1788 = vmatpush3.bf16.msra.mxu0 %v2471_v13  ;;  %1870 = vmatpush3.bf16.msra.mxu1 %v2471_v13  ;;  %v2177_v46 = vld [vmem:[%s2448_s8 + $0x70] ss:$8 sps:$4 sm:$0xff]   ;;  %v2178_v47 = vld [vmem:[%s2448_s8 + $0x120] ss:$8 sps:$4 sm:$0xff]   ;;  %v2179_v48 = vld [vmem:[%s2448_s8 + $0x84] ss:$8 sps:$4 sm:$0xff]  }
  0x1c   : > { %1789 = vmatprep.subr.bf16.mxu0 %v2478_v14  ;;  %1871 = vmatprep.subr.bf16.mxu1 %v2478_v14  ;;  %v2181_v49 = vld [vmem:[%s2448_s8 + $0x134] ss:$8 sps:$4 sm:$0xff]   ;;  %v2183_v50 = vld [vmem:[%s2448_s8 + $0x80] ss:$8 sps:$4 sm:$0xff]   ;;  %v2184_v51 = vld [vmem:[%s2448_s8 + $0x130] ss:$8 sps:$4 sm:$0xff]  }
  0x1d   : > { %v2185_v52 = vld [vmem:[%s2448_s8 + $0x94] ss:$8 sps:$4 sm:$0xff]   ;;  %v2187_v53 = vld [vmem:[%s2448_s8 + $0x144] ss:$8 sps:$4 sm:$0xff]   ;;  %v2189_v54 = vld [vmem:[%s2448_s8 + $0x90] ss:$8 sps:$4 sm:$0xff]  }
  0x1e   : > { %v2190_v55 = vld [vmem:[%s2448_s8 + $0x140] ss:$8 sps:$4 sm:$0xff]   ;;  %v2191_v56 = vld [vmem:[%s2448_s8 + $0xa4] ss:$8 sps:$4 sm:$0x1f]  }
  0x1f   : > { %1790 = vmatpush3.bf16.msra.mxu0 %v2485_v15  ;;  %1872 = vmatpush3.bf16.msra.mxu1 %v2485_v15  ;;  %v2193_v57 = vld [vmem:[%s2448_s8 + $0x154] ss:$8 sps:$4 sm:$0x1f]   ;;  %v2195_v58 = vld [vmem:[%s2448_s8 + $0xa0] ss:$8 sps:$4 sm:$0x1f]  }
  0x20   : > { %1791 = vmatprep.subr.bf16.mxu0 %v2492_v16  ;;  %1873 = vmatprep.subr.bf16.mxu1 %v2492_v16  ;;  %v2196_v59 = vld [vmem:[%s2448_s8 + $0x150] ss:$8 sps:$4 sm:$0x1f]   ;;  %v2199_v60 = vld [vmem:[%s2448_s8 + $0x164] ss:$8 sps:$4 sm:$0xff]  }
  0x21   : > { %v2202_v61 = vld [vmem:[%s2448_s8 + $0x214] ss:$8 sps:$4 sm:$0xff]   ;;  %v2197_v62 = vld [vmem:[%s2448_s8 + $0x160] ss:$8 sps:$4 sm:$0xff]   ;;  %v2200_v63 = vld [vmem:[%s2448_s8 + $0x210] ss:$8 sps:$4 sm:$0xff]  }
  0x22   : > { %v2220_v11 = vld [vmem:[%s2448_s8 + $0x240] ss:$8 sps:$4 sm:$0xff]   ;;  %v2221_v12 = vld [vmem:[%s2448_s8 + $0x1a4] ss:$8 sps:$4 sm:$0xff]  }
  0x23   : > { %1792 = vmatpush3.bf16.msra.mxu0 %v2499_v17  ;;  %1874 = vmatpush3.bf16.msra.mxu1 %v2499_v17 }
  0x24   : > { %1941 = vmatprep.subr.bf16.mxu0 %v2115_v0  ;;  %2023 = vmatprep.subr.bf16.mxu1 %v2115_v0  ;;  %v2203_v0 = vld [vmem:[%s2448_s8 + $0x174] ss:$8 sps:$4 sm:$0xff]  }
  0x26   : > { %465 = vmatmul.mubr.bf16.vlgmr.msra.gmra.mrb[0].mxu0 %v2131_v18  ;;  %719 = vmatmul.mubr.bf16.vlgmr.msra.gmra.mrb[0].mxu1 %v2134_v19  ;;  %v2231_v18 = vld [vmem:[%s2448_s8 + $0x1b0] ss:$8 sps:$4 sm:$0xff]   ;;  %v2232_v19 = vld [vmem:[%s2448_s8 + $0x260] ss:$8 sps:$4 sm:$0xff]  }
  0x27   : > { %1942 = vmatpush3.bf16.msra.mxu0 %v2393_v1  ;;  %2024 = vmatpush3.bf16.msra.mxu1 %v2393_v1  ;;  %v2205_v1 = vld [vmem:[%s2448_s8 + $0x224] ss:$8 sps:$4 sm:$0xff]  }
  0x28   : > { %472 = vmatprep.mubr.bf16.mxu0 %v2137_v20  ;;  %726 = vmatprep.mubr.bf16.mxu1 %v2139_v21  ;;  %v2233_v20 = vld [vmem:[%s2448_s8 + $0x1c4] ss:$8 sps:$4 sm:$0xff]   ;;  %v2235_v21 = vld [vmem:[%s2448_s8 + $0x274] ss:$8 sps:$4 sm:$0xff]  }
  0x29   : > { %1943 = vmatprep.subr.bf16.mxu0 %v2398_v2  ;;  %2025 = vmatprep.subr.bf16.mxu1 %v2398_v2  ;;  %v2207_v2 = vld [vmem:[%s2448_s8 + $0x170] ss:$8 sps:$4 sm:$0xff]  }
  0x2b   : > { %1944 = vmatpush3.bf16.msra.mxu0 %v2405_v3  ;;  %2026 = vmatpush3.bf16.msra.mxu1 %v2405_v3  ;;  %v2208_v3 = vld [vmem:[%s2448_s8 + $0x220] ss:$8 sps:$4 sm:$0xff]  }
  0x2c   : > { %1945 = vmatprep.subr.bf16.mxu0 %v2412_v4  ;;  %2027 = vmatprep.subr.bf16.mxu1 %v2412_v4  ;;  %v2209_v4 = vld [vmem:[%s2448_s8 + $0x184] ss:$8 sps:$4 sm:$0xff]  }
  0x2e   : > { %473 = vmatmul.mubr.bf16.gmra.mrb[4].mxu0 %v2141_v22  ;;  %727 = vmatmul.mubr.bf16.gmra.mrb[4].mxu1 %v2142_v23  ;;  %v2237_v22 = vld [vmem:[%s2448_s8 + $0x1c0] ss:$8 sps:$4 sm:$0xff]   ;;  %v2238_v23 = vld [vmem:[%s2448_s8 + $0x270] ss:$8 sps:$4 sm:$0xff]  }
  0x2f   : > { %480 = vmatprep.mubr.bf16.mxu0 %v2143_v24  ;;  %734 = vmatprep.mubr.bf16.mxu1 %v2145_v25  ;;  %v2239_v24 = vld [vmem:[%s2448_s8 + $0x1d4] ss:$8 sps:$4 sm:$0xff]   ;;  %v2241_v25 = vld [vmem:[%s2448_s8 + $0x284] ss:$8 sps:$4 sm:$0xff]  }
  0x30   : > { %1946 = vmatpush3.bf16.msra.mxu0 %v2421_v5  ;;  %2028 = vmatpush3.bf16.msra.mxu1 %v2421_v5  ;;  %v2211_v5 = vld [vmem:[%s2448_s8 + $0x234] ss:$8 sps:$4 sm:$0xff]  }
  0x31   : > { %1947 = vmatprep.subr.bf16.mxu0 %v2428_v6  ;;  %2029 = vmatprep.subr.bf16.mxu1 %v2428_v6  ;;  %v2213_v6 = vld [vmem:[%s2448_s8 + $0x180] ss:$8 sps:$4 sm:$0xff]  }
  0x34   : > { %1948 = vmatpush3.bf16.msra.mxu0 %v2436_v7  ;;  %2030 = vmatpush3.bf16.msra.mxu1 %v2436_v7  ;;  %v2214_v7 = vld [vmem:[%s2448_s8 + $0x230] ss:$8 sps:$4 sm:$0xff]  }
  0x35   : > { %1949 = vmatprep.subr.bf16.mxu0 %v2443_v8  ;;  %2031 = vmatprep.subr.bf16.mxu1 %v2443_v8  ;;  %v2215_v8 = vld [vmem:[%s2448_s8 + $0x194] ss:$8 sps:$4 sm:$0xff]  }
  0x36   : > { %481 = vmatmul.mubr.bf16.gmra.mrb[8].mxu0 %v2147_v26  ;;  %735 = vmatmul.mubr.bf16.gmra.mrb[8].mxu1 %v2148_v27  ;;  %v2243_v26 = vld [vmem:[%s2448_s8 + $0x1d0] ss:$8 sps:$4 sm:$0xff]   ;;  %v2244_v27 = vld [vmem:[%s2448_s8 + $0x280] ss:$8 sps:$4 sm:$0xff]  }
  0x37   : > { %488 = vmatprep.mubr.bf16.mxu0 %v2149_v28  ;;  %742 = vmatprep.mubr.bf16.mxu1 %v2151_v29  ;;  %v2245_v28 = vld [vmem:[%s2448_s8 + $0x1e4] ss:$8 sps:$4 sm:$0xff]   ;;  %v2247_v29 = vld [vmem:[%s2448_s8 + $0x294] ss:$8 sps:$4 sm:$0xff]  }
  0x38   : > { %1950 = vmatpush3.bf16.msra.mxu0 %v2455_v9  ;;  %2032 = vmatpush3.bf16.msra.mxu1 %v2455_v9  ;;  %v2217_v9 = vld [vmem:[%s2448_s8 + $0x244] ss:$8 sps:$4 sm:$0xff]  }
  0x39   : > { %1951 = vmatprep.subr.bf16.mxu0 %v2462_v10  ;;  %2033 = vmatprep.subr.bf16.mxu1 %v2462_v10  ;;  %v2219_v10 = vld [vmem:[%s2448_s8 + $0x190] ss:$8 sps:$4 sm:$0xff]  }
  0x3c   : > { %1952 = vmatpush3.bf16.msra.mxu0 %v2471_v13  ;;  %2034 = vmatpush3.bf16.msra.mxu1 %v2471_v13  ;;  %v2223_v13 = vld [vmem:[%s2448_s8 + $0x254] ss:$8 sps:$4 sm:$0xff]  }
  0x3d   : > { %1953 = vmatprep.subr.bf16.mxu0 %v2478_v14  ;;  %2035 = vmatprep.subr.bf16.mxu1 %v2478_v14  ;;  %v2225_v14 = vld [vmem:[%s2448_s8 + $0x1a0] ss:$8 sps:$4 sm:$0xff]  }
  0x3e   : > { %489 = vmatmul.mubr.bf16.gmra.mrb[12].mxu0 %v2153_v30  ;;  %743 = vmatmul.mubr.bf16.gmra.mrb[12].mxu1 %v2154_v31  ;;  %v2249_v30 = vld [vmem:[%s2448_s8 + $0x1e0] ss:$8 sps:$4 sm:$0xff]   ;;  %v2250_v31 = vld [vmem:[%s2448_s8 + $0x290] ss:$8 sps:$4 sm:$0xff]  }
  0x3f   : > { %496 = vmatprep.mubr.bf16.mxu0 %v2155_v32  ;;  %750 = vmatprep.mubr.bf16.mxu1 %v2157_v33  ;;  %v2251_v32 = vld [vmem:[%s2448_s8 + $0x1f4] ss:$8 sps:$4 sm:$0xff]   ;;  %v2253_v33 = vld [vmem:[%s2448_s8 + $0x2a4] ss:$8 sps:$4 sm:$0xff]  }
  0x40   : > { %1954 = vmatpush3.bf16.msra.mxu0 %v2485_v15  ;;  %2036 = vmatpush3.bf16.msra.mxu1 %v2485_v15  ;;  %v2226_v15 = vld [vmem:[%s2448_s8 + $0x250] ss:$8 sps:$4 sm:$0xff]  }
  0x41   : > { %1955 = vmatprep.subr.bf16.mxu0 %v2492_v16  ;;  %2037 = vmatprep.subr.bf16.mxu1 %v2492_v16  ;;  %v2227_v16 = vld [vmem:[%s2448_s8 + $0x1b4] ss:$8 sps:$4 sm:$0xff]  }
  0x44   : > { %1956 = vmatpush3.bf16.msra.mxu0 %v2499_v17  ;;  %2038 = vmatpush3.bf16.msra.mxu1 %v2499_v17  ;;  %v2229_v17 = vld [vmem:[%s2448_s8 + $0x264] ss:$8 sps:$4 sm:$0xff]  }
  0x46   : > { %497 = vmatmul.mubr.bf16.gmra.mrb[16].mxu0 %v2159_v34  ;;  %751 = vmatmul.mubr.bf16.gmra.mrb[16].mxu1 %v2160_v35  ;;  %v2255_v34 = vld [vmem:[%s2448_s8 + $0x1f0] ss:$8 sps:$4 sm:$0xff]   ;;  %v2256_v35 = vld [vmem:[%s2448_s8 + $0x2a0] ss:$8 sps:$4 sm:$0xff]  }
  0x47   : > { %504 = vmatprep.mubr.bf16.mxu0 %v2161_v36  ;;  %758 = vmatprep.mubr.bf16.mxu1 %v2163_v37  ;;  %v2257_v36 = vld [vmem:[%s2448_s8 + $0x204] ss:$8 sps:$4 sm:$0x1f]   ;;  %v2259_v37 = vld [vmem:[%s2448_s8 + $0x2b4] ss:$8 sps:$4 sm:$0x1f]  }
  0x4e   : > { %505 = vmatmul.mubr.bf16.gmra.mrb[20].mxu0 %v2165_v38  ;;  %759 = vmatmul.mubr.bf16.gmra.mrb[20].mxu1 %v2166_v39  ;;  %v2261_v38 = vld [vmem:[%s2448_s8 + $0x200] ss:$8 sps:$4 sm:$0x1f]   ;;  %v2262_v39 = vld [vmem:[%s2448_s8 + $0x2b0] ss:$8 sps:$4 sm:$0x1f]  }
  0x4f   : > { %512 = vmatprep.mubr.bf16.mxu0 %v2167_v40  ;;  %766 = vmatprep.mubr.bf16.mxu1 %v2169_v41 }
  0x56   : > { %513 = vmatmul.mubr.bf16.gmra.mrb[24].mxu0 %v2171_v42  ;;  %767 = vmatmul.mubr.bf16.gmra.mrb[24].mxu1 %v2172_v43 }
  0x57   : > { %520 = vmatprep.mubr.bf16.mxu0 %v2173_v44  ;;  %774 = vmatprep.mubr.bf16.mxu1 %v2175_v45 }
  0x5e   : > { %521 = vmatmul.mubr.bf16.gmra.mrb[28].mxu0 %v2177_v46  ;;  %775 = vmatmul.mubr.bf16.gmra.mrb[28].mxu1 %v2178_v47 }
  0x5f   : > { %528 = vmatprep.mubr.bf16.mxu0 %v2179_v48  ;;  %782 = vmatprep.mubr.bf16.mxu1 %v2181_v49 }
  0x66   : > { %529 = vmatmul.mubr.bf16.gmra.mrb[32].mxu0 %v2183_v50  ;;  %783 = vmatmul.mubr.bf16.gmra.mrb[32].mxu1 %v2184_v51 }
  0x67   : > { %536 = vmatprep.mubr.bf16.mxu0 %v2185_v52  ;;  %790 = vmatprep.mubr.bf16.mxu1 %v2187_v53 }
  0x6e   : > { %537 = vmatmul.mubr.bf16.gmra.mrb[36].mxu0 %v2189_v54  ;;  %791 = vmatmul.mubr.bf16.gmra.mrb[36].mxu1 %v2190_v55 }
  0x6f   : > { %544 = vmatprep.mubr.bf16.mxu0 %v2191_v56  ;;  %798 = vmatprep.mubr.bf16.mxu1 %v2193_v57 }
  0x76   : > { %545 = vmatmul.mubr.bf16.gmra.mrb[40].mxu0 %v2195_v58  ;;  %799 = vmatmul.mubr.bf16.gmra.mrb[40].mxu1 %v2196_v59 }
  0x77   : > { %994 = vmatprep.mubr.bf16.mxu0 %v2199_v60  ;;  %1270 = vmatprep.mubr.bf16.mxu1 %v2202_v61 }
  0x7e   : > { %995 = vmatmul.mubr.bf16.vlgmr.msra.gmra.mrb[44].mxu0 %v2197_v62  ;;  %1271 = vmatmul.mubr.bf16.vlgmr.msra.gmra.mrb[44].mxu1 %v2200_v63 }
  0x7f   : > { %1002 = vmatprep.mubr.bf16.mxu0 %v2203_v0  ;;  %1278 = vmatprep.mubr.bf16.mxu1 %v2205_v1 }
  0x86   : > { %1003 = vmatmul.mubr.bf16.gmra.mrb[48].mxu0 %v2207_v2  ;;  %1279 = vmatmul.mubr.bf16.gmra.mrb[48].mxu1 %v2208_v3 }
  0x87   : > { %1010 = vmatprep.mubr.bf16.mxu0 %v2209_v4  ;;  %1286 = vmatprep.mubr.bf16.mxu1 %v2211_v5 }
  0x8e   : > { %1011 = vmatmul.mubr.bf16.gmra.mrb[52].mxu0 %v2213_v6  ;;  %1287 = vmatmul.mubr.bf16.gmra.mrb[52].mxu1 %v2214_v7 }
  0x8f   : > { %1018 = vmatprep.mubr.bf16.mxu0 %v2215_v8  ;;  %1294 = vmatprep.mubr.bf16.mxu1 %v2217_v9 }
  0x96   : > { %1019 = vmatmul.mubr.bf16.gmra.mrb[56].mxu0 %v2219_v10  ;;  %1295 = vmatmul.mubr.bf16.gmra.mrb[56].mxu1 %v2220_v11 }
  0x97   : > { %1026 = vmatprep.mubr.bf16.mxu0 %v2221_v12  ;;  %1302 = vmatprep.mubr.bf16.mxu1 %v2223_v13 }
  0x9e   : > { %1027 = vmatmul.mubr.bf16.gmra.mrb[60].mxu0 %v2225_v14  ;;  %1303 = vmatmul.mubr.bf16.gmra.mrb[60].mxu1 %v2226_v15 }
  0x9f   : > { %1034 = vmatprep.mubr.bf16.mxu0 %v2227_v16  ;;  %1310 = vmatprep.mubr.bf16.mxu1 %v2229_v17 }
  0xa6   : > { %1035 = vmatmul.mubr.bf16.gmra.mrb[64].mxu0 %v2231_v18  ;;  %1311 = vmatmul.mubr.bf16.gmra.mrb[64].mxu1 %v2232_v19 }
  0xa7   : > { %1042 = vmatprep.mubr.bf16.mxu0 %v2233_v20  ;;  %1318 = vmatprep.mubr.bf16.mxu1 %v2235_v21 }
  0xae   : > { %1043 = vmatmul.mubr.bf16.gmra.mrb[68].mxu0 %v2237_v22  ;;  %1319 = vmatmul.mubr.bf16.gmra.mrb[68].mxu1 %v2238_v23 }
  0xaf   : > { %1050 = vmatprep.mubr.bf16.mxu0 %v2239_v24  ;;  %1326 = vmatprep.mubr.bf16.mxu1 %v2241_v25 }
  0xb6   : > { %1051 = vmatmul.mubr.bf16.gmra.mrb[72].mxu0 %v2243_v26  ;;  %1327 = vmatmul.mubr.bf16.gmra.mrb[72].mxu1 %v2244_v27 }
  0xb7   : > { %1058 = vmatprep.mubr.bf16.mxu0 %v2245_v28  ;;  %1334 = vmatprep.mubr.bf16.mxu1 %v2247_v29 }
  0xbe   : > { %1059 = vmatmul.mubr.bf16.gmra.mrb[76].mxu0 %v2249_v30  ;;  %1335 = vmatmul.mubr.bf16.gmra.mrb[76].mxu1 %v2250_v31 }
  0xbf   : > { %1066 = vmatprep.mubr.bf16.mxu0 %v2251_v32  ;;  %1342 = vmatprep.mubr.bf16.mxu1 %v2253_v33 }
  0xc6   : > { %1067 = vmatmul.mubr.bf16.gmra.mrb[80].mxu0 %v2255_v34  ;;  %1343 = vmatmul.mubr.bf16.gmra.mrb[80].mxu1 %v2256_v35 }
  0xc7   : > { %1074 = vmatprep.mubr.bf16.mxu0 %v2257_v36  ;;  %1350 = vmatprep.mubr.bf16.mxu1 %v2259_v37 }
  0xce   : > { %1075 = vmatmul.mubr.bf16.gmra.mrb[84].mxu0 %v2261_v38  ;;  %1351 = vmatmul.mubr.bf16.gmra.mrb[84].mxu1 %v2262_v39 }
  0xf9   : > { %v1793_v40 = vpop.f32.mrb[0].mxu0  ;;  %v1875_v41 = vpop.f32.mrb[0].mxu1 }
  0xfa   : > { %v1794_v42 = vpop.f32.mrb[1].mxu0  ;;  %v1876_v43 = vpop.f32.mrb[1].mxu1 }
  0xfb   : > { %v2621_v44 = vadd.f32 %v1794_v42, %v1793_v40  ;;  %v2623_v45 = vadd.f32 %v1876_v43, %v1875_v41  ;;  %v1796_v46 = vpop.f32.mrb[2].mxu0  ;;  %v1878_v47 = vpop.f32.mrb[2].mxu1 }
  0xfc   : > { %v1797_v48 = vpop.f32.mrb[3].mxu0  ;;  %v1879_v49 = vpop.f32.mrb[3].mxu1 }
  0xfd   : > { %v807_v50 = vmax.f32 %v2621_v44, %v2623_v45  ;;  %v2627_v51 = vadd.f32 %v1797_v48, %v1796_v46  ;;  %v2629_v52 = vadd.f32 %v1879_v49, %v1878_v47 }
  0xff   : > { %v808_v53 = vmax.f32 %v2627_v51, %v2629_v52 }
 0x101   : > { %v1799_v54 = vpop.f32.mrb[4].mxu0  ;;  %v1881_v55 = vpop.f32.mrb[4].mxu1 }
 0x102   : > { %v1800_v56 = vpop.f32.mrb[5].mxu0  ;;  %v1882_v57 = vpop.f32.mrb[5].mxu1 }
 0x103   : > { %v2633_v58 = vadd.f32 %v1800_v56, %v1799_v54  ;;  %v2635_v59 = vadd.f32 %v1882_v57, %v1881_v55  ;;  %v1802_v60 = vpop.f32.mrb[6].mxu0  ;;  %v1884_v61 = vpop.f32.mrb[6].mxu1 }
 0x104   : > { %v1803_v62 = vpop.f32.mrb[7].mxu0  ;;  %v1885_v63 = vpop.f32.mrb[7].mxu1 }
 0x105   : > { %v2639_v1 = vadd.f32 %v1803_v62, %v1802_v60  ;;  %v2641_v2 = vadd.f32 %v1885_v63, %v1884_v61  ;;  %v2881_v51 = vmax.f32 %v2633_v58, %v2635_v59 }
 0x109   : > { %v1805_v4 = vpop.f32.mrb[8].mxu0  ;;  %v1887_v5 = vpop.f32.mrb[8].mxu1 }
 0x10a   : > { %v1806_v6 = vpop.f32.mrb[9].mxu0  ;;  %v1888_v7 = vpop.f32.mrb[9].mxu1 }
 0x10b   : > { %v2645_v8 = vadd.f32 %v1806_v6, %v1805_v4  ;;  %v2647_v9 = vadd.f32 %v1888_v7, %v1887_v5  ;;  %v1808_v10 = vpop.f32.mrb[10].mxu0  ;;  %v1890_v11 = vpop.f32.mrb[10].mxu1 }
 0x10c   : > { %v1809_v12 = vpop.f32.mrb[11].mxu0  ;;  %v1891_v13 = vpop.f32.mrb[11].mxu1 }
 0x10d   : > { %v2651_v15 = vadd.f32 %v1809_v12, %v1808_v10  ;;  %v2653_v16 = vadd.f32 %v1891_v13, %v1890_v11 }
 0x111   : > { %v1811_v18 = vpop.f32.mrb[12].mxu0  ;;  %v1893_v19 = vpop.f32.mrb[12].mxu1 }
 0x112   : > { %v1812_v20 = vpop.f32.mrb[13].mxu0  ;;  %v1894_v21 = vpop.f32.mrb[13].mxu1 }
 0x113   : > { %v2657_v22 = vadd.f32 %v1812_v20, %v1811_v18  ;;  %v2659_v23 = vadd.f32 %v1894_v21, %v1893_v19  ;;  %v1814_v24 = vpop.f32.mrb[14].mxu0  ;;  %v1896_v25 = vpop.f32.mrb[14].mxu1 }
 0x114   : > { %v1815_v26 = vpop.f32.mrb[15].mxu0  ;;  %v1897_v27 = vpop.f32.mrb[15].mxu1 }
 0x115   : > { %v2663_v29 = vadd.f32 %v1815_v26, %v1814_v24  ;;  %v2665_v30 = vadd.f32 %v1897_v27, %v1896_v25 }
 0x119   : > { %v1817_v32 = vpop.f32.mrb[16].mxu0  ;;  %v1899_v33 = vpop.f32.mrb[16].mxu1 }
 0x11a   : > { %v1818_v34 = vpop.f32.mrb[17].mxu0  ;;  %v1900_v35 = vpop.f32.mrb[17].mxu1 }
 0x11b   : > { %v2669_v36 = vadd.f32 %v1818_v34, %v1817_v32  ;;  %v2671_v37 = vadd.f32 %v1900_v35, %v1899_v33  ;;  %v1820_v38 = vpop.f32.mrb[18].mxu0  ;;  %v1902_v39 = vpop.f32.mrb[18].mxu1 }
 0x11c   : > { %v1821_v40 = vpop.f32.mrb[19].mxu0  ;;  %v1903_v41 = vpop.f32.mrb[19].mxu1 }
 0x11d   : > { %v2675_v43 = vadd.f32 %v1821_v40, %v1820_v38  ;;  %v2677_v46 = vadd.f32 %v1903_v41, %v1902_v39 }
 0x121   : > { %v1823_v48 = vpop.f32.mrb[20].mxu0  ;;  %v1905_v49 = vpop.f32.mrb[20].mxu1 }
 0x122   : > { %v1824_v54 = vpop.f32.mrb[21].mxu0  ;;  %v1906_v55 = vpop.f32.mrb[21].mxu1 }
 0x123   : > { %v2681_v56 = vadd.f32 %v1824_v54, %v1823_v48  ;;  %v2683_v57 = vadd.f32 %v1906_v55, %v1905_v49  ;;  %v1826_v60 = vpop.f32.mrb[22].mxu0  ;;  %v1908_v61 = vpop.f32.mrb[22].mxu1 }
 0x124   : > { %v1827_v62 = vpop.f32.mrb[23].mxu0  ;;  %v1909_v63 = vpop.f32.mrb[23].mxu1 }
 0x125   : > { %v2687_v5 = vadd.f32 %v1827_v62, %v1826_v60  ;;  %v2689_v6 = vadd.f32 %v1909_v63, %v1908_v61 }
 0x129   : > { %v1829_v10 = vpop.f32.mrb[24].mxu0  ;;  %v1911_v11 = vpop.f32.mrb[24].mxu1 }
 0x12a   : > { %v1830_v12 = vpop.f32.mrb[25].mxu0  ;;  %v1912_v13 = vpop.f32.mrb[25].mxu1 }
 0x12b   : > { %v2693_v18 = vadd.f32 %v1830_v12, %v1829_v10  ;;  %v2695_v19 = vadd.f32 %v1912_v13, %v1911_v11  ;;  %v1832_v20 = vpop.f32.mrb[26].mxu0  ;;  %v1914_v21 = vpop.f32.mrb[26].mxu1 }
 0x12c   : > { %v1833_v24 = vpop.f32.mrb[27].mxu0  ;;  %v1915_v25 = vpop.f32.mrb[27].mxu1 }
 0x12d   : > { %v2699_v27 = vadd.f32 %v1833_v24, %v1832_v20  ;;  %v2701_v32 = vadd.f32 %v1915_v25, %v1914_v21 }
 0x131   : > { %v1835_v34 = vpop.f32.mrb[28].mxu0  ;;  %v1917_v35 = vpop.f32.mrb[28].mxu1 }
 0x132   : > { %v1836_v38 = vpop.f32.mrb[29].mxu0  ;;  %v1918_v39 = vpop.f32.mrb[29].mxu1 }
 0x133   : > { %v2705_v40 = vadd.f32 %v1836_v38, %v1835_v34  ;;  %v2707_v41 = vadd.f32 %v1918_v39, %v1917_v35  ;;  %v1838_v48 = vpop.f32.mrb[30].mxu0  ;;  %v1920_v49 = vpop.f32.mrb[30].mxu1 }
 0x134   : > { %v1839_v54 = vpop.f32.mrb[31].mxu0  ;;  %v1921_v55 = vpop.f32.mrb[31].mxu1 }
 0x135   : > { %v2711_v61 = vadd.f32 %v1839_v54, %v1838_v48  ;;  %v2713_v62 = vadd.f32 %v1921_v55, %v1920_v49 }
 0x139   : > { %v1841_v10 = vpop.f32.mrb[32].mxu0  ;;  %v1923_v11 = vpop.f32.mrb[32].mxu1 }
 0x13a   : > { %v1842_v12 = vpop.f32.mrb[33].mxu0  ;;  %v1924_v13 = vpop.f32.mrb[33].mxu1 }
 0x13b   : > { %v2717_v20 = vadd.f32 %v1842_v12, %v1841_v10  ;;  %v2719_v21 = vadd.f32 %v1924_v13, %v1923_v11  ;;  %v1844_v24 = vpop.f32.mrb[34].mxu0  ;;  %v1926_v25 = vpop.f32.mrb[34].mxu1 }
 0x13c   : > { %v1845_v34 = vpop.f32.mrb[35].mxu0  ;;  %v1927_v35 = vpop.f32.mrb[35].mxu1 }
 0x13d   : > { %v2723_v39 = vadd.f32 %v1845_v34, %v1844_v24  ;;  %v2725_v48 = vadd.f32 %v1927_v35, %v1926_v25 }
 0x141   : > { %v1847_v54 = vpop.f32.mrb[36].mxu0  ;;  %v1929_v55 = vpop.f32.mrb[36].mxu1 }
 0x142   : > { %v1848_v10 = vpop.f32.mrb[37].mxu0  ;;  %v1930_v12 = vpop.f32.mrb[37].mxu1 }
 0x143   : > { %v2729_v11 = vadd.f32 %v1848_v10, %v1847_v54  ;;  %v2731_v13 = vadd.f32 %v1930_v12, %v1929_v55  ;;  %v1850_v63 = vpop.f32.mrb[38].mxu0  ;;  %v1932_v60 = vpop.f32.mrb[38].mxu1 }
 0x144   : > { %v1851_v33 = vpop.f32.mrb[39].mxu0  ;;  %v1933_v26 = vpop.f32.mrb[39].mxu1 }
 0x145   : > { %v2735_v25 = vadd.f32 %v1851_v33, %v1850_v63  ;;  %v2737_v34 = vadd.f32 %v1933_v26, %v1932_v60 }
 0x149   : > { %v1853_v49 = vpop.f32.mrb[40].mxu0  ;;  %v1935_v38 = vpop.f32.mrb[40].mxu1 }
 0x14a   : > { %v1854_v54 = vpop.f32.mrb[41].mxu0  ;;  %v1936_v10 = vpop.f32.mrb[41].mxu1 }
 0x14b   : > { %v2741_v55 = vadd.f32 %v1854_v54, %v1853_v49  ;;  %v2743_v12 = vadd.f32 %v1936_v10, %v1935_v38  ;;  %v1856_v7 = vpop.f32.mrb[42].mxu0  ;;  %v1938_v4 = vpop.f32.mrb[42].mxu1 }
 0x14c   : > { %v1857_v47 = vpop.f32.mrb[43].mxu0  ;;  %v1939_v42 = vpop.f32.mrb[43].mxu1 }
 0x14d   : > { %v2747_v26 = vadd.f32 %v1857_v47, %v1856_v7  ;;  %v2749_v60 = vadd.f32 %v1939_v42, %v1938_v4  ;;  %v2759_v4 = vld [vmem:[%s2879_s2] ss:$0 sm:$0xff] }
 0x151   : > { %v1957_v35 = vpop.f32.mrb[44].mxu0  ;;  %v2039_v24 = vpop.f32.mrb[44].mxu1 }
 0x152   : > { %v1958_v49 = vpop.f32.mrb[45].mxu0  ;;  %v2040_v54 = vpop.f32.mrb[45].mxu1 }
 0x153   : > { %v1959_v38 = vadd.f32 %v1958_v49, %v1957_v35  ;;  %v2041_v10 = vadd.f32 %v2040_v54, %v2039_v24  ;;  %v1960_v31 = vpop.f32.mrb[46].mxu0  ;;  %v2042_v28 = vpop.f32.mrb[46].mxu1 }
 0x154   : > { %v1961_v17 = vpop.f32.mrb[47].mxu0  ;;  %v2043_v14 = vpop.f32.mrb[47].mxu1 }
 0x155   : > { %v1083_v47 = vmax.f32 %v807_v50, %v1959_v38  ;;  %v1962_v7 = vadd.f32 %v1961_v17, %v1960_v31  ;;  %v2044_v42 = vadd.f32 %v2043_v14, %v2042_v28 }
 0x157   : > { %v1359_v63 = vmax.f32 %v1083_v47, %v2041_v10  ;;  %v1084_v24 = vmax.f32 %v808_v53, %v1962_v7 }
 0x159   : > { %v1388_v35 = vadd.f32 %v2759_v4, %v1359_v63  ;;  %v1360_v49 = vmax.f32 %v1084_v24, %v2044_v42  ;;  %v1963_v54 = vpop.f32.mrb[48].mxu0  ;;  %v2045_v33 = vpop.f32.mrb[48].mxu1  ;;  %v2882_v24 = vmax.f32 %v2639_v1, %v2641_v2  ;;  %v2883_v2 = vmax.f32 %v2645_v8, %v2647_v9 }
 0x15a   : > { %v1964_v3 = vpop.f32.mrb[49].mxu0  ;;  %v2046_v44 = vpop.f32.mrb[49].mxu1 }
 0x15b   : > { %v1410_v45 = vsub.f32 0.0, %v1388_v35  ;;  %v1389_v50 = vadd.f32 %v2759_v4, %v1360_v49  ;;  %v1965_v14 = vadd.f32 %v1964_v3, %v1963_v54  ;;  %v2047_v17 = vadd.f32 %v2046_v44, %v2045_v33  ;;  %v1966_v28 = vpop.f32.mrb[50].mxu0  ;;  %v2048_v31 = vpop.f32.mrb[50].mxu1 }
 0x15c   : > { %v1967_v38 = vpop.f32.mrb[51].mxu0  ;;  %v2049_v10 = vpop.f32.mrb[51].mxu1 }
 0x15d   : > { %v1432_v47 = vmul.f32 1.442695, %v1410_v45  ;;  %v1411_v0 = vsub.f32 0.0, %v1389_v50  ;;  %v1085_v52 = vmax.f32 %v2881_v51, %v1965_v14  ;;  %v1968_v53 = vadd.f32 %v1967_v38, %v1966_v28 }
 0x15e   : > { %v2050_v63 = vadd.f32 %v2049_v10, %v2048_v31 }
 0x15f   : > { %2263 = vpow2.f32 %v1432_v47  ;;  %v1434_v7 = vmul.f32 1.442695, %v1411_v0  ;;  %v1361_v42 = vmax.f32 %v1085_v52, %v2047_v17  ;;  %v1086_v3 = vmax.f32 %v2882_v24, %v1968_v53 }
 0x161   : > { %2265 = vpow2.f32 %v1434_v7  ;;  %v1390_v33 = vadd.f32 %v2759_v4, %v1361_v42  ;;  %v1362_v35 = vmax.f32 %v1086_v3, %v2050_v63  ;;  %v1969_v49 = vpop.f32.mrb[52].mxu0  ;;  %v2051_v54 = vpop.f32.mrb[52].mxu1  ;;  %v2884_v63 = vmax.f32 %v2651_v15, %v2653_v16 }
 0x162   : > { %v1970_v44 = vpop.f32.mrb[53].mxu0  ;;  %v2052_v45 = vpop.f32.mrb[53].mxu1 }
 0x163   : > { %v1412_v50 = vsub.f32 0.0, %v1390_v33  ;;  %v1391_v58 = vadd.f32 %v2759_v4, %v1362_v35  ;;  %v1971_v59 = vadd.f32 %v1970_v44, %v1969_v49  ;;  %v2053_v14 = vadd.f32 %v2052_v45, %v2051_v54  ;;  %v1972_v28 = vpop.f32.mrb[54].mxu0  ;;  %v2054_v0 = vpop.f32.mrb[54].mxu1 }
 0x164   : > { %v1973_v17 = vpop.f32.mrb[55].mxu0  ;;  %v2055_v31 = vpop.f32.mrb[55].mxu1 }
 0x165   : > { %v1436_v38 = vmul.f32 1.442695, %v1412_v50  ;;  %v1413_v1 = vsub.f32 0.0, %v1391_v58  ;;  %v1087_v10 = vmax.f32 %v2883_v2, %v1971_v59  ;;  %v1974_v47 = vadd.f32 %v1973_v17, %v1972_v28 }
 0x166   : > { %v2056_v51 = vadd.f32 %v2055_v31, %v2054_v0  ;;  %v2885_v31 = vmax.f32 %v2657_v22, %v2659_v23 }
 0x167   : > { %2267 = vpow2.f32 %v1436_v38  ;;  %v1438_v52 = vmul.f32 1.442695, %v1413_v1  ;;  %v1363_v53 = vmax.f32 %v1087_v10, %v2053_v14  ;;  %v1088_v7 = vmax.f32 %v2884_v63, %v1974_v47 }
 0x169   : > { %v2264_v42 = vpop.eup %2263  ;;  %2269 = vpow2.f32 %v1438_v52  ;;  %v1392_v24 = vadd.f32 %v2759_v4, %v1363_v53  ;;  %v1364_v3 = vmax.f32 %v1088_v7, %v2056_v51  ;;  %v1975_v33 = vpop.f32.mrb[56].mxu0  ;;  %v2886_v51 = vmax.f32 %v2663_v29, %v2665_v30 }
 0x16a   : > { %v2057_v35 = vpop.f32.mrb[56].mxu1  ;;  %v1476_v49 = vadd.f32 1.0, %v2264_v42  ;;  %v1976_v54 = vpop.f32.mrb[57].mxu0 }
 0x16b   : > { %v2058_v8 = vpop.f32.mrb[57].mxu1  ;;  %v2266_v9 = vpop.eup %2265  ;;  %v1414_v44 = vsub.f32 0.0, %v1392_v24  ;;  %v1393_v45 = vadd.f32 %v2759_v4, %v1364_v3  ;;  %v1977_v50 = vadd.f32 %v1976_v54, %v1975_v33 }
 0x16c   : > { %v2059_v58 = vadd.f32 %v2058_v8, %v2057_v35  ;;  %v1978_v59 = vpop.f32.mrb[58].mxu0  ;;  %v2060_v15 = vpop.f32.mrb[58].mxu1  ;;  %2271 = vrcp.f32 %v1476_v49  ;;  %v1477_v16 = vadd.f32 1.0, %v2266_v9 }
 0x16d   : > { %v1979_v14 = vpop.f32.mrb[59].mxu0  ;;  %v2061_v28 = vpop.f32.mrb[59].mxu1  ;;  %v1440_v0 = vmul.f32 1.442695, %v1414_v44  ;;  %v1415_v17 = vsub.f32 0.0, %v1393_v45  ;;  %v1089_v38 = vmax.f32 %v2885_v31, %v1977_v50  ;;  %v2888_v31 = vmax.f32 %v2675_v43, %v2677_v46 }
 0x16e   : > { %v1980_v1 = vadd.f32 %v1979_v14, %v1978_v59  ;;  %2273 = vrcp.f32 %v1477_v16  ;;  %v2062_v2 = vadd.f32 %v2061_v28, %v2060_v15  ;;  %v2887_v59 = vmax.f32 %v2669_v36, %v2671_v37 }
 0x16f   : > { %2275 = vpow2.f32 %v1440_v0  ;;  %v1442_v10 = vmul.f32 1.442695, %v1415_v17  ;;  %v1365_v47 = vmax.f32 %v1089_v38, %v2059_v58 }
 0x170   : > { %v1090_v52 = vmax.f32 %v2886_v51, %v1980_v1 }
 0x171   : > { %v2268_v53 = vpop.eup %2267  ;;  %2277 = vpow2.f32 %v1442_v10  ;;  %v1394_v63 = vadd.f32 %v2759_v4, %v1365_v47  ;;  %v1981_v42 = vpop.f32.mrb[60].mxu0 }
 0x172   : > { %v1366_v7 = vmax.f32 %v1090_v52, %v2062_v2  ;;  %v2063_v24 = vpop.f32.mrb[60].mxu1  ;;  %v1478_v22 = vadd.f32 1.0, %v2268_v53  ;;  %v1982_v23 = vpop.f32.mrb[61].mxu0 }
 0x173   : > { %v2064_v3 = vpop.f32.mrb[61].mxu1  ;;  %v2270_v33 = vpop.eup %2269  ;;  %v1416_v35 = vsub.f32 0.0, %v1394_v63  ;;  %v1983_v54 = vadd.f32 %v1982_v23, %v1981_v42 }
 0x174   : > { %v1395_v49 = vadd.f32 %v2759_v4, %v1366_v7  ;;  %v2065_v8 = vadd.f32 %v2064_v3, %v2063_v24  ;;  %v1984_v9 = vpop.f32.mrb[62].mxu0  ;;  %v2066_v29 = vpop.f32.mrb[62].mxu1  ;;  %2279 = vrcp.f32 %v1478_v22  ;;  %v1479_v30 = vadd.f32 1.0, %v2270_v33 }
 0x175   : > { %v1985_v44 = vpop.f32.mrb[63].mxu0  ;;  %v2067_v45 = vpop.f32.mrb[63].mxu1  ;;  %v1444_v50 = vmul.f32 1.442695, %v1416_v35  ;;  %v1091_v15 = vmax.f32 %v2887_v59, %v1983_v54  ;;  %v2889_v54 = vmax.f32 %v2681_v56, %v2683_v57 }
 0x176   : > { %v1417_v58 = vsub.f32 0.0, %v1395_v49  ;;  %v1986_v16 = vadd.f32 %v1985_v44, %v1984_v9  ;;  %v2272_v14 = vpop.eup %2271  ;;  %2281 = vrcp.f32 %v1479_v30  ;;  %v2068_v28 = vadd.f32 %v2067_v45, %v2066_v29 }
 0x177   : > { %1520 = vst [vmem:[%s2794_s29] sm:$0xff] %v2272_v14  ;;  %2283 = vpow2.f32 %v1444_v50  ;;  %v1367_v17 = vmax.f32 %v1091_v15, %v2065_v8  ;;  %v2890_v50 = vmax.f32 %v2687_v5, %v2689_v6 }
 0x178   : > { %v1446_v0 = vmul.f32 1.442695, %v1417_v58  ;;  %v1092_v38 = vmax.f32 %v2888_v31, %v1986_v16  ;;  %v2274_v1 = vpop.eup %2273 }
 0x179   : > { %v2276_v2 = vpop.eup %2275  ;;  %1521 = vst [vmem:[%s2794_s29 + $0x8] sm:$0xff] %v2274_v1  ;;  %v1396_v10 = vadd.f32 %v2759_v4, %v1367_v17  ;;  %v1987_v37 = vpop.f32.mrb[64].mxu0 }
 0x17a   : > { %2285 = vpow2.f32 %v1446_v0  ;;  %v1368_v36 = vmax.f32 %v1092_v38, %v2068_v28  ;;  %v2069_v47 = vpop.f32.mrb[64].mxu1  ;;  %v1480_v51 = vadd.f32 1.0, %v2276_v2  ;;  %v1988_v52 = vpop.f32.mrb[65].mxu0 }
 0x17b   : > { %v2070_v53 = vpop.f32.mrb[65].mxu1  ;;  %v2278_v63 = vpop.eup %2277  ;;  %v1418_v7 = vsub.f32 0.0, %v1396_v10  ;;  %v1989_v24 = vadd.f32 %v1988_v52, %v1987_v37 }
 0x17c   : > { %v1397_v42 = vadd.f32 %v2759_v4, %v1368_v36  ;;  %v2071_v43 = vadd.f32 %v2070_v53, %v2069_v47  ;;  %v1990_v46 = vpop.f32.mrb[66].mxu0  ;;  %v2072_v22 = vpop.f32.mrb[66].mxu1  ;;  %2287 = vrcp.f32 %v1480_v51  ;;  %v1481_v23 = vadd.f32 1.0, %v2278_v63 }
 0x17d   : > { %v1991_v3 = vpop.f32.mrb[67].mxu0  ;;  %v2073_v33 = vpop.f32.mrb[67].mxu1  ;;  %v1448_v35 = vmul.f32 1.442695, %v1418_v7  ;;  %v1093_v8 = vmax.f32 %v2889_v54, %v1989_v24  ;;  %v2891_v53 = vmax.f32 %v2693_v18, %v2695_v19 }
 0x17e   : > { %v1419_v49 = vsub.f32 0.0, %v1397_v42  ;;  %v1992_v9 = vadd.f32 %v1991_v3, %v1990_v46  ;;  %v2280_v29 = vpop.eup %2279  ;;  %2289 = vrcp.f32 %v1481_v23  ;;  %v2074_v30 = vadd.f32 %v2073_v33, %v2072_v22 }
 0x17f   : > { %1522 = vst [vmem:[%s2794_s29 + $0x10] sm:$0xff] %v2280_v29  ;;  %2291 = vpow2.f32 %v1448_v35  ;;  %v1369_v45 = vmax.f32 %v1093_v8, %v2071_v43  ;;  %v2892_v22 = vmax.f32 %v2699_v27, %v2701_v32 }
 0x180   : > { %v1450_v44 = vmul.f32 1.442695, %v1419_v49  ;;  %v1094_v58 = vmax.f32 %v2890_v50, %v1992_v9  ;;  %v2282_v59 = vpop.eup %2281 }
 0x181   : > { %v2284_v15 = vpop.eup %2283  ;;  %1523 = vst [vmem:[%s2794_s29 + $0x18] sm:$0xff] %v2282_v59  ;;  %v1398_v16 = vadd.f32 %v2759_v4, %v1369_v45  ;;  %v1993_v57 = vpop.f32.mrb[68].mxu0 }
 0x182   : > { %2293 = vpow2.f32 %v1450_v44  ;;  %v1370_v56 = vmax.f32 %v1094_v58, %v2074_v30  ;;  %v2075_v14 = vpop.f32.mrb[68].mxu1  ;;  %v1482_v28 = vadd.f32 1.0, %v2284_v15  ;;  %v1994_v0 = vpop.f32.mrb[69].mxu0 }
 0x183   : > { %v2076_v17 = vpop.f32.mrb[69].mxu1  ;;  %v1420_v38 = vsub.f32 0.0, %v1398_v16  ;;  %v1995_v2 = vadd.f32 %v1994_v0, %v1993_v57  ;;  %v1996_v6 = vpop.f32.mrb[70].mxu0  ;;  %v2893_v57 = vmax.f32 %v2705_v40, %v2707_v41 }
 0x184   : > { %v2286_v31 = vpop.eup %2285  ;;  %v1399_v1 = vadd.f32 %v2759_v4, %v1370_v56  ;;  %v2077_v5 = vadd.f32 %v2076_v17, %v2075_v14  ;;  %v2078_v10 = vpop.f32.mrb[70].mxu1  ;;  %2295 = vrcp.f32 %v1482_v28 }
 0x185   : > { %v1483_v36 = vadd.f32 1.0, %v2286_v31  ;;  %v1997_v37 = vpop.f32.mrb[71].mxu0  ;;  %v2079_v47 = vpop.f32.mrb[71].mxu1  ;;  %v1452_v51 = vmul.f32 1.442695, %v1420_v38  ;;  %v1095_v63 = vmax.f32 %v2891_v53, %v1995_v2 }
 0x186   : > { %v1421_v52 = vsub.f32 0.0, %v1399_v1  ;;  %v1998_v7 = vadd.f32 %v1997_v37, %v1996_v6  ;;  %v2288_v42 = vpop.eup %2287  ;;  %v2080_v24 = vadd.f32 %v2079_v47, %v2078_v10  ;;  %v2894_v1 = vmax.f32 %v2711_v61, %v2713_v62 }
 0x187   : > { %2297 = vrcp.f32 %v1483_v36  ;;  %1524 = vst [vmem:[%s2794_s29 + $0x20] sm:$0xff] %v2288_v42  ;;  %v1371_v46 = vmax.f32 %v1095_v63, %v2077_v5 }
 0x188   : > { %2299 = vpow2.f32 %v1452_v51  ;;  %v1454_v43 = vmul.f32 1.442695, %v1421_v52  ;;  %v1096_v23 = vmax.f32 %v2892_v22, %v1998_v7  ;;  %v2290_v3 = vpop.eup %2289 }
 0x189   : > { %v2292_v33 = vpop.eup %2291  ;;  %1525 = vst [vmem:[%s2794_s29 + $0x28] sm:$0xff] %v2290_v3  ;;  %v1400_v35 = vadd.f32 %v2759_v4, %v1371_v46  ;;  %v1999_v19 = vpop.f32.mrb[72].mxu0  ;;  %v2895_v3 = vmax.f32 %v2717_v20, %v2719_v21 }
 0x18a   : > { %2301 = vpow2.f32 %v1454_v43  ;;  %v1372_v18 = vmax.f32 %v1096_v23, %v2080_v24  ;;  %v2081_v49 = vpop.f32.mrb[72].mxu1  ;;  %v1484_v54 = vadd.f32 1.0, %v2292_v33  ;;  %v2000_v8 = vpop.f32.mrb[73].mxu0 }
 0x18b   : > { %v2082_v9 = vpop.f32.mrb[73].mxu1  ;;  %v1422_v30 = vsub.f32 0.0, %v1400_v35  ;;  %v2001_v45 = vadd.f32 %v2000_v8, %v1999_v19  ;;  %v2002_v32 = vpop.f32.mrb[74].mxu0  ;;  %v2896_v8 = vmax.f32 %v2723_v39, %v2725_v48 }
 0x18c   : > { %v2294_v29 = vpop.eup %2293  ;;  %v1401_v44 = vadd.f32 %v2759_v4, %v1372_v18  ;;  %v2083_v27 = vadd.f32 %v2082_v9, %v2081_v49  ;;  %v2084_v50 = vpop.f32.mrb[74].mxu1  ;;  %2303 = vrcp.f32 %v1484_v54 }
 0x18d   : > { %v1485_v58 = vadd.f32 1.0, %v2294_v29  ;;  %v2003_v59 = vpop.f32.mrb[75].mxu0  ;;  %v2085_v15 = vpop.f32.mrb[75].mxu1  ;;  %v1456_v16 = vmul.f32 1.442695, %v1422_v30  ;;  %v1097_v14 = vmax.f32 %v2893_v57, %v2001_v45 }
 0x18e   : > { %v1423_v56 = vsub.f32 0.0, %v1401_v44  ;;  %v2004_v28 = vadd.f32 %v2003_v59, %v2002_v32  ;;  %v2296_v0 = vpop.eup %2295  ;;  %v2086_v17 = vadd.f32 %v2085_v15, %v2084_v50 }
 0x18f   : > { %2305 = vrcp.f32 %v1485_v58  ;;  %1526 = vst [vmem:[%s2794_s29 + $0x30] sm:$0xff] %v2296_v0  ;;  %v1373_v38 = vmax.f32 %v1097_v14, %v2083_v27 }
 0x190   : > { %2307 = vpow2.f32 %v1456_v16  ;;  %v1458_v31 = vmul.f32 1.442695, %v1423_v56  ;;  %v1098_v2 = vmax.f32 %v2894_v1, %v2004_v28 }
 0x191   : > { %v2298_v5 = vpop.eup %2297  ;;  %v1402_v10 = vadd.f32 %v2759_v4, %v1373_v38  ;;  %v2005_v41 = vpop.f32.mrb[76].mxu0 }
 0x192   : > { %v2300_v6 = vpop.eup %2299  ;;  %1527 = vst [vmem:[%s2794_s29 + $0x38] sm:$0xff] %v2298_v5  ;;  %2309 = vpow2.f32 %v1458_v31  ;;  %v1374_v40 = vmax.f32 %v1098_v2, %v2086_v17  ;;  %v2087_v36 = vpop.f32.mrb[76].mxu1  ;;  %v2897_v31 = vmax.f32 %v2729_v11, %v2731_v13 }
 0x193   : > { %v1486_v37 = vadd.f32 1.0, %v2300_v6  ;;  %v2006_v47 = vpop.f32.mrb[77].mxu0  ;;  %v2088_v51 = vpop.f32.mrb[77].mxu1  ;;  %v1424_v53 = vsub.f32 0.0, %v1402_v10 }
 0x194   : > { %v2302_v52 = vpop.eup %2301  ;;  %v1403_v63 = vadd.f32 %v2759_v4, %v1374_v40  ;;  %v2007_v7 = vadd.f32 %v2006_v47, %v2005_v41  ;;  %v2089_v61 = vadd.f32 %v2088_v51, %v2087_v36  ;;  %v2008_v62 = vpop.f32.mrb[78].mxu0  ;;  %v2898_v40 = vmax.f32 %v2735_v25, %v2737_v34 }
 0x195   : > { %v2090_v42 = vpop.f32.mrb[78].mxu1  ;;  %2311 = vrcp.f32 %v1486_v37  ;;  %v1487_v24 = vadd.f32 1.0, %v2302_v52  ;;  %v2009_v43 = vpop.f32.mrb[79].mxu0  ;;  %v1460_v22 = vmul.f32 1.442695, %v1424_v53 }
 0x196   : > { %v2091_v46 = vpop.f32.mrb[79].mxu1  ;;  %v1425_v23 = vsub.f32 0.0, %v1403_v63  ;;  %v1099_v33 = vmax.f32 %v2895_v3, %v2007_v7  ;;  %v2010_v35 = vadd.f32 %v2009_v43, %v2008_v62  ;;  %v2304_v18 = vpop.eup %2303 }
 0x197   : > { %2313 = vrcp.f32 %v1487_v24  ;;  %v2092_v19 = vadd.f32 %v2091_v46, %v2090_v42  ;;  %1528 = vst [vmem:[%s2794_s29 + $0x40] sm:$0xff] %v2304_v18 }
 0x198   : > { %2315 = vpow2.f32 %v1460_v22  ;;  %v1462_v49 = vmul.f32 1.442695, %v1425_v23  ;;  %v1375_v54 = vmax.f32 %v1099_v33, %v2089_v61  ;;  %v1100_v9 = vmax.f32 %v2896_v8, %v2010_v35 }
 0x199   : > { %v2306_v29 = vpop.eup %2305  ;;  %v2011_v21 = vpop.f32.mrb[80].mxu0  ;;  %v2899_v33 = vmax.f32 %v2741_v55, %v2743_v12 }
 0x19a   : > { %v2308_v30 = vpop.eup %2307  ;;  %1529 = vst [vmem:[%s2794_s29 + $0x48] sm:$0xff] %v2306_v29  ;;  %2317 = vpow2.f32 %v1462_v49  ;;  %v1404_v44 = vadd.f32 %v2759_v4, %v1375_v54  ;;  %v1376_v20 = vmax.f32 %v1100_v9, %v2092_v19  ;;  %v2093_v45 = vpop.f32.mrb[80].mxu1  ;;  %v2900_v9 = vmax.f32 %v2747_v26, %v2749_v60 }
 0x19b   : > { %v1488_v27 = vadd.f32 1.0, %v2308_v30  ;;  %v2012_v32 = vpop.f32.mrb[81].mxu0  ;;  %v2094_v50 = vpop.f32.mrb[81].mxu1 }
 0x19c   : > { %v2310_v58 = vpop.eup %2309  ;;  %v1426_v59 = vsub.f32 0.0, %v1404_v44  ;;  %v1405_v15 = vadd.f32 %v2759_v4, %v1376_v20  ;;  %v2013_v16 = vadd.f32 %v2012_v32, %v2011_v21  ;;  %v2095_v39 = vadd.f32 %v2094_v50, %v2093_v45  ;;  %v2014_v48 = vpop.f32.mrb[82].mxu0 }
 0x19d   : > { %v2096_v56 = vpop.f32.mrb[82].mxu1  ;;  %2319 = vrcp.f32 %v1488_v27  ;;  %v1489_v57 = vadd.f32 1.0, %v2310_v58  ;;  %v2015_v14 = vpop.f32.mrb[83].mxu0 }
 0x19e   : > { %v2097_v28 = vpop.f32.mrb[83].mxu1  ;;  %v1464_v0 = vmul.f32 1.442695, %v1426_v59  ;;  %v1427_v17 = vsub.f32 0.0, %v1405_v15  ;;  %v1101_v38 = vmax.f32 %v2897_v31, %v2013_v16  ;;  %v2016_v1 = vadd.f32 %v2015_v14, %v2014_v48 }
 0x19f   : > { %v2312_v2 = vpop.eup %2311  ;;  %2321 = vrcp.f32 %v1489_v57  ;;  %v2098_v5 = vadd.f32 %v2097_v28, %v2096_v56 }
 0x1a0   : > { %1530 = vst [vmem:[%s2794_s29 + $0x50] sm:$0xff] %v2312_v2  ;;  %2323 = vpow2.f32 %v1464_v0  ;;  %v1466_v6 = vmul.f32 1.442695, %v1427_v17  ;;  %v1377_v10 = vmax.f32 %v1101_v38, %v2095_v39  ;;  %v1102_v41 = vmax.f32 %v2898_v40, %v2016_v1 }
 0x1a1   : > { %v2314_v36 = vpop.eup %2313  ;;  %v2017_v13 = vpop.f32.mrb[84].mxu0 }
 0x1a2   : > { %v2316_v37 = vpop.eup %2315  ;;  %1531 = vst [vmem:[%s2794_s29 + $0x58] sm:$0xff] %v2314_v36  ;;  %2325 = vpow2.f32 %v1466_v6  ;;  %v1406_v47 = vadd.f32 %v2759_v4, %v1377_v10  ;;  %v1378_v11 = vmax.f32 %v1102_v41, %v2098_v5  ;;  %v2099_v51 = vpop.f32.mrb[84].mxu1 }
 0x1a3   : > { %v1490_v52 = vadd.f32 1.0, %v2316_v37  ;;  %v2018_v53 = vpop.f32.mrb[85].mxu0  ;;  %v2100_v63 = vpop.f32.mrb[85].mxu1 }
 0x1a4   : > { %v2318_v7 = vpop.eup %2317  ;;  %v1428_v61 = vsub.f32 0.0, %v1406_v47  ;;  %v1407_v62 = vadd.f32 %v2759_v4, %v1378_v11  ;;  %v2019_v42 = vadd.f32 %v2018_v53, %v2017_v13  ;;  %v2101_v25 = vadd.f32 %v2100_v63, %v2099_v51  ;;  %v2020_v34 = vpop.f32.mrb[86].mxu0 }
 0x1a5   : > { %v2102_v24 = vpop.f32.mrb[86].mxu1  ;;  %2327 = vrcp.f32 %v1490_v52  ;;  %v1491_v43 = vadd.f32 1.0, %v2318_v7  ;;  %v2021_v46 = vpop.f32.mrb[87].mxu0 }
 0x1a6   : > { %v2103_v22 = vpop.f32.mrb[87].mxu1  ;;  %v1468_v23 = vmul.f32 1.442695, %v1428_v61  ;;  %v1429_v3 = vsub.f32 0.0, %v1407_v62  ;;  %v1103_v35 = vmax.f32 %v2899_v33, %v2019_v42  ;;  %v2022_v18 = vadd.f32 %v2021_v46, %v2020_v34 }
 0x1a7   : > { %v2320_v19 = vpop.eup %2319  ;;  %2329 = vrcp.f32 %v1491_v43  ;;  %v2104_v49 = vadd.f32 %v2103_v22, %v2102_v24 }
 0x1a8   : > { %1532 = vst [vmem:[%s2794_s29 + $0x60] sm:$0xff] %v2320_v19  ;;  %2331 = vpow2.f32 %v1468_v23  ;;  %v1470_v54 = vmul.f32 1.442695, %v1429_v3  ;;  %v1379_v8 = vmax.f32 %v1103_v35, %v2101_v25  ;;  %v1104_v29 = vmax.f32 %v2900_v9, %v2022_v18 }
 0x1a9   : > { %v2322_v30 = vpop.eup %2321 }
 0x1aa   : > { %v2324_v44 = vpop.eup %2323  ;;  %1533 = vst [vmem:[%s2794_s29 + $0x68] sm:$0xff] %v2322_v30  ;;  %2333 = vpow2.f32 %v1470_v54  ;;  %v1408_v55 = vadd.f32 %v2759_v4, %v1379_v8  ;;  %v1380_v12 = vmax.f32 %v1104_v29, %v2104_v49 }
 0x1ab   : > { %v1492_v20 = vadd.f32 1.0, %v2324_v44 }
 0x1ac   : > { %v2326_v21 = vpop.eup %2325  ;;  %v1430_v45 = vsub.f32 0.0, %v1408_v55  ;;  %v1409_v27 = vadd.f32 %v2759_v4, %v1380_v12 }
 0x1ad   : > { %2335 = vrcp.f32 %v1492_v20  ;;  %v1493_v32 = vadd.f32 1.0, %v2326_v21 }
 0x1ae   : > { %v1472_v50 = vmul.f32 1.442695, %v1430_v45  ;;  %v1431_v58 = vsub.f32 0.0, %v1409_v27 }
 0x1af   : > { %v2328_v26 = vpop.eup %2327  ;;  %2337 = vrcp.f32 %v1493_v32 }
 0x1b0   : > { %1534 = vst [vmem:[%s2794_s29 + $0x70] sm:$0xff] %v2328_v26  ;;  %2339 = vpow2.f32 %v1472_v50  ;;  %v1474_v60 = vmul.f32 1.442695, %v1431_v58 }
 0x1b1   : > { %v2330_v59 = vpop.eup %2329 }
 0x1b2   : > { %v2332_v15 = vpop.eup %2331  ;;  %1535 = vst [vmem:[%s2794_s29 + $0x78] sm:$0xff] %v2330_v59  ;;  %2341 = vpow2.f32 %v1474_v60 }
 0x1b3   : > { %v1494_v16 = vadd.f32 1.0, %v2332_v15 }
 0x1b4   : > { %v2334_v39 = vpop.eup %2333 }
 0x1b5   : > { %2343 = vrcp.f32 %v1494_v16  ;;  %v1495_v4 = vadd.f32 1.0, %v2334_v39 }
 0x1b7   : > { %v2336_v48 = vpop.eup %2335  ;;  %2345 = vrcp.f32 %v1495_v4 }
 0x1b8   : > { %1536 = vst [vmem:[%s2794_s29 + $0x80] sm:$0xff] %v2336_v48 }
 0x1b9   : > { %v2338_v56 = vpop.eup %2337 }
 0x1ba   : > { %v2340_v57 = vpop.eup %2339  ;;  %1537 = vst [vmem:[%s2794_s29 + $0x88] sm:$0xff] %v2338_v56 }
 0x1bb   : > { %v1496_v14 = vadd.f32 1.0, %v2340_v57 }
 0x1bc   : > { %v2342_v28 = vpop.eup %2341 }
 0x1bd   : > { %2347 = vrcp.f32 %v1496_v14  ;;  %v1497_v0 = vadd.f32 1.0, %v2342_v28 }
 0x1bf   : > { %v2344_v17 = vpop.eup %2343  ;;  %2349 = vrcp.f32 %v1497_v0 }
 0x1c0   : > { %1538 = vst [vmem:[%s2794_s29 + $0x90] sm:$0xff] %v2344_v17 }
 0x1c1   : > { %v2346_v31 = vpop.eup %2345 }
 0x1c2   : > { %1539 = vst [vmem:[%s2794_s29 + $0x98] sm:$0xff] %v2346_v31 }
 0x1c7   : > { %v2348_v38 = vpop.eup %2347 }
 0x1c8   : > { %1540 = vst [vmem:[%s2794_s29 + $0xa0] sm:$0xff] %v2348_v38 }
 0x1c9   : > { %v2350_v1 = vpop.eup %2349 }
 0x1ca   : > { %1541 = vst [vmem:[%s2794_s29 + $0xa8] sm:$0x1] %v2350_v1 }
 0x1cb PF: > { %s13_s12 = sadd.s32 1, %s2357_s12  }
 0x1cc   : > { %p10_p4 = scmp.ge.s32.totalorder %s13_s12, 4  }
 0x1ce   :  { %12 = sbr.rel (!%p10_p4) target bundleno = 1 (0x1), region = 65 }

// kernel: lenet5_forward.6
= control target key start
LH: loop header
LB: loop body
LE: loop exit
PB: predicated region body
PF: predicated region fallthrough
CT: control target
= control target key end

     0   :  { %s1071_s12 = smov 0   ;;  %s1245_s0 = inlined_call_operand.vmem [shape: bf16[2,81,512], index: 0, kind: input, shape index: {}]   ;;  %s1246_s1 = inlined_call_operand.vmem [shape: bf16[512,128], index: 1, kind: input, shape index: {}]   ;;  %s1247_s2 = inlined_call_operand.vmem [shape: f32[1,128], index: 2, kind: input, shape index: {}]   ;;  %s1248_s3 = inlined_call_operand.vmem [shape: f32[2,81,128], index: 3, kind: output, shape index: {}]  }
   0x1 LB: > { %s797_s13 = sadd.s32 4294967295, %s1049_s12   ;;  %p801_p0 = scmp.ge.s32.totalorder %s1049_s12, 1  ;;  %s1049_s12 = sphi %s1071_s12, %s13_s12  }
   0x2   : > { %p137_p1 = scmp.lt.s32.totalorder %s1049_s12, 3 }
   0x4   : > { %p138_p2 = pnand %p801_p0, %p137_p1 }
   0x5   : > { %v977_v0 = vld [vmem:[%s1246_s1 + $0x40] sm:$0xff] (!%p138_p2)   ;;  %v981_v4 = vld [vmem:[%s1246_s1 + $0x48] sm:$0xff] (!%p138_p2)   ;;  %v985_v8 = vld [vmem:[%s1246_s1 + $0x50] sm:$0xff] (!%p138_p2)   ;;  %p161_p3 = scmp.lt.s32.totalorder (!%p138_p2), %s797_s13, 1 }
   0x6   : > { %141 = sbr.rel (%p138_p2) target bundleno = 299 (0x12b), region = 32  ;;  %v978_v1 = vld [vmem:[%s1246_s1 + $0xc0] sm:$0xff] (!%p138_p2)   ;;  %863 = vmatprep.subr.bf16.mxu0 (!%p138_p2), %v977_v0  ;;  %v982_v5 = vld [vmem:[%s1246_s1 + $0xc8] sm:$0xff] (!%p138_p2)   ;;  %v986_v9 = vld [vmem:[%s1246_s1 + $0xd0] sm:$0xff] (!%p138_p2)  }
   0x7   : > { %v979_v2 = vld [vmem:[%s1246_s1] sm:$0xff] (!%p138_p2)   ;;  %915 = vmatprep.subr.bf16.mxu1 (!%p138_p2), %v978_v1  ;;  %v983_v6 = vld [vmem:[%s1246_s1 + $0x8] sm:$0xff] (!%p138_p2)   ;;  %v987_v10 = vld [vmem:[%s1246_s1 + $0x10] sm:$0xff] (!%p138_p2)  }
   0x8   : > { %v980_v3 = vld [vmem:[%s1246_s1 + $0x80] sm:$0xff] (!%p138_p2)   ;;  %864 = vmatpush3.bf16.msra.mxu0 (!%p138_p2), %v979_v2  ;;  %v984_v7 = vld [vmem:[%s1246_s1 + $0x88] sm:$0xff] (!%p138_p2)   ;;  %v988_v11 = vld [vmem:[%s1246_s1 + $0x90] sm:$0xff] (!%p138_p2)  }
   0x9   : > { %916 = vmatpush3.bf16.msra.mxu1 (!%p138_p2), %v980_v3  ;;  %865 = vmatprep.subr.bf16.mxu0 (!%p138_p2), %v981_v4  ;;  %v989_v12 = vld [vmem:[%s1246_s1 + $0x58] sm:$0xff] (!%p138_p2)   ;;  %v993_v16 = vld [vmem:[%s1246_s1 + $0x60] sm:$0xff] (!%p138_p2)   ;;  %v997_v20 = vld [vmem:[%s1246_s1 + $0x68] sm:$0xff] (!%p138_p2)  }
   0xa   : > { %917 = vmatprep.subr.bf16.mxu1 (!%p138_p2), %v982_v5  ;;  %v990_v13 = vld [vmem:[%s1246_s1 + $0xd8] sm:$0xff] (!%p138_p2)   ;;  %v994_v17 = vld [vmem:[%s1246_s1 + $0xe0] sm:$0xff] (!%p138_p2)   ;;  %v998_v21 = vld [vmem:[%s1246_s1 + $0xe8] sm:$0xff] (!%p138_p2)  }
   0xb   : > { %v991_v14 = vld [vmem:[%s1246_s1 + $0x18] sm:$0xff] (!%p138_p2)   ;;  %v995_v18 = vld [vmem:[%s1246_s1 + $0x20] sm:$0xff] (!%p138_p2)   ;;  %v999_v22 = vld [vmem:[%s1246_s1 + $0x28] sm:$0xff] (!%p138_p2)  }
   0xc   : > { %866 = vmatpush3.bf16.msra.mxu0 (!%p138_p2), %v983_v6  ;;  %v992_v15 = vld [vmem:[%s1246_s1 + $0x98] sm:$0xff] (!%p138_p2)   ;;  %v996_v19 = vld [vmem:[%s1246_s1 + $0xa0] sm:$0xff] (!%p138_p2)   ;;  %v1000_v23 = vld [vmem:[%s1246_s1 + $0xa8] sm:$0xff] (!%p138_p2)  }
   0xd   : > { %918 = vmatpush3.bf16.msra.mxu1 %v984_v7  ;;  %867 = vmatprep.subr.bf16.mxu0 %v985_v8  ;;  %s1250_s13 = smov (!%p161_p3, %s797_s13), 1  ;;  %v1001_v24 = vld [vmem:[%s1246_s1 + $0x70] sm:$0xff]   ;;  %v1005_v28 = vld [vmem:[%s1246_s1 + $0x78] sm:$0xff]   ;;  %v1212_v60 = vld [vmem:[%s1247_s2] ss:$0 sm:$0xff] }
   0xe   : > { %919 = vmatprep.subr.bf16.mxu1 %v986_v9  ;;  %v1002_v25 = vld [vmem:[%s1246_s1 + $0xf0] sm:$0xff]   ;;  %s967_s16 = smul.u32 176, %s1250_s13  ;;  %v1006_v29 = vld [vmem:[%s1246_s1 + $0xf8] sm:$0xff]  }
   0xf   : > { %v1003_v26 = vld [vmem:[%s1246_s1 + $0x30] sm:$0xff]   ;;  %v1007_v30 = vld [vmem:[%s1246_s1 + $0x38] sm:$0xff]   ;;  %s968_s7 = smul.u32 88, %s1250_s13 }
  0x10   : > { %868 = vmatpush3.bf16.msra.mxu0 %v987_v10  ;;  %v1004_v27 = vld [vmem:[%s1246_s1 + $0xb0] sm:$0xff]   ;;  %s1179_s27 = scalar_lea.vmem %s1245_s0, %s967_s16  ;;  %v1008_v31 = vld [vmem:[%s1246_s1 + $0xb8] sm:$0xff]  }
  0x11   : > { %920 = vmatpush3.bf16.msra.mxu1 %v988_v11  ;;  %869 = vmatprep.subr.bf16.mxu0 %v989_v12  ;;  %v1009_v32 = vld [vmem:[%s1179_s27] ss:$16 sps:$4 sm:$0xff]   ;;  %v1011_v33 = vld [vmem:[%s1179_s27 + $0x4] ss:$16 sps:$4 sm:$0xff]   ;;  %v1012_v34 = vld [vmem:[%s1179_s27 + $0x8] ss:$16 sps:$4 sm:$0xff]   ;;  %s1219_s10 = scalar_lea.vmem %s1248_s3, %s968_s7 }
  0x12   : > { %921 = vmatprep.subr.bf16.mxu1 %v990_v13  ;;  %v1014_v35 = vld [vmem:[%s1179_s27 + $0xc] ss:$16 sps:$4 sm:$0xff]   ;;  %603 = vmatprep.mubr.bf16.mxu0 %v1011_v33  ;;  %v1015_v36 = vld [vmem:[%s1179_s27 + $0x24] ss:$16 sps:$4 sm:$0xff]   ;;  %v1019_v38 = vld [vmem:[%s1179_s27 + $0x20] ss:$16 sps:$4 sm:$0xff]  }
  0x13   : > { %683 = vmatprep.mubr.bf16.mxu1 %v1014_v35  ;;  %v1017_v37 = vld [vmem:[%s1179_s27 + $0x2c] ss:$16 sps:$4 sm:$0xff]   ;;  %v1020_v39 = vld [vmem:[%s1179_s27 + $0x28] ss:$16 sps:$4 sm:$0xff]   ;;  %v1021_v40 = vld [vmem:[%s1179_s27 + $0x44] ss:$16 sps:$4 sm:$0xff]  }
  0x14   : > { %870 = vmatpush3.bf16.msra.mxu0 %v991_v14  ;;  %v1023_v41 = vld [vmem:[%s1179_s27 + $0x4c] ss:$16 sps:$4 sm:$0xff]   ;;  %v1025_v42 = vld [vmem:[%s1179_s27 + $0x40] ss:$16 sps:$4 sm:$0xff]   ;;  %v1026_v43 = vld [vmem:[%s1179_s27 + $0x48] ss:$16 sps:$4 sm:$0xff]  }
  0x15   : > { %922 = vmatpush3.bf16.msra.mxu1 %v992_v15  ;;  %871 = vmatprep.subr.bf16.mxu0 %v993_v16  ;;  %v1027_v44 = vld [vmem:[%s1179_s27 + $0x64] ss:$16 sps:$4 sm:$0xff]   ;;  %v1029_v45 = vld [vmem:[%s1179_s27 + $0x6c] ss:$16 sps:$4 sm:$0xff]   ;;  %v1031_v46 = vld [vmem:[%s1179_s27 + $0x60] ss:$16 sps:$4 sm:$0xff]  }
  0x16   : > { %923 = vmatprep.subr.bf16.mxu1 %v994_v17  ;;  %v1032_v47 = vld [vmem:[%s1179_s27 + $0x68] ss:$16 sps:$4 sm:$0xff]   ;;  %v1033_v48 = vld [vmem:[%s1179_s27 + $0x84] ss:$16 sps:$4 sm:$0xff]   ;;  %v1035_v49 = vld [vmem:[%s1179_s27 + $0x8c] ss:$16 sps:$4 sm:$0xff]  }
  0x17   : > { %v192_v50 = vld [vmem:[%s1179_s27 + $0xa0] sm:$0x11]  ;;  %v193_v51 = vld [vmem:[%s1179_s27 + $0xa8] sm:$0x11] }
  0x18   : > { %872 = vmatpush3.bf16.msra.mxu0 %v995_v18  ;;  %v1037_v52 = vld [vmem:[%s1179_s27 + $0x80] ss:$16 sps:$4 sm:$0xff]   ;;  %v1038_v53 = vld [vmem:[%s1179_s27 + $0x88] ss:$16 sps:$4 sm:$0xff]   ;;  %v826_v54 = vcombine.high %v192_v50, %v192_v50  ;;  %v828_v55 = vcombine.high %v193_v51, %v193_v51  ;;  %v825_v56 = vcombine.low %v192_v50, %v192_v50  ;;  %v827_v57 = vcombine.low %v193_v51, %v193_v51 }
  0x19   : > { %924 = vmatpush3.bf16.msra.mxu1 %v996_v19  ;;  %873 = vmatprep.subr.bf16.mxu0 %v997_v20 }
  0x1a   : > { %925 = vmatprep.subr.bf16.mxu1 %v998_v21 }
  0x1c   : > { %874 = vmatpush3.bf16.msra.mxu0 %v999_v22 }
  0x1d   : > { %926 = vmatpush3.bf16.msra.mxu1 %v1000_v23  ;;  %875 = vmatprep.subr.bf16.mxu0 %v1001_v24 }
  0x1e   : > { %927 = vmatprep.subr.bf16.mxu1 %v1002_v25 }
  0x20   : > { %876 = vmatpush3.bf16.msra.mxu0 %v1003_v26 }
  0x21   : > { %928 = vmatpush3.bf16.msra.mxu1 %v1004_v27  ;;  %877 = vmatprep.subr.bf16.mxu0 %v1005_v28 }
  0x22   : > { %929 = vmatprep.subr.bf16.mxu1 %v1006_v29 }
  0x24   : > { %878 = vmatpush3.bf16.msra.mxu0 %v1007_v30 }
  0x25   : > { %930 = vmatpush3.bf16.msra.mxu1 %v1008_v31 }
  0x27   : > { %604 = vmatmul.mubr.bf16.vlgmr.msra.gmra.mrb[0].mxu0 %v1009_v32 }
  0x28   : > { %684 = vmatmul.mubr.bf16.vlgmr.msra.gmra.mrb[0].mxu1 %v1012_v34  ;;  %611 = vmatprep.mubr.bf16.mxu0 %v1015_v36 }
  0x29   : > { %691 = vmatprep.mubr.bf16.mxu1 %v1017_v37 }
  0x2f   : > { %612 = vmatmul.mubr.bf16.gmra.mrb[4].mxu0 %v1019_v38 }
  0x30   : > { %692 = vmatmul.mubr.bf16.gmra.mrb[4].mxu1 %v1020_v39  ;;  %619 = vmatprep.mubr.bf16.mxu0 %v1021_v40 }
  0x31   : > { %699 = vmatprep.mubr.bf16.mxu1 %v1023_v41 }
  0x37   : > { %620 = vmatmul.mubr.bf16.gmra.mrb[8].mxu0 %v1025_v42 }
  0x38   : > { %700 = vmatmul.mubr.bf16.gmra.mrb[8].mxu1 %v1026_v43  ;;  %627 = vmatprep.mubr.bf16.mxu0 %v1027_v44 }
  0x39   : > { %707 = vmatprep.mubr.bf16.mxu1 %v1029_v45 }
  0x3f   : > { %628 = vmatmul.mubr.bf16.gmra.mrb[12].mxu0 %v1031_v46 }
  0x40   : > { %708 = vmatmul.mubr.bf16.gmra.mrb[12].mxu1 %v1032_v47  ;;  %635 = vmatprep.mubr.bf16.mxu0 %v1033_v48 }
  0x41   : > { %715 = vmatprep.mubr.bf16.mxu1 %v1035_v49 }
  0x47   : > { %636 = vmatmul.mubr.bf16.gmra.mrb[16].mxu0 %v1037_v52 }
  0x48   : > { %716 = vmatmul.mubr.bf16.gmra.mrb[16].mxu1 %v1038_v53  ;;  %643 = vmatprep.mubr.bf16.mxu0 %v826_v54 }
  0x49   : > { %723 = vmatprep.mubr.bf16.mxu1 %v828_v55 }
  0x4f   : > { %644 = vmatmul.mubr.bf16.gmra.mrb[20].mxu0 %v825_v56 }
  0x50   : > { %724 = vmatmul.mubr.bf16.gmra.mrb[20].mxu1 %v827_v57 }
  0xfa   : > { %v879_v58 = vpop.f32.mrb[0].mxu0 }
  0xfb   : > { %v931_v59 = vpop.f32.mrb[0].mxu1  ;;  %v880_v61 = vpop.f32.mrb[1].mxu0 }
  0xfc   : > { %v881_v62 = vadd.f32 %v880_v61, %v879_v58  ;;  %v932_v63 = vpop.f32.mrb[1].mxu1  ;;  %v882_v0 = vpop.f32.mrb[2].mxu0 }
  0xfd   : > { %v933_v1 = vadd.f32 %v932_v63, %v931_v59  ;;  %v934_v2 = vpop.f32.mrb[2].mxu1  ;;  %v883_v3 = vpop.f32.mrb[3].mxu0 }
  0xfe   : > { %v606_v4 = vadd.f32 %v881_v62, %v1212_v60  ;;  %v884_v5 = vadd.f32 %v883_v3, %v882_v0  ;;  %v935_v6 = vpop.f32.mrb[3].mxu1 }
  0xff   : > { %v936_v7 = vadd.f32 %v935_v6, %v934_v2 }
 0x100   : > { %v686_v8 = vadd.f32 %v933_v1, %v606_v4  ;;  %v609_v9 = vadd.f32 %v884_v5, %v1212_v60 }
 0x102   : > { %731 = vst [vmem:[%s1219_s10] sm:$0xff] %v686_v8  ;;  %v689_v10 = vadd.f32 %v936_v7, %v609_v9  ;;  %v885_v11 = vpop.f32.mrb[4].mxu0 }
 0x103   : > { %v937_v12 = vpop.f32.mrb[4].mxu1  ;;  %v886_v13 = vpop.f32.mrb[5].mxu0 }
 0x104   : > { %732 = vst [vmem:[%s1219_s10 + $0x8] sm:$0xff] %v689_v10  ;;  %v887_v14 = vadd.f32 %v886_v13, %v885_v11  ;;  %v938_v15 = vpop.f32.mrb[5].mxu1  ;;  %v888_v16 = vpop.f32.mrb[6].mxu0 }
 0x105   : > { %v939_v17 = vadd.f32 %v938_v15, %v937_v12  ;;  %v940_v18 = vpop.f32.mrb[6].mxu1  ;;  %v889_v19 = vpop.f32.mrb[7].mxu0 }
 0x106   : > { %v614_v20 = vadd.f32 %v887_v14, %v1212_v60  ;;  %v890_v21 = vadd.f32 %v889_v19, %v888_v16  ;;  %v941_v22 = vpop.f32.mrb[7].mxu1 }
 0x107   : > { %v942_v23 = vadd.f32 %v941_v22, %v940_v18 }
 0x108   : > { %v694_v24 = vadd.f32 %v939_v17, %v614_v20  ;;  %v617_v25 = vadd.f32 %v890_v21, %v1212_v60 }
 0x10a   : > { %733 = vst [vmem:[%s1219_s10 + $0x10] sm:$0xff] %v694_v24  ;;  %v697_v26 = vadd.f32 %v942_v23, %v617_v25  ;;  %v891_v27 = vpop.f32.mrb[8].mxu0 }
 0x10b   : > { %v943_v28 = vpop.f32.mrb[8].mxu1  ;;  %v892_v29 = vpop.f32.mrb[9].mxu0 }
 0x10c   : > { %734 = vst [vmem:[%s1219_s10 + $0x18] sm:$0xff] %v697_v26  ;;  %v893_v30 = vadd.f32 %v892_v29, %v891_v27  ;;  %v944_v31 = vpop.f32.mrb[9].mxu1  ;;  %v894_v32 = vpop.f32.mrb[10].mxu0 }
 0x10d   : > { %v945_v33 = vadd.f32 %v944_v31, %v943_v28  ;;  %v946_v34 = vpop.f32.mrb[10].mxu1  ;;  %v895_v35 = vpop.f32.mrb[11].mxu0 }
 0x10e   : > { %v622_v36 = vadd.f32 %v893_v30, %v1212_v60  ;;  %v896_v37 = vadd.f32 %v895_v35, %v894_v32  ;;  %v947_v38 = vpop.f32.mrb[11].mxu1 }
 0x10f   : > { %v948_v39 = vadd.f32 %v947_v38, %v946_v34 }
 0x110   : > { %v702_v40 = vadd.f32 %v945_v33, %v622_v36  ;;  %v625_v41 = vadd.f32 %v896_v37, %v1212_v60 }
 0x112   : > { %735 = vst [vmem:[%s1219_s10 + $0x20] sm:$0xff] %v702_v40  ;;  %v705_v42 = vadd.f32 %v948_v39, %v625_v41  ;;  %v897_v43 = vpop.f32.mrb[12].mxu0 }
 0x113   : > { %v949_v44 = vpop.f32.mrb[12].mxu1  ;;  %v898_v45 = vpop.f32.mrb[13].mxu0 }
 0x114   : > { %736 = vst [vmem:[%s1219_s10 + $0x28] sm:$0xff] %v705_v42  ;;  %v899_v46 = vadd.f32 %v898_v45, %v897_v43  ;;  %v950_v47 = vpop.f32.mrb[13].mxu1  ;;  %v900_v48 = vpop.f32.mrb[14].mxu0 }
 0x115   : > { %v951_v49 = vadd.f32 %v950_v47, %v949_v44  ;;  %v952_v50 = vpop.f32.mrb[14].mxu1  ;;  %v901_v51 = vpop.f32.mrb[15].mxu0 }
 0x116   : > { %v630_v52 = vadd.f32 %v899_v46, %v1212_v60  ;;  %v902_v53 = vadd.f32 %v901_v51, %v900_v48  ;;  %v953_v54 = vpop.f32.mrb[15].mxu1 }
 0x117   : > { %v954_v55 = vadd.f32 %v953_v54, %v952_v50 }
 0x118   : > { %v710_v56 = vadd.f32 %v951_v49, %v630_v52  ;;  %v633_v57 = vadd.f32 %v902_v53, %v1212_v60 }
 0x11a   : > { %737 = vst [vmem:[%s1219_s10 + $0x30] sm:$0xff] %v710_v56  ;;  %v713_v58 = vadd.f32 %v954_v55, %v633_v57  ;;  %v903_v59 = vpop.f32.mrb[16].mxu0 }
 0x11b   : > { %v955_v61 = vpop.f32.mrb[16].mxu1  ;;  %v904_v62 = vpop.f32.mrb[17].mxu0 }
 0x11c   : > { %738 = vst [vmem:[%s1219_s10 + $0x38] sm:$0xff] %v713_v58  ;;  %v905_v63 = vadd.f32 %v904_v62, %v903_v59  ;;  %v956_v0 = vpop.f32.mrb[17].mxu1  ;;  %v906_v1 = vpop.f32.mrb[18].mxu0 }
 0x11d   : > { %v957_v2 = vadd.f32 %v956_v0, %v955_v61  ;;  %v958_v3 = vpop.f32.mrb[18].mxu1  ;;  %v907_v4 = vpop.f32.mrb[19].mxu0 }
 0x11e   : > { %v638_v5 = vadd.f32 %v905_v63, %v1212_v60  ;;  %v908_v6 = vadd.f32 %v907_v4, %v906_v1  ;;  %v959_v7 = vpop.f32.mrb[19].mxu1 }
 0x11f   : > { %v960_v8 = vadd.f32 %v959_v7, %v958_v3 }
 0x120   : > { %v718_v9 = vadd.f32 %v957_v2, %v638_v5  ;;  %v641_v10 = vadd.f32 %v908_v6, %v1212_v60 }
 0x122   : > { %739 = vst [vmem:[%s1219_s10 + $0x40] sm:$0xff] %v718_v9  ;;  %v721_v11 = vadd.f32 %v960_v8, %v641_v10  ;;  %v909_v12 = vpop.f32.mrb[20].mxu0 }
 0x123   : > { %v961_v13 = vpop.f32.mrb[20].mxu1  ;;  %v910_v14 = vpop.f32.mrb[21].mxu0 }
 0x124   : > { %740 = vst [vmem:[%s1219_s10 + $0x48] sm:$0xff] %v721_v11  ;;  %v911_v15 = vadd.f32 %v910_v14, %v909_v12  ;;  %v962_v16 = vpop.f32.mrb[21].mxu1  ;;  %v912_v17 = vpop.f32.mrb[22].mxu0 }
 0x125   : > { %v963_v18 = vadd.f32 %v962_v16, %v961_v13  ;;  %v964_v19 = vpop.f32.mrb[22].mxu1  ;;  %v913_v20 = vpop.f32.mrb[23].mxu0 }
 0x126   : > { %v646_v21 = vadd.f32 %v911_v15, %v1212_v60  ;;  %v965_v22 = vpop.f32.mrb[23].mxu1 }
 0x128   : > { %v726_v23 = vadd.f32 %v963_v18, %v646_v21 }
 0x12a   : > { %741 = vst [vmem:[%s1219_s10 + $0x50] sm:$0x1] %v726_v23 }
 0x12b PF: > { %s13_s12 = sadd.s32 1, %s1049_s12  }
 0x12c   : > { %p10_p4 = scmp.ge.s32.totalorder %s13_s12, 4  }
 0x12e   :  { %12 = sbr.rel (!%p10_p4) target bundleno = 1 (0x1), region = 62 }

// kernel: lenet5_forward.7
= control target key start
LH: loop header
LB: loop body
LE: loop exit
PB: predicated region body
PF: predicated region fallthrough
CT: control target
= control target key end

     0   :  { %vm9113_vm0 = vmmov 0   ;;  %s11148_s1 = inlined_call_operand.vmem [shape: bf16[9728,128], index: 1, kind: input, shape index: {}]   ;;  %s11149_s0 = inlined_call_operand.vmem [shape: bf16[8,9728], index: 0, kind: input, shape index: {}]   ;;  %s11150_s2 = inlined_call_operand.vmem [shape: f32[1,128], index: 2, kind: input, shape index: {}]   ;;  %s11151_s3 = inlined_call_operand.vmem [shape: bf16[128,128], index: 3, kind: input, shape index: {}]   ;;  %s11152_s4 = inlined_call_operand.vmem [shape: f32[1,128], index: 4, kind: input, shape index: {}]   ;;  %s11153_s5 = inlined_call_operand.vmem [shape: f32[8,128], index: 5, kind: output, shape index: {}]  }
   0x1   :  { %v8412_v0 = vld [vmem:[%s11148_s1 + $0x40] sm:$0xff]   ;;  %v8416_v4 = vld [vmem:[%s11148_s1 + $0x48] sm:$0xff]   ;;  %v8420_v8 = vld [vmem:[%s11148_s1 + $0x50] sm:$0xff]  }
   0x2   :  { %v8413_v1 = vld [vmem:[%s11148_s1 + $0xc0] sm:$0xff]   ;;  %7545 = vmatprep.subr.bf16.mxu0 %v8412_v0  ;;  %v8417_v5 = vld [vmem:[%s11148_s1 + $0xc8] sm:$0xff]   ;;  %v8421_v9 = vld [vmem:[%s11148_s1 + $0xd0] sm:$0xff]  }
   0x3   :  { %v8414_v2 = vld [vmem:[%s11148_s1] sm:$0xff]   ;;  %7567 = vmatprep.subr.bf16.mxu1 %v8413_v1  ;;  %v8418_v6 = vld [vmem:[%s11148_s1 + $0x8] sm:$0xff]   ;;  %v8422_v10 = vld [vmem:[%s11148_s1 + $0x10] sm:$0xff]  }
   0x4   :  { %v8415_v3 = vld [vmem:[%s11148_s1 + $0x80] sm:$0xff]   ;;  %7546 = vmatpush3.bf16.msra.mxu0 %v8414_v2  ;;  %v8419_v7 = vld [vmem:[%s11148_s1 + $0x88] sm:$0xff]   ;;  %v8423_v11 = vld [vmem:[%s11148_s1 + $0x90] sm:$0xff]  }
   0x5   :  { %7568 = vmatpush3.bf16.msra.mxu1 %v8415_v3  ;;  %7547 = vmatprep.subr.bf16.mxu0 %v8416_v4  ;;  %v8424_v12 = vld [vmem:[%s11148_s1 + $0x58] sm:$0xff]   ;;  %v8428_v16 = vld [vmem:[%s11148_s1 + $0x60] sm:$0xff]   ;;  %v8432_v20 = vld [vmem:[%s11148_s1 + $0x68] sm:$0xff]  }
   0x6   :  { %7569 = vmatprep.subr.bf16.mxu1 %v8417_v5  ;;  %v8425_v13 = vld [vmem:[%s11148_s1 + $0xd8] sm:$0xff]   ;;  %v8429_v17 = vld [vmem:[%s11148_s1 + $0xe0] sm:$0xff]   ;;  %v8433_v21 = vld [vmem:[%s11148_s1 + $0xe8] sm:$0xff]  }
   0x7   :  { %v8426_v14 = vld [vmem:[%s11148_s1 + $0x18] sm:$0xff]   ;;  %v8430_v18 = vld [vmem:[%s11148_s1 + $0x20] sm:$0xff]   ;;  %v8434_v22 = vld [vmem:[%s11148_s1 + $0x28] sm:$0xff]  }
   0x8   :  { %7548 = vmatpush3.bf16.msra.mxu0 %v8418_v6  ;;  %v8427_v15 = vld [vmem:[%s11148_s1 + $0x98] sm:$0xff]   ;;  %v8431_v19 = vld [vmem:[%s11148_s1 + $0xa0] sm:$0xff]   ;;  %v8435_v23 = vld [vmem:[%s11148_s1 + $0xa8] sm:$0xff]  }
   0x9   :  { %7570 = vmatpush3.bf16.msra.mxu1 %v8419_v7  ;;  %7549 = vmatprep.subr.bf16.mxu0 %v8420_v8  ;;  %v8436_v24 = vld [vmem:[%s11148_s1 + $0x70] sm:$0xff]   ;;  %v8440_v28 = vld [vmem:[%s11148_s1 + $0x78] sm:$0xff]   ;;  %v21_v32 = vld [vmem:[%s11149_s0] sm:$0xff] }
   0xa   :  { %7571 = vmatprep.subr.bf16.mxu1 %v8421_v9  ;;  %v8437_v25 = vld [vmem:[%s11148_s1 + $0xf0] sm:$0xff]   ;;  %v8441_v29 = vld [vmem:[%s11148_s1 + $0xf8] sm:$0xff]   ;;  %v22_v33 = vld [vmem:[%s11149_s0 + $0x8] sm:$0xff]  ;;  %v6852_v34 = vcombine.low %v21_v32, %v21_v32  ;;  %v6853_v35 = vcombine.high %v21_v32, %v21_v32 }
   0xb   :  { %v8438_v26 = vld [vmem:[%s11148_s1 + $0x30] sm:$0xff]   ;;  %v8442_v30 = vld [vmem:[%s11148_s1 + $0x38] sm:$0xff]   ;;  %v6854_v36 = vcombine.low %v22_v33, %v22_v33  ;;  %v6855_v37 = vcombine.high %v22_v33, %v22_v33  ;;  %v8448_v38 = vld [vmem:[%s11148_s1 + $0x140] sm:$0xff]  }
   0xc   :  { %7550 = vmatpush3.bf16.msra.mxu0 %v8422_v10  ;;  %v8439_v27 = vld [vmem:[%s11148_s1 + $0xb0] sm:$0xff]   ;;  %v8443_v31 = vld [vmem:[%s11148_s1 + $0xb8] sm:$0xff]   ;;  %v8449_v39 = vld [vmem:[%s11148_s1 + $0x1c0] sm:$0xff]   ;;  %5228 = vmatprep.mubr.bf16.mxu0 %v6853_v35 }
   0xd   :  { %7572 = vmatpush3.bf16.msra.mxu1 %v8423_v11  ;;  %7551 = vmatprep.subr.bf16.mxu0 %v8424_v12  ;;  %v8450_v40 = vld [vmem:[%s11148_s1 + $0x100] sm:$0xff]   ;;  %v8452_v42 = vld [vmem:[%s11148_s1 + $0x148] sm:$0xff]   ;;  %v8456_v46 = vld [vmem:[%s11148_s1 + $0x150] sm:$0xff]  }
   0xe   :  { %7573 = vmatprep.subr.bf16.mxu1 %v8425_v13  ;;  %5268 = vmatprep.mubr.bf16.mxu1 %v6855_v37  ;;  %v8451_v41 = vld [vmem:[%s11148_s1 + $0x180] sm:$0xff]   ;;  %v8453_v43 = vld [vmem:[%s11148_s1 + $0x1c8] sm:$0xff]   ;;  %v8457_v47 = vld [vmem:[%s11148_s1 + $0x1d0] sm:$0xff]  }
   0xf   :  { %v8454_v44 = vld [vmem:[%s11148_s1 + $0x108] sm:$0xff]   ;;  %v8458_v48 = vld [vmem:[%s11148_s1 + $0x110] sm:$0xff]   ;;  %v8460_v50 = vld [vmem:[%s11148_s1 + $0x158] sm:$0xff]  }
  0x10   :  { %7552 = vmatpush3.bf16.msra.mxu0 %v8426_v14  ;;  %v8455_v45 = vld [vmem:[%s11148_s1 + $0x188] sm:$0xff]   ;;  %v8459_v49 = vld [vmem:[%s11148_s1 + $0x190] sm:$0xff]   ;;  %v8461_v51 = vld [vmem:[%s11148_s1 + $0x1d8] sm:$0xff]  }
  0x11   :  { %7574 = vmatpush3.bf16.msra.mxu1 %v8427_v15  ;;  %7553 = vmatprep.subr.bf16.mxu0 %v8428_v16  ;;  %v8462_v52 = vld [vmem:[%s11148_s1 + $0x118] sm:$0xff]   ;;  %v8464_v54 = vld [vmem:[%s11148_s1 + $0x160] sm:$0xff]   ;;  %v8468_v58 = vld [vmem:[%s11148_s1 + $0x168] sm:$0xff]  }
  0x12   :  { %7575 = vmatprep.subr.bf16.mxu1 %v8429_v17  ;;  %v8463_v53 = vld [vmem:[%s11148_s1 + $0x198] sm:$0xff]   ;;  %v8465_v55 = vld [vmem:[%s11148_s1 + $0x1e0] sm:$0xff]   ;;  %v8469_v59 = vld [vmem:[%s11148_s1 + $0x1e8] sm:$0xff]  }
  0x13   :  { %v8466_v56 = vld [vmem:[%s11148_s1 + $0x120] sm:$0xff]   ;;  %v8470_v60 = vld [vmem:[%s11148_s1 + $0x128] sm:$0xff]   ;;  %v8472_v62 = vld [vmem:[%s11148_s1 + $0x170] sm:$0xff]  }
  0x14   :  { %7554 = vmatpush3.bf16.msra.mxu0 %v8430_v18  ;;  %v8467_v57 = vld [vmem:[%s11148_s1 + $0x1a0] sm:$0xff]   ;;  %v8471_v61 = vld [vmem:[%s11148_s1 + $0x1a8] sm:$0xff]   ;;  %v8473_v63 = vld [vmem:[%s11148_s1 + $0x1f0] sm:$0xff]  }
  0x15   :  { %7576 = vmatpush3.bf16.msra.mxu1 %v8431_v19  ;;  %7555 = vmatprep.subr.bf16.mxu0 %v8432_v20  ;;  %v8474_v0 = vld [vmem:[%s11148_s1 + $0x130] sm:$0xff]   ;;  %v8476_v2 = vld [vmem:[%s11148_s1 + $0x178] sm:$0xff]   ;;  %v8484_v12 = vld [vmem:[%s11148_s1 + $0x240] sm:$0xff]  }
  0x16   :  { %7577 = vmatprep.subr.bf16.mxu1 %v8433_v21  ;;  %v8475_v1 = vld [vmem:[%s11148_s1 + $0x1b0] sm:$0xff]   ;;  %v8477_v3 = vld [vmem:[%s11148_s1 + $0x1f8] sm:$0xff]   ;;  %v8485_v13 = vld [vmem:[%s11148_s1 + $0x2c0] sm:$0xff]  }
  0x17   :  { %v8478_v4 = vld [vmem:[%s11148_s1 + $0x138] sm:$0xff]   ;;  %v23_v6 = vld [vmem:[%s11149_s0 + $0x10] sm:$0xff]  ;;  %v8486_v14 = vld [vmem:[%s11148_s1 + $0x200] sm:$0xff]  }
  0x18   :  { %7556 = vmatpush3.bf16.msra.mxu0 %v8434_v22  ;;  %v8479_v5 = vld [vmem:[%s11148_s1 + $0x1b8] sm:$0xff]   ;;  %v6856_v7 = vcombine.low %v23_v6, %v23_v6  ;;  %v6857_v8 = vcombine.high %v23_v6, %v23_v6  ;;  %v8487_v15 = vld [vmem:[%s11148_s1 + $0x280] sm:$0xff]   ;;  %v8488_v16 = vld [vmem:[%s11148_s1 + $0x248] sm:$0xff]  }
  0x19   :  { %7578 = vmatpush3.bf16.msra.mxu1 %v8435_v23  ;;  %7557 = vmatprep.subr.bf16.mxu0 %v8436_v24  ;;  %v24_v9 = vld [vmem:[%s11149_s0 + $0x18] sm:$0xff]  ;;  %v8489_v17 = vld [vmem:[%s11148_s1 + $0x2c8] sm:$0xff]   ;;  %v8492_v20 = vld [vmem:[%s11148_s1 + $0x250] sm:$0xff]  }
  0x1a   :  { %7579 = vmatprep.subr.bf16.mxu1 %v8437_v25  ;;  %v6858_v10 = vcombine.low %v24_v9, %v24_v9  ;;  %v6859_v11 = vcombine.high %v24_v9, %v24_v9  ;;  %v8490_v18 = vld [vmem:[%s11148_s1 + $0x208] sm:$0xff]   ;;  %v8493_v21 = vld [vmem:[%s11148_s1 + $0x2d0] sm:$0xff]   ;;  %v8496_v24 = vld [vmem:[%s11148_s1 + $0x258] sm:$0xff]  }
  0x1b   :  { %v8491_v19 = vld [vmem:[%s11148_s1 + $0x288] sm:$0xff]   ;;  %v8494_v22 = vld [vmem:[%s11148_s1 + $0x210] sm:$0xff]   ;;  %v8497_v25 = vld [vmem:[%s11148_s1 + $0x2d8] sm:$0xff]  }
  0x1c   :  { %7558 = vmatpush3.bf16.msra.mxu0 %v8438_v26  ;;  %v8495_v23 = vld [vmem:[%s11148_s1 + $0x290] sm:$0xff]   ;;  %v8498_v26 = vld [vmem:[%s11148_s1 + $0x218] sm:$0xff]   ;;  %v8504_v32 = vld [vmem:[%s11148_s1 + $0x268] sm:$0xff]  }
  0x1d   :  { %7580 = vmatpush3.bf16.msra.mxu1 %v8439_v27  ;;  %7559 = vmatprep.subr.bf16.mxu0 %v8440_v28  ;;  %v8499_v27 = vld [vmem:[%s11148_s1 + $0x298] sm:$0xff]   ;;  %v8500_v28 = vld [vmem:[%s11148_s1 + $0x260] sm:$0xff]   ;;  %v8505_v33 = vld [vmem:[%s11148_s1 + $0x2e8] sm:$0xff]  }
  0x1e   :  { %7581 = vmatprep.subr.bf16.mxu1 %v8441_v29  ;;  %v8501_v29 = vld [vmem:[%s11148_s1 + $0x2e0] sm:$0xff]   ;;  %v8507_v35 = vld [vmem:[%s11148_s1 + $0x2a8] sm:$0xff]   ;;  %v8509_v37 = vld [vmem:[%s11148_s1 + $0x2f0] sm:$0xff]  }
  0x1f   :  { %v8540_v6 = vld [vmem:[%s11148_s1 + $0x368] sm:$0xff]  }
  0x20   :  { %7560 = vmatpush3.bf16.msra.mxu0 %v8442_v30  ;;  %v8502_v30 = vld [vmem:[%s11148_s1 + $0x220] sm:$0xff]   ;;  %v8543_v9 = vld [vmem:[%s11148_s1 + $0x3a8] sm:$0xff]  }
  0x21   :  { %7582 = vmatpush3.bf16.msra.mxu1 %v8443_v31  ;;  %7589 = vmatprep.subr.bf16.mxu0 %v8448_v38  ;;  %v8503_v31 = vld [vmem:[%s11148_s1 + $0x2a0] sm:$0xff]   ;;  %v8510_v38 = vld [vmem:[%s11148_s1 + $0x230] sm:$0xff]  }
  0x22   :  { %7611 = vmatprep.subr.bf16.mxu1 %v8449_v39  ;;  %v8511_v39 = vld [vmem:[%s11148_s1 + $0x2b0] sm:$0xff]  }
  0x23   :  { %5229 = vmatmul.mubr.bf16.vlgmr.msra.gmra.mrb[0].mxu0 %v6852_v34  ;;  %v8506_v34 = vld [vmem:[%s11148_s1 + $0x228] sm:$0xff]  }
  0x24   :  { %5269 = vmatmul.mubr.bf16.vlgmr.msra.gmra.mrb[0].mxu1 %v6854_v36  ;;  %7590 = vmatpush3.bf16.msra.mxu0 %v8450_v40  ;;  %v8508_v36 = vld [vmem:[%s11148_s1 + $0x270] sm:$0xff]   ;;  %v8512_v40 = vld [vmem:[%s11148_s1 + $0x278] sm:$0xff]  }
  0x25   :  { %7612 = vmatpush3.bf16.msra.mxu1 %v8451_v41  ;;  %7591 = vmatprep.subr.bf16.mxu0 %v8452_v42  ;;  %v8513_v41 = vld [vmem:[%s11148_s1 + $0x2f8] sm:$0xff]  }
  0x26   :  { %7613 = vmatprep.subr.bf16.mxu1 %v8453_v43  ;;  %5308 = vmatprep.mubr.bf16.mxu0 %v6857_v8  ;;  %v8514_v42 = vld [vmem:[%s11148_s1 + $0x238] sm:$0xff]   ;;  %v8542_v8 = vld [vmem:[%s11148_s1 + $0x328] sm:$0xff]  }
  0x27   :  { %5348 = vmatprep.mubr.bf16.mxu1 %v6859_v11  ;;  %v8515_v43 = vld [vmem:[%s11148_s1 + $0x2b8] sm:$0xff]   ;;  %v8545_v11 = vld [vmem:[%s11148_s1 + $0x3f0] sm:$0xff]  }
  0x28   :  { %7592 = vmatpush3.bf16.msra.mxu0 %v8454_v44  ;;  %v25_v44 = vld [vmem:[%s11149_s0 + $0x20] sm:$0xff] }
  0x29   :  { %7614 = vmatpush3.bf16.msra.mxu1 %v8455_v45  ;;  %7593 = vmatprep.subr.bf16.mxu0 %v8456_v46  ;;  %v26_v45 = vld [vmem:[%s11149_s0 + $0x28] sm:$0xff]  ;;  %v6860_v46 = vcombine.low %v25_v44, %v25_v44 }
  0x2a   :  { %7615 = vmatprep.subr.bf16.mxu1 %v8457_v47  ;;  %v6861_v47 = vcombine.high %v25_v44, %v25_v44  ;;  %v8576_v44 = vld [vmem:[%s11148_s1 + $0x468] sm:$0xff]  }
  0x2c   :  { %7594 = vmatpush3.bf16.msra.mxu0 %v8458_v48  ;;  %v6862_v48 = vcombine.low %v26_v45, %v26_v45 }
  0x2d   :  { %7616 = vmatpush3.bf16.msra.mxu1 %v8459_v49  ;;  %7595 = vmatprep.subr.bf16.mxu0 %v8460_v50  ;;  %v6863_v49 = vcombine.high %v26_v45, %v26_v45  ;;  %v8520_v50 = vld [vmem:[%s11148_s1 + $0x340] sm:$0xff]   ;;  %v8577_v45 = vld [vmem:[%s11148_s1 + $0x4e8] sm:$0xff]  }
  0x2e   :  { %7617 = vmatprep.subr.bf16.mxu1 %v8461_v51  ;;  %v8521_v51 = vld [vmem:[%s11148_s1 + $0x3c0] sm:$0xff]  }
  0x30   :  { %7596 = vmatpush3.bf16.msra.mxu0 %v8462_v52  ;;  %v8522_v52 = vld [vmem:[%s11148_s1 + $0x300] sm:$0xff]  }
  0x31   :  { %7618 = vmatpush3.bf16.msra.mxu1 %v8463_v53  ;;  %7597 = vmatprep.subr.bf16.mxu0 %v8464_v54  ;;  %v8523_v53 = vld [vmem:[%s11148_s1 + $0x380] sm:$0xff]   ;;  %v8524_v54 = vld [vmem:[%s11148_s1 + $0x348] sm:$0xff]  }
  0x32   :  { %7619 = vmatprep.subr.bf16.mxu1 %v8465_v55  ;;  %v8525_v55 = vld [vmem:[%s11148_s1 + $0x3c8] sm:$0xff]  }
  0x34   :  { %7598 = vmatpush3.bf16.msra.mxu0 %v8466_v56  ;;  %v8526_v56 = vld [vmem:[%s11148_s1 + $0x308] sm:$0xff]  }
  0x35   :  { %7620 = vmatpush3.bf16.msra.mxu1 %v8467_v57  ;;  %7599 = vmatprep.subr.bf16.mxu0 %v8468_v58  ;;  %v8527_v57 = vld [vmem:[%s11148_s1 + $0x388] sm:$0xff]   ;;  %v8528_v58 = vld [vmem:[%s11148_s1 + $0x350] sm:$0xff]  }
  0x36   :  { %7621 = vmatprep.subr.bf16.mxu1 %v8469_v59  ;;  %v8529_v59 = vld [vmem:[%s11148_s1 + $0x3d0] sm:$0xff]  }
  0x38   :  { %7600 = vmatpush3.bf16.msra.mxu0 %v8470_v60  ;;  %v8530_v60 = vld [vmem:[%s11148_s1 + $0x310] sm:$0xff]  }
  0x39   :  { %7622 = vmatpush3.bf16.msra.mxu1 %v8471_v61  ;;  %7601 = vmatprep.subr.bf16.mxu0 %v8472_v62  ;;  %v8531_v61 = vld [vmem:[%s11148_s1 + $0x390] sm:$0xff]   ;;  %v8532_v62 = vld [vmem:[%s11148_s1 + $0x358] sm:$0xff]  }
  0x3a   :  { %7623 = vmatprep.subr.bf16.mxu1 %v8473_v63  ;;  %v8533_v63 = vld [vmem:[%s11148_s1 + $0x3d8] sm:$0xff]  }
  0x3c   :  { %7602 = vmatpush3.bf16.msra.mxu0 %v8474_v0  ;;  %v8534_v0 = vld [vmem:[%s11148_s1 + $0x318] sm:$0xff]  }
  0x3d   :  { %7624 = vmatpush3.bf16.msra.mxu1 %v8475_v1  ;;  %7603 = vmatprep.subr.bf16.mxu0 %v8476_v2  ;;  %v8535_v1 = vld [vmem:[%s11148_s1 + $0x398] sm:$0xff]   ;;  %v8536_v2 = vld [vmem:[%s11148_s1 + $0x360] sm:$0xff]  }
  0x3e   :  { %7625 = vmatprep.subr.bf16.mxu1 %v8477_v3  ;;  %v8537_v3 = vld [vmem:[%s11148_s1 + $0x3e0] sm:$0xff]  }
  0x40   :  { %7604 = vmatpush3.bf16.msra.mxu0 %v8478_v4  ;;  %v8538_v4 = vld [vmem:[%s11148_s1 + $0x320] sm:$0xff]  }
  0x41   :  { %7626 = vmatpush3.bf16.msra.mxu1 %v8479_v5  ;;  %7633 = vmatprep.subr.bf16.mxu0 %v8484_v12  ;;  %v8539_v5 = vld [vmem:[%s11148_s1 + $0x3a0] sm:$0xff]   ;;  %v8546_v12 = vld [vmem:[%s11148_s1 + $0x330] sm:$0xff]  }
  0x42   :  { %7655 = vmatprep.subr.bf16.mxu1 %v8485_v13  ;;  %v8547_v13 = vld [vmem:[%s11148_s1 + $0x3b0] sm:$0xff]  }
  0x43   :  { %5309 = vmatmul.mubr.bf16.vlgmr.msra.gmra.mrb[4].mxu0 %v6856_v7  ;;  %v8541_v7 = vld [vmem:[%s11148_s1 + $0x3e8] sm:$0xff]  }
  0x44   :  { %5349 = vmatmul.mubr.bf16.vlgmr.msra.gmra.mrb[4].mxu1 %v6858_v10  ;;  %7634 = vmatpush3.bf16.msra.mxu0 %v8486_v14  ;;  %v8544_v10 = vld [vmem:[%s11148_s1 + $0x370] sm:$0xff]   ;;  %v8548_v14 = vld [vmem:[%s11148_s1 + $0x378] sm:$0xff]  }
  0x45   :  { %7656 = vmatpush3.bf16.msra.mxu1 %v8487_v15  ;;  %7635 = vmatprep.subr.bf16.mxu0 %v8488_v16  ;;  %v8549_v15 = vld [vmem:[%s11148_s1 + $0x3f8] sm:$0xff]  }
  0x46   :  { %7657 = vmatprep.subr.bf16.mxu1 %v8489_v17  ;;  %5388 = vmatprep.mubr.bf16.mxu0 %v6861_v47  ;;  %v8550_v16 = vld [vmem:[%s11148_s1 + $0x338] sm:$0xff]   ;;  %v8579_v47 = vld [vmem:[%s11148_s1 + $0x4a8] sm:$0xff]  }
  0x47   :  { %5428 = vmatprep.mubr.bf16.mxu1 %v6863_v49  ;;  %v8551_v17 = vld [vmem:[%s11148_s1 + $0x3b8] sm:$0xff]   ;;  %v8581_v49 = vld [vmem:[%s11148_s1 + $0x4f0] sm:$0xff]  }
  0x48   :  { %7636 = vmatpush3.bf16.msra.mxu0 %v8490_v18  ;;  %v27_v18 = vld [vmem:[%s11149_s0 + $0x30] sm:$0xff] }
  0x49   :  { %7658 = vmatpush3.bf16.msra.mxu1 %v8491_v19  ;;  %7637 = vmatprep.subr.bf16.mxu0 %v8492_v20  ;;  %v28_v19 = vld [vmem:[%s11149_s0 + $0x38] sm:$0xff]  ;;  %v6864_v20 = vcombine.low %v27_v18, %v27_v18 }
  0x4a   :  { %7659 = vmatprep.subr.bf16.mxu1 %v8493_v21  ;;  %v6865_v21 = vcombine.high %v27_v18, %v27_v18  ;;  %v8612_v18 = vld [vmem:[%s11148_s1 + $0x568] sm:$0xff]  }
  0x4c   :  { %7638 = vmatpush3.bf16.msra.mxu0 %v8494_v22  ;;  %v6866_v22 = vcombine.low %v28_v19, %v28_v19 }
  0x4d   :  { %7660 = vmatpush3.bf16.msra.mxu1 %v8495_v23  ;;  %7639 = vmatprep.subr.bf16.mxu0 %v8496_v24  ;;  %v8556_v23 = vld [vmem:[%s11148_s1 + $0x440] sm:$0xff]   ;;  %v6867_v24 = vcombine.high %v28_v19, %v28_v19  ;;  %v8613_v19 = vld [vmem:[%s11148_s1 + $0x5e8] sm:$0xff]  }
  0x4e   :  { %7661 = vmatprep.subr.bf16.mxu1 %v8497_v25  ;;  %v8557_v25 = vld [vmem:[%s11148_s1 + $0x4c0] sm:$0xff]  }
  0x50   :  { %7640 = vmatpush3.bf16.msra.mxu0 %v8498_v26  ;;  %v8558_v26 = vld [vmem:[%s11148_s1 + $0x400] sm:$0xff]  }
  0x51   :  { %7662 = vmatpush3.bf16.msra.mxu1 %v8499_v27  ;;  %7641 = vmatprep.subr.bf16.mxu0 %v8500_v28  ;;  %v8559_v27 = vld [vmem:[%s11148_s1 + $0x480] sm:$0xff]   ;;  %v8560_v28 = vld [vmem:[%s11148_s1 + $0x448] sm:$0xff]  }
  0x52   :  { %7663 = vmatprep.subr.bf16.mxu1 %v8501_v29  ;;  %v8561_v29 = vld [vmem:[%s11148_s1 + $0x4c8] sm:$0xff]  }
  0x54   :  { %7642 = vmatpush3.bf16.msra.mxu0 %v8502_v30  ;;  %v8562_v30 = vld [vmem:[%s11148_s1 + $0x408] sm:$0xff]  }
  0x55   :  { %7664 = vmatpush3.bf16.msra.mxu1 %v8503_v31  ;;  %7643 = vmatprep.subr.bf16.mxu0 %v8504_v32  ;;  %v8563_v31 = vld [vmem:[%s11148_s1 + $0x488] sm:$0xff]   ;;  %v8564_v32 = vld [vmem:[%s11148_s1 + $0x450] sm:$0xff]  }
  0x56   :  { %7665 = vmatprep.subr.bf16.mxu1 %v8505_v33  ;;  %v8565_v33 = vld [vmem:[%s11148_s1 + $0x4d0] sm:$0xff]  }
  0x58   :  { %7644 = vmatpush3.bf16.msra.mxu0 %v8506_v34  ;;  %v8566_v34 = vld [vmem:[%s11148_s1 + $0x410] sm:$0xff]  }
  0x59   :  { %7666 = vmatpush3.bf16.msra.mxu1 %v8507_v35  ;;  %7645 = vmatprep.subr.bf16.mxu0 %v8508_v36  ;;  %v8567_v35 = vld [vmem:[%s11148_s1 + $0x490] sm:$0xff]   ;;  %v8568_v36 = vld [vmem:[%s11148_s1 + $0x458] sm:$0xff]  }
  0x5a   :  { %7667 = vmatprep.subr.bf16.mxu1 %v8509_v37  ;;  %v8569_v37 = vld [vmem:[%s11148_s1 + $0x4d8] sm:$0xff]  }
  0x5c   :  { %7646 = vmatpush3.bf16.msra.mxu0 %v8510_v38  ;;  %v8570_v38 = vld [vmem:[%s11148_s1 + $0x418] sm:$0xff]  }
  0x5d   :  { %7668 = vmatpush3.bf16.msra.mxu1 %v8511_v39  ;;  %7647 = vmatprep.subr.bf16.mxu0 %v8512_v40  ;;  %v8571_v39 = vld [vmem:[%s11148_s1 + $0x498] sm:$0xff]   ;;  %v8572_v40 = vld [vmem:[%s11148_s1 + $0x460] sm:$0xff]  }
  0x5e   :  { %7669 = vmatprep.subr.bf16.mxu1 %v8513_v41  ;;  %v8573_v41 = vld [vmem:[%s11148_s1 + $0x4e0] sm:$0xff]  }
  0x60   :  { %7648 = vmatpush3.bf16.msra.mxu0 %v8514_v42  ;;  %v8574_v42 = vld [vmem:[%s11148_s1 + $0x420] sm:$0xff]  }
  0x61   :  { %7670 = vmatpush3.bf16.msra.mxu1 %v8515_v43  ;;  %7677 = vmatprep.subr.bf16.mxu0 %v8520_v50  ;;  %v8575_v43 = vld [vmem:[%s11148_s1 + $0x4a0] sm:$0xff]   ;;  %v8582_v50 = vld [vmem:[%s11148_s1 + $0x430] sm:$0xff]  }
  0x62   :  { %7699 = vmatprep.subr.bf16.mxu1 %v8521_v51  ;;  %v8583_v51 = vld [vmem:[%s11148_s1 + $0x4b0] sm:$0xff]  }
  0x63   :  { %5389 = vmatmul.mubr.bf16.vlgmr.msra.gmra.mrb[8].mxu0 %v6860_v46  ;;  %v8578_v46 = vld [vmem:[%s11148_s1 + $0x428] sm:$0xff]  }
  0x64   :  { %5429 = vmatmul.mubr.bf16.vlgmr.msra.gmra.mrb[8].mxu1 %v6862_v48  ;;  %7678 = vmatpush3.bf16.msra.mxu0 %v8522_v52  ;;  %v8580_v48 = vld [vmem:[%s11148_s1 + $0x470] sm:$0xff]   ;;  %v8584_v52 = vld [vmem:[%s11148_s1 + $0x478] sm:$0xff]  }
  0x65   :  { %7700 = vmatpush3.bf16.msra.mxu1 %v8523_v53  ;;  %7679 = vmatprep.subr.bf16.mxu0 %v8524_v54  ;;  %v8585_v53 = vld [vmem:[%s11148_s1 + $0x4f8] sm:$0xff]  }
  0x66   :  { %7701 = vmatprep.subr.bf16.mxu1 %v8525_v55  ;;  %5468 = vmatprep.mubr.bf16.mxu0 %v6865_v21  ;;  %v8586_v54 = vld [vmem:[%s11148_s1 + $0x438] sm:$0xff]   ;;  %v8615_v21 = vld [vmem:[%s11148_s1 + $0x5a8] sm:$0xff]  }
  0x67   :  { %5508 = vmatprep.mubr.bf16.mxu1 %v6867_v24  ;;  %v8587_v55 = vld [vmem:[%s11148_s1 + $0x4b8] sm:$0xff]   ;;  %v8618_v24 = vld [vmem:[%s11148_s1 + $0x530] sm:$0xff]  }
  0x68   :  { %7680 = vmatpush3.bf16.msra.mxu0 %v8526_v56  ;;  %v29_v56 = vld [vmem:[%s11149_s0 + $0x40] sm:$0xff] }
  0x69   :  { %7702 = vmatpush3.bf16.msra.mxu1 %v8527_v57  ;;  %7681 = vmatprep.subr.bf16.mxu0 %v8528_v58  ;;  %v6868_v57 = vcombine.low %v29_v56, %v29_v56  ;;  %v6869_v58 = vcombine.high %v29_v56, %v29_v56  ;;  %v8648_v56 = vld [vmem:[%s11148_s1 + $0x668] sm:$0xff]  }
  0x6a   :  { %7703 = vmatprep.subr.bf16.mxu1 %v8529_v59  ;;  %v30_v59 = vld [vmem:[%s11149_s0 + $0x48] sm:$0xff] }
  0x6c   :  { %7682 = vmatpush3.bf16.msra.mxu0 %v8530_v60  ;;  %v6870_v60 = vcombine.low %v30_v59, %v30_v59 }
  0x6d   :  { %7704 = vmatpush3.bf16.msra.mxu1 %v8531_v61  ;;  %7683 = vmatprep.subr.bf16.mxu0 %v8532_v62  ;;  %v6871_v61 = vcombine.high %v30_v59, %v30_v59  ;;  %v8592_v62 = vld [vmem:[%s11148_s1 + $0x540] sm:$0xff]   ;;  %v8651_v59 = vld [vmem:[%s11148_s1 + $0x6a8] sm:$0xff]  }
  0x6e   :  { %7705 = vmatprep.subr.bf16.mxu1 %v8533_v63  ;;  %v8593_v63 = vld [vmem:[%s11148_s1 + $0x5c0] sm:$0xff]  }
  0x70   :  { %7684 = vmatpush3.bf16.msra.mxu0 %v8534_v0  ;;  %v8594_v0 = vld [vmem:[%s11148_s1 + $0x500] sm:$0xff]  }
  0x71   :  { %7706 = vmatpush3.bf16.msra.mxu1 %v8535_v1  ;;  %7685 = vmatprep.subr.bf16.mxu0 %v8536_v2  ;;  %v8595_v1 = vld [vmem:[%s11148_s1 + $0x580] sm:$0xff]   ;;  %v8596_v2 = vld [vmem:[%s11148_s1 + $0x548] sm:$0xff]  }
  0x72   :  { %7707 = vmatprep.subr.bf16.mxu1 %v8537_v3  ;;  %v8597_v3 = vld [vmem:[%s11148_s1 + $0x5c8] sm:$0xff]  }
  0x74   :  { %7686 = vmatpush3.bf16.msra.mxu0 %v8538_v4  ;;  %v8598_v4 = vld [vmem:[%s11148_s1 + $0x508] sm:$0xff]  }
  0x75   :  { %7708 = vmatpush3.bf16.msra.mxu1 %v8539_v5  ;;  %7687 = vmatprep.subr.bf16.mxu0 %v8540_v6  ;;  %v8599_v5 = vld [vmem:[%s11148_s1 + $0x588] sm:$0xff]   ;;  %v8600_v6 = vld [vmem:[%s11148_s1 + $0x550] sm:$0xff]  }
  0x76   :  { %7709 = vmatprep.subr.bf16.mxu1 %v8541_v7  ;;  %v8601_v7 = vld [vmem:[%s11148_s1 + $0x5d0] sm:$0xff]  }
  0x78   :  { %7688 = vmatpush3.bf16.msra.mxu0 %v8542_v8  ;;  %v8602_v8 = vld [vmem:[%s11148_s1 + $0x510] sm:$0xff]  }
  0x79   :  { %7710 = vmatpush3.bf16.msra.mxu1 %v8543_v9  ;;  %7689 = vmatprep.subr.bf16.mxu0 %v8544_v10  ;;  %v8603_v9 = vld [vmem:[%s11148_s1 + $0x590] sm:$0xff]   ;;  %v8604_v10 = vld [vmem:[%s11148_s1 + $0x558] sm:$0xff]  }
  0x7a   :  { %7711 = vmatprep.subr.bf16.mxu1 %v8545_v11  ;;  %v8605_v11 = vld [vmem:[%s11148_s1 + $0x5d8] sm:$0xff]  }
  0x7c   :  { %7690 = vmatpush3.bf16.msra.mxu0 %v8546_v12  ;;  %v8606_v12 = vld [vmem:[%s11148_s1 + $0x518] sm:$0xff]  }
  0x7d   :  { %7712 = vmatpush3.bf16.msra.mxu1 %v8547_v13  ;;  %7691 = vmatprep.subr.bf16.mxu0 %v8548_v14  ;;  %v8607_v13 = vld [vmem:[%s11148_s1 + $0x598] sm:$0xff]   ;;  %v8608_v14 = vld [vmem:[%s11148_s1 + $0x560] sm:$0xff]  }
  0x7e   :  { %7713 = vmatprep.subr.bf16.mxu1 %v8549_v15  ;;  %v8609_v15 = vld [vmem:[%s11148_s1 + $0x5e0] sm:$0xff]  }
  0x80   :  { %7692 = vmatpush3.bf16.msra.mxu0 %v8550_v16  ;;  %v8610_v16 = vld [vmem:[%s11148_s1 + $0x520] sm:$0xff]  }
  0x81   :  { %7714 = vmatpush3.bf16.msra.mxu1 %v8551_v17  ;;  %7721 = vmatprep.subr.bf16.mxu0 %v8556_v23  ;;  %v8611_v17 = vld [vmem:[%s11148_s1 + $0x5a0] sm:$0xff]   ;;  %v8617_v23 = vld [vmem:[%s11148_s1 + $0x5f0] sm:$0xff]  }
  0x82   :  { %7743 = vmatprep.subr.bf16.mxu1 %v8557_v25  ;;  %v8619_v25 = vld [vmem:[%s11148_s1 + $0x5b0] sm:$0xff]  }
  0x83   :  { %5469 = vmatmul.mubr.bf16.vlgmr.msra.gmra.mrb[12].mxu0 %v6864_v20  ;;  %v8614_v20 = vld [vmem:[%s11148_s1 + $0x528] sm:$0xff]  }
  0x84   :  { %5509 = vmatmul.mubr.bf16.vlgmr.msra.gmra.mrb[12].mxu1 %v6866_v22  ;;  %7722 = vmatpush3.bf16.msra.mxu0 %v8558_v26  ;;  %v8616_v22 = vld [vmem:[%s11148_s1 + $0x570] sm:$0xff]   ;;  %v8620_v26 = vld [vmem:[%s11148_s1 + $0x578] sm:$0xff]  }
  0x85   :  { %7744 = vmatpush3.bf16.msra.mxu1 %v8559_v27  ;;  %7723 = vmatprep.subr.bf16.mxu0 %v8560_v28  ;;  %v8621_v27 = vld [vmem:[%s11148_s1 + $0x5f8] sm:$0xff]  }
  0x86   :  { %7745 = vmatprep.subr.bf16.mxu1 %v8561_v29  ;;  %5548 = vmatprep.mubr.bf16.mxu0 %v6869_v58  ;;  %v8622_v28 = vld [vmem:[%s11148_s1 + $0x538] sm:$0xff]   ;;  %v8650_v58 = vld [vmem:[%s11148_s1 + $0x628] sm:$0xff]  }
  0x87   :  { %5588 = vmatprep.mubr.bf16.mxu1 %v6871_v61  ;;  %v8623_v29 = vld [vmem:[%s11148_s1 + $0x5b8] sm:$0xff]   ;;  %v8653_v61 = vld [vmem:[%s11148_s1 + $0x6f0] sm:$0xff]  }
  0x88   :  { %7724 = vmatpush3.bf16.msra.mxu0 %v8562_v30  ;;  %v31_v30 = vld [vmem:[%s11149_s0 + $0x50] sm:$0xff] }
  0x89   :  { %7746 = vmatpush3.bf16.msra.mxu1 %v8563_v31  ;;  %7725 = vmatprep.subr.bf16.mxu0 %v8564_v32  ;;  %v32_v31 = vld [vmem:[%s11149_s0 + $0x58] sm:$0xff]  ;;  %v6872_v32 = vcombine.low %v31_v30, %v31_v30 }
  0x8a   :  { %7747 = vmatprep.subr.bf16.mxu1 %v8565_v33  ;;  %v6873_v33 = vcombine.high %v31_v30, %v31_v30  ;;  %v8683_v30 = vld [vmem:[%s11148_s1 + $0x7a0] sm:$0xff]  }
  0x8c   :  { %7726 = vmatpush3.bf16.msra.mxu0 %v8566_v34  ;;  %v6874_v34 = vcombine.low %v32_v31, %v32_v31 }
  0x8d   :  { %7748 = vmatpush3.bf16.msra.mxu1 %v8567_v35  ;;  %7727 = vmatprep.subr.bf16.mxu0 %v8568_v36  ;;  %v6875_v35 = vcombine.high %v32_v31, %v32_v31  ;;  %v8628_v36 = vld [vmem:[%s11148_s1 + $0x640] sm:$0xff]  }
  0x8e   :  { %7749 = vmatprep.subr.bf16.mxu1 %v8569_v37  ;;  %v8629_v37 = vld [vmem:[%s11148_s1 + $0x6c0] sm:$0xff]  }
  0x90   :  { %7728 = vmatpush3.bf16.msra.mxu0 %v8570_v38  ;;  %v8630_v38 = vld [vmem:[%s11148_s1 + $0x600] sm:$0xff]  }
  0x91   :  { %7750 = vmatpush3.bf16.msra.mxu1 %v8571_v39  ;;  %7729 = vmatprep.subr.bf16.mxu0 %v8572_v40  ;;  %v8631_v39 = vld [vmem:[%s11148_s1 + $0x680] sm:$0xff]   ;;  %v8632_v40 = vld [vmem:[%s11148_s1 + $0x648] sm:$0xff]  }
  0x92   :  { %7751 = vmatprep.subr.bf16.mxu1 %v8573_v41  ;;  %v8633_v41 = vld [vmem:[%s11148_s1 + $0x6c8] sm:$0xff]  }
  0x94   :  { %7730 = vmatpush3.bf16.msra.mxu0 %v8574_v42  ;;  %v8634_v42 = vld [vmem:[%s11148_s1 + $0x608] sm:$0xff]  }
  0x95   :  { %7752 = vmatpush3.bf16.msra.mxu1 %v8575_v43  ;;  %7731 = vmatprep.subr.bf16.mxu0 %v8576_v44  ;;  %v8635_v43 = vld [vmem:[%s11148_s1 + $0x688] sm:$0xff]   ;;  %v8636_v44 = vld [vmem:[%s11148_s1 + $0x650] sm:$0xff]  }
  0x96   :  { %7753 = vmatprep.subr.bf16.mxu1 %v8577_v45  ;;  %v8637_v45 = vld [vmem:[%s11148_s1 + $0x6d0] sm:$0xff]  }
  0x98   :  { %7732 = vmatpush3.bf16.msra.mxu0 %v8578_v46  ;;  %v8638_v46 = vld [vmem:[%s11148_s1 + $0x610] sm:$0xff]  }
  0x99   :  { %7754 = vmatpush3.bf16.msra.mxu1 %v8579_v47  ;;  %7733 = vmatprep.subr.bf16.mxu0 %v8580_v48  ;;  %v8639_v47 = vld [vmem:[%s11148_s1 + $0x690] sm:$0xff]   ;;  %v8640_v48 = vld [vmem:[%s11148_s1 + $0x658] sm:$0xff]  }
  0x9a   :  { %7755 = vmatprep.subr.bf16.mxu1 %v8581_v49  ;;  %v8641_v49 = vld [vmem:[%s11148_s1 + $0x6d8] sm:$0xff]  }
  0x9c   :  { %7734 = vmatpush3.bf16.msra.mxu0 %v8582_v50  ;;  %v8642_v50 = vld [vmem:[%s11148_s1 + $0x618] sm:$0xff]  }
  0x9d   :  { %7756 = vmatpush3.bf16.msra.mxu1 %v8583_v51  ;;  %7735 = vmatprep.subr.bf16.mxu0 %v8584_v52  ;;  %v8643_v51 = vld [vmem:[%s11148_s1 + $0x698] sm:$0xff]   ;;  %v8644_v52 = vld [vmem:[%s11148_s1 + $0x660] sm:$0xff]  }
  0x9e   :  { %7757 = vmatprep.subr.bf16.mxu1 %v8585_v53  ;;  %v8645_v53 = vld [vmem:[%s11148_s1 + $0x6e0] sm:$0xff]  }
  0xa0   :  { %7736 = vmatpush3.bf16.msra.mxu0 %v8586_v54  ;;  %v8646_v54 = vld [vmem:[%s11148_s1 + $0x620] sm:$0xff]  }
  0xa1   :  { %7758 = vmatpush3.bf16.msra.mxu1 %v8587_v55  ;;  %7765 = vmatprep.subr.bf16.mxu0 %v8592_v62  ;;  %v8647_v55 = vld [vmem:[%s11148_s1 + $0x6a0] sm:$0xff]   ;;  %v8654_v62 = vld [vmem:[%s11148_s1 + $0x630] sm:$0xff]  }
  0xa2   :  { %7787 = vmatprep.subr.bf16.mxu1 %v8593_v63  ;;  %v8655_v63 = vld [vmem:[%s11148_s1 + $0x6b0] sm:$0xff]  }
  0xa3   :  { %5549 = vmatmul.mubr.bf16.vlgmr.msra.gmra.mrb[16].mxu0 %v6868_v57  ;;  %v8649_v57 = vld [vmem:[%s11148_s1 + $0x6e8] sm:$0xff]  }
  0xa4   :  { %5589 = vmatmul.mubr.bf16.vlgmr.msra.gmra.mrb[16].mxu1 %v6870_v60  ;;  %7766 = vmatpush3.bf16.msra.mxu0 %v8594_v0  ;;  %v8652_v60 = vld [vmem:[%s11148_s1 + $0x670] sm:$0xff]   ;;  %v8656_v0 = vld [vmem:[%s11148_s1 + $0x678] sm:$0xff]  }
  0xa5   :  { %7788 = vmatpush3.bf16.msra.mxu1 %v8595_v1  ;;  %7767 = vmatprep.subr.bf16.mxu0 %v8596_v2  ;;  %v8657_v1 = vld [vmem:[%s11148_s1 + $0x6f8] sm:$0xff]  }
  0xa6   :  { %7789 = vmatprep.subr.bf16.mxu1 %v8597_v3  ;;  %5628 = vmatprep.mubr.bf16.mxu0 %v6873_v33  ;;  %v8658_v2 = vld [vmem:[%s11148_s1 + $0x638] sm:$0xff]  }
  0xa7   :  { %5668 = vmatprep.mubr.bf16.mxu1 %v6875_v35  ;;  %v8659_v3 = vld [vmem:[%s11148_s1 + $0x6b8] sm:$0xff]  }
  0xa8   :  { %7768 = vmatpush3.bf16.msra.mxu0 %v8598_v4  ;;  %v33_v4 = vld [vmem:[%s11149_s0 + $0x60] sm:$0xff] }
  0xa9   :  { %7790 = vmatpush3.bf16.msra.mxu1 %v8599_v5  ;;  %7769 = vmatprep.subr.bf16.mxu0 %v8600_v6  ;;  %v34_v5 = vld [vmem:[%s11149_s0 + $0x68] sm:$0xff]  ;;  %v6876_v6 = vcombine.low %v33_v4, %v33_v4 }
  0xaa   :  { %7791 = vmatprep.subr.bf16.mxu1 %v8601_v7  ;;  %v6877_v7 = vcombine.high %v33_v4, %v33_v4  ;;  %v8707_v4 = vld [vmem:[%s11148_s1 + $0x888] sm:$0xff]  }
  0xac   :  { %7770 = vmatpush3.bf16.msra.mxu0 %v8602_v8  ;;  %v6878_v8 = vcombine.low %v34_v5, %v34_v5 }
  0xad   :  { %7792 = vmatpush3.bf16.msra.mxu1 %v8603_v9  ;;  %7771 = vmatprep.subr.bf16.mxu0 %v8604_v10  ;;  %v8664_v9 = vld [vmem:[%s11148_s1 + $0x740] sm:$0xff]   ;;  %v6879_v10 = vcombine.high %v34_v5, %v34_v5  ;;  %v8708_v5 = vld [vmem:[%s11148_s1 + $0x850] sm:$0xff]  }
  0xae   :  { %7793 = vmatprep.subr.bf16.mxu1 %v8605_v11  ;;  %v8665_v11 = vld [vmem:[%s11148_s1 + $0x7c0] sm:$0xff]  }
  0xb0   :  { %7772 = vmatpush3.bf16.msra.mxu0 %v8606_v12  ;;  %v8666_v12 = vld [vmem:[%s11148_s1 + $0x700] sm:$0xff]  }
  0xb1   :  { %7794 = vmatpush3.bf16.msra.mxu1 %v8607_v13  ;;  %7773 = vmatprep.subr.bf16.mxu0 %v8608_v14  ;;  %v8667_v13 = vld [vmem:[%s11148_s1 + $0x780] sm:$0xff]   ;;  %v8668_v14 = vld [vmem:[%s11148_s1 + $0x748] sm:$0xff]  }
  0xb2   :  { %7795 = vmatprep.subr.bf16.mxu1 %v8609_v15  ;;  %v8669_v15 = vld [vmem:[%s11148_s1 + $0x7c8] sm:$0xff]  }
  0xb4   :  { %7774 = vmatpush3.bf16.msra.mxu0 %v8610_v16  ;;  %v8670_v16 = vld [vmem:[%s11148_s1 + $0x708] sm:$0xff]  }
  0xb5   :  { %7796 = vmatpush3.bf16.msra.mxu1 %v8611_v17  ;;  %7775 = vmatprep.subr.bf16.mxu0 %v8612_v18  ;;  %v8671_v17 = vld [vmem:[%s11148_s1 + $0x788] sm:$0xff]   ;;  %v8672_v18 = vld [vmem:[%s11148_s1 + $0x750] sm:$0xff]  }
  0xb6   :  { %7797 = vmatprep.subr.bf16.mxu1 %v8613_v19  ;;  %v8673_v19 = vld [vmem:[%s11148_s1 + $0x7d0] sm:$0xff]  }
  0xb8   :  { %7776 = vmatpush3.bf16.msra.mxu0 %v8614_v20  ;;  %v8674_v20 = vld [vmem:[%s11148_s1 + $0x710] sm:$0xff]  }
  0xb9   :  { %7798 = vmatpush3.bf16.msra.mxu1 %v8615_v21  ;;  %7777 = vmatprep.subr.bf16.mxu0 %v8616_v22  ;;  %v8675_v21 = vld [vmem:[%s11148_s1 + $0x790] sm:$0xff]   ;;  %v8676_v22 = vld [vmem:[%s11148_s1 + $0x758] sm:$0xff]  }
  0xba   :  { %7799 = vmatprep.subr.bf16.mxu1 %v8617_v23  ;;  %v8677_v23 = vld [vmem:[%s11148_s1 + $0x7d8] sm:$0xff]  }
  0xbc   :  { %7778 = vmatpush3.bf16.msra.mxu0 %v8618_v24  ;;  %v8678_v24 = vld [vmem:[%s11148_s1 + $0x718] sm:$0xff]  }
  0xbd   :  { %7800 = vmatpush3.bf16.msra.mxu1 %v8619_v25  ;;  %7779 = vmatprep.subr.bf16.mxu0 %v8620_v26  ;;  %v8679_v25 = vld [vmem:[%s11148_s1 + $0x798] sm:$0xff]   ;;  %v8680_v26 = vld [vmem:[%s11148_s1 + $0x760] sm:$0xff]  }
  0xbe   :  { %7801 = vmatprep.subr.bf16.mxu1 %v8621_v27  ;;  %v8681_v27 = vld [vmem:[%s11148_s1 + $0x7e0] sm:$0xff]  }
  0xc0   :  { %7780 = vmatpush3.bf16.msra.mxu0 %v8622_v28  ;;  %v8682_v28 = vld [vmem:[%s11148_s1 + $0x720] sm:$0xff]  }
  0xc1   :  { %7802 = vmatpush3.bf16.msra.mxu1 %v8623_v29  ;;  %7809 = vmatprep.subr.bf16.mxu0 %v8628_v36 }
  0xc2   :  { %7831 = vmatprep.subr.bf16.mxu1 %v8629_v37  ;;  %v8684_v37 = vld [vmem:[%s11148_s1 + $0x768] sm:$0xff]  }
  0xc3   :  { %5629 = vmatmul.mubr.bf16.vlgmr.msra.gmra.mrb[20].mxu0 %v6872_v32  ;;  %v6851_v32 = vld [vmem:[%s11150_s2] ss:$0 sm:$0xff] }
  0xc4   :  { %5669 = vmatmul.mubr.bf16.vlgmr.msra.gmra.mrb[20].mxu1 %v6874_v34  ;;  %7810 = vmatpush3.bf16.msra.mxu0 %v8630_v38 }
  0xc5   :  { %7832 = vmatpush3.bf16.msra.mxu1 %v8631_v39  ;;  %7811 = vmatprep.subr.bf16.mxu0 %v8632_v40  ;;  %v8685_v39 = vld [vmem:[%s11148_s1 + $0x7e8] sm:$0xff]  }
  0xc6   :  { %7833 = vmatprep.subr.bf16.mxu1 %v8633_v41  ;;  %5708 = vmatprep.mubr.bf16.mxu0 %v6877_v7  ;;  %v8710_v7 = vld [vmem:[%s11148_s1 + $0x810] sm:$0xff]  }
  0xc7   :  { %5748 = vmatprep.mubr.bf16.mxu1 %v6879_v10  ;;  %v8713_v10 = vld [vmem:[%s11148_s1 + $0x8d8] sm:$0xff]  }
  0xc8   :  { %7812 = vmatpush3.bf16.msra.mxu0 %v8634_v42  ;;  %v8686_v42 = vld [vmem:[%s11148_s1 + $0x728] sm:$0xff]  }
  0xc9   :  { %7834 = vmatpush3.bf16.msra.mxu1 %v8635_v43  ;;  %7813 = vmatprep.subr.bf16.mxu0 %v8636_v44  ;;  %v8687_v44 = vld [vmem:[%s11148_s1 + $0x7a8] sm:$0xff]  }
  0xca   :  { %7835 = vmatprep.subr.bf16.mxu1 %v8637_v45 }
  0xcc   :  { %7814 = vmatpush3.bf16.msra.mxu0 %v8638_v46 }
  0xcd   :  { %7836 = vmatpush3.bf16.msra.mxu1 %v8639_v47  ;;  %7815 = vmatprep.subr.bf16.mxu0 %v8640_v48  ;;  %v8688_v47 = vld [vmem:[%s11148_s1 + $0x770] sm:$0xff]  }
  0xce   :  { %7837 = vmatprep.subr.bf16.mxu1 %v8641_v49  ;;  %v8689_v48 = vld [vmem:[%s11148_s1 + $0x7f0] sm:$0xff]  }
  0xcf   :  { %v8690_v49 = vld [vmem:[%s11148_s1 + $0x730] sm:$0xff]  }
  0xd0   :  { %7816 = vmatpush3.bf16.msra.mxu0 %v8642_v50  ;;  %v8691_v50 = vld [vmem:[%s11148_s1 + $0x7b0] sm:$0xff]  }
  0xd1   :  { %7838 = vmatpush3.bf16.msra.mxu1 %v8643_v51  ;;  %7817 = vmatprep.subr.bf16.mxu0 %v8644_v52  ;;  %v8692_v51 = vld [vmem:[%s11148_s1 + $0x778] sm:$0xff]  }
  0xd2   :  { %7839 = vmatprep.subr.bf16.mxu1 %v8645_v53  ;;  %v8693_v52 = vld [vmem:[%s11148_s1 + $0x7f8] sm:$0xff]  }
  0xd3   :  { %v8694_v53 = vld [vmem:[%s11148_s1 + $0x738] sm:$0xff]  }
  0xd4   :  { %7818 = vmatpush3.bf16.msra.mxu0 %v8646_v54  ;;  %v8695_v54 = vld [vmem:[%s11148_s1 + $0x7b8] sm:$0xff]  }
  0xd5   :  { %7840 = vmatpush3.bf16.msra.mxu1 %v8647_v55  ;;  %7819 = vmatprep.subr.bf16.mxu0 %v8648_v56  ;;  %v35_v55 = vld [vmem:[%s11149_s0 + $0x70] sm:$0xff]  ;;  %v36_v56 = vld [vmem:[%s11149_s0 + $0x78] sm:$0xff] }
  0xd6   :  { %7841 = vmatprep.subr.bf16.mxu1 %v8649_v57  ;;  %v6880_v57 = vcombine.low %v35_v55, %v35_v55 }
  0xd8   :  { %7820 = vmatpush3.bf16.msra.mxu0 %v8650_v58  ;;  %v6881_v58 = vcombine.high %v35_v55, %v35_v55  ;;  %v8744_v55 = vld [vmem:[%s11148_s1 + $0x950] sm:$0xff]  }
  0xd9   :  { %7842 = vmatpush3.bf16.msra.mxu1 %v8651_v59  ;;  %7821 = vmatprep.subr.bf16.mxu0 %v8652_v60  ;;  %v6882_v59 = vcombine.low %v36_v56, %v36_v56  ;;  %v6883_v60 = vcombine.high %v36_v56, %v36_v56  ;;  %v8745_v56 = vld [vmem:[%s11148_s1 + $0x9d0] sm:$0xff]  }
  0xda   :  { %7843 = vmatprep.subr.bf16.mxu1 %v8653_v61  ;;  %v8700_v61 = vld [vmem:[%s11148_s1 + $0x840] sm:$0xff]  }
  0xdc   :  { %7822 = vmatpush3.bf16.msra.mxu0 %v8654_v62  ;;  %v8701_v62 = vld [vmem:[%s11148_s1 + $0x8c0] sm:$0xff]  }
  0xdd   :  { %7844 = vmatpush3.bf16.msra.mxu1 %v8655_v63  ;;  %7823 = vmatprep.subr.bf16.mxu0 %v8656_v0  ;;  %v8702_v63 = vld [vmem:[%s11148_s1 + $0x800] sm:$0xff]  }
  0xde   :  { %7845 = vmatprep.subr.bf16.mxu1 %v8657_v1  ;;  %v8703_v0 = vld [vmem:[%s11148_s1 + $0x880] sm:$0xff]   ;;  %v8704_v1 = vld [vmem:[%s11148_s1 + $0x848] sm:$0xff]  }
  0xe0   :  { %7824 = vmatpush3.bf16.msra.mxu0 %v8658_v2  ;;  %v8705_v2 = vld [vmem:[%s11148_s1 + $0x8c8] sm:$0xff]  }
  0xe1   :  { %7846 = vmatpush3.bf16.msra.mxu1 %v8659_v3  ;;  %7853 = vmatprep.subr.bf16.mxu0 %v8664_v9  ;;  %v8706_v3 = vld [vmem:[%s11148_s1 + $0x808] sm:$0xff]   ;;  %v8712_v9 = vld [vmem:[%s11148_s1 + $0x858] sm:$0xff]  }
  0xe2   :  { %7875 = vmatprep.subr.bf16.mxu1 %v8665_v11  ;;  %v8714_v11 = vld [vmem:[%s11148_s1 + $0x818] sm:$0xff]  }
  0xe3   :  { %5709 = vmatmul.mubr.bf16.vlgmr.msra.gmra.mrb[24].mxu0 %v6876_v6  ;;  %v8709_v6 = vld [vmem:[%s11148_s1 + $0x8d0] sm:$0xff]  }
  0xe4   :  { %5749 = vmatmul.mubr.bf16.vlgmr.msra.gmra.mrb[24].mxu1 %v6878_v8  ;;  %7854 = vmatpush3.bf16.msra.mxu0 %v8666_v12  ;;  %v8711_v8 = vld [vmem:[%s11148_s1 + $0x890] sm:$0xff]   ;;  %v8715_v12 = vld [vmem:[%s11148_s1 + $0x898] sm:$0xff]  }
  0xe5   :  { %7876 = vmatpush3.bf16.msra.mxu1 %v8667_v13  ;;  %7855 = vmatprep.subr.bf16.mxu0 %v8668_v14  ;;  %v8716_v13 = vld [vmem:[%s11148_s1 + $0x860] sm:$0xff]  }
  0xe6   :  { %7877 = vmatprep.subr.bf16.mxu1 %v8669_v15  ;;  %5788 = vmatprep.mubr.bf16.mxu0 %v6881_v58  ;;  %v8717_v14 = vld [vmem:[%s11148_s1 + $0x8e0] sm:$0xff]   ;;  %v8747_v58 = vld [vmem:[%s11148_s1 + $0x990] sm:$0xff]  }
  0xe7   :  { %5828 = vmatprep.mubr.bf16.mxu1 %v6883_v60  ;;  %v8718_v15 = vld [vmem:[%s11148_s1 + $0x820] sm:$0xff]   ;;  %v8749_v60 = vld [vmem:[%s11148_s1 + $0x9d8] sm:$0xff]  }
  0xe8   :  { %7856 = vmatpush3.bf16.msra.mxu0 %v8670_v16 }
  0xe9   :  { %7878 = vmatpush3.bf16.msra.mxu1 %v8671_v17  ;;  %7857 = vmatprep.subr.bf16.mxu0 %v8672_v18  ;;  %v8719_v17 = vld [vmem:[%s11148_s1 + $0x8a0] sm:$0xff]  }
  0xea   :  { %7879 = vmatprep.subr.bf16.mxu1 %v8673_v19 }
  0xec   :  { %7858 = vmatpush3.bf16.msra.mxu0 %v8674_v20 }
  0xed   :  { %7880 = vmatpush3.bf16.msra.mxu1 %v8675_v21  ;;  %7859 = vmatprep.subr.bf16.mxu0 %v8676_v22 }
  0xee   :  { %7881 = vmatprep.subr.bf16.mxu1 %v8677_v23  ;;  %v8720_v23 = vld [vmem:[%s11148_s1 + $0x868] sm:$0xff]  }
  0xf0   :  { %7860 = vmatpush3.bf16.msra.mxu0 %v8678_v24 }
  0xf1   :  { %7882 = vmatpush3.bf16.msra.mxu1 %v8679_v25  ;;  %7861 = vmatprep.subr.bf16.mxu0 %v8680_v26  ;;  %v8721_v25 = vld [vmem:[%s11148_s1 + $0x8e8] sm:$0xff]  }
  0xf2   :  { %7883 = vmatprep.subr.bf16.mxu1 %v8681_v27 }
  0xf4   :  { %7862 = vmatpush3.bf16.msra.mxu0 %v8682_v28  ;;  %v8722_v28 = vld [vmem:[%s11148_s1 + $0x828] sm:$0xff]  }
  0xf5   :  { %7884 = vmatpush3.bf16.msra.mxu1 %v8683_v30  ;;  %7863 = vmatprep.subr.bf16.mxu0 %v8684_v37  ;;  %v8723_v30 = vld [vmem:[%s11148_s1 + $0x8a8] sm:$0xff]   ;;  %v8728_v37 = vld [vmem:[%s11148_s1 + $0x878] sm:$0xff]  }
  0xf6   :  { %v7561_v29 = vpop.f32.mrb[0].mxu0  ;;  %7885 = vmatprep.subr.bf16.mxu1 %v8685_v39  ;;  %v8730_v39 = vld [vmem:[%s11148_s1 + $0x838] sm:$0xff]  }
  0xf7   :  { %v7583_v31 = vpop.f32.mrb[0].mxu1  ;;  %v7562_v33 = vpop.f32.mrb[1].mxu0 }
  0xf8   :  { %v7584_v34 = vpop.f32.mrb[1].mxu1  ;;  %v7563_v35 = vadd.f32 %v7562_v33, %v7561_v29  ;;  %v7564_v38 = vpop.f32.mrb[2].mxu0  ;;  %7864 = vmatpush3.bf16.msra.mxu0 %v8686_v42  ;;  %v8724_v33 = vld [vmem:[%s11148_s1 + $0x870] sm:$0xff]   ;;  %v38_v42 = vld [vmem:[%s11149_s0 + $0x88] sm:$0xff] }
  0xf9   :  { %v7585_v36 = vadd.f32 %v7584_v34, %v7583_v31  ;;  %v7586_v40 = vpop.f32.mrb[2].mxu1  ;;  %v7565_v43 = vpop.f32.mrb[3].mxu0  ;;  %7886 = vmatpush3.bf16.msra.mxu1 %v8687_v44  ;;  %7865 = vmatprep.subr.bf16.mxu0 %v8688_v47  ;;  %v8725_v34 = vld [vmem:[%s11148_s1 + $0x8f0] sm:$0xff]   ;;  %v8729_v38 = vld [vmem:[%s11148_s1 + $0x8f8] sm:$0xff]   ;;  %v8736_v47 = vld [vmem:[%s11148_s1 + $0x940] sm:$0xff]  }
  0xfa   :  { %v5231_v41 = vadd.f32 %v7563_v35, %v6851_v32  ;;  %v7587_v45 = vpop.f32.mrb[3].mxu1  ;;  %7887 = vmatprep.subr.bf16.mxu1 %v8689_v48  ;;  %v8726_v35 = vld [vmem:[%s11148_s1 + $0x830] sm:$0xff]   ;;  %v8731_v40 = vld [vmem:[%s11148_s1 + $0x8b8] sm:$0xff]   ;;  %v8737_v48 = vld [vmem:[%s11148_s1 + $0x9c0] sm:$0xff]  }
  0xfb   :  { %v6886_v45 = vcombine.low %v38_v42, %v38_v42 }
  0xfc   :  { %v9933_v46 = vadd.f32 %v7585_v36, %v5231_v41  ;;  %7866 = vmatpush3.bf16.msra.mxu0 %v8690_v49  ;;  %v8727_v36 = vld [vmem:[%s11148_s1 + $0x8b0] sm:$0xff]   ;;  %v37_v41 = vld [vmem:[%s11149_s0 + $0x80] sm:$0xff] }
  0xfd   :  { %7888 = vmatpush3.bf16.msra.mxu1 %v8691_v50  ;;  %7867 = vmatprep.subr.bf16.mxu0 %v8692_v51  ;;  %v6884_v43 = vcombine.low %v37_v41, %v37_v41  ;;  %v6885_v44 = vcombine.high %v37_v41, %v37_v41  ;;  %v8738_v49 = vld [vmem:[%s11148_s1 + $0x900] sm:$0xff]   ;;  %v8740_v51 = vld [vmem:[%s11148_s1 + $0x948] sm:$0xff]   ;;  %v8780_v41 = vld [vmem:[%s11148_s1 + $0xa50] sm:$0xff]  }
  0xfe   :  { %7889 = vmatprep.subr.bf16.mxu1 %v8693_v52  ;;  %v8739_v50 = vld [vmem:[%s11148_s1 + $0x980] sm:$0xff]   ;;  %v8741_v52 = vld [vmem:[%s11148_s1 + $0x9c8] sm:$0xff]  }
 0x100   :  { %7868 = vmatpush3.bf16.msra.mxu0 %v8694_v53  ;;  %v8742_v53 = vld [vmem:[%s11148_s1 + $0x908] sm:$0xff]  }
 0x101   :  { %7890 = vmatpush3.bf16.msra.mxu1 %v8695_v54  ;;  %7897 = vmatprep.subr.bf16.mxu0 %v8700_v61  ;;  %v8743_v54 = vld [vmem:[%s11148_s1 + $0x988] sm:$0xff]   ;;  %v8750_v61 = vld [vmem:[%s11148_s1 + $0x918] sm:$0xff]  }
 0x102   :  { %7919 = vmatprep.subr.bf16.mxu1 %v8701_v62  ;;  %v8751_v62 = vld [vmem:[%s11148_s1 + $0x998] sm:$0xff]  }
 0x103   :  { %5789 = vmatmul.mubr.bf16.vlgmr.msra.gmra.mrb[28].mxu0 %v6880_v57  ;;  %v8746_v57 = vld [vmem:[%s11148_s1 + $0x910] sm:$0xff]  }
 0x104   :  { %5829 = vmatmul.mubr.bf16.vlgmr.msra.gmra.mrb[28].mxu1 %v6882_v59  ;;  %7898 = vmatpush3.bf16.msra.mxu0 %v8702_v63  ;;  %v8748_v59 = vld [vmem:[%s11148_s1 + $0x958] sm:$0xff]   ;;  %v8752_v63 = vld [vmem:[%s11148_s1 + $0x960] sm:$0xff]  }
 0x105   :  { %7920 = vmatpush3.bf16.msra.mxu1 %v8703_v0  ;;  %7899 = vmatprep.subr.bf16.mxu0 %v8704_v1  ;;  %v8753_v0 = vld [vmem:[%s11148_s1 + $0x9e0] sm:$0xff]  }
 0x106   :  { %7921 = vmatprep.subr.bf16.mxu1 %v8705_v2  ;;  %5868 = vmatprep.mubr.bf16.mxu0 %v6885_v44  ;;  %v8754_v2 = vld [vmem:[%s11148_s1 + $0x920] sm:$0xff]   ;;  %v8783_v44 = vld [vmem:[%s11148_s1 + $0xa90] sm:$0xff]  }
 0x108   :  { %7900 = vmatpush3.bf16.msra.mxu0 %v8706_v3 }
 0x109   :  { %7922 = vmatpush3.bf16.msra.mxu1 %v8707_v4  ;;  %7901 = vmatprep.subr.bf16.mxu0 %v8708_v5  ;;  %v8755_v4 = vld [vmem:[%s11148_s1 + $0x9a0] sm:$0xff]  }
 0x10a   :  { %7923 = vmatprep.subr.bf16.mxu1 %v8709_v6 }
 0x10c   :  { %7902 = vmatpush3.bf16.msra.mxu0 %v8710_v7 }
 0x10d   :  { %7924 = vmatpush3.bf16.msra.mxu1 %v8711_v8  ;;  %7903 = vmatprep.subr.bf16.mxu0 %v8712_v9  ;;  %v8756_v8 = vld [vmem:[%s11148_s1 + $0x968] sm:$0xff]  }
 0x10e   :  { %7925 = vmatprep.subr.bf16.mxu1 %v8713_v10  ;;  %v8757_v10 = vld [vmem:[%s11148_s1 + $0x9e8] sm:$0xff]  }
 0x110   :  { %7904 = vmatpush3.bf16.msra.mxu0 %v8714_v11 }
 0x111   :  { %7926 = vmatpush3.bf16.msra.mxu1 %v8715_v12  ;;  %7905 = vmatprep.subr.bf16.mxu0 %v8716_v13 }
 0x112   :  { %7927 = vmatprep.subr.bf16.mxu1 %v8717_v14  ;;  %v8758_v14 = vld [vmem:[%s11148_s1 + $0x928] sm:$0xff]  }
 0x114   :  { %7906 = vmatpush3.bf16.msra.mxu0 %v8718_v15  ;;  %v8759_v15 = vld [vmem:[%s11148_s1 + $0x9a8] sm:$0xff]  }
 0x115   :  { %7928 = vmatpush3.bf16.msra.mxu1 %v8719_v17  ;;  %7907 = vmatprep.subr.bf16.mxu0 %v8720_v23  ;;  %v8764_v23 = vld [vmem:[%s11148_s1 + $0x978] sm:$0xff]  }
 0x116   :  { %v7605_v16 = vpop.f32.mrb[4].mxu0  ;;  %7929 = vmatprep.subr.bf16.mxu1 %v8721_v25  ;;  %v8766_v25 = vld [vmem:[%s11148_s1 + $0x938] sm:$0xff]  }
 0x117   :  { %v7627_v18 = vpop.f32.mrb[4].mxu1  ;;  %v7606_v19 = vpop.f32.mrb[5].mxu0 }
 0x118   :  { %v7628_v20 = vpop.f32.mrb[5].mxu1  ;;  %v7607_v21 = vadd.f32 %v7606_v19, %v7605_v16  ;;  %v7608_v24 = vpop.f32.mrb[6].mxu0  ;;  %7908 = vmatpush3.bf16.msra.mxu0 %v8722_v28  ;;  %v8760_v19 = vld [vmem:[%s11148_s1 + $0x970] sm:$0xff]   ;;  %v40_v28 = vld [vmem:[%s11149_s0 + $0x98] sm:$0xff] }
 0x119   :  { %v7629_v22 = vadd.f32 %v7628_v20, %v7627_v18  ;;  %v7630_v26 = vpop.f32.mrb[6].mxu1  ;;  %v7609_v29 = vpop.f32.mrb[7].mxu0  ;;  %7930 = vmatpush3.bf16.msra.mxu1 %v8723_v30  ;;  %7909 = vmatprep.subr.bf16.mxu0 %v8724_v33  ;;  %v8761_v20 = vld [vmem:[%s11148_s1 + $0x9f0] sm:$0xff]   ;;  %v8765_v24 = vld [vmem:[%s11148_s1 + $0x9f8] sm:$0xff]   ;;  %v6891_v33 = vcombine.high %v40_v28, %v40_v28 }
 0x11a   :  { %v5311_v27 = vadd.f32 %v7607_v21, %v9933_v46  ;;  %v7631_v31 = vpop.f32.mrb[7].mxu1  ;;  %7931 = vmatprep.subr.bf16.mxu1 %v8725_v34  ;;  %v6887_v46 = vcombine.high %v38_v42, %v38_v42  ;;  %v8762_v21 = vld [vmem:[%s11148_s1 + $0x930] sm:$0xff]   ;;  %v8767_v26 = vld [vmem:[%s11148_s1 + $0x9b8] sm:$0xff]   ;;  %v8773_v34 = vld [vmem:[%s11148_s1 + $0xac0] sm:$0xff]  }
 0x11b   :  { %v6890_v31 = vcombine.low %v40_v28, %v40_v28  ;;  %v8781_v42 = vld [vmem:[%s11148_s1 + $0xad0] sm:$0xff]  }
 0x11c   :  { %v10038_v32 = vadd.f32 %v7629_v22, %v5311_v27  ;;  %7910 = vmatpush3.bf16.msra.mxu0 %v8726_v35  ;;  %5908 = vmatprep.mubr.bf16.mxu1 %v6887_v46  ;;  %v8763_v22 = vld [vmem:[%s11148_s1 + $0x9b0] sm:$0xff]   ;;  %v8774_v35 = vld [vmem:[%s11148_s1 + $0xa00] sm:$0xff]   ;;  %v8785_v46 = vld [vmem:[%s11148_s1 + $0xad8] sm:$0xff]  }
 0x11d   :  { %7932 = vmatpush3.bf16.msra.mxu1 %v8727_v36  ;;  %7911 = vmatprep.subr.bf16.mxu0 %v8728_v37  ;;  %v39_v27 = vld [vmem:[%s11149_s0 + $0x90] sm:$0xff]  ;;  %v8775_v36 = vld [vmem:[%s11148_s1 + $0xa80] sm:$0xff]   ;;  %v8776_v37 = vld [vmem:[%s11148_s1 + $0xa48] sm:$0xff]  }
 0x11e   :  { %7933 = vmatprep.subr.bf16.mxu1 %v8729_v38  ;;  %v6888_v29 = vcombine.low %v39_v27, %v39_v27  ;;  %v6889_v30 = vcombine.high %v39_v27, %v39_v27  ;;  %v8777_v38 = vld [vmem:[%s11148_s1 + $0xac8] sm:$0xff]   ;;  %v8816_v27 = vld [vmem:[%s11148_s1 + $0xb50] sm:$0xff]  }
 0x11f   :  { %v8817_v28 = vld [vmem:[%s11148_s1 + $0xbd0] sm:$0xff]  }
 0x120   :  { %7912 = vmatpush3.bf16.msra.mxu0 %v8730_v39  ;;  %v8778_v39 = vld [vmem:[%s11148_s1 + $0xa08] sm:$0xff]  }
 0x121   :  { %7934 = vmatpush3.bf16.msra.mxu1 %v8731_v40  ;;  %7941 = vmatprep.subr.bf16.mxu0 %v8736_v47  ;;  %v8779_v40 = vld [vmem:[%s11148_s1 + $0xa88] sm:$0xff]   ;;  %v8786_v47 = vld [vmem:[%s11148_s1 + $0xa18] sm:$0xff]  }
 0x122   :  { %7963 = vmatprep.subr.bf16.mxu1 %v8737_v48  ;;  %v8787_v48 = vld [vmem:[%s11148_s1 + $0xa98] sm:$0xff]  }
 0x123   :  { %5869 = vmatmul.mubr.bf16.vlgmr.msra.gmra.mrb[32].mxu0 %v6884_v43  ;;  %v8782_v43 = vld [vmem:[%s11148_s1 + $0xa10] sm:$0xff]  }
 0x124   :  { %5909 = vmatmul.mubr.bf16.vlgmr.msra.gmra.mrb[32].mxu1 %v6886_v45  ;;  %7942 = vmatpush3.bf16.msra.mxu0 %v8738_v49  ;;  %v8784_v45 = vld [vmem:[%s11148_s1 + $0xa58] sm:$0xff]   ;;  %v8788_v49 = vld [vmem:[%s11148_s1 + $0xa60] sm:$0xff]  }
 0x125   :  { %7964 = vmatpush3.bf16.msra.mxu1 %v8739_v50  ;;  %7943 = vmatprep.subr.bf16.mxu0 %v8740_v51  ;;  %v8789_v50 = vld [vmem:[%s11148_s1 + $0xae0] sm:$0xff]  }
 0x126   :  { %7965 = vmatprep.subr.bf16.mxu1 %v8741_v52  ;;  %5948 = vmatprep.mubr.bf16.mxu0 %v6889_v30  ;;  %v8790_v52 = vld [vmem:[%s11148_s1 + $0xa20] sm:$0xff]   ;;  %v8819_v30 = vld [vmem:[%s11148_s1 + $0xb90] sm:$0xff]  }
 0x127   :  { %5988 = vmatprep.mubr.bf16.mxu1 %v6891_v33  ;;  %v8822_v33 = vld [vmem:[%s11148_s1 + $0xb18] sm:$0xff]  }
 0x128   :  { %7944 = vmatpush3.bf16.msra.mxu0 %v8742_v53 }
 0x129   :  { %7966 = vmatpush3.bf16.msra.mxu1 %v8743_v54  ;;  %7945 = vmatprep.subr.bf16.mxu0 %v8744_v55  ;;  %v8791_v54 = vld [vmem:[%s11148_s1 + $0xaa0] sm:$0xff]  }
 0x12a   :  { %7967 = vmatprep.subr.bf16.mxu1 %v8745_v56 }
 0x12c   :  { %7946 = vmatpush3.bf16.msra.mxu0 %v8746_v57  ;;  %v8792_v57 = vld [vmem:[%s11148_s1 + $0xa68] sm:$0xff]  }
 0x12d   :  { %7968 = vmatpush3.bf16.msra.mxu1 %v8747_v58  ;;  %7947 = vmatprep.subr.bf16.mxu0 %v8748_v59 }
 0x12e   :  { %7969 = vmatprep.subr.bf16.mxu1 %v8749_v60  ;;  %v8793_v60 = vld [vmem:[%s11148_s1 + $0xae8] sm:$0xff]  }
 0x130   :  { %7948 = vmatpush3.bf16.msra.mxu0 %v8750_v61 }
 0x131   :  { %7970 = vmatpush3.bf16.msra.mxu1 %v8751_v62  ;;  %7949 = vmatprep.subr.bf16.mxu0 %v8752_v63  ;;  %v8794_v63 = vld [vmem:[%s11148_s1 + $0xa28] sm:$0xff]  }
 0x132   :  { %7971 = vmatprep.subr.bf16.mxu1 %v8753_v0 }
 0x134   :  { %7950 = vmatpush3.bf16.msra.mxu0 %v8754_v2 }
 0x135   :  { %7972 = vmatpush3.bf16.msra.mxu1 %v8755_v4  ;;  %7951 = vmatprep.subr.bf16.mxu0 %v8756_v8  ;;  %v8796_v4 = vld [vmem:[%s11148_s1 + $0xa70] sm:$0xff]  }
 0x136   :  { %v7649_v1 = vpop.f32.mrb[8].mxu0  ;;  %7973 = vmatprep.subr.bf16.mxu1 %v8757_v10  ;;  %v8799_v8 = vld [vmem:[%s11148_s1 + $0xab0] sm:$0xff]   ;;  %v8801_v10 = vld [vmem:[%s11148_s1 + $0xaf8] sm:$0xff]  }
 0x137   :  { %v7671_v3 = vpop.f32.mrb[8].mxu1  ;;  %v7650_v5 = vpop.f32.mrb[9].mxu0 }
 0x138   :  { %v7651_v6 = vadd.f32 %v7650_v5, %v7649_v1  ;;  %v7672_v7 = vpop.f32.mrb[9].mxu1  ;;  %v7652_v11 = vpop.f32.mrb[10].mxu0  ;;  %7952 = vmatpush3.bf16.msra.mxu0 %v8758_v14  ;;  %v8795_v1 = vld [vmem:[%s11148_s1 + $0xaa8] sm:$0xff]  }
 0x139   :  { %v7673_v9 = vadd.f32 %v7672_v7, %v7671_v3  ;;  %v7674_v13 = vpop.f32.mrb[10].mxu1  ;;  %v7653_v16 = vpop.f32.mrb[11].mxu0  ;;  %7974 = vmatpush3.bf16.msra.mxu1 %v8759_v15  ;;  %7953 = vmatprep.subr.bf16.mxu0 %v8760_v19  ;;  %v8798_v7 = vld [vmem:[%s11148_s1 + $0xa30] sm:$0xff]   ;;  %v8802_v11 = vld [vmem:[%s11148_s1 + $0xa38] sm:$0xff]   ;;  %v8808_v19 = vld [vmem:[%s11148_s1 + $0xb40] sm:$0xff]  }
 0x13a   :  { %v5391_v12 = vadd.f32 %v7651_v6, %v10038_v32  ;;  %v7675_v18 = vpop.f32.mrb[11].mxu1  ;;  %7975 = vmatprep.subr.bf16.mxu1 %v8761_v20  ;;  %v8772_v32 = vld [vmem:[%s11148_s1 + $0xa40] sm:$0xff]   ;;  %v8797_v6 = vld [vmem:[%s11148_s1 + $0xaf0] sm:$0xff]   ;;  %v42_v16 = vld [vmem:[%s11149_s0 + $0xa8] sm:$0xff] }
 0x13b   :  { %v41_v13 = vld [vmem:[%s11149_s0 + $0xa0] sm:$0xff]  ;;  %v6895_v18 = vcombine.high %v42_v16, %v42_v16 }
 0x13c   :  { %v10143_v17 = vadd.f32 %v7673_v9, %v5391_v12  ;;  %7954 = vmatpush3.bf16.msra.mxu0 %v8762_v21  ;;  %v8800_v9 = vld [vmem:[%s11148_s1 + $0xa78] sm:$0xff]   ;;  %v6892_v14 = vcombine.low %v41_v13, %v41_v13  ;;  %v6893_v15 = vcombine.high %v41_v13, %v41_v13  ;;  %v8809_v20 = vld [vmem:[%s11148_s1 + $0xbc0] sm:$0xff]   ;;  %v8852_v13 = vld [vmem:[%s11148_s1 + $0xc50] sm:$0xff]  }
 0x13d   :  { %7976 = vmatpush3.bf16.msra.mxu1 %v8763_v22  ;;  %7955 = vmatprep.subr.bf16.mxu0 %v8764_v23  ;;  %v8803_v12 = vld [vmem:[%s11148_s1 + $0xab8] sm:$0xff]   ;;  %v8810_v21 = vld [vmem:[%s11148_s1 + $0xb00] sm:$0xff]   ;;  %v8812_v23 = vld [vmem:[%s11148_s1 + $0xb48] sm:$0xff]  }
 0x13e   :  { %7977 = vmatprep.subr.bf16.mxu1 %v8765_v24  ;;  %v8811_v22 = vld [vmem:[%s11148_s1 + $0xb80] sm:$0xff]   ;;  %v8813_v24 = vld [vmem:[%s11148_s1 + $0xbc8] sm:$0xff]  }
 0x140   :  { %7956 = vmatpush3.bf16.msra.mxu0 %v8766_v25  ;;  %v8814_v25 = vld [vmem:[%s11148_s1 + $0xb08] sm:$0xff]  }
 0x141   :  { %7978 = vmatpush3.bf16.msra.mxu1 %v8767_v26  ;;  %7985 = vmatprep.subr.bf16.mxu0 %v8772_v32  ;;  %v8815_v26 = vld [vmem:[%s11148_s1 + $0xb88] sm:$0xff]   ;;  %v8821_v32 = vld [vmem:[%s11148_s1 + $0xbd8] sm:$0xff]  }
 0x142   :  { %8007 = vmatprep.subr.bf16.mxu1 %v8773_v34  ;;  %v8823_v34 = vld [vmem:[%s11148_s1 + $0xb98] sm:$0xff]  }
 0x143   :  { %5949 = vmatmul.mubr.bf16.vlgmr.msra.gmra.mrb[36].mxu0 %v6888_v29  ;;  %v8818_v29 = vld [vmem:[%s11148_s1 + $0xb10] sm:$0xff]  }
 0x144   :  { %5989 = vmatmul.mubr.bf16.vlgmr.msra.gmra.mrb[36].mxu1 %v6890_v31  ;;  %7986 = vmatpush3.bf16.msra.mxu0 %v8774_v35  ;;  %v8820_v31 = vld [vmem:[%s11148_s1 + $0xb58] sm:$0xff]   ;;  %v8824_v35 = vld [vmem:[%s11148_s1 + $0xb60] sm:$0xff]  }
 0x145   :  { %8008 = vmatpush3.bf16.msra.mxu1 %v8775_v36  ;;  %7987 = vmatprep.subr.bf16.mxu0 %v8776_v37  ;;  %v8825_v36 = vld [vmem:[%s11148_s1 + $0xbe0] sm:$0xff]  }
 0x146   :  { %8009 = vmatprep.subr.bf16.mxu1 %v8777_v38  ;;  %6028 = vmatprep.mubr.bf16.mxu0 %v6893_v15  ;;  %v8826_v38 = vld [vmem:[%s11148_s1 + $0xb20] sm:$0xff]   ;;  %v8854_v15 = vld [vmem:[%s11148_s1 + $0xc10] sm:$0xff]  }
 0x147   :  { %6068 = vmatprep.mubr.bf16.mxu1 %v6895_v18  ;;  %v8857_v18 = vld [vmem:[%s11148_s1 + $0xcd8] sm:$0xff]  }
 0x148   :  { %7988 = vmatpush3.bf16.msra.mxu0 %v8778_v39 }
 0x149   :  { %8010 = vmatpush3.bf16.msra.mxu1 %v8779_v40  ;;  %7989 = vmatprep.subr.bf16.mxu0 %v8780_v41  ;;  %v8827_v40 = vld [vmem:[%s11148_s1 + $0xba0] sm:$0xff]  }
 0x14a   :  { %8011 = vmatprep.subr.bf16.mxu1 %v8781_v42 }
 0x14c   :  { %7990 = vmatpush3.bf16.msra.mxu0 %v8782_v43  ;;  %v8828_v43 = vld [vmem:[%s11148_s1 + $0xb68] sm:$0xff]  }
 0x14d   :  { %8012 = vmatpush3.bf16.msra.mxu1 %v8783_v44  ;;  %7991 = vmatprep.subr.bf16.mxu0 %v8784_v45 }
 0x14e   :  { %8013 = vmatprep.subr.bf16.mxu1 %v8785_v46  ;;  %v8829_v46 = vld [vmem:[%s11148_s1 + $0xbe8] sm:$0xff]  }
 0x150   :  { %7992 = vmatpush3.bf16.msra.mxu0 %v8786_v47 }
 0x151   :  { %8014 = vmatpush3.bf16.msra.mxu1 %v8787_v48  ;;  %7993 = vmatprep.subr.bf16.mxu0 %v8788_v49  ;;  %v8830_v49 = vld [vmem:[%s11148_s1 + $0xb28] sm:$0xff]  }
 0x152   :  { %8015 = vmatprep.subr.bf16.mxu1 %v8789_v50 }
 0x154   :  { %7994 = vmatpush3.bf16.msra.mxu0 %v8790_v52 }
 0x155   :  { %8016 = vmatpush3.bf16.msra.mxu1 %v8791_v54  ;;  %7995 = vmatprep.subr.bf16.mxu0 %v8792_v57  ;;  %v8832_v54 = vld [vmem:[%s11148_s1 + $0xb70] sm:$0xff]  }
 0x156   :  { %v7693_v51 = vpop.f32.mrb[12].mxu0  ;;  %8017 = vmatprep.subr.bf16.mxu1 %v8793_v60  ;;  %v8834_v57 = vld [vmem:[%s11148_s1 + $0xb30] sm:$0xff]   ;;  %v8837_v60 = vld [vmem:[%s11148_s1 + $0xbf8] sm:$0xff]  }
 0x157   :  { %v7715_v53 = vpop.f32.mrb[12].mxu1  ;;  %v7694_v55 = vpop.f32.mrb[13].mxu0 }
 0x158   :  { %v7716_v56 = vpop.f32.mrb[13].mxu1  ;;  %v7695_v58 = vadd.f32 %v7694_v55, %v7693_v51  ;;  %v7696_v61 = vpop.f32.mrb[14].mxu0  ;;  %7996 = vmatpush3.bf16.msra.mxu0 %v8794_v63  ;;  %v8831_v51 = vld [vmem:[%s11148_s1 + $0xba8] sm:$0xff]   ;;  %v43_v63 = vld [vmem:[%s11149_s0 + $0xb0] sm:$0xff] }
 0x159   :  { %v7717_v59 = vadd.f32 %v7716_v56, %v7715_v53  ;;  %v7718_v62 = vpop.f32.mrb[14].mxu1  ;;  %v7697_v2 = vpop.f32.mrb[15].mxu0  ;;  %8018 = vmatpush3.bf16.msra.mxu1 %v8795_v1  ;;  %7997 = vmatprep.subr.bf16.mxu0 %v8796_v4  ;;  %v8833_v56 = vld [vmem:[%s11148_s1 + $0xbf0] sm:$0xff]   ;;  %v8838_v61 = vld [vmem:[%s11148_s1 + $0xb38] sm:$0xff]   ;;  %v6896_v1 = vcombine.low %v43_v63, %v43_v63 }
 0x15a   :  { %v5471_v0 = vadd.f32 %v7695_v58, %v10143_v17  ;;  %v7719_v3 = vpop.f32.mrb[15].mxu1  ;;  %8019 = vmatprep.subr.bf16.mxu1 %v8797_v6  ;;  %v6894_v17 = vcombine.low %v42_v16, %v42_v16  ;;  %v8835_v58 = vld [vmem:[%s11148_s1 + $0xbb0] sm:$0xff]   ;;  %v8839_v62 = vld [vmem:[%s11148_s1 + $0xbb8] sm:$0xff]   ;;  %v6897_v2 = vcombine.high %v43_v63, %v43_v63  ;;  %v8845_v6 = vld [vmem:[%s11148_s1 + $0xcc0] sm:$0xff]  }
 0x15b   :  { %v8855_v16 = vld [vmem:[%s11148_s1 + $0xc90] sm:$0xff]  }
 0x15c   :  { %v10251_v5 = vadd.f32 %v7717_v59, %v5471_v0  ;;  %7998 = vmatpush3.bf16.msra.mxu0 %v8798_v7  ;;  %v8836_v59 = vld [vmem:[%s11148_s1 + $0xb78] sm:$0xff]   ;;  %v8846_v7 = vld [vmem:[%s11148_s1 + $0xc00] sm:$0xff]   ;;  %v8888_v63 = vld [vmem:[%s11148_s1 + $0xd50] sm:$0xff]  }
 0x15d   :  { %8020 = vmatpush3.bf16.msra.mxu1 %v8799_v8  ;;  %7999 = vmatprep.subr.bf16.mxu0 %v8800_v9  ;;  %v44_v0 = vld [vmem:[%s11149_s0 + $0xb8] sm:$0xff]  ;;  %v8847_v8 = vld [vmem:[%s11148_s1 + $0xc80] sm:$0xff]   ;;  %v8848_v9 = vld [vmem:[%s11148_s1 + $0xc48] sm:$0xff]  }
 0x15e   :  { %8021 = vmatprep.subr.bf16.mxu1 %v8801_v10  ;;  %v6898_v3 = vcombine.low %v44_v0, %v44_v0  ;;  %v6899_v4 = vcombine.high %v44_v0, %v44_v0  ;;  %v8849_v10 = vld [vmem:[%s11148_s1 + $0xcc8] sm:$0xff]   ;;  %v8889_v0 = vld [vmem:[%s11148_s1 + $0xdd0] sm:$0xff]  }
 0x160   :  { %8000 = vmatpush3.bf16.msra.mxu0 %v8802_v11  ;;  %v8850_v11 = vld [vmem:[%s11148_s1 + $0xc08] sm:$0xff]  }
 0x161   :  { %8022 = vmatpush3.bf16.msra.mxu1 %v8803_v12  ;;  %8029 = vmatprep.subr.bf16.mxu0 %v8808_v19  ;;  %v8851_v12 = vld [vmem:[%s11148_s1 + $0xc88] sm:$0xff]   ;;  %v8858_v19 = vld [vmem:[%s11148_s1 + $0xc18] sm:$0xff]  }
 0x162   :  { %8051 = vmatprep.subr.bf16.mxu1 %v8809_v20  ;;  %v8859_v20 = vld [vmem:[%s11148_s1 + $0xc98] sm:$0xff]  }
 0x163   :  { %6029 = vmatmul.mubr.bf16.vlgmr.msra.gmra.mrb[40].mxu0 %v6892_v14  ;;  %v8853_v14 = vld [vmem:[%s11148_s1 + $0xcd0] sm:$0xff]  }
 0x164   :  { %6069 = vmatmul.mubr.bf16.vlgmr.msra.gmra.mrb[40].mxu1 %v6894_v17  ;;  %8030 = vmatpush3.bf16.msra.mxu0 %v8810_v21  ;;  %v8856_v17 = vld [vmem:[%s11148_s1 + $0xc58] sm:$0xff]   ;;  %v8860_v21 = vld [vmem:[%s11148_s1 + $0xc60] sm:$0xff]  }
 0x165   :  { %8052 = vmatpush3.bf16.msra.mxu1 %v8811_v22  ;;  %8031 = vmatprep.subr.bf16.mxu0 %v8812_v23  ;;  %v8861_v22 = vld [vmem:[%s11148_s1 + $0xce0] sm:$0xff]  }
 0x166   :  { %8053 = vmatprep.subr.bf16.mxu1 %v8813_v24  ;;  %6108 = vmatprep.mubr.bf16.mxu0 %v6897_v2  ;;  %v8862_v24 = vld [vmem:[%s11148_s1 + $0xc20] sm:$0xff]   ;;  %v8891_v2 = vld [vmem:[%s11148_s1 + $0xd90] sm:$0xff]  }
 0x167   :  { %6148 = vmatprep.mubr.bf16.mxu1 %v6899_v4  ;;  %v8893_v4 = vld [vmem:[%s11148_s1 + $0xdd8] sm:$0xff]  }
 0x168   :  { %8032 = vmatpush3.bf16.msra.mxu0 %v8814_v25 }
 0x169   :  { %8054 = vmatpush3.bf16.msra.mxu1 %v8815_v26  ;;  %8033 = vmatprep.subr.bf16.mxu0 %v8816_v27  ;;  %v8863_v26 = vld [vmem:[%s11148_s1 + $0xca0] sm:$0xff]  }
 0x16a   :  { %8055 = vmatprep.subr.bf16.mxu1 %v8817_v28 }
 0x16c   :  { %8034 = vmatpush3.bf16.msra.mxu0 %v8818_v29 }
 0x16d   :  { %8056 = vmatpush3.bf16.msra.mxu1 %v8819_v30  ;;  %8035 = vmatprep.subr.bf16.mxu0 %v8820_v31  ;;  %v8864_v30 = vld [vmem:[%s11148_s1 + $0xc68] sm:$0xff]  }
 0x16e   :  { %8057 = vmatprep.subr.bf16.mxu1 %v8821_v32  ;;  %v8865_v32 = vld [vmem:[%s11148_s1 + $0xce8] sm:$0xff]  }
 0x170   :  { %8036 = vmatpush3.bf16.msra.mxu0 %v8822_v33 }
 0x171   :  { %8058 = vmatpush3.bf16.msra.mxu1 %v8823_v34  ;;  %8037 = vmatprep.subr.bf16.mxu0 %v8824_v35 }
 0x172   :  { %8059 = vmatprep.subr.bf16.mxu1 %v8825_v36  ;;  %v8866_v36 = vld [vmem:[%s11148_s1 + $0xc28] sm:$0xff]  }
 0x174   :  { %8038 = vmatpush3.bf16.msra.mxu0 %v8826_v38 }
 0x175   :  { %8060 = vmatpush3.bf16.msra.mxu1 %v8827_v40  ;;  %8039 = vmatprep.subr.bf16.mxu0 %v8828_v43  ;;  %v8870_v43 = vld [vmem:[%s11148_s1 + $0xc30] sm:$0xff]  }
 0x176   :  { %v7737_v37 = vpop.f32.mrb[16].mxu0  ;;  %8061 = vmatprep.subr.bf16.mxu1 %v8829_v46  ;;  %v8873_v46 = vld [vmem:[%s11148_s1 + $0xcf8] sm:$0xff]  }
 0x177   :  { %v7759_v39 = vpop.f32.mrb[16].mxu1  ;;  %v7738_v41 = vpop.f32.mrb[17].mxu0 }
 0x178   :  { %v7760_v42 = vpop.f32.mrb[17].mxu1  ;;  %v7739_v44 = vadd.f32 %v7738_v41, %v7737_v37  ;;  %v7740_v47 = vpop.f32.mrb[18].mxu0  ;;  %8040 = vmatpush3.bf16.msra.mxu0 %v8830_v49  ;;  %v8867_v37 = vld [vmem:[%s11148_s1 + $0xca8] sm:$0xff]   ;;  %v8868_v41 = vld [vmem:[%s11148_s1 + $0xc70] sm:$0xff]   ;;  %v45_v49 = vld [vmem:[%s11149_s0 + $0xc0] sm:$0xff] }
 0x179   :  { %v7761_v45 = vadd.f32 %v7760_v42, %v7759_v39  ;;  %v7762_v48 = vpop.f32.mrb[18].mxu1  ;;  %v7741_v52 = vpop.f32.mrb[19].mxu0  ;;  %8062 = vmatpush3.bf16.msra.mxu1 %v8831_v51  ;;  %8041 = vmatprep.subr.bf16.mxu0 %v8832_v54  ;;  %v8869_v42 = vld [vmem:[%s11148_s1 + $0xcf0] sm:$0xff]   ;;  %v8874_v47 = vld [vmem:[%s11148_s1 + $0xc38] sm:$0xff]   ;;  %v6900_v51 = vcombine.low %v45_v49, %v45_v49  ;;  %v8880_v54 = vld [vmem:[%s11148_s1 + $0xd40] sm:$0xff]  }
 0x17a   :  { %v5551_v50 = vadd.f32 %v7739_v44, %v10251_v5  ;;  %v7763_v53 = vpop.f32.mrb[19].mxu1  ;;  %8063 = vmatprep.subr.bf16.mxu1 %v8833_v56  ;;  %v8844_v5 = vld [vmem:[%s11148_s1 + $0xc40] sm:$0xff]   ;;  %v8871_v44 = vld [vmem:[%s11148_s1 + $0xcb0] sm:$0xff]   ;;  %v8875_v48 = vld [vmem:[%s11148_s1 + $0xcb8] sm:$0xff]   ;;  %v6901_v52 = vcombine.high %v45_v49, %v45_v49 }
 0x17b   :  { %v8881_v56 = vld [vmem:[%s11148_s1 + $0xdc0] sm:$0xff]   ;;  %v8924_v49 = vld [vmem:[%s11148_s1 + $0xe50] sm:$0xff]  }
 0x17c   :  { %v10356_v55 = vadd.f32 %v7761_v45, %v5551_v50  ;;  %8042 = vmatpush3.bf16.msra.mxu0 %v8834_v57  ;;  %v8872_v45 = vld [vmem:[%s11148_s1 + $0xc78] sm:$0xff]   ;;  %v46_v50 = vld [vmem:[%s11149_s0 + $0xc8] sm:$0xff]  ;;  %v8882_v57 = vld [vmem:[%s11148_s1 + $0xd00] sm:$0xff]  }
 0x17d   :  { %8064 = vmatpush3.bf16.msra.mxu1 %v8835_v58  ;;  %8043 = vmatprep.subr.bf16.mxu0 %v8836_v59  ;;  %v6902_v53 = vcombine.low %v46_v50, %v46_v50  ;;  %v8883_v58 = vld [vmem:[%s11148_s1 + $0xd80] sm:$0xff]   ;;  %v8884_v59 = vld [vmem:[%s11148_s1 + $0xd48] sm:$0xff]  }
 0x17e   :  { %8065 = vmatprep.subr.bf16.mxu1 %v8837_v60  ;;  %v8885_v60 = vld [vmem:[%s11148_s1 + $0xdc8] sm:$0xff]  }
 0x180   :  { %8044 = vmatpush3.bf16.msra.mxu0 %v8838_v61  ;;  %v8886_v61 = vld [vmem:[%s11148_s1 + $0xd08] sm:$0xff]  }
 0x181   :  { %8066 = vmatpush3.bf16.msra.mxu1 %v8839_v62  ;;  %8073 = vmatprep.subr.bf16.mxu0 %v8844_v5  ;;  %v8887_v62 = vld [vmem:[%s11148_s1 + $0xd88] sm:$0xff]   ;;  %v8894_v5 = vld [vmem:[%s11148_s1 + $0xd18] sm:$0xff]  }
 0x182   :  { %8095 = vmatprep.subr.bf16.mxu1 %v8845_v6  ;;  %v8895_v6 = vld [vmem:[%s11148_s1 + $0xd98] sm:$0xff]  }
 0x183   :  { %6109 = vmatmul.mubr.bf16.vlgmr.msra.gmra.mrb[44].mxu0 %v6896_v1  ;;  %v8890_v1 = vld [vmem:[%s11148_s1 + $0xd10] sm:$0xff]  }
 0x184   :  { %6149 = vmatmul.mubr.bf16.vlgmr.msra.gmra.mrb[44].mxu1 %v6898_v3  ;;  %8074 = vmatpush3.bf16.msra.mxu0 %v8846_v7  ;;  %v8892_v3 = vld [vmem:[%s11148_s1 + $0xd58] sm:$0xff]   ;;  %v8896_v7 = vld [vmem:[%s11148_s1 + $0xd60] sm:$0xff]  }
 0x185   :  { %8096 = vmatpush3.bf16.msra.mxu1 %v8847_v8  ;;  %8075 = vmatprep.subr.bf16.mxu0 %v8848_v9  ;;  %v8897_v8 = vld [vmem:[%s11148_s1 + $0xde0] sm:$0xff]  }
 0x186   :  { %8097 = vmatprep.subr.bf16.mxu1 %v8849_v10  ;;  %6188 = vmatprep.mubr.bf16.mxu0 %v6901_v52  ;;  %v8898_v10 = vld [vmem:[%s11148_s1 + $0xd20] sm:$0xff]   ;;  %v8927_v52 = vld [vmem:[%s11148_s1 + $0xe90] sm:$0xff]  }
 0x188   :  { %8076 = vmatpush3.bf16.msra.mxu0 %v8850_v11 }
 0x189   :  { %8098 = vmatpush3.bf16.msra.mxu1 %v8851_v12  ;;  %8077 = vmatprep.subr.bf16.mxu0 %v8852_v13  ;;  %v8899_v12 = vld [vmem:[%s11148_s1 + $0xda0] sm:$0xff]  }
 0x18a   :  { %8099 = vmatprep.subr.bf16.mxu1 %v8853_v14 }
 0x18c   :  { %8078 = vmatpush3.bf16.msra.mxu0 %v8854_v15  ;;  %v8900_v15 = vld [vmem:[%s11148_s1 + $0xd68] sm:$0xff]  }
 0x18d   :  { %8100 = vmatpush3.bf16.msra.mxu1 %v8855_v16  ;;  %8079 = vmatprep.subr.bf16.mxu0 %v8856_v17 }
 0x18e   :  { %8101 = vmatprep.subr.bf16.mxu1 %v8857_v18  ;;  %v8901_v18 = vld [vmem:[%s11148_s1 + $0xde8] sm:$0xff]  }
 0x190   :  { %8080 = vmatpush3.bf16.msra.mxu0 %v8858_v19 }
 0x191   :  { %8102 = vmatpush3.bf16.msra.mxu1 %v8859_v20  ;;  %8081 = vmatprep.subr.bf16.mxu0 %v8860_v21  ;;  %v8902_v21 = vld [vmem:[%s11148_s1 + $0xd28] sm:$0xff]  }
 0x192   :  { %8103 = vmatprep.subr.bf16.mxu1 %v8861_v22 }
 0x194   :  { %8082 = vmatpush3.bf16.msra.mxu0 %v8862_v24 }
 0x195   :  { %8104 = vmatpush3.bf16.msra.mxu1 %v8863_v26  ;;  %8083 = vmatprep.subr.bf16.mxu0 %v8864_v30  ;;  %v8904_v26 = vld [vmem:[%s11148_s1 + $0xd70] sm:$0xff]  }
 0x196   :  { %v7781_v23 = vpop.f32.mrb[20].mxu0  ;;  %8105 = vmatprep.subr.bf16.mxu1 %v8865_v32  ;;  %v8907_v30 = vld [vmem:[%s11148_s1 + $0xdb0] sm:$0xff]   ;;  %v8909_v32 = vld [vmem:[%s11148_s1 + $0xdf8] sm:$0xff]  }
 0x197   :  { %v7803_v25 = vpop.f32.mrb[20].mxu1  ;;  %v7782_v27 = vpop.f32.mrb[21].mxu0 }
 0x198   :  { %v7783_v28 = vadd.f32 %v7782_v27, %v7781_v23  ;;  %v7804_v29 = vpop.f32.mrb[21].mxu1  ;;  %v7784_v33 = vpop.f32.mrb[22].mxu0  ;;  %8084 = vmatpush3.bf16.msra.mxu0 %v8866_v36  ;;  %v8903_v23 = vld [vmem:[%s11148_s1 + $0xda8] sm:$0xff]  }
 0x199   :  { %v7805_v31 = vadd.f32 %v7804_v29, %v7803_v25  ;;  %v7806_v35 = vpop.f32.mrb[22].mxu1  ;;  %v7785_v38 = vpop.f32.mrb[23].mxu0  ;;  %8106 = vmatpush3.bf16.msra.mxu1 %v8867_v37  ;;  %8085 = vmatprep.subr.bf16.mxu0 %v8868_v41  ;;  %v8906_v29 = vld [vmem:[%s11148_s1 + $0xd30] sm:$0xff]   ;;  %v8910_v33 = vld [vmem:[%s11148_s1 + $0xd38] sm:$0xff]   ;;  %v8916_v41 = vld [vmem:[%s11148_s1 + $0xe40] sm:$0xff]  }
 0x19a   :  { %v5631_v34 = vadd.f32 %v7783_v28, %v10356_v55  ;;  %v7807_v40 = vpop.f32.mrb[23].mxu1  ;;  %8107 = vmatprep.subr.bf16.mxu1 %v8869_v42  ;;  %v6903_v55 = vcombine.high %v46_v50, %v46_v50  ;;  %v8905_v28 = vld [vmem:[%s11148_s1 + $0xdf0] sm:$0xff]   ;;  %v48_v38 = vld [vmem:[%s11149_s0 + $0xd8] sm:$0xff]  ;;  %v8917_v42 = vld [vmem:[%s11148_s1 + $0xec0] sm:$0xff]  }
 0x19b   :  { %v47_v35 = vld [vmem:[%s11149_s0 + $0xd0] sm:$0xff]  ;;  %v6907_v40 = vcombine.high %v48_v38, %v48_v38 }
 0x19c   :  { %v10458_v39 = vadd.f32 %v7805_v31, %v5631_v34  ;;  %8086 = vmatpush3.bf16.msra.mxu0 %v8870_v43  ;;  %6228 = vmatprep.mubr.bf16.mxu1 %v6903_v55  ;;  %v8908_v31 = vld [vmem:[%s11148_s1 + $0xd78] sm:$0xff]   ;;  %v6904_v36 = vcombine.low %v47_v35, %v47_v35  ;;  %v6905_v37 = vcombine.high %v47_v35, %v47_v35  ;;  %v8918_v43 = vld [vmem:[%s11148_s1 + $0xe00] sm:$0xff]   ;;  %v8925_v50 = vld [vmem:[%s11148_s1 + $0xed0] sm:$0xff]  }
 0x19d   :  { %8108 = vmatpush3.bf16.msra.mxu1 %v8871_v44  ;;  %8087 = vmatprep.subr.bf16.mxu0 %v8872_v45  ;;  %v8911_v34 = vld [vmem:[%s11148_s1 + $0xdb8] sm:$0xff]   ;;  %v8919_v44 = vld [vmem:[%s11148_s1 + $0xe80] sm:$0xff]   ;;  %v8920_v45 = vld [vmem:[%s11148_s1 + $0xe48] sm:$0xff]  }
 0x19e   :  { %8109 = vmatprep.subr.bf16.mxu1 %v8873_v46  ;;  %v8921_v46 = vld [vmem:[%s11148_s1 + $0xec8] sm:$0xff]   ;;  %v8930_v55 = vld [vmem:[%s11148_s1 + $0xe18] sm:$0xff]   ;;  %v8960_v35 = vld [vmem:[%s11148_s1 + $0xf50] sm:$0xff]  }
 0x1a0   :  { %8088 = vmatpush3.bf16.msra.mxu0 %v8874_v47  ;;  %v8922_v47 = vld [vmem:[%s11148_s1 + $0xe08] sm:$0xff]  }
 0x1a1   :  { %8110 = vmatpush3.bf16.msra.mxu1 %v8875_v48  ;;  %8117 = vmatprep.subr.bf16.mxu0 %v8880_v54  ;;  %v8923_v48 = vld [vmem:[%s11148_s1 + $0xe88] sm:$0xff]   ;;  %v8929_v54 = vld [vmem:[%s11148_s1 + $0xed8] sm:$0xff]  }
 0x1a2   :  { %8139 = vmatprep.subr.bf16.mxu1 %v8881_v56  ;;  %v8931_v56 = vld [vmem:[%s11148_s1 + $0xe98] sm:$0xff]  }
 0x1a3   :  { %6189 = vmatmul.mubr.bf16.vlgmr.msra.gmra.mrb[48].mxu0 %v6900_v51  ;;  %v8926_v51 = vld [vmem:[%s11148_s1 + $0xe10] sm:$0xff]  }
 0x1a4   :  { %6229 = vmatmul.mubr.bf16.vlgmr.msra.gmra.mrb[48].mxu1 %v6902_v53  ;;  %8118 = vmatpush3.bf16.msra.mxu0 %v8882_v57  ;;  %v8928_v53 = vld [vmem:[%s11148_s1 + $0xe58] sm:$0xff]   ;;  %v8932_v57 = vld [vmem:[%s11148_s1 + $0xe60] sm:$0xff]  }
 0x1a5   :  { %8140 = vmatpush3.bf16.msra.mxu1 %v8883_v58  ;;  %8119 = vmatprep.subr.bf16.mxu0 %v8884_v59  ;;  %v8933_v58 = vld [vmem:[%s11148_s1 + $0xee0] sm:$0xff]  }
 0x1a6   :  { %8141 = vmatprep.subr.bf16.mxu1 %v8885_v60  ;;  %6268 = vmatprep.mubr.bf16.mxu0 %v6905_v37  ;;  %v8934_v60 = vld [vmem:[%s11148_s1 + $0xe20] sm:$0xff]   ;;  %v8962_v37 = vld [vmem:[%s11148_s1 + $0xf10] sm:$0xff]  }
 0x1a7   :  { %6308 = vmatprep.mubr.bf16.mxu1 %v6907_v40  ;;  %v8965_v40 = vld [vmem:[%s11148_s1 + $0xfd8] sm:$0xff]  }
 0x1a8   :  { %8120 = vmatpush3.bf16.msra.mxu0 %v8886_v61 }
 0x1a9   :  { %8142 = vmatpush3.bf16.msra.mxu1 %v8887_v62  ;;  %8121 = vmatprep.subr.bf16.mxu0 %v8888_v63  ;;  %v8935_v62 = vld [vmem:[%s11148_s1 + $0xea0] sm:$0xff]  }
 0x1aa   :  { %8143 = vmatprep.subr.bf16.mxu1 %v8889_v0 }
 0x1ac   :  { %8122 = vmatpush3.bf16.msra.mxu0 %v8890_v1  ;;  %v8936_v1 = vld [vmem:[%s11148_s1 + $0xe68] sm:$0xff]  }
 0x1ad   :  { %8144 = vmatpush3.bf16.msra.mxu1 %v8891_v2  ;;  %8123 = vmatprep.subr.bf16.mxu0 %v8892_v3 }
 0x1ae   :  { %8145 = vmatprep.subr.bf16.mxu1 %v8893_v4  ;;  %v8937_v4 = vld [vmem:[%s11148_s1 + $0xee8] sm:$0xff]  }
 0x1b0   :  { %8124 = vmatpush3.bf16.msra.mxu0 %v8894_v5 }
 0x1b1   :  { %8146 = vmatpush3.bf16.msra.mxu1 %v8895_v6  ;;  %8125 = vmatprep.subr.bf16.mxu0 %v8896_v7  ;;  %v8938_v7 = vld [vmem:[%s11148_s1 + $0xe28] sm:$0xff]  }
 0x1b2   :  { %8147 = vmatprep.subr.bf16.mxu1 %v8897_v8 }
 0x1b4   :  { %8126 = vmatpush3.bf16.msra.mxu0 %v8898_v10 }
 0x1b5   :  { %8148 = vmatpush3.bf16.msra.mxu1 %v8899_v12  ;;  %8127 = vmatprep.subr.bf16.mxu0 %v8900_v15  ;;  %v8940_v12 = vld [vmem:[%s11148_s1 + $0xe70] sm:$0xff]  }
 0x1b6   :  { %v7825_v9 = vpop.f32.mrb[24].mxu0  ;;  %8149 = vmatprep.subr.bf16.mxu1 %v8901_v18  ;;  %v8942_v15 = vld [vmem:[%s11148_s1 + $0xe30] sm:$0xff]   ;;  %v8945_v18 = vld [vmem:[%s11148_s1 + $0xef8] sm:$0xff]  }
 0x1b7   :  { %v7847_v11 = vpop.f32.mrb[24].mxu1  ;;  %v7826_v13 = vpop.f32.mrb[25].mxu0 }
 0x1b8   :  { %v7848_v14 = vpop.f32.mrb[25].mxu1  ;;  %v7827_v16 = vadd.f32 %v7826_v13, %v7825_v9  ;;  %v7828_v19 = vpop.f32.mrb[26].mxu0  ;;  %8128 = vmatpush3.bf16.msra.mxu0 %v8902_v21  ;;  %v8939_v9 = vld [vmem:[%s11148_s1 + $0xea8] sm:$0xff]   ;;  %v49_v21 = vld [vmem:[%s11149_s0 + $0xe0] sm:$0xff] }
 0x1b9   :  { %v7849_v17 = vadd.f32 %v7848_v14, %v7847_v11  ;;  %v7850_v20 = vpop.f32.mrb[26].mxu1  ;;  %v7829_v24 = vpop.f32.mrb[27].mxu0  ;;  %8150 = vmatpush3.bf16.msra.mxu1 %v8903_v23  ;;  %8129 = vmatprep.subr.bf16.mxu0 %v8904_v26  ;;  %v8941_v14 = vld [vmem:[%s11148_s1 + $0xef0] sm:$0xff]   ;;  %v8946_v19 = vld [vmem:[%s11148_s1 + $0xe38] sm:$0xff]   ;;  %v6908_v23 = vcombine.low %v49_v21, %v49_v21 }
 0x1ba   :  { %v5711_v22 = vadd.f32 %v7827_v16, %v10458_v39  ;;  %v7851_v25 = vpop.f32.mrb[27].mxu1  ;;  %8151 = vmatprep.subr.bf16.mxu1 %v8905_v28  ;;  %v6906_v39 = vcombine.low %v48_v38, %v48_v38  ;;  %v8943_v16 = vld [vmem:[%s11148_s1 + $0xeb0] sm:$0xff]   ;;  %v8947_v20 = vld [vmem:[%s11148_s1 + $0xeb8] sm:$0xff]   ;;  %v6909_v24 = vcombine.high %v49_v21, %v49_v21  ;;  %v8953_v28 = vld [vmem:[%s11148_s1 + $0xfc0] sm:$0xff]  }
 0x1bb   :  { %v8963_v38 = vld [vmem:[%s11148_s1 + $0xf90] sm:$0xff]  }
 0x1bc   :  { %v10566_v27 = vadd.f32 %v7849_v17, %v5711_v22  ;;  %8130 = vmatpush3.bf16.msra.mxu0 %v8906_v29  ;;  %v8944_v17 = vld [vmem:[%s11148_s1 + $0xe78] sm:$0xff]   ;;  %v50_v22 = vld [vmem:[%s11149_s0 + $0xe8] sm:$0xff]  ;;  %v8954_v29 = vld [vmem:[%s11148_s1 + $0xf00] sm:$0xff]  }
 0x1bd   :  { %8152 = vmatpush3.bf16.msra.mxu1 %v8907_v30  ;;  %8131 = vmatprep.subr.bf16.mxu0 %v8908_v31  ;;  %v6910_v25 = vcombine.low %v50_v22, %v50_v22  ;;  %v6911_v26 = vcombine.high %v50_v22, %v50_v22  ;;  %v8955_v30 = vld [vmem:[%s11148_s1 + $0xf80] sm:$0xff]   ;;  %v8956_v31 = vld [vmem:[%s11148_s1 + $0xf48] sm:$0xff]   ;;  %v8996_v21 = vld [vmem:[%s11148_s1 + $0x1050] sm:$0xff]  }
 0x1be   :  { %8153 = vmatprep.subr.bf16.mxu1 %v8909_v32  ;;  %v8957_v32 = vld [vmem:[%s11148_s1 + $0xfc8] sm:$0xff]   ;;  %v8997_v22 = vld [vmem:[%s11148_s1 + $0x10d0] sm:$0xff]  }
 0x1c0   :  { %8132 = vmatpush3.bf16.msra.mxu0 %v8910_v33  ;;  %v8958_v33 = vld [vmem:[%s11148_s1 + $0xf08] sm:$0xff]  }
 0x1c1   :  { %8154 = vmatpush3.bf16.msra.mxu1 %v8911_v34  ;;  %8161 = vmatprep.subr.bf16.mxu0 %v8916_v41  ;;  %v8959_v34 = vld [vmem:[%s11148_s1 + $0xf88] sm:$0xff]   ;;  %v8966_v41 = vld [vmem:[%s11148_s1 + $0xf18] sm:$0xff]  }
 0x1c2   :  { %8183 = vmatprep.subr.bf16.mxu1 %v8917_v42  ;;  %v8967_v42 = vld [vmem:[%s11148_s1 + $0xf98] sm:$0xff]  }
 0x1c3   :  { %6269 = vmatmul.mubr.bf16.vlgmr.msra.gmra.mrb[52].mxu0 %v6904_v36  ;;  %v8961_v36 = vld [vmem:[%s11148_s1 + $0xfd0] sm:$0xff]  }
 0x1c4   :  { %6309 = vmatmul.mubr.bf16.vlgmr.msra.gmra.mrb[52].mxu1 %v6906_v39  ;;  %8162 = vmatpush3.bf16.msra.mxu0 %v8918_v43  ;;  %v8964_v39 = vld [vmem:[%s11148_s1 + $0xf58] sm:$0xff]   ;;  %v8968_v43 = vld [vmem:[%s11148_s1 + $0xf60] sm:$0xff]  }
 0x1c5   :  { %8184 = vmatpush3.bf16.msra.mxu1 %v8919_v44  ;;  %8163 = vmatprep.subr.bf16.mxu0 %v8920_v45  ;;  %v8969_v44 = vld [vmem:[%s11148_s1 + $0xfe0] sm:$0xff]  }
 0x1c6   :  { %8185 = vmatprep.subr.bf16.mxu1 %v8921_v46  ;;  %6348 = vmatprep.mubr.bf16.mxu0 %v6909_v24  ;;  %v8970_v45 = vld [vmem:[%s11148_s1 + $0xf20] sm:$0xff]   ;;  %v8999_v24 = vld [vmem:[%s11148_s1 + $0x1090] sm:$0xff]  }
 0x1c7   :  { %6388 = vmatprep.mubr.bf16.mxu1 %v6911_v26  ;;  %v9001_v26 = vld [vmem:[%s11148_s1 + $0x10d8] sm:$0xff]  }
 0x1c8   :  { %8164 = vmatpush3.bf16.msra.mxu0 %v8922_v47  ;;  %v8971_v47 = vld [vmem:[%s11148_s1 + $0xfa0] sm:$0xff]  }
 0x1c9   :  { %8186 = vmatpush3.bf16.msra.mxu1 %v8923_v48  ;;  %8165 = vmatprep.subr.bf16.mxu0 %v8924_v49 }
 0x1ca   :  { %8187 = vmatprep.subr.bf16.mxu1 %v8925_v50 }
 0x1cc   :  { %8166 = vmatpush3.bf16.msra.mxu0 %v8926_v51 }
 0x1cd   :  { %8188 = vmatpush3.bf16.msra.mxu1 %v8927_v52  ;;  %8167 = vmatprep.subr.bf16.mxu0 %v8928_v53  ;;  %v8972_v53 = vld [vmem:[%s11148_s1 + $0xf68] sm:$0xff]  }
 0x1ce   :  { %8189 = vmatprep.subr.bf16.mxu1 %v8929_v54 }
 0x1d0   :  { %8168 = vmatpush3.bf16.msra.mxu0 %v8930_v55  ;;  %v8973_v55 = vld [vmem:[%s11148_s1 + $0xfe8] sm:$0xff]  }
 0x1d1   :  { %8190 = vmatpush3.bf16.msra.mxu1 %v8931_v56  ;;  %8169 = vmatprep.subr.bf16.mxu0 %v8932_v57 }
 0x1d2   :  { %8191 = vmatprep.subr.bf16.mxu1 %v8933_v58  ;;  %v8974_v58 = vld [vmem:[%s11148_s1 + $0xf28] sm:$0xff]  }
 0x1d4   :  { %8170 = vmatpush3.bf16.msra.mxu0 %v8934_v60  ;;  %v8975_v60 = vld [vmem:[%s11148_s1 + $0xfa8] sm:$0xff]  }
 0x1d5   :  { %8192 = vmatpush3.bf16.msra.mxu1 %v8935_v62  ;;  %8171 = vmatprep.subr.bf16.mxu0 %v8936_v1  ;;  %v8978_v1 = vld [vmem:[%s11148_s1 + $0xf30] sm:$0xff]  }
 0x1d6   :  { %v7869_v59 = vpop.f32.mrb[28].mxu0  ;;  %8193 = vmatprep.subr.bf16.mxu1 %v8937_v4  ;;  %v8981_v4 = vld [vmem:[%s11148_s1 + $0xff8] sm:$0xff]  }
 0x1d7   :  { %v7891_v61 = vpop.f32.mrb[28].mxu1  ;;  %v7870_v63 = vpop.f32.mrb[29].mxu0 }
 0x1d8   :  { %v7892_v0 = vpop.f32.mrb[29].mxu1  ;;  %v7871_v2 = vadd.f32 %v7870_v63, %v7869_v59  ;;  %v7872_v5 = vpop.f32.mrb[30].mxu0  ;;  %8172 = vmatpush3.bf16.msra.mxu0 %v8938_v7  ;;  %v8976_v63 = vld [vmem:[%s11148_s1 + $0xf70] sm:$0xff]  }
 0x1d9   :  { %v7893_v3 = vadd.f32 %v7892_v0, %v7891_v61  ;;  %v7894_v6 = vpop.f32.mrb[30].mxu1  ;;  %v7873_v10 = vpop.f32.mrb[31].mxu0  ;;  %8194 = vmatpush3.bf16.msra.mxu1 %v8939_v9  ;;  %8173 = vmatprep.subr.bf16.mxu0 %v8940_v12  ;;  %v8977_v0 = vld [vmem:[%s11148_s1 + $0xff0] sm:$0xff]   ;;  %v8982_v5 = vld [vmem:[%s11148_s1 + $0xf38] sm:$0xff]  }
 0x1da   :  { %v5791_v8 = vadd.f32 %v7871_v2, %v10566_v27  ;;  %v7895_v11 = vpop.f32.mrb[31].mxu1  ;;  %8195 = vmatprep.subr.bf16.mxu1 %v8941_v14  ;;  %v8952_v27 = vld [vmem:[%s11148_s1 + $0xf40] sm:$0xff]   ;;  %v8979_v2 = vld [vmem:[%s11148_s1 + $0xfb0] sm:$0xff]   ;;  %v8983_v6 = vld [vmem:[%s11148_s1 + $0xfb8] sm:$0xff]  }
 0x1db   :  { %v51_v7 = vld [vmem:[%s11149_s0 + $0xf0] sm:$0xff]  ;;  %v8989_v14 = vld [vmem:[%s11148_s1 + $0x10c0] sm:$0xff]  }
 0x1dc   :  { %v10671_v13 = vadd.f32 %v7893_v3, %v5791_v8  ;;  %8174 = vmatpush3.bf16.msra.mxu0 %v8942_v15  ;;  %v8980_v3 = vld [vmem:[%s11148_s1 + $0xf78] sm:$0xff]   ;;  %v6912_v9 = vcombine.low %v51_v7, %v51_v7  ;;  %v6913_v10 = vcombine.high %v51_v7, %v51_v7  ;;  %v8990_v15 = vld [vmem:[%s11148_s1 + $0x1000] sm:$0xff]   ;;  %v9032_v7 = vld [vmem:[%s11148_s1 + $0x1150] sm:$0xff]  }
 0x1dd   :  { %8196 = vmatpush3.bf16.msra.mxu1 %v8943_v16  ;;  %8175 = vmatprep.subr.bf16.mxu0 %v8944_v17  ;;  %v52_v8 = vld [vmem:[%s11149_s0 + $0xf8] sm:$0xff]  ;;  %v8991_v16 = vld [vmem:[%s11148_s1 + $0x1080] sm:$0xff]   ;;  %v8992_v17 = vld [vmem:[%s11148_s1 + $0x1048] sm:$0xff]  }
 0x1de   :  { %8197 = vmatprep.subr.bf16.mxu1 %v8945_v18  ;;  %v6914_v11 = vcombine.low %v52_v8, %v52_v8  ;;  %v6915_v12 = vcombine.high %v52_v8, %v52_v8  ;;  %v8993_v18 = vld [vmem:[%s11148_s1 + $0x10c8] sm:$0xff]   ;;  %v9033_v8 = vld [vmem:[%s11148_s1 + $0x11d0] sm:$0xff]  }
 0x1e0   :  { %8176 = vmatpush3.bf16.msra.mxu0 %v8946_v19  ;;  %v8994_v19 = vld [vmem:[%s11148_s1 + $0x1008] sm:$0xff]  }
 0x1e1   :  { %8198 = vmatpush3.bf16.msra.mxu1 %v8947_v20  ;;  %8205 = vmatprep.subr.bf16.mxu0 %v8952_v27  ;;  %v8995_v20 = vld [vmem:[%s11148_s1 + $0x1088] sm:$0xff]   ;;  %v9002_v27 = vld [vmem:[%s11148_s1 + $0x1018] sm:$0xff]  }
 0x1e2   :  { %8227 = vmatprep.subr.bf16.mxu1 %v8953_v28  ;;  %v9003_v28 = vld [vmem:[%s11148_s1 + $0x1098] sm:$0xff]  }
 0x1e3   :  { %6349 = vmatmul.mubr.bf16.vlgmr.msra.gmra.mrb[56].mxu0 %v6908_v23  ;;  %v8998_v23 = vld [vmem:[%s11148_s1 + $0x1010] sm:$0xff]  }
 0x1e4   :  { %6389 = vmatmul.mubr.bf16.vlgmr.msra.gmra.mrb[56].mxu1 %v6910_v25  ;;  %8206 = vmatpush3.bf16.msra.mxu0 %v8954_v29  ;;  %v9000_v25 = vld [vmem:[%s11148_s1 + $0x1058] sm:$0xff]   ;;  %v9004_v29 = vld [vmem:[%s11148_s1 + $0x1060] sm:$0xff]  }
 0x1e5   :  { %8228 = vmatpush3.bf16.msra.mxu1 %v8955_v30  ;;  %8207 = vmatprep.subr.bf16.mxu0 %v8956_v31  ;;  %v9005_v30 = vld [vmem:[%s11148_s1 + $0x10e0] sm:$0xff]  }
 0x1e6   :  { %8229 = vmatprep.subr.bf16.mxu1 %v8957_v32  ;;  %6428 = vmatprep.mubr.bf16.mxu0 %v6913_v10  ;;  %v9006_v31 = vld [vmem:[%s11148_s1 + $0x1020] sm:$0xff]   ;;  %v9035_v10 = vld [vmem:[%s11148_s1 + $0x1190] sm:$0xff]  }
 0x1e7   :  { %6468 = vmatprep.mubr.bf16.mxu1 %v6915_v12  ;;  %v9037_v12 = vld [vmem:[%s11148_s1 + $0x11d8] sm:$0xff]  }
 0x1e8   :  { %8208 = vmatpush3.bf16.msra.mxu0 %v8958_v33  ;;  %v9007_v33 = vld [vmem:[%s11148_s1 + $0x10a0] sm:$0xff]  }
 0x1e9   :  { %8230 = vmatpush3.bf16.msra.mxu1 %v8959_v34  ;;  %8209 = vmatprep.subr.bf16.mxu0 %v8960_v35 }
 0x1ea   :  { %8231 = vmatprep.subr.bf16.mxu1 %v8961_v36 }
 0x1ec   :  { %8210 = vmatpush3.bf16.msra.mxu0 %v8962_v37 }
 0x1ed   :  { %8232 = vmatpush3.bf16.msra.mxu1 %v8963_v38  ;;  %8211 = vmatprep.subr.bf16.mxu0 %v8964_v39  ;;  %v9008_v39 = vld [vmem:[%s11148_s1 + $0x1068] sm:$0xff]  }
 0x1ee   :  { %8233 = vmatprep.subr.bf16.mxu1 %v8965_v40 }
 0x1f0   :  { %8212 = vmatpush3.bf16.msra.mxu0 %v8966_v41  ;;  %v9009_v41 = vld [vmem:[%s11148_s1 + $0x10e8] sm:$0xff]  }
 0x1f1   :  { %8234 = vmatpush3.bf16.msra.mxu1 %v8967_v42  ;;  %8213 = vmatprep.subr.bf16.mxu0 %v8968_v43 }
 0x1f2   :  { %8235 = vmatprep.subr.bf16.mxu1 %v8969_v44  ;;  %v9010_v44 = vld [vmem:[%s11148_s1 + $0x1028] sm:$0xff]  }
 0x1f4   :  { %8214 = vmatpush3.bf16.msra.mxu0 %v8970_v45 }
 0x1f5   :  { %8236 = vmatpush3.bf16.msra.mxu1 %v8971_v47  ;;  %8215 = vmatprep.subr.bf16.mxu0 %v8972_v53  ;;  %v9016_v53 = vld [vmem:[%s11148_s1 + $0x1078] sm:$0xff]  }
 0x1f6   :  { %v7913_v46 = vpop.f32.mrb[32].mxu0  ;;  %8237 = vmatprep.subr.bf16.mxu1 %v8973_v55  ;;  %v9018_v55 = vld [vmem:[%s11148_s1 + $0x1038] sm:$0xff]  }
 0x1f7   :  { %v7935_v48 = vpop.f32.mrb[32].mxu1  ;;  %v7914_v49 = vpop.f32.mrb[33].mxu0 }
 0x1f8   :  { %v7936_v50 = vpop.f32.mrb[33].mxu1  ;;  %v7915_v51 = vadd.f32 %v7914_v49, %v7913_v46  ;;  %v7916_v54 = vpop.f32.mrb[34].mxu0  ;;  %8216 = vmatpush3.bf16.msra.mxu0 %v8974_v58  ;;  %v9011_v46 = vld [vmem:[%s11148_s1 + $0x10a8] sm:$0xff]   ;;  %v9012_v49 = vld [vmem:[%s11148_s1 + $0x1070] sm:$0xff]  }
 0x1f9   :  { %v7937_v52 = vadd.f32 %v7936_v50, %v7935_v48  ;;  %v7938_v56 = vpop.f32.mrb[34].mxu1  ;;  %v7917_v59 = vpop.f32.mrb[35].mxu0  ;;  %8238 = vmatpush3.bf16.msra.mxu1 %v8975_v60  ;;  %8217 = vmatprep.subr.bf16.mxu0 %v8976_v63  ;;  %v9013_v50 = vld [vmem:[%s11148_s1 + $0x10f0] sm:$0xff]   ;;  %v9017_v54 = vld [vmem:[%s11148_s1 + $0x10f8] sm:$0xff]   ;;  %v54_v58 = vld [vmem:[%s11149_s0 + $0x108] sm:$0xff] }
 0x1fa   :  { %v5871_v57 = vadd.f32 %v7915_v51, %v10671_v13  ;;  %v7939_v61 = vpop.f32.mrb[35].mxu1  ;;  %8239 = vmatprep.subr.bf16.mxu1 %v8977_v0  ;;  %v8988_v13 = vld [vmem:[%s11148_s1 + $0x1040] sm:$0xff]   ;;  %v9014_v51 = vld [vmem:[%s11148_s1 + $0x1030] sm:$0xff]   ;;  %v9019_v56 = vld [vmem:[%s11148_s1 + $0x10b8] sm:$0xff]  }
 0x1fb   :  { %v6918_v61 = vcombine.low %v54_v58, %v54_v58  ;;  %v9024_v63 = vld [vmem:[%s11148_s1 + $0x1140] sm:$0xff]  }
 0x1fc   :  { %v10773_v62 = vadd.f32 %v7937_v52, %v5871_v57  ;;  %8218 = vmatpush3.bf16.msra.mxu0 %v8978_v1  ;;  %v9015_v52 = vld [vmem:[%s11148_s1 + $0x10b0] sm:$0xff]   ;;  %v53_v57 = vld [vmem:[%s11149_s0 + $0x100] sm:$0xff] }
 0x1fd   :  { %8240 = vmatpush3.bf16.msra.mxu1 %v8979_v2  ;;  %8219 = vmatprep.subr.bf16.mxu0 %v8980_v3  ;;  %v6916_v59 = vcombine.low %v53_v57, %v53_v57  ;;  %v6917_v60 = vcombine.high %v53_v57, %v53_v57  ;;  %v9025_v0 = vld [vmem:[%s11148_s1 + $0x11c0] sm:$0xff]   ;;  %v9028_v3 = vld [vmem:[%s11148_s1 + $0x1148] sm:$0xff]   ;;  %v9068_v57 = vld [vmem:[%s11148_s1 + $0x1250] sm:$0xff]  }
 0x1fe   :  { %8241 = vmatprep.subr.bf16.mxu1 %v8981_v4  ;;  %v9026_v1 = vld [vmem:[%s11148_s1 + $0x1100] sm:$0xff]   ;;  %v9029_v4 = vld [vmem:[%s11148_s1 + $0x11c8] sm:$0xff]  }
 0x1ff   :  { %v9027_v2 = vld [vmem:[%s11148_s1 + $0x1180] sm:$0xff]  }
 0x200   :  { %8220 = vmatpush3.bf16.msra.mxu0 %v8982_v5  ;;  %v9030_v5 = vld [vmem:[%s11148_s1 + $0x1108] sm:$0xff]  }
 0x201   :  { %8242 = vmatpush3.bf16.msra.mxu1 %v8983_v6  ;;  %8249 = vmatprep.subr.bf16.mxu0 %v8988_v13  ;;  %v9031_v6 = vld [vmem:[%s11148_s1 + $0x1188] sm:$0xff]   ;;  %v9038_v13 = vld [vmem:[%s11148_s1 + $0x1118] sm:$0xff]  }
 0x202   :  { %8271 = vmatprep.subr.bf16.mxu1 %v8989_v14  ;;  %v9039_v14 = vld [vmem:[%s11148_s1 + $0x1198] sm:$0xff]  }
 0x203   :  { %6429 = vmatmul.mubr.bf16.vlgmr.msra.gmra.mrb[60].mxu0 %v6912_v9  ;;  %v9034_v9 = vld [vmem:[%s11148_s1 + $0x1110] sm:$0xff]  }
 0x204   :  { %6469 = vmatmul.mubr.bf16.vlgmr.msra.gmra.mrb[60].mxu1 %v6914_v11  ;;  %8250 = vmatpush3.bf16.msra.mxu0 %v8990_v15  ;;  %v9036_v11 = vld [vmem:[%s11148_s1 + $0x1158] sm:$0xff]   ;;  %v9040_v15 = vld [vmem:[%s11148_s1 + $0x1160] sm:$0xff]  }
 0x205   :  { %8272 = vmatpush3.bf16.msra.mxu1 %v8991_v16  ;;  %8251 = vmatprep.subr.bf16.mxu0 %v8992_v17  ;;  %v9041_v16 = vld [vmem:[%s11148_s1 + $0x11e0] sm:$0xff]  }
 0x206   :  { %8273 = vmatprep.subr.bf16.mxu1 %v8993_v18  ;;  %6508 = vmatprep.mubr.bf16.mxu0 %v6917_v60  ;;  %v9042_v17 = vld [vmem:[%s11148_s1 + $0x1120] sm:$0xff]   ;;  %v9071_v60 = vld [vmem:[%s11148_s1 + $0x1290] sm:$0xff]  }
 0x208   :  { %8252 = vmatpush3.bf16.msra.mxu0 %v8994_v19  ;;  %v9043_v19 = vld [vmem:[%s11148_s1 + $0x11a0] sm:$0xff]  }
 0x209   :  { %8274 = vmatpush3.bf16.msra.mxu1 %v8995_v20  ;;  %8253 = vmatprep.subr.bf16.mxu0 %v8996_v21 }
 0x20a   :  { %8275 = vmatprep.subr.bf16.mxu1 %v8997_v22 }
 0x20c   :  { %8254 = vmatpush3.bf16.msra.mxu0 %v8998_v23 }
 0x20d   :  { %8276 = vmatpush3.bf16.msra.mxu1 %v8999_v24  ;;  %8255 = vmatprep.subr.bf16.mxu0 %v9000_v25  ;;  %v9044_v25 = vld [vmem:[%s11148_s1 + $0x1168] sm:$0xff]  }
 0x20e   :  { %8277 = vmatprep.subr.bf16.mxu1 %v9001_v26 }
 0x210   :  { %8256 = vmatpush3.bf16.msra.mxu0 %v9002_v27  ;;  %v9045_v27 = vld [vmem:[%s11148_s1 + $0x11e8] sm:$0xff]  }
 0x211   :  { %8278 = vmatpush3.bf16.msra.mxu1 %v9003_v28  ;;  %8257 = vmatprep.subr.bf16.mxu0 %v9004_v29 }
 0x212   :  { %8279 = vmatprep.subr.bf16.mxu1 %v9005_v30  ;;  %v9046_v30 = vld [vmem:[%s11148_s1 + $0x1128] sm:$0xff]  }
 0x214   :  { %8258 = vmatpush3.bf16.msra.mxu0 %v9006_v31 }
 0x215   :  { %8280 = vmatpush3.bf16.msra.mxu1 %v9007_v33  ;;  %8259 = vmatprep.subr.bf16.mxu0 %v9008_v39  ;;  %v9052_v39 = vld [vmem:[%s11148_s1 + $0x1178] sm:$0xff]  }
 0x216   :  { %v7957_v32 = vpop.f32.mrb[36].mxu0  ;;  %8281 = vmatprep.subr.bf16.mxu1 %v9009_v41  ;;  %v9054_v41 = vld [vmem:[%s11148_s1 + $0x1138] sm:$0xff]  }
 0x217   :  { %v7979_v34 = vpop.f32.mrb[36].mxu1  ;;  %v7958_v35 = vpop.f32.mrb[37].mxu0 }
 0x218   :  { %v7980_v36 = vpop.f32.mrb[37].mxu1  ;;  %v7959_v37 = vadd.f32 %v7958_v35, %v7957_v32  ;;  %v7960_v40 = vpop.f32.mrb[38].mxu0  ;;  %8260 = vmatpush3.bf16.msra.mxu0 %v9010_v44  ;;  %v9047_v32 = vld [vmem:[%s11148_s1 + $0x11a8] sm:$0xff]   ;;  %v9048_v35 = vld [vmem:[%s11148_s1 + $0x1170] sm:$0xff]   ;;  %v56_v44 = vld [vmem:[%s11149_s0 + $0x118] sm:$0xff] }
 0x219   :  { %v7981_v38 = vadd.f32 %v7980_v36, %v7979_v34  ;;  %v7982_v42 = vpop.f32.mrb[38].mxu1  ;;  %v7961_v45 = vpop.f32.mrb[39].mxu0  ;;  %8282 = vmatpush3.bf16.msra.mxu1 %v9011_v46  ;;  %8261 = vmatprep.subr.bf16.mxu0 %v9012_v49  ;;  %v9049_v36 = vld [vmem:[%s11148_s1 + $0x11f0] sm:$0xff]   ;;  %v9053_v40 = vld [vmem:[%s11148_s1 + $0x11f8] sm:$0xff]   ;;  %v9060_v49 = vld [vmem:[%s11148_s1 + $0x1240] sm:$0xff]  }
 0x21a   :  { %v5951_v43 = vadd.f32 %v7959_v37, %v10773_v62  ;;  %v7983_v47 = vpop.f32.mrb[39].mxu1  ;;  %8283 = vmatprep.subr.bf16.mxu1 %v9013_v50  ;;  %v6919_v62 = vcombine.high %v54_v58, %v54_v58  ;;  %v9050_v37 = vld [vmem:[%s11148_s1 + $0x1130] sm:$0xff]   ;;  %v9055_v42 = vld [vmem:[%s11148_s1 + $0x11b8] sm:$0xff]   ;;  %v9061_v50 = vld [vmem:[%s11148_s1 + $0x12c0] sm:$0xff]  }
 0x21b   :  { %v6922_v47 = vcombine.low %v56_v44, %v56_v44  ;;  %v9069_v58 = vld [vmem:[%s11148_s1 + $0x12d0] sm:$0xff]  }
 0x21c   :  { %v10878_v48 = vadd.f32 %v7981_v38, %v5951_v43  ;;  %8262 = vmatpush3.bf16.msra.mxu0 %v9014_v51  ;;  %6548 = vmatprep.mubr.bf16.mxu1 %v6919_v62  ;;  %v9051_v38 = vld [vmem:[%s11148_s1 + $0x11b0] sm:$0xff]   ;;  %v9062_v51 = vld [vmem:[%s11148_s1 + $0x1200] sm:$0xff]   ;;  %v9073_v62 = vld [vmem:[%s11148_s1 + $0x12d8] sm:$0xff]  }
 0x21d   :  { %8284 = vmatpush3.bf16.msra.mxu1 %v9015_v52  ;;  %8263 = vmatprep.subr.bf16.mxu0 %v9016_v53  ;;  %v55_v43 = vld [vmem:[%s11149_s0 + $0x110] sm:$0xff]  ;;  %v9063_v52 = vld [vmem:[%s11148_s1 + $0x1280] sm:$0xff]   ;;  %v9064_v53 = vld [vmem:[%s11148_s1 + $0x1248] sm:$0xff]  }
 0x21e   :  { %8285 = vmatprep.subr.bf16.mxu1 %v9017_v54  ;;  %v6920_v45 = vcombine.low %v55_v43, %v55_v43  ;;  %v6921_v46 = vcombine.high %v55_v43, %v55_v43  ;;  %v9065_v54 = vld [vmem:[%s11148_s1 + $0x12c8] sm:$0xff]  }
 0x220   :  { %8264 = vmatpush3.bf16.msra.mxu0 %v9018_v55  ;;  %v9066_v55 = vld [vmem:[%s11148_s1 + $0x1208] sm:$0xff]  }
 0x221   :  { %8286 = vmatpush3.bf16.msra.mxu1 %v9019_v56  ;;  %8293 = vmatprep.subr.bf16.mxu0 %v9024_v63  ;;  %v9067_v56 = vld [vmem:[%s11148_s1 + $0x1288] sm:$0xff]   ;;  %v9074_v63 = vld [vmem:[%s11148_s1 + $0x1218] sm:$0xff]  }
 0x222   :  { %8315 = vmatprep.subr.bf16.mxu1 %v9025_v0  ;;  %v9075_v0 = vld [vmem:[%s11148_s1 + $0x1298] sm:$0xff]  }
 0x223   :  { %6509 = vmatmul.mubr.bf16.vlgmr.msra.gmra.mrb[64].mxu0 %v6916_v59  ;;  %v9070_v59 = vld [vmem:[%s11148_s1 + $0x1210] sm:$0xff]  }
 0x224   :  { %6549 = vmatmul.mubr.bf16.vlgmr.msra.gmra.mrb[64].mxu1 %v6918_v61  ;;  %8294 = vmatpush3.bf16.msra.mxu0 %v9026_v1  ;;  %v9072_v61 = vld [vmem:[%s11148_s1 + $0x1258] sm:$0xff]   ;;  %v9076_v1 = vld [vmem:[%s11148_s1 + $0x1260] sm:$0xff]  }
 0x225   :  { %8316 = vmatpush3.bf16.msra.mxu1 %v9027_v2  ;;  %8295 = vmatprep.subr.bf16.mxu0 %v9028_v3  ;;  %v9077_v2 = vld [vmem:[%s11148_s1 + $0x12e0] sm:$0xff]  }
 0x226   :  { %8317 = vmatprep.subr.bf16.mxu1 %v9029_v4  ;;  %6588 = vmatprep.mubr.bf16.mxu0 %v6921_v46  ;;  %v9078_v4 = vld [vmem:[%s11148_s1 + $0x1220] sm:$0xff]  }
 0x228   :  { %8296 = vmatpush3.bf16.msra.mxu0 %v9030_v5 }
 0x229   :  { %8318 = vmatpush3.bf16.msra.mxu1 %v9031_v6  ;;  %8297 = vmatprep.subr.bf16.mxu0 %v9032_v7  ;;  %v9079_v6 = vld [vmem:[%s11148_s1 + $0x12a0] sm:$0xff]  }
 0x22a   :  { %8319 = vmatprep.subr.bf16.mxu1 %v9033_v8 }
 0x22c   :  { %8298 = vmatpush3.bf16.msra.mxu0 %v9034_v9 }
 0x22d   :  { %8320 = vmatpush3.bf16.msra.mxu1 %v9035_v10  ;;  %8299 = vmatprep.subr.bf16.mxu0 %v9036_v11  ;;  %v9080_v10 = vld [vmem:[%s11148_s1 + $0x1268] sm:$0xff]  }
 0x22e   :  { %8321 = vmatprep.subr.bf16.mxu1 %v9037_v12  ;;  %v9081_v12 = vld [vmem:[%s11148_s1 + $0x12e8] sm:$0xff]  }
 0x230   :  { %8300 = vmatpush3.bf16.msra.mxu0 %v9038_v13 }
 0x231   :  { %8322 = vmatpush3.bf16.msra.mxu1 %v9039_v14  ;;  %8301 = vmatprep.subr.bf16.mxu0 %v9040_v15 }
 0x232   :  { %8323 = vmatprep.subr.bf16.mxu1 %v9041_v16  ;;  %v9082_v16 = vld [vmem:[%s11148_s1 + $0x1228] sm:$0xff]  }
 0x234   :  { %8302 = vmatpush3.bf16.msra.mxu0 %v9042_v17  ;;  %v9083_v17 = vld [vmem:[%s11148_s1 + $0x12a8] sm:$0xff]  }
 0x235   :  { %8324 = vmatpush3.bf16.msra.mxu1 %v9043_v19  ;;  %8303 = vmatprep.subr.bf16.mxu0 %v9044_v25  ;;  %v9088_v25 = vld [vmem:[%s11148_s1 + $0x1278] sm:$0xff]  }
 0x236   :  { %v8001_v18 = vpop.f32.mrb[40].mxu0  ;;  %8325 = vmatprep.subr.bf16.mxu1 %v9045_v27  ;;  %v9090_v27 = vld [vmem:[%s11148_s1 + $0x1238] sm:$0xff]  }
 0x237   :  { %v8023_v20 = vpop.f32.mrb[40].mxu1  ;;  %v8002_v21 = vpop.f32.mrb[41].mxu0 }
 0x238   :  { %v8024_v22 = vpop.f32.mrb[41].mxu1  ;;  %v8003_v23 = vadd.f32 %v8002_v21, %v8001_v18  ;;  %v8004_v26 = vpop.f32.mrb[42].mxu0  ;;  %8304 = vmatpush3.bf16.msra.mxu0 %v9046_v30  ;;  %v9084_v21 = vld [vmem:[%s11148_s1 + $0x1270] sm:$0xff]   ;;  %v58_v30 = vld [vmem:[%s11149_s0 + $0x128] sm:$0xff] }
 0x239   :  { %v8025_v24 = vadd.f32 %v8024_v22, %v8023_v20  ;;  %v8026_v28 = vpop.f32.mrb[42].mxu1  ;;  %v8005_v31 = vpop.f32.mrb[43].mxu0  ;;  %8326 = vmatpush3.bf16.msra.mxu1 %v9047_v32  ;;  %8305 = vmatprep.subr.bf16.mxu0 %v9048_v35  ;;  %v9085_v22 = vld [vmem:[%s11148_s1 + $0x12f0] sm:$0xff]   ;;  %v9089_v26 = vld [vmem:[%s11148_s1 + $0x12f8] sm:$0xff]  }
 0x23a   :  { %v6031_v29 = vadd.f32 %v8003_v23, %v10878_v48  ;;  %v8027_v33 = vpop.f32.mrb[43].mxu1  ;;  %8327 = vmatprep.subr.bf16.mxu1 %v9049_v36  ;;  %v6923_v48 = vcombine.high %v56_v44, %v56_v44  ;;  %v9086_v23 = vld [vmem:[%s11148_s1 + $0x1230] sm:$0xff]   ;;  %v9091_v28 = vld [vmem:[%s11148_s1 + $0x12b8] sm:$0xff]  }
 0x23b   :  { %v6926_v33 = vcombine.low %v58_v30, %v58_v30 }
 0x23c   :  { %v10983_v34 = vadd.f32 %v8025_v24, %v6031_v29  ;;  %8306 = vmatpush3.bf16.msra.mxu0 %v9050_v37  ;;  %6628 = vmatprep.mubr.bf16.mxu1 %v6923_v48  ;;  %v9087_v24 = vld [vmem:[%s11148_s1 + $0x12b0] sm:$0xff]   ;;  %v57_v29 = vld [vmem:[%s11149_s0 + $0x120] sm:$0xff] }
 0x23d   :  { %8328 = vmatpush3.bf16.msra.mxu1 %v9051_v38  ;;  %8307 = vmatprep.subr.bf16.mxu0 %v9052_v39  ;;  %v6924_v31 = vcombine.low %v57_v29, %v57_v29  ;;  %v6925_v32 = vcombine.high %v57_v29, %v57_v29 }
 0x23e   :  { %8329 = vmatprep.subr.bf16.mxu1 %v9053_v40 }
 0x240   :  { %8308 = vmatpush3.bf16.msra.mxu0 %v9054_v41 }
 0x241   :  { %8330 = vmatpush3.bf16.msra.mxu1 %v9055_v42  ;;  %8337 = vmatprep.subr.bf16.mxu0 %v9060_v49 }
 0x242   :  { %8359 = vmatprep.subr.bf16.mxu1 %v9061_v50 }
 0x243   :  { %6589 = vmatmul.mubr.bf16.vlgmr.msra.gmra.mrb[68].mxu0 %v6920_v45 }
 0x244   :  { %6629 = vmatmul.mubr.bf16.vlgmr.msra.gmra.mrb[68].mxu1 %v6922_v47  ;;  %8338 = vmatpush3.bf16.msra.mxu0 %v9062_v51 }
 0x245   :  { %8360 = vmatpush3.bf16.msra.mxu1 %v9063_v52  ;;  %8339 = vmatprep.subr.bf16.mxu0 %v9064_v53 }
 0x246   :  { %8361 = vmatprep.subr.bf16.mxu1 %v9065_v54  ;;  %6668 = vmatprep.mubr.bf16.mxu0 %v6925_v32 }
 0x248   :  { %8340 = vmatpush3.bf16.msra.mxu0 %v9066_v55 }
 0x249   :  { %8362 = vmatpush3.bf16.msra.mxu1 %v9067_v56  ;;  %8341 = vmatprep.subr.bf16.mxu0 %v9068_v57 }
 0x24a   :  { %8363 = vmatprep.subr.bf16.mxu1 %v9069_v58 }
 0x24c   :  { %8342 = vmatpush3.bf16.msra.mxu0 %v9070_v59 }
 0x24d   :  { %8364 = vmatpush3.bf16.msra.mxu1 %v9071_v60  ;;  %8343 = vmatprep.subr.bf16.mxu0 %v9072_v61 }
 0x24e   :  { %8365 = vmatprep.subr.bf16.mxu1 %v9073_v62 }
 0x250   :  { %8344 = vmatpush3.bf16.msra.mxu0 %v9074_v63 }
 0x251   :  { %8366 = vmatpush3.bf16.msra.mxu1 %v9075_v0  ;;  %8345 = vmatprep.subr.bf16.mxu0 %v9076_v1 }
 0x252   :  { %8367 = vmatprep.subr.bf16.mxu1 %v9077_v2 }
 0x254   :  { %8346 = vmatpush3.bf16.msra.mxu0 %v9078_v4 }
 0x255   :  { %8368 = vmatpush3.bf16.msra.mxu1 %v9079_v6  ;;  %8347 = vmatprep.subr.bf16.mxu0 %v9080_v10  ;;  %v9098_v10 = vld [vmem:[%s11151_s3 + $0x10] sm:$0xff]  }
 0x256   :  { %v8045_v3 = vpop.f32.mrb[44].mxu0  ;;  %8369 = vmatprep.subr.bf16.mxu1 %v9081_v12  ;;  %v9100_v12 = vld [vmem:[%s11151_s3 + $0x20] sm:$0xff]  }
 0x257   :  { %v8067_v5 = vpop.f32.mrb[44].mxu1  ;;  %v8046_v7 = vpop.f32.mrb[45].mxu0 }
 0x258   :  { %v8047_v8 = vadd.f32 %v8046_v7, %v8045_v3  ;;  %v8068_v9 = vpop.f32.mrb[45].mxu1  ;;  %v8048_v13 = vpop.f32.mrb[46].mxu0  ;;  %8348 = vmatpush3.bf16.msra.mxu0 %v9082_v16  ;;  %v9096_v7 = vld [vmem:[%s11151_s3] sm:$0xff]  }
 0x259   :  { %v8069_v11 = vadd.f32 %v8068_v9, %v8067_v5  ;;  %v8070_v15 = vpop.f32.mrb[46].mxu1  ;;  %v8049_v18 = vpop.f32.mrb[47].mxu0  ;;  %8370 = vmatpush3.bf16.msra.mxu1 %v9083_v17  ;;  %8349 = vmatprep.subr.bf16.mxu0 %v9084_v21  ;;  %v9097_v9 = vld [vmem:[%s11151_s3 + $0x8] sm:$0xff]  }
 0x25a   :  { %v6111_v14 = vadd.f32 %v8047_v8, %v10983_v34  ;;  %v8071_v20 = vpop.f32.mrb[47].mxu1  ;;  %8371 = vmatprep.subr.bf16.mxu1 %v9085_v22  ;;  %v6927_v34 = vcombine.high %v58_v30, %v58_v30  ;;  %v9112_v8 = vmov 0.0   ;;  %v9101_v13 = vld [vmem:[%s11151_s3 + $0x28] sm:$0xff]  }
 0x25c   :  { %v6151_v19 = vadd.f32 %v8069_v11, %v6111_v14  ;;  %8350 = vmatpush3.bf16.msra.mxu0 %v9086_v23  ;;  %6708 = vmatprep.mubr.bf16.mxu1 %v6927_v34  ;;  %v9099_v11 = vld [vmem:[%s11151_s3 + $0x18] sm:$0xff]   ;;  %v9102_v14 = vld [vmem:[%s11151_s3 + $0x30] sm:$0xff]  }
 0x25d   :  { %8372 = vmatpush3.bf16.msra.mxu1 %v9087_v24  ;;  %8351 = vmatprep.subr.bf16.mxu0 %v9088_v25  ;;  %v9103_v24 = vld [vmem:[%s11151_s3 + $0x38] sm:$0xff]  }
 0x25e   :  { %8373 = vmatprep.subr.bf16.mxu1 %v9089_v26 }
 0x260   :  { %8352 = vmatpush3.bf16.msra.mxu0 %v9090_v27 }
 0x261   :  { %8374 = vmatpush3.bf16.msra.mxu1 %v9091_v28  ;;  %8390 = vmatprep.subr.bf16.mxu0 %v9112_v8 }
 0x263   :  { %6669 = vmatmul.mubr.bf16.vlgmr.msra.gmra.mrb[72].mxu0 %v6924_v31 }
 0x264   :  { %6709 = vmatmul.mubr.bf16.vlgmr.msra.gmra.mrb[72].mxu1 %v6926_v33  ;;  %8391 = vmatpush3.bf16.msra.mxu0 %v9096_v7 }
 0x265   :  { %8392 = vmatprep.subr.bf16.mxu0 %v9112_v8  ;;  %8406 = vmatprep.mubr.msk.bf16.mxu0 %vm9113_vm0, %v9112_v8 }
 0x268   :  { %8393 = vmatpush3.bf16.msra.mxu0 %v9097_v9 }
 0x269   :  { %8394 = vmatprep.subr.bf16.mxu0 %v9112_v8 }
 0x26c   :  { %8395 = vmatpush3.bf16.msra.mxu0 %v9098_v10 }
 0x26d   :  { %8396 = vmatprep.subr.bf16.mxu0 %v9112_v8 }
 0x270   :  { %8397 = vmatpush3.bf16.msra.mxu0 %v9099_v11 }
 0x271   :  { %8398 = vmatprep.subr.bf16.mxu0 %v9112_v8 }
 0x274   :  { %8399 = vmatpush3.bf16.msra.mxu0 %v9100_v12 }
 0x275   :  { %8400 = vmatprep.subr.bf16.mxu0 %v9112_v8 }
 0x276   :  { %v8089_v35 = vpop.f32.mrb[48].mxu0 }
 0x277   :  { %v8111_v36 = vpop.f32.mrb[48].mxu1  ;;  %v8090_v37 = vpop.f32.mrb[49].mxu0 }
 0x278   :  { %v8091_v38 = vadd.f32 %v8090_v37, %v8089_v35  ;;  %v8112_v39 = vpop.f32.mrb[49].mxu1  ;;  %v8092_v40 = vpop.f32.mrb[50].mxu0  ;;  %8401 = vmatpush3.bf16.msra.mxu0 %v9101_v13 }
 0x279   :  { %v8113_v41 = vadd.f32 %v8112_v39, %v8111_v36  ;;  %v8114_v42 = vpop.f32.mrb[50].mxu1  ;;  %v8093_v43 = vpop.f32.mrb[51].mxu0  ;;  %8402 = vmatprep.subr.bf16.mxu0 %v9112_v8 }
 0x27a   :  { %v6191_v44 = vadd.f32 %v8091_v38, %v6151_v19  ;;  %v8115_v45 = vpop.f32.mrb[51].mxu1 }
 0x27c   :  { %v6231_v46 = vadd.f32 %v8113_v41, %v6191_v44  ;;  %8403 = vmatpush3.bf16.msra.mxu0 %v9102_v14 }
 0x27d   :  { %8404 = vmatprep.subr.bf16.mxu0 %v9112_v8  ;;  %v7536_v8 = vld [vmem:[%s11152_s4] ss:$0 sm:$0xff] }
 0x280   :  { %8405 = vmatpush3.bf16.msra.mxu0 %v9103_v24 }
 0x296   :  { %v8133_v47 = vpop.f32.mrb[52].mxu0 }
 0x297   :  { %v8155_v48 = vpop.f32.mrb[52].mxu1  ;;  %v8134_v49 = vpop.f32.mrb[53].mxu0 }
 0x298   :  { %v8156_v50 = vpop.f32.mrb[53].mxu1  ;;  %v8135_v51 = vadd.f32 %v8134_v49, %v8133_v47  ;;  %v8136_v53 = vpop.f32.mrb[54].mxu0 }
 0x299   :  { %v8157_v52 = vadd.f32 %v8156_v50, %v8155_v48  ;;  %v8158_v54 = vpop.f32.mrb[54].mxu1  ;;  %v8137_v55 = vpop.f32.mrb[55].mxu0 }
 0x29a   :  { %v8159_v56 = vpop.f32.mrb[55].mxu1  ;;  %v6271_v57 = vadd.f32 %v8135_v51, %v6231_v46 }
 0x29c   :  { %v6311_v58 = vadd.f32 %v8157_v52, %v6271_v57 }
 0x2b6   :  { %v8177_v59 = vpop.f32.mrb[56].mxu0 }
 0x2b7   :  { %v8199_v60 = vpop.f32.mrb[56].mxu1  ;;  %v8178_v61 = vpop.f32.mrb[57].mxu0 }
 0x2b8   :  { %v8179_v62 = vadd.f32 %v8178_v61, %v8177_v59  ;;  %v8200_v63 = vpop.f32.mrb[57].mxu1  ;;  %v8180_v0 = vpop.f32.mrb[58].mxu0 }
 0x2b9   :  { %v8201_v1 = vadd.f32 %v8200_v63, %v8199_v60  ;;  %v8202_v2 = vpop.f32.mrb[58].mxu1  ;;  %v8181_v3 = vpop.f32.mrb[59].mxu0 }
 0x2ba   :  { %v6351_v4 = vadd.f32 %v8179_v62, %v6311_v58  ;;  %v8203_v5 = vpop.f32.mrb[59].mxu1 }
 0x2bc   :  { %v6391_v6 = vadd.f32 %v8201_v1, %v6351_v4 }
 0x2d6   :  { %v8221_v15 = vpop.f32.mrb[60].mxu0 }
 0x2d7   :  { %v8243_v16 = vpop.f32.mrb[60].mxu1  ;;  %v8222_v17 = vpop.f32.mrb[61].mxu0 }
 0x2d8   :  { %v8223_v18 = vadd.f32 %v8222_v17, %v8221_v15  ;;  %v8244_v19 = vpop.f32.mrb[61].mxu1  ;;  %v8224_v20 = vpop.f32.mrb[62].mxu0 }
 0x2d9   :  { %v8245_v21 = vadd.f32 %v8244_v19, %v8243_v16  ;;  %v8246_v22 = vpop.f32.mrb[62].mxu1  ;;  %v8225_v23 = vpop.f32.mrb[63].mxu0 }
 0x2da   :  { %v6431_v25 = vadd.f32 %v8223_v18, %v6391_v6  ;;  %v8247_v26 = vpop.f32.mrb[63].mxu1  ;;  %v6833_v6 = vlaneseq }
 0x2dc   :  { %v6471_v27 = vadd.f32 %v8245_v21, %v6431_v25  ;;  %v6834_v7 = vand.u32 127, %v6833_v6 }
 0x2de   :  { %vm6835_vm1 = vcmp.lt.s32.totalorder %v6834_v7, 50 }
 0x2f6   :  { %v8265_v28 = vpop.f32.mrb[64].mxu0 }
 0x2f7   :  { %v8287_v29 = vpop.f32.mrb[64].mxu1  ;;  %v8266_v30 = vpop.f32.mrb[65].mxu0 }
 0x2f8   :  { %v8267_v31 = vadd.f32 %v8266_v30, %v8265_v28  ;;  %v8288_v32 = vpop.f32.mrb[65].mxu1  ;;  %v8268_v33 = vpop.f32.mrb[66].mxu0 }
 0x2f9   :  { %v8289_v34 = vadd.f32 %v8288_v32, %v8287_v29  ;;  %v8290_v35 = vpop.f32.mrb[66].mxu1  ;;  %v8269_v36 = vpop.f32.mrb[67].mxu0 }
 0x2fa   :  { %v6511_v37 = vadd.f32 %v8267_v31, %v6471_v27  ;;  %v8291_v38 = vpop.f32.mrb[67].mxu1 }
 0x2fc   :  { %v6551_v39 = vadd.f32 %v8289_v34, %v6511_v37 }
 0x316   :  { %v8309_v40 = vpop.f32.mrb[68].mxu0 }
 0x317   :  { %v8331_v41 = vpop.f32.mrb[68].mxu1  ;;  %v8310_v42 = vpop.f32.mrb[69].mxu0 }
 0x318   :  { %v8311_v43 = vadd.f32 %v8310_v42, %v8309_v40  ;;  %v8332_v44 = vpop.f32.mrb[69].mxu1  ;;  %v8312_v45 = vpop.f32.mrb[70].mxu0 }
 0x319   :  { %v8333_v46 = vadd.f32 %v8332_v44, %v8331_v41  ;;  %v8334_v47 = vpop.f32.mrb[70].mxu1  ;;  %v8313_v48 = vpop.f32.mrb[71].mxu0 }
 0x31a   :  { %v6591_v49 = vadd.f32 %v8311_v43, %v6551_v39  ;;  %v8335_v50 = vpop.f32.mrb[71].mxu1 }
 0x31c   :  { %v6631_v51 = vadd.f32 %v8333_v46, %v6591_v49 }
 0x336   :  { %v8353_v52 = vpop.f32.mrb[72].mxu0 }
 0x337   :  { %v8375_v53 = vpop.f32.mrb[72].mxu1  ;;  %v8354_v54 = vpop.f32.mrb[73].mxu0 }
 0x338   :  { %v8355_v55 = vadd.f32 %v8354_v54, %v8353_v52  ;;  %v8376_v56 = vpop.f32.mrb[73].mxu1  ;;  %v8356_v57 = vpop.f32.mrb[74].mxu0 }
 0x339   :  { %v8377_v58 = vadd.f32 %v8376_v56, %v8375_v53  ;;  %v8378_v59 = vpop.f32.mrb[74].mxu1  ;;  %v8357_v60 = vpop.f32.mrb[75].mxu0 }
 0x33a   :  { %v6671_v61 = vadd.f32 %v8355_v55, %v6631_v51  ;;  %v8379_v62 = vpop.f32.mrb[75].mxu1 }
 0x33c   :  { %v6711_v63 = vadd.f32 %v8377_v58, %v6671_v61 }
 0x33e   :  { %v6716_v0 = vsub.f32 0.0, %v6711_v63 }
 0x340   :  { %v6717_v1 = vmul.f32 1.442695, %v6716_v0 }
 0x342   :  { %9104 = vpow2.f32 %v6717_v1 }
 0x34c   :  { %v9105_v2 = vpop.eup %9104 }
 0x34d   :  { %v6719_v3 = vadd.f32 1.0, %v9105_v2 }
 0x34f   :  { %9106 = vrcp.f32 %v6719_v3 }
 0x359   :  { %v9107_v4 = vpop.eup %9106 }
 0x35a   :  { %v6721_v5 = vpack.c.bf16 %v9107_v4, %v9107_v4 }
 0x35c   :  { %8407 = vmatmul.mubr.bf16.vlgmr.msra.gmra.mrb[76].mxu0 %v6721_v5 }
 0x42f   :  { %v6827_v9 = vpop.f32.mrb[76].mxu0 }
 0x430   :  { %v6828_v10 = vadd.f32 %v7536_v8, %v6827_v9  ;;  %v8408_v11 = vpop.f32.mrb[77].mxu0 }
 0x431   :  { %v6830_v12 = vpop.f32.mrb[78].mxu0 }
 0x432   :  { %v8409_v13 = vpop.f32.mrb[79].mxu0  ;;  %v6836_v14 = vsel %vm6835_vm1, %v6828_v10, -1e+30 }
 0x433   :  { %6837 = vmax.xlane.f32.xlu0 %v6836_v14 }
 0x4c0   :  { %v6838_v15 = vpop.xlane.xlu0 %6837 }
 0x4c1   :  { %v6839_v16 = vsub.f32 %v6836_v14, %v6838_v15 }
 0x4c3   :  { %v6840_v17 = vmul.f32 1.442695, %v6839_v16 }
 0x4c5   :  { %9108 = vpow2.f32 %v6840_v17 }
 0x4cf   :  { %v9109_v18 = vpop.eup %9108 }
 0x4d0   :  { %6842 = vadd.xlane.f32.xlu0 %v9109_v18 }
 0x55d   :  { %v6843_v19 = vpop.xlane.xlu0 %6842 }
 0x55e   :  { %9110 = vrcp.f32 %v6843_v19 }
 0x568   :  { %v9111_v20 = vpop.eup %9110 }
 0x569   :  { %v6845_v21 = vmul.f32 %v9111_v20, %v9109_v18 }
 0x56b   :  { %6846 = vst [vmem:[%s11153_s5] sm:$0xff] %v6845_v21 }

</bundles_post_ra>
